<compile_context>
chip_gen: v7x
topology: tpu7x:2x2x1
jax: 0.10.0
libtpu: 0.0.40
codegen_flags: <defaults>
</compile_context>

<pallas_src>
import functools

import jax
import jax.numpy as jnp
from jax.experimental import pallas as pl
from jax.experimental.pallas import tpu as pltpu

CLAMP_MIN = -1.0   # torch.clamp_min(v1, self.min)
CLAMP_MAX = 0.5    # torch.clamp_max(v2, self.max)

C_OUT = 42         # channels after the first conv (and of the residual sum)
C_PAD = 128        # lane-padded channel width
K1 = 6 * 6 * 2     # im2col contraction of the first conv (kh*kw*Cin = 72)


def _round_up(x, m):
    return (x + m - 1) // m * m


# ----------------------------- glue (plain JAX) -----------------------------

def im2col(x, kh, kw, stride, pad):
    """x: (N, H, W, C) -> patches (N, Ho, Wo, kh*kw*C), plus Ho, Wo."""
    x = jnp.pad(x, ((0, 0), (pad, pad), (pad, pad), (0, 0)))
    n, hp, wp, c = x.shape
    ho = (hp - kh) // stride + 1
    wo = (wp - kw) // stride + 1
    pieces = []
    for i in range(kh):
        for j in range(kw):
            pieces.append(x[:, i:i + stride * ho:stride,
                            j:j + stride * wo:stride, :])
    p = jnp.stack(pieces, axis=3)                     # (N, Ho, Wo, kh*kw, C)
    return p.reshape(n, ho, wo, kh * kw * c), ho, wo


def _vmem_spec():
    return pl.BlockSpec(memory_space=pltpu.MemorySpace.VMEM)


# ------------------------------ Pallas kernel --------------------------------

def _fused_model_kernel(taps, p1_ref, w1_ref, w2_ref, o_ref, v1_ref):
    """Whole forward pass in one kernel.

    p1_ref : (R1, 128) bf16  conv1 im2col patches laid out on the zero-ring-
                             padded (gph x gpw) grid, + constant-one flag
                             channel at column K1.
    w1_ref : (128, 128) bf16 conv1 weights (bias folded in via the flag row).
    w2_ref : (9, 128, 128) bf16 merged 3x3 tap weights (wa+wb, +I and +b_sum
                             folded into the centre tap).
    o_ref  : (RO, 128) f32   clamped output on the padded-grid row layout.
    v1_ref : (R1, 128) f32   VMEM scratch holding v1 on the padded grid.
    """
    ro = o_ref.shape[0]

    # Stage 1: conv1 (+bias) -> padded-grid scratch, kept in VMEM only.
    v1_ref[...] = jnp.dot(p1_ref[...], w1_ref[...],
                          preferred_element_type=jnp.float32)

    # Stage 2: 3x3/s1/p1 conv of v1 as 9 shifted MXU matmuls.  Residual (+v1)
    # and the merged bias are already folded into the centre-tap weights.
    for t, off in enumerate(taps):
        lhs = v1_ref[off:off + ro, :].astype(jnp.bfloat16)
        contrib = jnp.dot(lhs, w2_ref[t], preferred_element_type=jnp.float32)
        if t == 0:
            o_ref[...] = contrib
        else:
            o_ref[...] = o_ref[...] + contrib

    # Epilogue: clamp_min then clamp_max (f32).
    o_ref[...] = jnp.minimum(jnp.maximum(o_ref[...], CLAMP_MIN), CLAMP_MAX)


# ------------------------------ wrapper ---------------------------------------

@jax.jit
def model_forward(x, params):
    w1, b1, wa, ba, wb, bb = params
    n = x.shape[0]

    # ---- conv1 im2col (cheap, on the tiny raw input) ----
    patches, ho, wo = im2col(x, 6, 6, 2, 2)            # (N, 31, 31, 72)
    gph, gpw = ho + 2, wo + 2                          # zero ring for the 3x3
    cells = n * gph * gpw
    ro = _round_up(cells, 8)                           # rows computed
    r1 = ro + _round_up(2 * gpw + 2, 8)                # scratch rows (+shift slack)
    taps = tuple(di * gpw + dj for di in range(3) for dj in range(3))

    # patches on the padded grid, lane-padded to 128, with a constant-one
    # "flag" channel at column K1 (used to fold biases into the weights).
    flag = jnp.ones((n, ho, wo, 1), jnp.float32)
    zpad = jnp.zeros((n, ho, wo, C_PAD - K1 - 1), jnp.float32)
    p1 = jnp.concatenate([patches, flag, zpad], axis=-1)      # (N, 31, 31, 128)
    p1 = jnp.pad(p1, ((0, 0), (1, 1), (1, 1), (0, 0)))        # (N, 33, 33, 128)
    p1 = p1.reshape(cells, C_PAD)
    p1 = jnp.pad(p1, ((0, r1 - cells), (0, 0))).astype(jnp.bfloat16)

    # conv1 weights packed to (128, 128); bias via the flag row; the flag is
    # also propagated to channel C_OUT for use by the second stage's bias.
    w1_full = jnp.zeros((C_PAD, C_PAD), jnp.float32)
    w1_full = w1_full.at[:K1, :C_OUT].set(w1)
    w1_full = w1_full.at[K1, :C_OUT].set(b1)
    w1_full = w1_full.at[K1, C_OUT].set(1.0)
    w1_full = w1_full.astype(jnp.bfloat16)

    # Merge conv_a and conv_b:  v1 + conv_a(v1) + conv_b(v1)
    #   == v1 + conv(v1; wa+wb) + (ba+bb)
    # Residual -> +I on the centre tap; merged bias -> flag-channel row.
    w_sum = wa + wb                                    # (3, 3, 42, 42)
    b_sum = ba + bb
    w2 = jnp.zeros((3, 3, C_PAD, C_PAD), jnp.float32)
    w2 = w2.at[:, :, :C_OUT, :C_OUT].set(w_sum)
    w2 = w2.at[1, 1, :C_OUT, :C_OUT].add(jnp.eye(C_OUT, dtype=jnp.float32))
    w2 = w2.at[1, 1, C_OUT, :C_OUT].set(b_sum)
    w2 = w2.reshape(9, C_PAD, C_PAD).astype(jnp.bfloat16)

    out_flat = pl.pallas_call(
        functools.partial(_fused_model_kernel, taps),
        out_shape=jax.ShapeDtypeStruct((ro, C_PAD), jnp.float32),
        in_specs=[_vmem_spec(), _vmem_spec(), _vmem_spec()],
        out_specs=_vmem_spec(),
        scratch_shapes=[pltpu.VMEM((r1, C_PAD), jnp.float32)],
    )(p1, w1_full, w2)

    # Drop the padded ring / padded rows / padded channels.
    out = out_flat[:cells].reshape(n, gph, gpw, C_PAD)[:, :ho, :wo, :C_OUT]
    return out


# ------------------------------ param init ------------------------------------

def init_params(key):
    """Deterministic PyTorch-style uniform(+-1/sqrt(fan_in)) init."""
    k1 = 6 * 6 * 2          # fan_in of conv
    k2 = 3 * 3 * C_OUT      # fan_in of conv_a / conv_b (unified to 42 in)
    ks = jax.random.split(key, 6)

    def u(k, shape, fan_in):
        bound = 1.0 / (fan_in ** 0.5)
        return jax.random.uniform(k, shape, jnp.float32, -bound, bound)

    w1 = u(ks[0], (k1, C_OUT), k1)              # (72, 42): im2col-K x Cout
    b1 = u(ks[1], (C_OUT,), k1)
    wa = u(ks[2], (3, 3, C_OUT, C_OUT), k2)     # (kh, kw, Cin, Cout)
    ba = u(ks[3], (C_OUT,), k2)
    wb = u(ks[4], (3, 3, C_OUT, C_OUT), k2)
    bb = u(ks[5], (C_OUT,), k2)
    return (w1, b1, wa, ba, wb, bb)


if __name__ == "__main__":
    key = jax.random.PRNGKey(0)
    k_x, k_p = jax.random.split(key)

    # PyTorch reference input: torch.randn(1, 2, 62, 62) (NCHW) -> NHWC here.
    x = jax.random.normal(k_x, (1, 62, 62, 2), dtype=jnp.float32)
    params = init_params(k_p)

    out = model_forward(x, params)
    jax.block_until_ready(out)

    assert out.shape == (1, 31, 31, C_OUT), out.shape
    assert float(jnp.max(out)) <= CLAMP_MAX + 1e-6
    assert float(jnp.min(out)) >= CLAMP_MIN - 1e-6
    print("KERNEL_OK")
</pallas_src>

<mosaic_0001>
module attributes {stable_mosaic.version = 11 : i64} {
  func.func @_fused_model_kernel(%arg0: memref<1168x128xbf16, #tpu.memory_space<vmem>>, %arg1: memref<128x128xbf16, #tpu.memory_space<vmem>>, %arg2: memref<9x128x128xbf16, #tpu.memory_space<vmem>>, %arg3: memref<1096x128xf32, #tpu.memory_space<vmem>>, %arg4: memref<1168x128xf32, #tpu.memory_space<vmem>>) attributes {dimension_semantics = [], scalar_prefetch = 0 : i64, scratch_operands = 1 : i64, tpu.core_type = #tpu.core_type<tc>} {
    %c0 = arith.constant 0 : index
    %c0_0 = arith.constant 0 : index
    %0 = vector.load %arg0[%c0, %c0_0] : memref<1168x128xbf16, #tpu.memory_space<vmem>>, vector<1168x128xbf16>
    %c0_1 = arith.constant 0 : index
    %c0_2 = arith.constant 0 : index
    %1 = vector.load %arg1[%c0_1, %c0_2] : memref<128x128xbf16, #tpu.memory_space<vmem>>, vector<128x128xbf16>
    %cst = arith.constant dense<0.000000e+00> : vector<1168x128xf32>
    %2 = tpu.matmul %0, %1, %cst {dimension_numbers = #tpu.dot_dimension_numbers<[1], [0], [0], [1], [0, 0, 1, 1], [], []>} : vector<1168x128xbf16>, vector<128x128xbf16>, vector<1168x128xf32> -> vector<1168x128xf32>
    %c0_3 = arith.constant 0 : index
    %c0_4 = arith.constant 0 : index
    %3 = vector.load %arg4[%c0_3, %c0_4] : memref<1168x128xf32, #tpu.memory_space<vmem>>, vector<1168x128xf32>
    tpu.vector_store %arg4[%c0_3, %c0_4], %2 {strides = array<i32>} : memref<1168x128xf32, #tpu.memory_space<vmem>>, vector<1168x128xf32>,
    %c0_5 = arith.constant 0 : index
    %c0_6 = arith.constant 0 : index
    %4 = vector.load %arg4[%c0_5, %c0_6] : memref<1168x128xf32, #tpu.memory_space<vmem>>, vector<1096x128xf32>
    %5 = arith.truncf %4 : vector<1096x128xf32> to vector<1096x128xbf16>
    %c0_7 = arith.constant 0 : index
    %c0_8 = arith.constant 0 : index
    %c0_9 = arith.constant 0 : index
    %6 = vector.load %arg2[%c0_7, %c0_8, %c0_9] : memref<9x128x128xbf16, #tpu.memory_space<vmem>>, vector<1x128x128xbf16>
    %7 = vector.shape_cast %6 : vector<1x128x128xbf16> to vector<128x128xbf16>
    %cst_10 = arith.constant dense<0.000000e+00> : vector<1096x128xf32>
    %8 = tpu.matmul %5, %7, %cst_10 {dimension_numbers = #tpu.dot_dimension_numbers<[1], [0], [0], [1], [0, 0, 1, 1], [], []>} : vector<1096x128xbf16>, vector<128x128xbf16>, vector<1096x128xf32> -> vector<1096x128xf32>
    %c0_11 = arith.constant 0 : index
    %c0_12 = arith.constant 0 : index
    %9 = vector.load %arg3[%c0_11, %c0_12] : memref<1096x128xf32, #tpu.memory_space<vmem>>, vector<1096x128xf32>
    tpu.vector_store %arg3[%c0_11, %c0_12], %8 {strides = array<i32>} : memref<1096x128xf32, #tpu.memory_space<vmem>>, vector<1096x128xf32>,
    %c1 = arith.constant 1 : index
    %c0_13 = arith.constant 0 : index
    %10 = vector.load %arg4[%c1, %c0_13] : memref<1168x128xf32, #tpu.memory_space<vmem>>, vector<1096x128xf32>
    %11 = arith.truncf %10 : vector<1096x128xf32> to vector<1096x128xbf16>
    %c1_14 = arith.constant 1 : index
    %c0_15 = arith.constant 0 : index
    %c0_16 = arith.constant 0 : index
    %12 = vector.load %arg2[%c1_14, %c0_15, %c0_16] : memref<9x128x128xbf16, #tpu.memory_space<vmem>>, vector<1x128x128xbf16>
    %13 = vector.shape_cast %12 : vector<1x128x128xbf16> to vector<128x128xbf16>
    %cst_17 = arith.constant dense<0.000000e+00> : vector<1096x128xf32>
    %14 = tpu.matmul %11, %13, %cst_17 {dimension_numbers = #tpu.dot_dimension_numbers<[1], [0], [0], [1], [0, 0, 1, 1], [], []>} : vector<1096x128xbf16>, vector<128x128xbf16>, vector<1096x128xf32> -> vector<1096x128xf32>
    %c0_18 = arith.constant 0 : index
    %c0_19 = arith.constant 0 : index
    %15 = vector.load %arg3[%c0_18, %c0_19] : memref<1096x128xf32, #tpu.memory_space<vmem>>, vector<1096x128xf32>
    %16 = arith.addf %15, %14 : vector<1096x128xf32>
    %c0_20 = arith.constant 0 : index
    %c0_21 = arith.constant 0 : index
    %17 = vector.load %arg3[%c0_20, %c0_21] : memref<1096x128xf32, #tpu.memory_space<vmem>>, vector<1096x128xf32>
    tpu.vector_store %arg3[%c0_20, %c0_21], %16 {strides = array<i32>} : memref<1096x128xf32, #tpu.memory_space<vmem>>, vector<1096x128xf32>,
    %c2 = arith.constant 2 : index
    %c0_22 = arith.constant 0 : index
    %18 = vector.load %arg4[%c2, %c0_22] : memref<1168x128xf32, #tpu.memory_space<vmem>>, vector<1096x128xf32>
    %19 = arith.truncf %18 : vector<1096x128xf32> to vector<1096x128xbf16>
    %c2_23 = arith.constant 2 : index
    %c0_24 = arith.constant 0 : index
    %c0_25 = arith.constant 0 : index
    %20 = vector.load %arg2[%c2_23, %c0_24, %c0_25] : memref<9x128x128xbf16, #tpu.memory_space<vmem>>, vector<1x128x128xbf16>
    %21 = vector.shape_cast %20 : vector<1x128x128xbf16> to vector<128x128xbf16>
    %cst_26 = arith.constant dense<0.000000e+00> : vector<1096x128xf32>
    %22 = tpu.matmul %19, %21, %cst_26 {dimension_numbers = #tpu.dot_dimension_numbers<[1], [0], [0], [1], [0, 0, 1, 1], [], []>} : vector<1096x128xbf16>, vector<128x128xbf16>, vector<1096x128xf32> -> vector<1096x128xf32>
    %c0_27 = arith.constant 0 : index
    %c0_28 = arith.constant 0 : index
    %23 = vector.load %arg3[%c0_27, %c0_28] : memref<1096x128xf32, #tpu.memory_space<vmem>>, vector<1096x128xf32>
    %24 = arith.addf %23, %22 : vector<1096x128xf32>
    %c0_29 = arith.constant 0 : index
    %c0_30 = arith.constant 0 : index
    %25 = vector.load %arg3[%c0_29, %c0_30] : memref<1096x128xf32, #tpu.memory_space<vmem>>, vector<1096x128xf32>
    tpu.vector_store %arg3[%c0_29, %c0_30], %24 {strides = array<i32>} : memref<1096x128xf32, #tpu.memory_space<vmem>>, vector<1096x128xf32>,
    %c33 = arith.constant 33 : index
    %c0_31 = arith.constant 0 : index
    %26 = vector.load %arg4[%c33, %c0_31] : memref<1168x128xf32, #tpu.memory_space<vmem>>, vector<1096x128xf32>
    %27 = arith.truncf %26 : vector<1096x128xf32> to vector<1096x128xbf16>
    %c3 = arith.constant 3 : index
    %c0_32 = arith.constant 0 : index
    %c0_33 = arith.constant 0 : index
    %28 = vector.load %arg2[%c3, %c0_32, %c0_33] : memref<9x128x128xbf16, #tpu.memory_space<vmem>>, vector<1x128x128xbf16>
    %29 = vector.shape_cast %28 : vector<1x128x128xbf16> to vector<128x128xbf16>
    %cst_34 = arith.constant dense<0.000000e+00> : vector<1096x128xf32>
    %30 = tpu.matmul %27, %29, %cst_34 {dimension_numbers = #tpu.dot_dimension_numbers<[1], [0], [0], [1], [0, 0, 1, 1], [], []>} : vector<1096x128xbf16>, vector<128x128xbf16>, vector<1096x128xf32> -> vector<1096x128xf32>
    %c0_35 = arith.constant 0 : index
    %c0_36 = arith.constant 0 : index
    %31 = vector.load %arg3[%c0_35, %c0_36] : memref<1096x128xf32, #tpu.memory_space<vmem>>, vector<1096x128xf32>
    %32 = arith.addf %31, %30 : vector<1096x128xf32>
    %c0_37 = arith.constant 0 : index
    %c0_38 = arith.constant 0 : index
    %33 = vector.load %arg3[%c0_37, %c0_38] : memref<1096x128xf32, #tpu.memory_space<vmem>>, vector<1096x128xf32>
    tpu.vector_store %arg3[%c0_37, %c0_38], %32 {strides = array<i32>} : memref<1096x128xf32, #tpu.memory_space<vmem>>, vector<1096x128xf32>,
    %c34 = arith.constant 34 : index
    %c0_39 = arith.constant 0 : index
    %34 = vector.load %arg4[%c34, %c0_39] : memref<1168x128xf32, #tpu.memory_space<vmem>>, vector<1096x128xf32>
    %35 = arith.truncf %34 : vector<1096x128xf32> to vector<1096x128xbf16>
    %c4 = arith.constant 4 : index
    %c0_40 = arith.constant 0 : index
    %c0_41 = arith.constant 0 : index
    %36 = vector.load %arg2[%c4, %c0_40, %c0_41] : memref<9x128x128xbf16, #tpu.memory_space<vmem>>, vector<1x128x128xbf16>
    %37 = vector.shape_cast %36 : vector<1x128x128xbf16> to vector<128x128xbf16>
    %cst_42 = arith.constant dense<0.000000e+00> : vector<1096x128xf32>
    %38 = tpu.matmul %35, %37, %cst_42 {dimension_numbers = #tpu.dot_dimension_numbers<[1], [0], [0], [1], [0, 0, 1, 1], [], []>} : vector<1096x128xbf16>, vector<128x128xbf16>, vector<1096x128xf32> -> vector<1096x128xf32>
    %c0_43 = arith.constant 0 : index
    %c0_44 = arith.constant 0 : index
    %39 = vector.load %arg3[%c0_43, %c0_44] : memref<1096x128xf32, #tpu.memory_space<vmem>>, vector<1096x128xf32>
    %40 = arith.addf %39, %38 : vector<1096x128xf32>
    %c0_45 = arith.constant 0 : index
    %c0_46 = arith.constant 0 : index
    %41 = vector.load %arg3[%c0_45, %c0_46] : memref<1096x128xf32, #tpu.memory_space<vmem>>, vector<1096x128xf32>
    tpu.vector_store %arg3[%c0_45, %c0_46], %40 {strides = array<i32>} : memref<1096x128xf32, #tpu.memory_space<vmem>>, vector<1096x128xf32>,
    %c35 = arith.constant 35 : index
    %c0_47 = arith.constant 0 : index
    %42 = vector.load %arg4[%c35, %c0_47] : memref<1168x128xf32, #tpu.memory_space<vmem>>, vector<1096x128xf32>
    %43 = arith.truncf %42 : vector<1096x128xf32> to vector<1096x128xbf16>
    %c5 = arith.constant 5 : index
    %c0_48 = arith.constant 0 : index
    %c0_49 = arith.constant 0 : index
    %44 = vector.load %arg2[%c5, %c0_48, %c0_49] : memref<9x128x128xbf16, #tpu.memory_space<vmem>>, vector<1x128x128xbf16>
    %45 = vector.shape_cast %44 : vector<1x128x128xbf16> to vector<128x128xbf16>
    %cst_50 = arith.constant dense<0.000000e+00> : vector<1096x128xf32>
    %46 = tpu.matmul %43, %45, %cst_50 {dimension_numbers = #tpu.dot_dimension_numbers<[1], [0], [0], [1], [0, 0, 1, 1], [], []>} : vector<1096x128xbf16>, vector<128x128xbf16>, vector<1096x128xf32> -> vector<1096x128xf32>
    %c0_51 = arith.constant 0 : index
    %c0_52 = arith.constant 0 : index
    %47 = vector.load %arg3[%c0_51, %c0_52] : memref<1096x128xf32, #tpu.memory_space<vmem>>, vector<1096x128xf32>
    %48 = arith.addf %47, %46 : vector<1096x128xf32>
    %c0_53 = arith.constant 0 : index
    %c0_54 = arith.constant 0 : index
    %49 = vector.load %arg3[%c0_53, %c0_54] : memref<1096x128xf32, #tpu.memory_space<vmem>>, vector<1096x128xf32>
    tpu.vector_store %arg3[%c0_53, %c0_54], %48 {strides = array<i32>} : memref<1096x128xf32, #tpu.memory_space<vmem>>, vector<1096x128xf32>,
    %c66 = arith.constant 66 : index
    %c0_55 = arith.constant 0 : index
    %50 = vector.load %arg4[%c66, %c0_55] : memref<1168x128xf32, #tpu.memory_space<vmem>>, vector<1096x128xf32>
    %51 = arith.truncf %50 : vector<1096x128xf32> to vector<1096x128xbf16>
    %c6 = arith.constant 6 : index
    %c0_56 = arith.constant 0 : index
    %c0_57 = arith.constant 0 : index
    %52 = vector.load %arg2[%c6, %c0_56, %c0_57] : memref<9x128x128xbf16, #tpu.memory_space<vmem>>, vector<1x128x128xbf16>
    %53 = vector.shape_cast %52 : vector<1x128x128xbf16> to vector<128x128xbf16>
    %cst_58 = arith.constant dense<0.000000e+00> : vector<1096x128xf32>
    %54 = tpu.matmul %51, %53, %cst_58 {dimension_numbers = #tpu.dot_dimension_numbers<[1], [0], [0], [1], [0, 0, 1, 1], [], []>} : vector<1096x128xbf16>, vector<128x128xbf16>, vector<1096x128xf32> -> vector<1096x128xf32>
    %c0_59 = arith.constant 0 : index
    %c0_60 = arith.constant 0 : index
    %55 = vector.load %arg3[%c0_59, %c0_60] : memref<1096x128xf32, #tpu.memory_space<vmem>>, vector<1096x128xf32>
    %56 = arith.addf %55, %54 : vector<1096x128xf32>
    %c0_61 = arith.constant 0 : index
    %c0_62 = arith.constant 0 : index
    %57 = vector.load %arg3[%c0_61, %c0_62] : memref<1096x128xf32, #tpu.memory_space<vmem>>, vector<1096x128xf32>
    tpu.vector_store %arg3[%c0_61, %c0_62], %56 {strides = array<i32>} : memref<1096x128xf32, #tpu.memory_space<vmem>>, vector<1096x128xf32>,
    %c67 = arith.constant 67 : index
    %c0_63 = arith.constant 0 : index
    %58 = vector.load %arg4[%c67, %c0_63] : memref<1168x128xf32, #tpu.memory_space<vmem>>, vector<1096x128xf32>
    %59 = arith.truncf %58 : vector<1096x128xf32> to vector<1096x128xbf16>
    %c7 = arith.constant 7 : index
    %c0_64 = arith.constant 0 : index
    %c0_65 = arith.constant 0 : index
    %60 = vector.load %arg2[%c7, %c0_64, %c0_65] : memref<9x128x128xbf16, #tpu.memory_space<vmem>>, vector<1x128x128xbf16>
    %61 = vector.shape_cast %60 : vector<1x128x128xbf16> to vector<128x128xbf16>
    %cst_66 = arith.constant dense<0.000000e+00> : vector<1096x128xf32>
    %62 = tpu.matmul %59, %61, %cst_66 {dimension_numbers = #tpu.dot_dimension_numbers<[1], [0], [0], [1], [0, 0, 1, 1], [], []>} : vector<1096x128xbf16>, vector<128x128xbf16>, vector<1096x128xf32> -> vector<1096x128xf32>
    %c0_67 = arith.constant 0 : index
    %c0_68 = arith.constant 0 : index
    %63 = vector.load %arg3[%c0_67, %c0_68] : memref<1096x128xf32, #tpu.memory_space<vmem>>, vector<1096x128xf32>
    %64 = arith.addf %63, %62 : vector<1096x128xf32>
    %c0_69 = arith.constant 0 : index
    %c0_70 = arith.constant 0 : index
    %65 = vector.load %arg3[%c0_69, %c0_70] : memref<1096x128xf32, #tpu.memory_space<vmem>>, vector<1096x128xf32>
    tpu.vector_store %arg3[%c0_69, %c0_70], %64 {strides = array<i32>} : memref<1096x128xf32, #tpu.memory_space<vmem>>, vector<1096x128xf32>,
    %c68 = arith.constant 68 : index
    %c0_71 = arith.constant 0 : index
    %66 = vector.load %arg4[%c68, %c0_71] : memref<1168x128xf32, #tpu.memory_space<vmem>>, vector<1096x128xf32>
    %67 = arith.truncf %66 : vector<1096x128xf32> to vector<1096x128xbf16>
    %c8 = arith.constant 8 : index
    %c0_72 = arith.constant 0 : index
    %c0_73 = arith.constant 0 : index
    %68 = vector.load %arg2[%c8, %c0_72, %c0_73] : memref<9x128x128xbf16, #tpu.memory_space<vmem>>, vector<1x128x128xbf16>
    %69 = vector.shape_cast %68 : vector<1x128x128xbf16> to vector<128x128xbf16>
    %cst_74 = arith.constant dense<0.000000e+00> : vector<1096x128xf32>
    %70 = tpu.matmul %67, %69, %cst_74 {dimension_numbers = #tpu.dot_dimension_numbers<[1], [0], [0], [1], [0, 0, 1, 1], [], []>} : vector<1096x128xbf16>, vector<128x128xbf16>, vector<1096x128xf32> -> vector<1096x128xf32>
    %c0_75 = arith.constant 0 : index
    %c0_76 = arith.constant 0 : index
    %71 = vector.load %arg3[%c0_75, %c0_76] : memref<1096x128xf32, #tpu.memory_space<vmem>>, vector<1096x128xf32>
    %72 = arith.addf %71, %70 : vector<1096x128xf32>
    %c0_77 = arith.constant 0 : index
    %c0_78 = arith.constant 0 : index
    %73 = vector.load %arg3[%c0_77, %c0_78] : memref<1096x128xf32, #tpu.memory_space<vmem>>, vector<1096x128xf32>
    tpu.vector_store %arg3[%c0_77, %c0_78], %72 {strides = array<i32>} : memref<1096x128xf32, #tpu.memory_space<vmem>>, vector<1096x128xf32>,
    %c0_79 = arith.constant 0 : index
    %c0_80 = arith.constant 0 : index
    %74 = vector.load %arg3[%c0_79, %c0_80] : memref<1096x128xf32, #tpu.memory_space<vmem>>, vector<1096x128xf32>
    %cst_81 = arith.constant -1.000000e+00 : f32
    %75 = vector.broadcast %cst_81 : f32 to vector<1096x128xf32>
    %76 = arith.maximumf %74, %75 : vector<1096x128xf32>
    %cst_82 = arith.constant 5.000000e-01 : f32
    %77 = vector.broadcast %cst_82 : f32 to vector<1096x128xf32>
    %78 = arith.minimumf %76, %77 : vector<1096x128xf32>
    %c0_83 = arith.constant 0 : index
    %c0_84 = arith.constant 0 : index
    %79 = vector.load %arg3[%c0_83, %c0_84] : memref<1096x128xf32, #tpu.memory_space<vmem>>, vector<1096x128xf32>
    tpu.vector_store %arg3[%c0_83, %c0_84], %78 {strides = array<i32>} : memref<1096x128xf32, #tpu.memory_space<vmem>>, vector<1096x128xf32>,
    return
  }
}

</mosaic_0001>

<bundles_post_ra>
// kernel: model_forward.1
= control target key start
LH: loop header
LB: loop body
LE: loop exit
PB: predicated region body
PF: predicated region fallthrough
CT: control target
= control target key end

     0   :  { %v24095_v0 = vmov 0.0   ;;  %vm19832_vm0 = vmmov 0   ;;  %s24091_s1 = inlined_call_operand.vmem [shape: bf16[128,128], index: 1, kind: input, shape index: {}]   ;;  %s24092_s0 = inlined_call_operand.vmem [shape: bf16[1168,128], index: 0, kind: input, shape index: {}]   ;;  %s24093_s2 = inlined_call_operand.vmem [shape: bf16[9,128,128], index: 2, kind: input, shape index: {}]   ;;  %s24094_s3 = inlined_call_operand.vmem [shape: f32[1096,128], index: 3, kind: output, shape index: {}]  }
   0x1   :  { %14152 = vmatprep.subr.bf16.mxu0 %v24095_v0  ;;  %v19670_v1 = vld [vmem:[%s24091_s1] sm:$0xff]   ;;  %14168 = vmatprep.mubr.msk.bf16.mxu0 %vm19832_vm0, %v24095_v0  ;;  %v19671_v2 = vld [vmem:[%s24091_s1 + $0x8] sm:$0xff]   ;;  %v19672_v3 = vld [vmem:[%s24091_s1 + $0x10] sm:$0xff]  }
   0x2   :  { %15336 = vmatprep.subr.bf16.mxu1 %v24095_v0  ;;  %15352 = vmatprep.mubr.msk.bf16.mxu1 %vm19832_vm0, %v24095_v0  ;;  %v19673_v4 = vld [vmem:[%s24091_s1 + $0x18] sm:$0xff]   ;;  %v19674_v5 = vld [vmem:[%s24091_s1 + $0x20] sm:$0xff]   ;;  %v19675_v6 = vld [vmem:[%s24091_s1 + $0x28] sm:$0xff]  }
   0x3   :  { %14153 = vmatpush3.bf16.msra.mxu0 %v19670_v1  ;;  %v19676_v7 = vld [vmem:[%s24091_s1 + $0x30] sm:$0xff]   ;;  %v19677_v8 = vld [vmem:[%s24091_s1 + $0x38] sm:$0xff]   ;;  %v19678_v9 = vld [vmem:[%s24092_s0] sm:$0xff]  }
   0x4   :  { %14154 = vmatprep.subr.bf16.mxu0 %v24095_v0  ;;  %v19679_v10 = vld [vmem:[%s24092_s0 + $0x8] sm:$0xff]   ;;  %v19680_v11 = vld [vmem:[%s24092_s0 + $0x10] sm:$0xff]   ;;  %v19681_v12 = vld [vmem:[%s24092_s0 + $0x18] sm:$0xff]  }
   0x5   :  { %v19682_v13 = vld [vmem:[%s24092_s0 + $0x20] sm:$0xff]   ;;  %v19683_v14 = vld [vmem:[%s24092_s0 + $0x28] sm:$0xff]   ;;  %v19684_v15 = vld [vmem:[%s24092_s0 + $0x30] sm:$0xff]  }
   0x6   :  { %v19685_v16 = vld [vmem:[%s24092_s0 + $0x38] sm:$0xff]   ;;  %v19686_v17 = vld [vmem:[%s24092_s0 + $0x40] sm:$0xff]   ;;  %v19687_v18 = vld [vmem:[%s24092_s0 + $0x48] sm:$0xff]  }
   0x7   :  { %14155 = vmatpush3.bf16.msra.mxu0 %v19671_v2  ;;  %v19688_v19 = vld [vmem:[%s24092_s0 + $0x50] sm:$0xff]   ;;  %v19689_v20 = vld [vmem:[%s24092_s0 + $0x58] sm:$0xff]   ;;  %v19705_v21 = vld [vmem:[%s24093_s2 + $0xc0] sm:$0xff]  }
   0x8   :  { %14156 = vmatprep.subr.bf16.mxu0 %v24095_v0  ;;  %15337 = vmatpush3.bf16.msra.mxu1 %v19705_v21  ;;  %v19707_v22 = vld [vmem:[%s24093_s2 + $0xc8] sm:$0xff]   ;;  %v19690_v23 = vld [vmem:[%s24092_s0 + $0x60] sm:$0xff]   ;;  %v19708_v24 = vld [vmem:[%s24093_s2 + $0xd0] sm:$0xff]  }
   0x9   :  { %15338 = vmatprep.subr.bf16.mxu1 %v24095_v0  ;;  %v19710_v25 = vld [vmem:[%s24093_s2 + $0xd8] sm:$0xff]   ;;  %v19691_v26 = vld [vmem:[%s24092_s0 + $0x68] sm:$0xff]   ;;  %v19711_v27 = vld [vmem:[%s24093_s2 + $0xe0] sm:$0xff]  }
   0xa   :  { %v19713_v28 = vld [vmem:[%s24093_s2 + $0xe8] sm:$0xff]   ;;  %v19692_v29 = vld [vmem:[%s24092_s0 + $0x70] sm:$0xff]   ;;  %v19716_v31 = vld [vmem:[%s24093_s2 + $0xf8] sm:$0xff]  }
   0xb   :  { %14157 = vmatpush3.bf16.msra.mxu0 %v19672_v3  ;;  %v19714_v30 = vld [vmem:[%s24093_s2 + $0xf0] sm:$0xff]   ;;  %v19693_v32 = vld [vmem:[%s24092_s0 + $0x78] sm:$0xff]   ;;  %v19717_v33 = vld [vmem:[%s24093_s2] sm:$0xff]  }
   0xc   :  { %14158 = vmatprep.subr.bf16.mxu0 %v24095_v0  ;;  %15339 = vmatpush3.bf16.msra.mxu1 %v19707_v22  ;;  %v19694_v34 = vld [vmem:[%s24092_s0 + $0x80] sm:$0xff]   ;;  %v19695_v35 = vld [vmem:[%s24092_s0 + $0x88] sm:$0xff]   ;;  %v19696_v36 = vld [vmem:[%s24092_s0 + $0x90] sm:$0xff]  }
   0xd   :  { %15340 = vmatprep.subr.bf16.mxu1 %v24095_v0  ;;  %v19697_v37 = vld [vmem:[%s24092_s0 + $0x98] sm:$0xff]   ;;  %v19698_v38 = vld [vmem:[%s24092_s0 + $0xa0] sm:$0xff]   ;;  %v19699_v39 = vld [vmem:[%s24092_s0 + $0xa8] sm:$0xff]  }
   0xe   :  { %v19700_v40 = vld [vmem:[%s24092_s0 + $0xb0] sm:$0xff]   ;;  %v19701_v41 = vld [vmem:[%s24092_s0 + $0xb8] sm:$0xff]   ;;  %v19702_v42 = vld [vmem:[%s24092_s0 + $0xc0] sm:$0xff]  }
   0xf   :  { %14159 = vmatpush3.bf16.msra.mxu0 %v19673_v4  ;;  %v19729_v43 = vld [vmem:[%s24093_s2 + $0x8] sm:$0xff]   ;;  %v19704_v45 = vld [vmem:[%s24092_s0 + $0xd0] sm:$0xff]   ;;  %v19706_v48 = vld [vmem:[%s24092_s0 + $0xd8] sm:$0xff]  }
  0x10   :  { %14160 = vmatprep.subr.bf16.mxu0 %v24095_v0  ;;  %15341 = vmatpush3.bf16.msra.mxu1 %v19708_v24  ;;  %v19703_v44 = vld [vmem:[%s24092_s0 + $0xc8] sm:$0xff]   ;;  %v19709_v54 = vld [vmem:[%s24092_s0 + $0xe0] sm:$0xff]   ;;  %v19715_v1 = vld [vmem:[%s24092_s0 + $0xf0] sm:$0xff]  }
  0x11   :  { %15342 = vmatprep.subr.bf16.mxu1 %v24095_v0  ;;  %v19712_v59 = vld [vmem:[%s24092_s0 + $0xe8] sm:$0xff]   ;;  %v19739_v22 = vld [vmem:[%s24093_s2 + $0x110] sm:$0xff]  }
  0x13   :  { %14161 = vmatpush3.bf16.msra.mxu0 %v19674_v5 }
  0x14   :  { %14162 = vmatprep.subr.bf16.mxu0 %v24095_v0  ;;  %15343 = vmatpush3.bf16.msra.mxu1 %v19710_v25 }
  0x15   :  { %15344 = vmatprep.subr.bf16.mxu1 %v24095_v0 }
  0x17   :  { %14163 = vmatpush3.bf16.msra.mxu0 %v19675_v6 }
  0x18   :  { %14164 = vmatprep.subr.bf16.mxu0 %v24095_v0  ;;  %15345 = vmatpush3.bf16.msra.mxu1 %v19711_v27 }
  0x19   :  { %15346 = vmatprep.subr.bf16.mxu1 %v24095_v0 }
  0x1b   :  { %14165 = vmatpush3.bf16.msra.mxu0 %v19676_v7  ;;  %v19718_v7 = vld [vmem:[%s24093_s2 + $0x100] sm:$0xff]  }
  0x1c   :  { %14166 = vmatprep.subr.bf16.mxu0 %v24095_v0  ;;  %15347 = vmatpush3.bf16.msra.mxu1 %v19713_v28  ;;  %v19721_v28 = vld [vmem:[%s24092_s0 + $0x108] sm:$0xff]  }
  0x1d   :  { %15348 = vmatprep.subr.bf16.mxu1 %v24095_v0 }
  0x1f   :  { %14167 = vmatpush3.bf16.msra.mxu0 %v19677_v8 }
  0x20   :  { %14460 = vmatprep.subr.bf16.mxu0 %v24095_v0  ;;  %15349 = vmatpush3.bf16.msra.mxu1 %v19714_v30 }
  0x21   :  { %15350 = vmatprep.subr.bf16.mxu1 %v24095_v0 }
  0x22   :  { %14169 = vmatmul.mubr.bf16.vlgmr.msra.gmra.mrb[0].mxu0 %v19678_v9 }
  0x23   :  { %14172 = vmatprep.mubr.msk.bf16.mxu0 %vm19832_vm0, %v24095_v0  ;;  %14461 = vmatpush3.bf16.msra.mxu0 %v19717_v33 }
  0x24   :  { %15351 = vmatpush3.bf16.msra.mxu1 %v19716_v31  ;;  %14462 = vmatprep.subr.bf16.mxu0 %v24095_v0  ;;  %v19740_v31 = vld [vmem:[%s24093_s2 + $0x10] sm:$0xff]  }
  0x25   :  { %15628 = vmatprep.subr.bf16.mxu1 %v24095_v0 }
  0x27   :  { %14463 = vmatpush3.bf16.msra.mxu0 %v19729_v43 }
  0x28   :  { %14464 = vmatprep.subr.bf16.mxu0 %v24095_v0 }
  0x2a   :  { %14173 = vmatmul.mubr.bf16.gmra.mrb[4].mxu0 %v19679_v10  ;;  %v19719_v10 = vld [vmem:[%s24092_s0 + $0xf8] sm:$0xff]  }
  0x2b   :  { %14176 = vmatprep.mubr.msk.bf16.mxu0 %vm19832_vm0, %v24095_v0  ;;  %14465 = vmatpush3.bf16.msra.mxu0 %v19740_v31 }
  0x2c   :  { %14466 = vmatprep.subr.bf16.mxu0 %v24095_v0 }
  0x32   :  { %14177 = vmatmul.mubr.bf16.gmra.mrb[8].mxu0 %v19680_v11 }
  0x33   :  { %14180 = vmatprep.mubr.msk.bf16.mxu0 %vm19832_vm0, %v24095_v0 }
  0x3a   :  { %14181 = vmatmul.mubr.bf16.gmra.mrb[12].mxu0 %v19681_v12 }
  0x3b   :  { %14184 = vmatprep.mubr.msk.bf16.mxu0 %vm19832_vm0, %v24095_v0 }
  0x42   :  { %14185 = vmatmul.mubr.bf16.gmra.mrb[16].mxu0 %v19682_v13  ;;  %v19728_v13 = vld [vmem:[%s24093_s2 + $0x108] sm:$0xff]  }
  0x43   :  { %14188 = vmatprep.mubr.msk.bf16.mxu0 %vm19832_vm0, %v24095_v0 }
  0x4a   :  { %14189 = vmatmul.mubr.bf16.gmra.mrb[20].mxu0 %v19683_v14 }
  0x4b   :  { %14192 = vmatprep.mubr.msk.bf16.mxu0 %vm19832_vm0, %v24095_v0 }
  0x52   :  { %14193 = vmatmul.mubr.bf16.gmra.mrb[24].mxu0 %v19684_v15 }
  0x53   :  { %14196 = vmatprep.mubr.msk.bf16.mxu0 %vm19832_vm0, %v24095_v0 }
  0x5a   :  { %14197 = vmatmul.mubr.bf16.gmra.mrb[28].mxu0 %v19685_v16 }
  0x5b   :  { %14200 = vmatprep.mubr.msk.bf16.mxu0 %vm19832_vm0, %v24095_v0 }
  0x62   :  { %14201 = vmatmul.mubr.bf16.gmra.mrb[32].mxu0 %v19686_v17 }
  0x63   :  { %14204 = vmatprep.mubr.msk.bf16.mxu0 %vm19832_vm0, %v24095_v0 }
  0x6a   :  { %14205 = vmatmul.mubr.bf16.gmra.mrb[36].mxu0 %v19687_v18 }
  0x6b   :  { %14208 = vmatprep.mubr.msk.bf16.mxu0 %vm19832_vm0, %v24095_v0 }
  0x72   :  { %14209 = vmatmul.mubr.bf16.gmra.mrb[40].mxu0 %v19688_v19  ;;  %v19720_v19 = vld [vmem:[%s24092_s0 + $0x100] sm:$0xff]  }
  0x73   :  { %14212 = vmatprep.mubr.msk.bf16.mxu0 %vm19832_vm0, %v24095_v0 }
  0x7a   :  { %14213 = vmatmul.mubr.bf16.gmra.mrb[44].mxu0 %v19689_v20 }
  0x7b   :  { %14216 = vmatprep.mubr.msk.bf16.mxu0 %vm19832_vm0, %v24095_v0 }
  0x82   :  { %14217 = vmatmul.mubr.bf16.gmra.mrb[48].mxu0 %v19690_v23 }
  0x83   :  { %14220 = vmatprep.mubr.msk.bf16.mxu0 %vm19832_vm0, %v24095_v0 }
  0x8a   :  { %14221 = vmatmul.mubr.bf16.gmra.mrb[52].mxu0 %v19691_v26 }
  0x8b   :  { %14224 = vmatprep.mubr.msk.bf16.mxu0 %vm19832_vm0, %v24095_v0 }
  0x92   :  { %14225 = vmatmul.mubr.bf16.gmra.mrb[56].mxu0 %v19692_v29 }
  0x93   :  { %14228 = vmatprep.mubr.msk.bf16.mxu0 %vm19832_vm0, %v24095_v0 }
  0x9a   :  { %14229 = vmatmul.mubr.bf16.gmra.mrb[60].mxu0 %v19693_v32 }
  0x9b   :  { %14232 = vmatprep.mubr.msk.bf16.mxu0 %vm19832_vm0, %v24095_v0 }
  0xa2   :  { %14233 = vmatmul.mubr.bf16.gmra.mrb[64].mxu0 %v19694_v34 }
  0xa3   :  { %14236 = vmatprep.mubr.msk.bf16.mxu0 %vm19832_vm0, %v24095_v0 }
  0xaa   :  { %14237 = vmatmul.mubr.bf16.gmra.mrb[68].mxu0 %v19695_v35 }
  0xab   :  { %14240 = vmatprep.mubr.msk.bf16.mxu0 %vm19832_vm0, %v24095_v0 }
  0xb2   :  { %14241 = vmatmul.mubr.bf16.gmra.mrb[72].mxu0 %v19696_v36 }
  0xb3   :  { %14244 = vmatprep.mubr.msk.bf16.mxu0 %vm19832_vm0, %v24095_v0 }
  0xba   :  { %14245 = vmatmul.mubr.bf16.gmra.mrb[76].mxu0 %v19697_v37  ;;  %v19722_v37 = vld [vmem:[%s24092_s0 + $0x110] sm:$0xff]  }
  0xbb   :  { %14248 = vmatprep.mubr.msk.bf16.mxu0 %vm19832_vm0, %v24095_v0 }
  0xc2   :  { %14249 = vmatmul.mubr.bf16.gmra.mrb[80].mxu0 %v19698_v38 }
  0xc3   :  { %14252 = vmatprep.mubr.msk.bf16.mxu0 %vm19832_vm0, %v24095_v0 }
  0xca   :  { %14253 = vmatmul.mubr.bf16.gmra.mrb[84].mxu0 %v19699_v39 }
  0xcb   :  { %14256 = vmatprep.mubr.msk.bf16.mxu0 %vm19832_vm0, %v24095_v0 }
  0xd2   :  { %14257 = vmatmul.mubr.bf16.gmra.mrb[88].mxu0 %v19700_v40 }
  0xd3   :  { %14260 = vmatprep.mubr.msk.bf16.mxu0 %vm19832_vm0, %v24095_v0 }
  0xda   :  { %14261 = vmatmul.mubr.bf16.gmra.mrb[92].mxu0 %v19701_v41 }
  0xdb   :  { %14264 = vmatprep.mubr.msk.bf16.mxu0 %vm19832_vm0, %v24095_v0 }
  0xe2   :  { %14265 = vmatmul.mubr.bf16.gmra.mrb[96].mxu0 %v19702_v42 }
  0xe3   :  { %14268 = vmatprep.mubr.msk.bf16.mxu0 %vm19832_vm0, %v24095_v0 }
  0xea   :  { %14269 = vmatmul.mubr.bf16.gmra.mrb[100].mxu0 %v19703_v44 }
  0xeb   :  { %14272 = vmatprep.mubr.msk.bf16.mxu0 %vm19832_vm0, %v24095_v0 }
  0xf2   :  { %14273 = vmatmul.mubr.bf16.gmra.mrb[104].mxu0 %v19704_v45  ;;  %v19723_v45 = vld [vmem:[%s24092_s0 + $0x118] sm:$0xff]  }
  0xf3   :  { %14276 = vmatprep.mubr.msk.bf16.mxu0 %vm19832_vm0, %v24095_v0 }
  0xf5   :  { %v20066_v46 = vpop.f32.mrb[0].mxu0 }
  0xf6   :  { %1280 = vst [vmem:[#allocation2] sm:$0xff] %v20066_v46  ;;  %v14170_v47 = vpop.f32.mrb[1].mxu0 }
  0xf7   :  { %v20072_v49 = vpop.f32.mrb[2].mxu0 }
  0xf8   :  { %1281 = vst [vmem:[#allocation2 + $0x8] sm:$0xff] %v20072_v49  ;;  %v1563_v50 = vpack.c.bf16 %v20072_v49, %v20066_v46  ;;  %v14171_v51 = vpop.f32.mrb[3].mxu0 }
  0xfa   :  { %14277 = vmatmul.mubr.bf16.gmra.mrb[108].mxu0 %v19706_v48 }
  0xfb   :  { %14280 = vmatprep.mubr.msk.bf16.mxu0 %vm19832_vm0, %v24095_v0 }
  0xfd   :  { %v705_v52 = vpop.f32.mrb[4].mxu0 }
  0xfe   :  { %1282 = vst [vmem:[#allocation2 + $0x10] sm:$0xff] %v705_v52  ;;  %v14174_v53 = vpop.f32.mrb[5].mxu0 }
  0xff   :  { %v708_v55 = vpop.f32.mrb[6].mxu0 }
 0x100   :  { %1283 = vst [vmem:[#allocation2 + $0x18] sm:$0xff] %v708_v55  ;;  %v14175_v56 = vpop.f32.mrb[7].mxu0 }
 0x101   :  { %v19724_v56 = vld [vmem:[%s24092_s0 + $0x120] sm:$0xff]  }
 0x102   :  { %14281 = vmatmul.mubr.bf16.gmra.mrb[112].mxu0 %v19709_v54 }
 0x103   :  { %14284 = vmatprep.mubr.msk.bf16.mxu0 %vm19832_vm0, %v24095_v0 }
 0x105   :  { %v713_v57 = vpop.f32.mrb[8].mxu0 }
 0x106   :  { %1284 = vst [vmem:[#allocation2 + $0x20] sm:$0xff] %v713_v57  ;;  %v14178_v58 = vpop.f32.mrb[9].mxu0 }
 0x107   :  { %v716_v60 = vpop.f32.mrb[10].mxu0 }
 0x108   :  { %1285 = vst [vmem:[#allocation2 + $0x28] sm:$0xff] %v716_v60  ;;  %v14179_v61 = vpop.f32.mrb[11].mxu0 }
 0x10a   :  { %14285 = vmatmul.mubr.bf16.gmra.mrb[116].mxu0 %v19712_v59 }
 0x10b   :  { %14288 = vmatprep.mubr.msk.bf16.mxu0 %vm19832_vm0, %v24095_v0 }
 0x10d   :  { %v721_v62 = vpop.f32.mrb[12].mxu0 }
 0x10e   :  { %1286 = vst [vmem:[#allocation2 + $0x30] sm:$0xff] %v721_v62  ;;  %v14182_v63 = vpop.f32.mrb[13].mxu0 }
 0x10f   :  { %v724_v2 = vpop.f32.mrb[14].mxu0  ;;  %v4949_v5 = vld [vmem:[#allocation2 + $0x21] sm:$0xff] }
 0x110   :  { %1287 = vst [vmem:[#allocation2 + $0x38] sm:$0xff] %v724_v2  ;;  %v14183_v3 = vpop.f32.mrb[15].mxu0 }
 0x112   :  { %14289 = vmatmul.mubr.bf16.gmra.mrb[120].mxu0 %v19715_v1  ;;  %v19725_v1 = vld [vmem:[%s24092_s0 + $0x128] sm:$0xff]  }
 0x113   :  { %14292 = vmatprep.mubr.msk.bf16.mxu0 %vm19832_vm0, %v24095_v0 }
 0x115   :  { %v729_v4 = vpop.f32.mrb[16].mxu0  ;;  %v4950_v6 = vld [vmem:[#allocation2 + $0x29] sm:$0xff] }
 0x116   :  { %1288 = vst [vmem:[#allocation2 + $0x40] sm:$0xff] %v729_v4  ;;  %v14186_v8 = vpop.f32.mrb[17].mxu0  ;;  %v5086_v9 = vpack.c.bf16 %v4950_v6, %v4949_v5 }
 0x117   :  { %v732_v11 = vpop.f32.mrb[18].mxu0  ;;  %v4951_v15 = vld [vmem:[#allocation2 + $0x31] sm:$0xff] }
 0x118   :  { %1289 = vst [vmem:[#allocation2 + $0x48] sm:$0xff] %v732_v11  ;;  %v14187_v12 = vpop.f32.mrb[19].mxu0  ;;  %15353 = vmatmul.mubr.bf16.vlgmr.msra.gmra.mrb[0].mxu1 %v5086_v9  ;;  %v19726_v9 = vld [vmem:[%s24092_s0 + $0x130] sm:$0xff]  }
 0x119   :  { %15629 = vmatpush3.bf16.msra.mxu1 %v19718_v7  ;;  %15356 = vmatprep.mubr.msk.bf16.mxu1 %vm19832_vm0, %v24095_v0 }
 0x11a   :  { %14293 = vmatmul.mubr.bf16.gmra.mrb[124].mxu0 %v19719_v10  ;;  %15630 = vmatprep.subr.bf16.mxu1 %v24095_v0 }
 0x11b   :  { %14296 = vmatprep.mubr.msk.bf16.mxu0 %vm19832_vm0, %v24095_v0 }
 0x11d   :  { %v737_v14 = vpop.f32.mrb[20].mxu0  ;;  %v4952_v16 = vld [vmem:[#allocation2 + $0x39] sm:$0xff]  ;;  %15631 = vmatpush3.bf16.msra.mxu1 %v19728_v13 }
 0x11e   :  { %1290 = vst [vmem:[#allocation2 + $0x50] sm:$0xff] %v737_v14  ;;  %v14190_v17 = vpop.f32.mrb[21].mxu0  ;;  %v5087_v18 = vpack.c.bf16 %v4952_v16, %v4951_v15  ;;  %15632 = vmatprep.subr.bf16.mxu1 %v24095_v0 }
 0x11f   :  { %v740_v20 = vpop.f32.mrb[22].mxu0  ;;  %v4953_v24 = vld [vmem:[#allocation2 + $0x41] sm:$0xff]  ;;  %v19727_v17 = vld [vmem:[%s24092_s0 + $0x138] sm:$0xff]  }
 0x120   :  { %1291 = vst [vmem:[#allocation2 + $0x58] sm:$0xff] %v740_v20  ;;  %v14191_v21 = vpop.f32.mrb[23].mxu0  ;;  %15357 = vmatmul.mubr.bf16.gmra.mrb[4].mxu1 %v5087_v18 }
 0x121   :  { %15360 = vmatprep.mubr.msk.bf16.mxu1 %vm19832_vm0, %v24095_v0  ;;  %15633 = vmatpush3.bf16.msra.mxu1 %v19739_v22 }
 0x122   :  { %14297 = vmatmul.mubr.bf16.gmra.mrb[128].mxu0 %v19720_v19  ;;  %15634 = vmatprep.subr.bf16.mxu1 %v24095_v0 }
 0x123   :  { %14300 = vmatprep.mubr.msk.bf16.mxu0 %vm19832_vm0, %v24095_v0 }
 0x125   :  { %v745_v23 = vpop.f32.mrb[24].mxu0  ;;  %v4954_v25 = vld [vmem:[#allocation2 + $0x49] sm:$0xff] }
 0x126   :  { %1292 = vst [vmem:[#allocation2 + $0x60] sm:$0xff] %v745_v23  ;;  %v14194_v26 = vpop.f32.mrb[25].mxu0  ;;  %v5088_v27 = vpack.c.bf16 %v4954_v25, %v4953_v24  ;;  %v19730_v25 = vld [vmem:[%s24092_s0 + $0x140] sm:$0xff]  }
 0x127   :  { %v748_v29 = vpop.f32.mrb[26].mxu0  ;;  %v4955_v33 = vld [vmem:[#allocation2 + $0x51] sm:$0xff] }
 0x128   :  { %1293 = vst [vmem:[#allocation2 + $0x68] sm:$0xff] %v748_v29  ;;  %v14195_v30 = vpop.f32.mrb[27].mxu0  ;;  %15361 = vmatmul.mubr.bf16.gmra.mrb[8].mxu1 %v5088_v27 }
 0x129   :  { %15364 = vmatprep.mubr.msk.bf16.mxu1 %vm19832_vm0, %v24095_v0 }
 0x12a   :  { %14301 = vmatmul.mubr.bf16.gmra.mrb[132].mxu0 %v19721_v28 }
 0x12b   :  { %14304 = vmatprep.mubr.msk.bf16.mxu0 %vm19832_vm0, %v24095_v0 }
 0x12d   :  { %v753_v32 = vpop.f32.mrb[28].mxu0  ;;  %v4956_v34 = vld [vmem:[#allocation2 + $0x59] sm:$0xff] }
 0x12e   :  { %1294 = vst [vmem:[#allocation2 + $0x70] sm:$0xff] %v753_v32  ;;  %v14198_v35 = vpop.f32.mrb[29].mxu0  ;;  %v5089_v36 = vpack.c.bf16 %v4956_v34, %v4955_v33  ;;  %v19731_v33 = vld [vmem:[%s24092_s0 + $0x148] sm:$0xff]  }
 0x12f   :  { %v756_v38 = vpop.f32.mrb[30].mxu0  ;;  %v4957_v41 = vld [vmem:[#allocation2 + $0x61] sm:$0xff] }
 0x130   :  { %1295 = vst [vmem:[#allocation2 + $0x78] sm:$0xff] %v756_v38  ;;  %v14199_v39 = vpop.f32.mrb[31].mxu0  ;;  %15365 = vmatmul.mubr.bf16.gmra.mrb[12].mxu1 %v5089_v36  ;;  %v19749_v36 = vld [vmem:[%s24093_s2 + $0x118] sm:$0xff]  }
 0x131   :  { %15368 = vmatprep.mubr.msk.bf16.mxu1 %vm19832_vm0, %v24095_v0  ;;  %15635 = vmatpush3.bf16.msra.mxu1 %v19749_v36 }
 0x132   :  { %14305 = vmatmul.mubr.bf16.gmra.mrb[136].mxu0 %v19722_v37  ;;  %15636 = vmatprep.subr.bf16.mxu1 %v24095_v0 }
 0x133   :  { %14308 = vmatprep.mubr.msk.bf16.mxu0 %vm19832_vm0, %v24095_v0 }
 0x135   :  { %v761_v40 = vpop.f32.mrb[32].mxu0  ;;  %v4958_v42 = vld [vmem:[#allocation2 + $0x69] sm:$0xff] }
 0x136   :  { %1296 = vst [vmem:[#allocation2 + $0x80] sm:$0xff] %v761_v40  ;;  %v14202_v43 = vpop.f32.mrb[33].mxu0  ;;  %v5090_v44 = vpack.c.bf16 %v4958_v42, %v4957_v41  ;;  %v19732_v42 = vld [vmem:[%s24092_s0 + $0x150] sm:$0xff]  }
 0x137   :  { %v764_v47 = vpop.f32.mrb[34].mxu0  ;;  %v4959_v52 = vld [vmem:[#allocation2 + $0x71] sm:$0xff] }
 0x138   :  { %1297 = vst [vmem:[#allocation2 + $0x88] sm:$0xff] %v764_v47  ;;  %v14203_v48 = vpop.f32.mrb[35].mxu0  ;;  %15369 = vmatmul.mubr.bf16.gmra.mrb[16].mxu1 %v5090_v44 }
 0x139   :  { %15372 = vmatprep.mubr.msk.bf16.mxu1 %vm19832_vm0, %v24095_v0 }
 0x13a   :  { %14309 = vmatmul.mubr.bf16.gmra.mrb[140].mxu0 %v19723_v45  ;;  %v19751_v45 = vld [vmem:[%s24093_s2 + $0x18] sm:$0xff]  }
 0x13b   :  { %14312 = vmatprep.mubr.msk.bf16.mxu0 %vm19832_vm0, %v24095_v0  ;;  %14467 = vmatpush3.bf16.msra.mxu0 %v19751_v45 }
 0x13c   :  { %14468 = vmatprep.subr.bf16.mxu0 %v24095_v0 }
 0x13d   :  { %v769_v51 = vpop.f32.mrb[36].mxu0  ;;  %v4960_v53 = vld [vmem:[#allocation2 + $0x79] sm:$0xff] }
 0x13e   :  { %1298 = vst [vmem:[#allocation2 + $0x90] sm:$0xff] %v769_v51  ;;  %v14206_v54 = vpop.f32.mrb[37].mxu0  ;;  %v5091_v55 = vpack.c.bf16 %v4960_v53, %v4959_v52 }
 0x13f   :  { %v772_v57 = vpop.f32.mrb[38].mxu0  ;;  %v4961_v60 = vld [vmem:[#allocation2 + $0x81] sm:$0xff]  ;;  %v19733_v54 = vld [vmem:[%s24092_s0 + $0x158] sm:$0xff]  }
 0x140   :  { %1299 = vst [vmem:[#allocation2 + $0x98] sm:$0xff] %v772_v57  ;;  %v14207_v58 = vpop.f32.mrb[39].mxu0  ;;  %15373 = vmatmul.mubr.bf16.gmra.mrb[20].mxu1 %v5091_v55 }
 0x141   :  { %15376 = vmatprep.mubr.msk.bf16.mxu1 %vm19832_vm0, %v24095_v0 }
 0x142   :  { %14313 = vmatmul.mubr.bf16.gmra.mrb[144].mxu0 %v19724_v56 }
 0x143   :  { %14316 = vmatprep.mubr.msk.bf16.mxu0 %vm19832_vm0, %v24095_v0 }
 0x145   :  { %v777_v59 = vpop.f32.mrb[40].mxu0  ;;  %v4962_v61 = vld [vmem:[#allocation2 + $0x89] sm:$0xff] }
 0x146   :  { %1300 = vst [vmem:[#allocation2 + $0xa0] sm:$0xff] %v777_v59  ;;  %v14210_v62 = vpop.f32.mrb[41].mxu0  ;;  %v5092_v63 = vpack.c.bf16 %v4962_v61, %v4961_v60 }
 0x147   :  { %v780_v2 = vpop.f32.mrb[42].mxu0  ;;  %v4963_v5 = vld [vmem:[#allocation2 + $0x91] sm:$0xff]  ;;  %v19734_v62 = vld [vmem:[%s24092_s0 + $0x160] sm:$0xff]  }
 0x148   :  { %1301 = vst [vmem:[#allocation2 + $0xa8] sm:$0xff] %v780_v2  ;;  %v14211_v3 = vpop.f32.mrb[43].mxu0  ;;  %15377 = vmatmul.mubr.bf16.gmra.mrb[24].mxu1 %v5092_v63 }
 0x149   :  { %15380 = vmatprep.mubr.msk.bf16.mxu1 %vm19832_vm0, %v24095_v0 }
 0x14a   :  { %14317 = vmatmul.mubr.bf16.gmra.mrb[148].mxu0 %v19725_v1 }
 0x14b   :  { %14320 = vmatprep.mubr.msk.bf16.mxu0 %vm19832_vm0, %v24095_v0 }
 0x14d   :  { %v785_v4 = vpop.f32.mrb[44].mxu0  ;;  %v4964_v6 = vld [vmem:[#allocation2 + $0x99] sm:$0xff] }
 0x14e   :  { %1302 = vst [vmem:[#allocation2 + $0xb0] sm:$0xff] %v785_v4  ;;  %v14214_v7 = vpop.f32.mrb[45].mxu0  ;;  %v5093_v8 = vpack.c.bf16 %v4964_v6, %v4963_v5 }
 0x14f   :  { %v788_v10 = vpop.f32.mrb[46].mxu0  ;;  %v4965_v13 = vld [vmem:[#allocation2 + $0xa1] sm:$0xff] }
 0x150   :  { %1303 = vst [vmem:[#allocation2 + $0xb8] sm:$0xff] %v788_v10  ;;  %v14215_v11 = vpop.f32.mrb[47].mxu0  ;;  %15381 = vmatmul.mubr.bf16.gmra.mrb[28].mxu1 %v5093_v8  ;;  %v19735_v7 = vld [vmem:[%s24092_s0 + $0x168] sm:$0xff]  }
 0x151   :  { %15384 = vmatprep.mubr.msk.bf16.mxu1 %vm19832_vm0, %v24095_v0 }
 0x152   :  { %14321 = vmatmul.mubr.bf16.gmra.mrb[152].mxu0 %v19726_v9 }
 0x153   :  { %14324 = vmatprep.mubr.msk.bf16.mxu0 %vm19832_vm0, %v24095_v0 }
 0x155   :  { %v793_v12 = vpop.f32.mrb[48].mxu0  ;;  %v4966_v14 = vld [vmem:[#allocation2 + $0xa9] sm:$0xff] }
 0x156   :  { %1304 = vst [vmem:[#allocation2 + $0xc0] sm:$0xff] %v793_v12  ;;  %v14218_v15 = vpop.f32.mrb[49].mxu0  ;;  %v5094_v16 = vpack.c.bf16 %v4966_v14, %v4965_v13 }
 0x157   :  { %v796_v18 = vpop.f32.mrb[50].mxu0  ;;  %v4967_v21 = vld [vmem:[#allocation2 + $0xb1] sm:$0xff] }
 0x158   :  { %1305 = vst [vmem:[#allocation2 + $0xc8] sm:$0xff] %v796_v18  ;;  %v14219_v19 = vpop.f32.mrb[51].mxu0  ;;  %15385 = vmatmul.mubr.bf16.gmra.mrb[32].mxu1 %v5094_v16  ;;  %v19736_v15 = vld [vmem:[%s24092_s0 + $0x170] sm:$0xff]  }
 0x159   :  { %15388 = vmatprep.mubr.msk.bf16.mxu1 %vm19832_vm0, %v24095_v0 }
 0x15a   :  { %14325 = vmatmul.mubr.bf16.gmra.mrb[156].mxu0 %v19727_v17 }
 0x15b   :  { %14328 = vmatprep.mubr.msk.bf16.mxu0 %vm19832_vm0, %v24095_v0 }
 0x15d   :  { %v801_v20 = vpop.f32.mrb[52].mxu0  ;;  %v4968_v22 = vld [vmem:[#allocation2 + $0xb9] sm:$0xff] }
 0x15e   :  { %1306 = vst [vmem:[#allocation2 + $0xd0] sm:$0xff] %v801_v20  ;;  %v14222_v23 = vpop.f32.mrb[53].mxu0  ;;  %v5095_v24 = vpack.c.bf16 %v4968_v22, %v4967_v21 }
 0x15f   :  { %v804_v26 = vpop.f32.mrb[54].mxu0  ;;  %v4969_v29 = vld [vmem:[#allocation2 + $0xc1] sm:$0xff]  ;;  %v19737_v23 = vld [vmem:[%s24092_s0 + $0x178] sm:$0xff]  }
 0x160   :  { %1307 = vst [vmem:[#allocation2 + $0xd8] sm:$0xff] %v804_v26  ;;  %v14223_v27 = vpop.f32.mrb[55].mxu0  ;;  %15389 = vmatmul.mubr.bf16.gmra.mrb[36].mxu1 %v5095_v24 }
 0x161   :  { %15392 = vmatprep.mubr.msk.bf16.mxu1 %vm19832_vm0, %v24095_v0 }
 0x162   :  { %14329 = vmatmul.mubr.bf16.gmra.mrb[160].mxu0 %v19730_v25 }
 0x163   :  { %14332 = vmatprep.mubr.msk.bf16.mxu0 %vm19832_vm0, %v24095_v0 }
 0x165   :  { %v809_v28 = vpop.f32.mrb[56].mxu0  ;;  %v4970_v30 = vld [vmem:[#allocation2 + $0xc9] sm:$0xff] }
 0x166   :  { %1308 = vst [vmem:[#allocation2 + $0xe0] sm:$0xff] %v809_v28  ;;  %v14226_v31 = vpop.f32.mrb[57].mxu0  ;;  %v5096_v32 = vpack.c.bf16 %v4970_v30, %v4969_v29 }
 0x167   :  { %v812_v34 = vpop.f32.mrb[58].mxu0  ;;  %v4971_v38 = vld [vmem:[#allocation2 + $0xd1] sm:$0xff]  ;;  %v19738_v31 = vld [vmem:[%s24092_s0 + $0x180] sm:$0xff]  }
 0x168   :  { %1309 = vst [vmem:[#allocation2 + $0xe8] sm:$0xff] %v812_v34  ;;  %v14227_v35 = vpop.f32.mrb[59].mxu0  ;;  %15393 = vmatmul.mubr.bf16.gmra.mrb[40].mxu1 %v5096_v32 }
 0x169   :  { %15396 = vmatprep.mubr.msk.bf16.mxu1 %vm19832_vm0, %v24095_v0 }
 0x16a   :  { %14333 = vmatmul.mubr.bf16.gmra.mrb[164].mxu0 %v19731_v33 }
 0x16b   :  { %14336 = vmatprep.mubr.msk.bf16.mxu0 %vm19832_vm0, %v24095_v0 }
 0x16d   :  { %v817_v37 = vpop.f32.mrb[60].mxu0  ;;  %v4972_v39 = vld [vmem:[#allocation2 + $0xd9] sm:$0xff] }
 0x16e   :  { %1310 = vst [vmem:[#allocation2 + $0xf0] sm:$0xff] %v817_v37  ;;  %v14230_v40 = vpop.f32.mrb[61].mxu0  ;;  %v5097_v41 = vpack.c.bf16 %v4972_v39, %v4971_v38  ;;  %v19741_v39 = vld [vmem:[%s24092_s0 + $0x188] sm:$0xff]  }
 0x16f   :  { %v820_v43 = vpop.f32.mrb[62].mxu0  ;;  %v4973_v48 = vld [vmem:[#allocation2 + $0xe1] sm:$0xff] }
 0x170   :  { %1311 = vst [vmem:[#allocation2 + $0xf8] sm:$0xff] %v820_v43  ;;  %v14231_v44 = vpop.f32.mrb[63].mxu0  ;;  %15397 = vmatmul.mubr.bf16.gmra.mrb[44].mxu1 %v5097_v41 }
 0x171   :  { %15400 = vmatprep.mubr.msk.bf16.mxu1 %vm19832_vm0, %v24095_v0 }
 0x172   :  { %14337 = vmatmul.mubr.bf16.gmra.mrb[168].mxu0 %v19732_v42  ;;  %v19760_v42 = vld [vmem:[%s24093_s2 + $0x120] sm:$0xff]  }
 0x173   :  { %14340 = vmatprep.mubr.msk.bf16.mxu0 %vm19832_vm0, %v24095_v0  ;;  %15637 = vmatpush3.bf16.msra.mxu1 %v19760_v42 }
 0x174   :  { %15638 = vmatprep.subr.bf16.mxu1 %v24095_v0 }
 0x175   :  { %v825_v47 = vpop.f32.mrb[64].mxu0  ;;  %v4974_v51 = vld [vmem:[#allocation2 + $0xe9] sm:$0xff] }
 0x176   :  { %1312 = vst [vmem:[#allocation2 + $0x100] sm:$0xff] %v825_v47  ;;  %v14234_v52 = vpop.f32.mrb[65].mxu0  ;;  %v5098_v53 = vpack.c.bf16 %v4974_v51, %v4973_v48  ;;  %v19742_v51 = vld [vmem:[%s24092_s0 + $0x190] sm:$0xff]  }
 0x177   :  { %v828_v55 = vpop.f32.mrb[66].mxu0  ;;  %v4975_v58 = vld [vmem:[#allocation2 + $0xf1] sm:$0xff] }
 0x178   :  { %1313 = vst [vmem:[#allocation2 + $0x108] sm:$0xff] %v828_v55  ;;  %v14235_v56 = vpop.f32.mrb[67].mxu0  ;;  %15401 = vmatmul.mubr.bf16.gmra.mrb[48].mxu1 %v5098_v53 }
 0x179   :  { %15404 = vmatprep.mubr.msk.bf16.mxu1 %vm19832_vm0, %v24095_v0 }
 0x17a   :  { %14341 = vmatmul.mubr.bf16.gmra.mrb[172].mxu0 %v19733_v54 }
 0x17b   :  { %14344 = vmatprep.mubr.msk.bf16.mxu0 %vm19832_vm0, %v24095_v0 }
 0x17d   :  { %v833_v57 = vpop.f32.mrb[68].mxu0  ;;  %v4976_v59 = vld [vmem:[#allocation2 + $0xf9] sm:$0xff] }
 0x17e   :  { %1314 = vst [vmem:[#allocation2 + $0x110] sm:$0xff] %v833_v57  ;;  %v14238_v60 = vpop.f32.mrb[69].mxu0  ;;  %v5099_v61 = vpack.c.bf16 %v4976_v59, %v4975_v58  ;;  %v19743_v59 = vld [vmem:[%s24092_s0 + $0x198] sm:$0xff]  }
 0x17f   :  { %v836_v63 = vpop.f32.mrb[70].mxu0  ;;  %v4977_v3 = vld [vmem:[#allocation2 + $0x101] sm:$0xff] }
 0x180   :  { %1315 = vst [vmem:[#allocation2 + $0x118] sm:$0xff] %v836_v63  ;;  %v14239_v1 = vpop.f32.mrb[71].mxu0  ;;  %15405 = vmatmul.mubr.bf16.gmra.mrb[52].mxu1 %v5099_v61 }
 0x181   :  { %15408 = vmatprep.mubr.msk.bf16.mxu1 %vm19832_vm0, %v24095_v0 }
 0x182   :  { %14345 = vmatmul.mubr.bf16.gmra.mrb[176].mxu0 %v19734_v62  ;;  %v19763_v62 = vld [vmem:[%s24093_s2 + $0x20] sm:$0xff]  }
 0x183   :  { %14348 = vmatprep.mubr.msk.bf16.mxu0 %vm19832_vm0, %v24095_v0  ;;  %14469 = vmatpush3.bf16.msra.mxu0 %v19763_v62  ;;  %v19772_v62 = vld [vmem:[%s24093_s2 + $0x128] sm:$0xff]  }
 0x184   :  { %14470 = vmatprep.subr.bf16.mxu0 %v24095_v0  ;;  %15639 = vmatpush3.bf16.msra.mxu1 %v19772_v62 }
 0x185   :  { %v841_v2 = vpop.f32.mrb[72].mxu0  ;;  %v4978_v4 = vld [vmem:[#allocation2 + $0x109] sm:$0xff]  ;;  %15640 = vmatprep.subr.bf16.mxu1 %v24095_v0 }
 0x186   :  { %1316 = vst [vmem:[#allocation2 + $0x120] sm:$0xff] %v841_v2  ;;  %v14242_v5 = vpop.f32.mrb[73].mxu0  ;;  %v5100_v6 = vpack.c.bf16 %v4978_v4, %v4977_v3 }
 0x187   :  { %v844_v8 = vpop.f32.mrb[74].mxu0  ;;  %v4979_v11 = vld [vmem:[#allocation2 + $0x111] sm:$0xff]  ;;  %v19744_v5 = vld [vmem:[%s24092_s0 + $0x1a0] sm:$0xff]  }
 0x188   :  { %1317 = vst [vmem:[#allocation2 + $0x128] sm:$0xff] %v844_v8  ;;  %v14243_v9 = vpop.f32.mrb[75].mxu0  ;;  %15409 = vmatmul.mubr.bf16.gmra.mrb[56].mxu1 %v5100_v6 }
 0x189   :  { %15412 = vmatprep.mubr.msk.bf16.mxu1 %vm19832_vm0, %v24095_v0 }
 0x18a   :  { %14349 = vmatmul.mubr.bf16.gmra.mrb[180].mxu0 %v19735_v7 }
 0x18b   :  { %14352 = vmatprep.mubr.msk.bf16.mxu0 %vm19832_vm0, %v24095_v0 }
 0x18d   :  { %v849_v10 = vpop.f32.mrb[76].mxu0  ;;  %v4980_v12 = vld [vmem:[#allocation2 + $0x119] sm:$0xff] }
 0x18e   :  { %1318 = vst [vmem:[#allocation2 + $0x130] sm:$0xff] %v849_v10  ;;  %v14246_v13 = vpop.f32.mrb[77].mxu0  ;;  %v5101_v14 = vpack.c.bf16 %v4980_v12, %v4979_v11 }
 0x18f   :  { %v852_v16 = vpop.f32.mrb[78].mxu0  ;;  %v4981_v19 = vld [vmem:[#allocation2 + $0x121] sm:$0xff] }
 0x190   :  { %1319 = vst [vmem:[#allocation2 + $0x138] sm:$0xff] %v852_v16  ;;  %v14247_v17 = vpop.f32.mrb[79].mxu0  ;;  %15413 = vmatmul.mubr.bf16.gmra.mrb[60].mxu1 %v5101_v14  ;;  %v19745_v13 = vld [vmem:[%s24092_s0 + $0x1a8] sm:$0xff]  }
 0x191   :  { %15416 = vmatprep.mubr.msk.bf16.mxu1 %vm19832_vm0, %v24095_v0 }
 0x192   :  { %14353 = vmatmul.mubr.bf16.gmra.mrb[184].mxu0 %v19736_v15 }
 0x193   :  { %14356 = vmatprep.mubr.msk.bf16.mxu0 %vm19832_vm0, %v24095_v0 }
 0x195   :  { %v857_v18 = vpop.f32.mrb[80].mxu0  ;;  %v4982_v20 = vld [vmem:[#allocation2 + $0x129] sm:$0xff] }
 0x196   :  { %1320 = vst [vmem:[#allocation2 + $0x140] sm:$0xff] %v857_v18  ;;  %v14250_v21 = vpop.f32.mrb[81].mxu0  ;;  %v5102_v22 = vpack.c.bf16 %v4982_v20, %v4981_v19 }
 0x197   :  { %v860_v24 = vpop.f32.mrb[82].mxu0  ;;  %v4983_v27 = vld [vmem:[#allocation2 + $0x131] sm:$0xff] }
 0x198   :  { %1321 = vst [vmem:[#allocation2 + $0x148] sm:$0xff] %v860_v24  ;;  %v14251_v25 = vpop.f32.mrb[83].mxu0  ;;  %15417 = vmatmul.mubr.bf16.gmra.mrb[64].mxu1 %v5102_v22  ;;  %v19746_v21 = vld [vmem:[%s24092_s0 + $0x1b0] sm:$0xff]  }
 0x199   :  { %15420 = vmatprep.mubr.msk.bf16.mxu1 %vm19832_vm0, %v24095_v0 }
 0x19a   :  { %14357 = vmatmul.mubr.bf16.gmra.mrb[188].mxu0 %v19737_v23 }
 0x19b   :  { %14360 = vmatprep.mubr.msk.bf16.mxu0 %vm19832_vm0, %v24095_v0 }
 0x19d   :  { %v865_v26 = vpop.f32.mrb[84].mxu0  ;;  %v4984_v28 = vld [vmem:[#allocation2 + $0x139] sm:$0xff] }
 0x19e   :  { %1322 = vst [vmem:[#allocation2 + $0x150] sm:$0xff] %v865_v26  ;;  %v14254_v29 = vpop.f32.mrb[85].mxu0  ;;  %v5103_v30 = vpack.c.bf16 %v4984_v28, %v4983_v27 }
 0x19f   :  { %v868_v32 = vpop.f32.mrb[86].mxu0  ;;  %v4985_v35 = vld [vmem:[#allocation2 + $0x141] sm:$0xff]  ;;  %v19747_v29 = vld [vmem:[%s24092_s0 + $0x1b8] sm:$0xff]  }
 0x1a0   :  { %1323 = vst [vmem:[#allocation2 + $0x158] sm:$0xff] %v868_v32  ;;  %v14255_v33 = vpop.f32.mrb[87].mxu0  ;;  %15421 = vmatmul.mubr.bf16.gmra.mrb[68].mxu1 %v5103_v30 }
 0x1a1   :  { %15424 = vmatprep.mubr.msk.bf16.mxu1 %vm19832_vm0, %v24095_v0 }
 0x1a2   :  { %14361 = vmatmul.mubr.bf16.gmra.mrb[192].mxu0 %v19738_v31 }
 0x1a3   :  { %14364 = vmatprep.mubr.msk.bf16.mxu0 %vm19832_vm0, %v24095_v0 }
 0x1a5   :  { %v873_v34 = vpop.f32.mrb[88].mxu0  ;;  %v4986_v36 = vld [vmem:[#allocation2 + $0x149] sm:$0xff] }
 0x1a6   :  { %1324 = vst [vmem:[#allocation2 + $0x160] sm:$0xff] %v873_v34  ;;  %v14258_v37 = vpop.f32.mrb[89].mxu0  ;;  %v5104_v38 = vpack.c.bf16 %v4986_v36, %v4985_v35  ;;  %v19768_v35 = vld [vmem:[%s24093_s2 + $0x28] sm:$0xff]  }
 0x1a7   :  { %v876_v40 = vpop.f32.mrb[90].mxu0  ;;  %v4987_v44 = vld [vmem:[#allocation2 + $0x151] sm:$0xff]  ;;  %14471 = vmatpush3.bf16.msra.mxu0 %v19768_v35 }
 0x1a8   :  { %1325 = vst [vmem:[#allocation2 + $0x168] sm:$0xff] %v876_v40  ;;  %v14259_v41 = vpop.f32.mrb[91].mxu0  ;;  %15425 = vmatmul.mubr.bf16.gmra.mrb[72].mxu1 %v5104_v38  ;;  %v19748_v38 = vld [vmem:[%s24092_s0 + $0x1c0] sm:$0xff]   ;;  %14472 = vmatprep.subr.bf16.mxu0 %v24095_v0 }
 0x1a9   :  { %15428 = vmatprep.mubr.msk.bf16.mxu1 %vm19832_vm0, %v24095_v0  ;;  %v19770_v41 = vld [vmem:[%s24093_s2 + $0x30] sm:$0xff]  }
 0x1aa   :  { %14365 = vmatmul.mubr.bf16.gmra.mrb[196].mxu0 %v19741_v39 }
 0x1ab   :  { %14368 = vmatprep.mubr.msk.bf16.mxu0 %vm19832_vm0, %v24095_v0  ;;  %14473 = vmatpush3.bf16.msra.mxu0 %v19770_v41 }
 0x1ac   :  { %14474 = vmatprep.subr.bf16.mxu0 %v24095_v0 }
 0x1ad   :  { %v881_v43 = vpop.f32.mrb[92].mxu0  ;;  %v4988_v45 = vld [vmem:[#allocation2 + $0x159] sm:$0xff] }
 0x1ae   :  { %1326 = vst [vmem:[#allocation2 + $0x170] sm:$0xff] %v881_v43  ;;  %v14262_v47 = vpop.f32.mrb[93].mxu0  ;;  %v5105_v48 = vpack.c.bf16 %v4988_v45, %v4987_v44  ;;  %v19771_v45 = vld [vmem:[%s24093_s2 + $0x38] sm:$0xff]  }
 0x1af   :  { %v884_v52 = vpop.f32.mrb[94].mxu0  ;;  %v4989_v55 = vld [vmem:[#allocation2 + $0x161] sm:$0xff]  ;;  %14475 = vmatpush3.bf16.msra.mxu0 %v19771_v45 }
 0x1b0   :  { %1327 = vst [vmem:[#allocation2 + $0x178] sm:$0xff] %v884_v52  ;;  %v14263_v53 = vpop.f32.mrb[95].mxu0  ;;  %15429 = vmatmul.mubr.bf16.gmra.mrb[76].mxu1 %v5105_v48  ;;  %14752 = vmatprep.subr.bf16.mxu0 %v24095_v0  ;;  %v19758_v45 = vld [vmem:[%s24092_s0 + $0x200] sm:$0xff]  }
 0x1b1   :  { %15432 = vmatprep.mubr.msk.bf16.mxu1 %vm19832_vm0, %v24095_v0 }
 0x1b2   :  { %14369 = vmatmul.mubr.bf16.gmra.mrb[200].mxu0 %v19742_v51  ;;  %v19750_v51 = vld [vmem:[%s24092_s0 + $0x1c8] sm:$0xff]  }
 0x1b3   :  { %14372 = vmatprep.mubr.msk.bf16.mxu0 %vm19832_vm0, %v24095_v0 }
 0x1b5   :  { %v889_v54 = vpop.f32.mrb[96].mxu0  ;;  %v4990_v56 = vld [vmem:[#allocation2 + $0x169] sm:$0xff] }
 0x1b6   :  { %1328 = vst [vmem:[#allocation2 + $0x180] sm:$0xff] %v889_v54  ;;  %v14266_v57 = vpop.f32.mrb[97].mxu0  ;;  %v5106_v58 = vpack.c.bf16 %v4990_v56, %v4989_v55 }
 0x1b7   :  { %v892_v60 = vpop.f32.mrb[98].mxu0  ;;  %v4991_v1 = vld [vmem:[#allocation2 + $0x171] sm:$0xff] }
 0x1b8   :  { %1329 = vst [vmem:[#allocation2 + $0x188] sm:$0xff] %v892_v60  ;;  %v14267_v61 = vpop.f32.mrb[99].mxu0  ;;  %15433 = vmatmul.mubr.bf16.gmra.mrb[80].mxu1 %v5106_v58 }
 0x1b9   :  { %15436 = vmatprep.mubr.msk.bf16.mxu1 %vm19832_vm0, %v24095_v0 }
 0x1ba   :  { %14373 = vmatmul.mubr.bf16.gmra.mrb[204].mxu0 %v19743_v59  ;;  %v19752_v59 = vld [vmem:[%s24092_s0 + $0x1d0] sm:$0xff]  }
 0x1bb   :  { %14376 = vmatprep.mubr.msk.bf16.mxu0 %vm19832_vm0, %v24095_v0 }
 0x1bd   :  { %v897_v63 = vpop.f32.mrb[100].mxu0  ;;  %v4992_v2 = vld [vmem:[#allocation2 + $0x179] sm:$0xff] }
 0x1be   :  { %1330 = vst [vmem:[#allocation2 + $0x190] sm:$0xff] %v897_v63  ;;  %v14270_v3 = vpop.f32.mrb[101].mxu0  ;;  %v5107_v4 = vpack.c.bf16 %v4992_v2, %v4991_v1 }
 0x1bf   :  { %v900_v6 = vpop.f32.mrb[102].mxu0  ;;  %v4993_v9 = vld [vmem:[#allocation2 + $0x181] sm:$0xff] }
 0x1c0   :  { %1331 = vst [vmem:[#allocation2 + $0x198] sm:$0xff] %v900_v6  ;;  %v14271_v7 = vpop.f32.mrb[103].mxu0  ;;  %15437 = vmatmul.mubr.bf16.gmra.mrb[84].mxu1 %v5107_v4 }
 0x1c1   :  { %15440 = vmatprep.mubr.msk.bf16.mxu1 %vm19832_vm0, %v24095_v0 }
 0x1c2   :  { %14377 = vmatmul.mubr.bf16.gmra.mrb[208].mxu0 %v19744_v5  ;;  %v19753_v5 = vld [vmem:[%s24092_s0 + $0x1d8] sm:$0xff]  }
 0x1c3   :  { %14380 = vmatprep.mubr.msk.bf16.mxu0 %vm19832_vm0, %v24095_v0 }
 0x1c5   :  { %v905_v8 = vpop.f32.mrb[104].mxu0  ;;  %v4994_v10 = vld [vmem:[#allocation2 + $0x189] sm:$0xff] }
 0x1c6   :  { %1332 = vst [vmem:[#allocation2 + $0x1a0] sm:$0xff] %v905_v8  ;;  %v14274_v11 = vpop.f32.mrb[105].mxu0  ;;  %v5108_v12 = vpack.c.bf16 %v4994_v10, %v4993_v9 }
 0x1c7   :  { %v908_v14 = vpop.f32.mrb[106].mxu0  ;;  %v4995_v17 = vld [vmem:[#allocation2 + $0x191] sm:$0xff] }
 0x1c8   :  { %1333 = vst [vmem:[#allocation2 + $0x1a8] sm:$0xff] %v908_v14  ;;  %v14275_v15 = vpop.f32.mrb[107].mxu0  ;;  %15441 = vmatmul.mubr.bf16.gmra.mrb[88].mxu1 %v5108_v12 }
 0x1c9   :  { %15444 = vmatprep.mubr.msk.bf16.mxu1 %vm19832_vm0, %v24095_v0 }
 0x1ca   :  { %14381 = vmatmul.mubr.bf16.gmra.mrb[212].mxu0 %v19745_v13  ;;  %v19754_v13 = vld [vmem:[%s24092_s0 + $0x1e0] sm:$0xff]  }
 0x1cb   :  { %14384 = vmatprep.mubr.msk.bf16.mxu0 %vm19832_vm0, %v24095_v0 }
 0x1cd   :  { %v913_v16 = vpop.f32.mrb[108].mxu0  ;;  %v4996_v18 = vld [vmem:[#allocation2 + $0x199] sm:$0xff] }
 0x1ce   :  { %1334 = vst [vmem:[#allocation2 + $0x1b0] sm:$0xff] %v913_v16  ;;  %v14278_v19 = vpop.f32.mrb[109].mxu0  ;;  %v5109_v20 = vpack.c.bf16 %v4996_v18, %v4995_v17 }
 0x1cf   :  { %v916_v22 = vpop.f32.mrb[110].mxu0  ;;  %v4997_v25 = vld [vmem:[#allocation2 + $0x1a1] sm:$0xff] }
 0x1d0   :  { %1335 = vst [vmem:[#allocation2 + $0x1b8] sm:$0xff] %v916_v22  ;;  %v14279_v23 = vpop.f32.mrb[111].mxu0  ;;  %15445 = vmatmul.mubr.bf16.gmra.mrb[92].mxu1 %v5109_v20 }
 0x1d1   :  { %15448 = vmatprep.mubr.msk.bf16.mxu1 %vm19832_vm0, %v24095_v0 }
 0x1d2   :  { %14385 = vmatmul.mubr.bf16.gmra.mrb[216].mxu0 %v19746_v21  ;;  %v19755_v21 = vld [vmem:[%s24092_s0 + $0x1e8] sm:$0xff]  }
 0x1d3   :  { %14388 = vmatprep.mubr.msk.bf16.mxu0 %vm19832_vm0, %v24095_v0 }
 0x1d5   :  { %v921_v24 = vpop.f32.mrb[112].mxu0  ;;  %v4998_v26 = vld [vmem:[#allocation2 + $0x1a9] sm:$0xff] }
 0x1d6   :  { %1336 = vst [vmem:[#allocation2 + $0x1c0] sm:$0xff] %v921_v24  ;;  %v14282_v27 = vpop.f32.mrb[113].mxu0  ;;  %v5110_v28 = vpack.c.bf16 %v4998_v26, %v4997_v25 }
 0x1d7   :  { %v924_v30 = vpop.f32.mrb[114].mxu0  ;;  %v4999_v33 = vld [vmem:[#allocation2 + $0x1b1] sm:$0xff] }
 0x1d8   :  { %1337 = vst [vmem:[#allocation2 + $0x1c8] sm:$0xff] %v924_v30  ;;  %v14283_v31 = vpop.f32.mrb[115].mxu0  ;;  %15449 = vmatmul.mubr.bf16.gmra.mrb[96].mxu1 %v5110_v28 }
 0x1d9   :  { %15452 = vmatprep.mubr.msk.bf16.mxu1 %vm19832_vm0, %v24095_v0 }
 0x1da   :  { %14389 = vmatmul.mubr.bf16.gmra.mrb[220].mxu0 %v19747_v29  ;;  %v19756_v29 = vld [vmem:[%s24092_s0 + $0x1f0] sm:$0xff]  }
 0x1db   :  { %14392 = vmatprep.mubr.msk.bf16.mxu0 %vm19832_vm0, %v24095_v0 }
 0x1dd   :  { %v929_v32 = vpop.f32.mrb[116].mxu0  ;;  %v5000_v34 = vld [vmem:[#allocation2 + $0x1b9] sm:$0xff] }
 0x1de   :  { %1338 = vst [vmem:[#allocation2 + $0x1d0] sm:$0xff] %v929_v32  ;;  %v14286_v36 = vpop.f32.mrb[117].mxu0  ;;  %v5111_v37 = vpack.c.bf16 %v5000_v34, %v4999_v33 }
 0x1df   :  { %v932_v39 = vpop.f32.mrb[118].mxu0  ;;  %v5001_v43 = vld [vmem:[#allocation2 + $0x1c1] sm:$0xff] }
 0x1e0   :  { %1339 = vst [vmem:[#allocation2 + $0x1d8] sm:$0xff] %v932_v39  ;;  %v14287_v40 = vpop.f32.mrb[119].mxu0  ;;  %15453 = vmatmul.mubr.bf16.gmra.mrb[100].mxu1 %v5111_v37  ;;  %v19757_v37 = vld [vmem:[%s24092_s0 + $0x1f8] sm:$0xff]  }
 0x1e1   :  { %15456 = vmatprep.mubr.msk.bf16.mxu1 %vm19832_vm0, %v24095_v0 }
 0x1e2   :  { %14393 = vmatmul.mubr.bf16.gmra.mrb[224].mxu0 %v19748_v38 }
 0x1e3   :  { %14396 = vmatprep.mubr.msk.bf16.mxu0 %vm19832_vm0, %v24095_v0 }
 0x1e5   :  { %v937_v42 = vpop.f32.mrb[120].mxu0  ;;  %v5002_v44 = vld [vmem:[#allocation2 + $0x1c9] sm:$0xff] }
 0x1e6   :  { %1340 = vst [vmem:[#allocation2 + $0x1e0] sm:$0xff] %v937_v42  ;;  %v14290_v47 = vpop.f32.mrb[121].mxu0  ;;  %v5112_v48 = vpack.c.bf16 %v5002_v44, %v5001_v43 }
 0x1e7   :  { %v940_v52 = vpop.f32.mrb[122].mxu0  ;;  %v5003_v55 = vld [vmem:[#allocation2 + $0x1d1] sm:$0xff] }
 0x1e8   :  { %1341 = vst [vmem:[#allocation2 + $0x1e8] sm:$0xff] %v940_v52  ;;  %v14291_v53 = vpop.f32.mrb[123].mxu0  ;;  %15457 = vmatmul.mubr.bf16.gmra.mrb[104].mxu1 %v5112_v48 }
 0x1e9   :  { %15460 = vmatprep.mubr.msk.bf16.mxu1 %vm19832_vm0, %v24095_v0 }
 0x1ea   :  { %14397 = vmatmul.mubr.bf16.gmra.mrb[228].mxu0 %v19750_v51 }
 0x1eb   :  { %14400 = vmatprep.mubr.msk.bf16.mxu0 %vm19832_vm0, %v24095_v0 }
 0x1ed   :  { %v945_v54 = vpop.f32.mrb[124].mxu0  ;;  %v5004_v56 = vld [vmem:[#allocation2 + $0x1d9] sm:$0xff] }
 0x1ee   :  { %1342 = vst [vmem:[#allocation2 + $0x1f0] sm:$0xff] %v945_v54  ;;  %v14294_v57 = vpop.f32.mrb[125].mxu0  ;;  %v5113_v58 = vpack.c.bf16 %v5004_v56, %v5003_v55  ;;  %v19759_v56 = vld [vmem:[%s24092_s0 + $0x208] sm:$0xff]  }
 0x1ef   :  { %v948_v60 = vpop.f32.mrb[126].mxu0  ;;  %v5005_v1 = vld [vmem:[#allocation2 + $0x1e1] sm:$0xff] }
 0x1f0   :  { %1343 = vst [vmem:[#allocation2 + $0x1f8] sm:$0xff] %v948_v60  ;;  %v14295_v61 = vpop.f32.mrb[127].mxu0  ;;  %15461 = vmatmul.mubr.bf16.gmra.mrb[108].mxu1 %v5113_v58 }
 0x1f1   :  { %15464 = vmatprep.mubr.msk.bf16.mxu1 %vm19832_vm0, %v24095_v0 }
 0x1f2   :  { %14401 = vmatmul.mubr.bf16.gmra.mrb[232].mxu0 %v19752_v59 }
 0x1f3   :  { %14404 = vmatprep.mubr.msk.bf16.mxu0 %vm19832_vm0, %v24095_v0 }
 0x1f5   :  { %v953_v63 = vpop.f32.mrb[128].mxu0  ;;  %v5006_v2 = vld [vmem:[#allocation2 + $0x1e9] sm:$0xff] }
 0x1f6   :  { %1344 = vst [vmem:[#allocation2 + $0x200] sm:$0xff] %v953_v63  ;;  %v14298_v3 = vpop.f32.mrb[129].mxu0  ;;  %v5114_v4 = vpack.c.bf16 %v5006_v2, %v5005_v1  ;;  %v19761_v1 = vld [vmem:[%s24092_s0 + $0x210] sm:$0xff]  }
 0x1f7   :  { %v956_v6 = vpop.f32.mrb[130].mxu0  ;;  %v5007_v9 = vld [vmem:[#allocation2 + $0x1f1] sm:$0xff] }
 0x1f8   :  { %1345 = vst [vmem:[#allocation2 + $0x208] sm:$0xff] %v956_v6  ;;  %v14299_v7 = vpop.f32.mrb[131].mxu0  ;;  %15465 = vmatmul.mubr.bf16.gmra.mrb[112].mxu1 %v5114_v4 }
 0x1f9   :  { %15468 = vmatprep.mubr.msk.bf16.mxu1 %vm19832_vm0, %v24095_v0 }
 0x1fa   :  { %14405 = vmatmul.mubr.bf16.gmra.mrb[236].mxu0 %v19753_v5 }
 0x1fb   :  { %14408 = vmatprep.mubr.msk.bf16.mxu0 %vm19832_vm0, %v24095_v0 }
 0x1fd   :  { %v961_v8 = vpop.f32.mrb[132].mxu0  ;;  %v5008_v10 = vld [vmem:[#allocation2 + $0x1f9] sm:$0xff] }
 0x1fe   :  { %1346 = vst [vmem:[#allocation2 + $0x210] sm:$0xff] %v961_v8  ;;  %v14302_v11 = vpop.f32.mrb[133].mxu0  ;;  %v5115_v12 = vpack.c.bf16 %v5008_v10, %v5007_v9  ;;  %v19762_v9 = vld [vmem:[%s24092_s0 + $0x218] sm:$0xff]   ;;  %v19773_v10 = vld [vmem:[%s24093_s2 + $0x130] sm:$0xff]  }
 0x1ff   :  { %v964_v14 = vpop.f32.mrb[134].mxu0  ;;  %v5009_v17 = vld [vmem:[#allocation2 + $0x201] sm:$0xff]  ;;  %15641 = vmatpush3.bf16.msra.mxu1 %v19773_v10 }
 0x200   :  { %1347 = vst [vmem:[#allocation2 + $0x218] sm:$0xff] %v964_v14  ;;  %v14303_v15 = vpop.f32.mrb[135].mxu0  ;;  %15469 = vmatmul.mubr.bf16.gmra.mrb[116].mxu1 %v5115_v12  ;;  %15642 = vmatprep.subr.bf16.mxu1 %v24095_v0  ;;  %v1431_v10 = vld [vmem:[#allocation2 + $0x28] sm:$0xff] }
 0x201   :  { %15472 = vmatprep.mubr.msk.bf16.mxu1 %vm19832_vm0, %v24095_v0 }
 0x202   :  { %14409 = vmatmul.mubr.bf16.gmra.mrb[240].mxu0 %v19754_v13 }
 0x203   :  { %14412 = vmatprep.mubr.msk.bf16.mxu0 %vm19832_vm0, %v24095_v0 }
 0x205   :  { %v969_v16 = vpop.f32.mrb[136].mxu0  ;;  %v5010_v18 = vld [vmem:[#allocation2 + $0x209] sm:$0xff] }
 0x206   :  { %1348 = vst [vmem:[#allocation2 + $0x220] sm:$0xff] %v969_v16  ;;  %v14306_v19 = vpop.f32.mrb[137].mxu0  ;;  %v5116_v20 = vpack.c.bf16 %v5010_v18, %v5009_v17  ;;  %v19764_v18 = vld [vmem:[%s24092_s0 + $0x220] sm:$0xff]  }
 0x207   :  { %v972_v22 = vpop.f32.mrb[138].mxu0  ;;  %v5011_v25 = vld [vmem:[#allocation2 + $0x211] sm:$0xff] }
 0x208   :  { %1349 = vst [vmem:[#allocation2 + $0x228] sm:$0xff] %v972_v22  ;;  %v14307_v23 = vpop.f32.mrb[139].mxu0  ;;  %15473 = vmatmul.mubr.bf16.gmra.mrb[120].mxu1 %v5116_v20 }
 0x209   :  { %15476 = vmatprep.mubr.msk.bf16.mxu1 %vm19832_vm0, %v24095_v0 }
 0x20a   :  { %14413 = vmatmul.mubr.bf16.gmra.mrb[244].mxu0 %v19755_v21 }
 0x20b   :  { %14416 = vmatprep.mubr.msk.bf16.mxu0 %vm19832_vm0, %v24095_v0 }
 0x20d   :  { %v977_v24 = vpop.f32.mrb[140].mxu0  ;;  %v5012_v26 = vld [vmem:[#allocation2 + $0x219] sm:$0xff] }
 0x20e   :  { %1350 = vst [vmem:[#allocation2 + $0x230] sm:$0xff] %v977_v24  ;;  %v14310_v27 = vpop.f32.mrb[141].mxu0  ;;  %v5117_v28 = vpack.c.bf16 %v5012_v26, %v5011_v25  ;;  %v19765_v26 = vld [vmem:[%s24092_s0 + $0x228] sm:$0xff]  }
 0x20f   :  { %v980_v30 = vpop.f32.mrb[142].mxu0  ;;  %v5013_v33 = vld [vmem:[#allocation2 + $0x221] sm:$0xff] }
 0x210   :  { %1351 = vst [vmem:[#allocation2 + $0x238] sm:$0xff] %v980_v30  ;;  %v14311_v31 = vpop.f32.mrb[143].mxu0  ;;  %15477 = vmatmul.mubr.bf16.gmra.mrb[124].mxu1 %v5117_v28 }
 0x211   :  { %15480 = vmatprep.mubr.msk.bf16.mxu1 %vm19832_vm0, %v24095_v0 }
 0x212   :  { %14417 = vmatmul.mubr.bf16.gmra.mrb[248].mxu0 %v19756_v29 }
 0x213   :  { %14420 = vmatprep.mubr.msk.bf16.mxu0 %vm19832_vm0, %v24095_v0 }
 0x215   :  { %v985_v32 = vpop.f32.mrb[144].mxu0  ;;  %v5014_v34 = vld [vmem:[#allocation2 + $0x229] sm:$0xff] }
 0x216   :  { %1352 = vst [vmem:[#allocation2 + $0x240] sm:$0xff] %v985_v32  ;;  %v14314_v35 = vpop.f32.mrb[145].mxu0  ;;  %v5118_v36 = vpack.c.bf16 %v5014_v34, %v5013_v33  ;;  %v19766_v34 = vld [vmem:[%s24092_s0 + $0x230] sm:$0xff]  }
 0x217   :  { %v988_v38 = vpop.f32.mrb[146].mxu0  ;;  %v5015_v41 = vld [vmem:[#allocation2 + $0x231] sm:$0xff] }
 0x218   :  { %1353 = vst [vmem:[#allocation2 + $0x248] sm:$0xff] %v988_v38  ;;  %v14315_v39 = vpop.f32.mrb[147].mxu0  ;;  %15481 = vmatmul.mubr.bf16.gmra.mrb[128].mxu1 %v5118_v36 }
 0x219   :  { %15484 = vmatprep.mubr.msk.bf16.mxu1 %vm19832_vm0, %v24095_v0 }
 0x21a   :  { %14421 = vmatmul.mubr.bf16.gmra.mrb[252].mxu0 %v19757_v37 }
 0x21b   :  { %14424 = vmatprep.mubr.msk.bf16.mxu0 %vm19832_vm0, %v24095_v0 }
 0x21d   :  { %v993_v40 = vpop.f32.mrb[148].mxu0  ;;  %v5016_v42 = vld [vmem:[#allocation2 + $0x239] sm:$0xff] }
 0x21e   :  { %1354 = vst [vmem:[#allocation2 + $0x250] sm:$0xff] %v993_v40  ;;  %v14318_v43 = vpop.f32.mrb[149].mxu0  ;;  %v5119_v44 = vpack.c.bf16 %v5016_v42, %v5015_v41  ;;  %v19767_v42 = vld [vmem:[%s24092_s0 + $0x238] sm:$0xff]  }
 0x21f   :  { %v996_v47 = vpop.f32.mrb[150].mxu0  ;;  %v5017_v52 = vld [vmem:[#allocation2 + $0x241] sm:$0xff] }
 0x220   :  { %1355 = vst [vmem:[#allocation2 + $0x258] sm:$0xff] %v996_v47  ;;  %v14319_v48 = vpop.f32.mrb[151].mxu0  ;;  %15485 = vmatmul.mubr.bf16.gmra.mrb[132].mxu1 %v5119_v44 }
 0x221   :  { %15488 = vmatprep.mubr.msk.bf16.mxu1 %vm19832_vm0, %v24095_v0 }
 0x222   :  { %14425 = vmatmul.mubr.bf16.gmra.mrb[0].mxu0 %v19758_v45 }
 0x223   :  { %14428 = vmatprep.mubr.msk.bf16.mxu0 %vm19832_vm0, %v24095_v0 }
 0x225   :  { %v1001_v51 = vpop.f32.mrb[152].mxu0  ;;  %v5018_v53 = vld [vmem:[#allocation2 + $0x249] sm:$0xff] }
 0x226   :  { %1356 = vst [vmem:[#allocation2 + $0x260] sm:$0xff] %v1001_v51  ;;  %v14322_v54 = vpop.f32.mrb[153].mxu0  ;;  %v5120_v55 = vpack.c.bf16 %v5018_v53, %v5017_v52  ;;  %v19769_v53 = vld [vmem:[%s24092_s0 + $0x240] sm:$0xff]  }
 0x227   :  { %v1004_v57 = vpop.f32.mrb[154].mxu0  ;;  %v5019_v60 = vld [vmem:[#allocation2 + $0x251] sm:$0xff] }
 0x228   :  { %1357 = vst [vmem:[#allocation2 + $0x268] sm:$0xff] %v1004_v57  ;;  %v14323_v58 = vpop.f32.mrb[155].mxu0  ;;  %15489 = vmatmul.mubr.bf16.gmra.mrb[136].mxu1 %v5120_v55 }
 0x229   :  { %15492 = vmatprep.mubr.msk.bf16.mxu1 %vm19832_vm0, %v24095_v0 }
 0x22a   :  { %14429 = vmatmul.mubr.bf16.gmra.mrb[4].mxu0 %v19759_v56 }
 0x22b   :  { %14432 = vmatprep.mubr.msk.bf16.mxu0 %vm19832_vm0, %v24095_v0 }
 0x22d   :  { %v1009_v59 = vpop.f32.mrb[156].mxu0  ;;  %v5020_v61 = vld [vmem:[#allocation2 + $0x259] sm:$0xff] }
 0x22e   :  { %1358 = vst [vmem:[#allocation2 + $0x270] sm:$0xff] %v1009_v59  ;;  %v14326_v62 = vpop.f32.mrb[157].mxu0  ;;  %v5121_v63 = vpack.c.bf16 %v5020_v61, %v5019_v60 }
 0x22f   :  { %v1012_v2 = vpop.f32.mrb[158].mxu0  ;;  %v5021_v5 = vld [vmem:[#allocation2 + $0x261] sm:$0xff] }
 0x230   :  { %1359 = vst [vmem:[#allocation2 + $0x278] sm:$0xff] %v1012_v2  ;;  %v14327_v3 = vpop.f32.mrb[159].mxu0  ;;  %15493 = vmatmul.mubr.bf16.gmra.mrb[140].mxu1 %v5121_v63 }
 0x231   :  { %15496 = vmatprep.mubr.msk.bf16.mxu1 %vm19832_vm0, %v24095_v0  ;;  %v1429_v3 = vld [vmem:[#allocation2 + $0x18] sm:$0xff] }
 0x232   :  { %14433 = vmatmul.mubr.bf16.gmra.mrb[8].mxu0 %v19761_v1 }
 0x233   :  { %14436 = vmatprep.mubr.msk.bf16.mxu0 %vm19832_vm0, %v24095_v0 }
 0x235   :  { %v1017_v4 = vpop.f32.mrb[160].mxu0  ;;  %v5022_v6 = vld [vmem:[#allocation2 + $0x269] sm:$0xff] }
 0x236   :  { %1360 = vst [vmem:[#allocation2 + $0x280] sm:$0xff] %v1017_v4  ;;  %v14330_v7 = vpop.f32.mrb[161].mxu0  ;;  %v5122_v8 = vpack.c.bf16 %v5022_v6, %v5021_v5 }
 0x237   :  { %v1020_v11 = vpop.f32.mrb[162].mxu0  ;;  %v5023_v14 = vld [vmem:[#allocation2 + $0x271] sm:$0xff] }
 0x238   :  { %1361 = vst [vmem:[#allocation2 + $0x288] sm:$0xff] %v1020_v11  ;;  %v14331_v12 = vpop.f32.mrb[163].mxu0  ;;  %15497 = vmatmul.mubr.bf16.gmra.mrb[144].mxu1 %v5122_v8  ;;  %v1428_v7 = vld [vmem:[#allocation2 + $0x10] sm:$0xff] }
 0x239   :  { %15500 = vmatprep.mubr.msk.bf16.mxu1 %vm19832_vm0, %v24095_v0 }
 0x23a   :  { %14437 = vmatmul.mubr.bf16.gmra.mrb[12].mxu0 %v19762_v9  ;;  %v1564_v9 = vpack.c.bf16 %v1429_v3, %v1428_v7 }
 0x23b   :  { %14440 = vmatprep.mubr.msk.bf16.mxu0 %vm19832_vm0, %v24095_v0 }
 0x23d   :  { %v1025_v13 = vpop.f32.mrb[164].mxu0  ;;  %v5024_v15 = vld [vmem:[#allocation2 + $0x279] sm:$0xff] }
 0x23e   :  { %1362 = vst [vmem:[#allocation2 + $0x290] sm:$0xff] %v1025_v13  ;;  %v14334_v16 = vpop.f32.mrb[165].mxu0  ;;  %v5123_v17 = vpack.c.bf16 %v5024_v15, %v5023_v14  ;;  %v1430_v14 = vld [vmem:[#allocation2 + $0x20] sm:$0xff] }
 0x23f   :  { %v1028_v19 = vpop.f32.mrb[166].mxu0  ;;  %v5025_v22 = vld [vmem:[#allocation2 + $0x281] sm:$0xff]  ;;  %v1565_v16 = vpack.c.bf16 %v1431_v10, %v1430_v14 }
 0x240   :  { %1363 = vst [vmem:[#allocation2 + $0x298] sm:$0xff] %v1028_v19  ;;  %v14335_v20 = vpop.f32.mrb[167].mxu0  ;;  %15501 = vmatmul.mubr.bf16.gmra.mrb[148].mxu1 %v5123_v17  ;;  %v19774_v17 = vld [vmem:[%s24093_s2 + $0x138] sm:$0xff]  }
 0x241   :  { %15504 = vmatprep.mubr.msk.bf16.mxu1 %vm19832_vm0, %v24095_v0  ;;  %15643 = vmatpush3.bf16.msra.mxu1 %v19774_v17 }
 0x242   :  { %14441 = vmatmul.mubr.bf16.gmra.mrb[16].mxu0 %v19764_v18  ;;  %15920 = vmatprep.subr.bf16.mxu1 %v24095_v0 }
 0x243   :  { %14444 = vmatprep.mubr.msk.bf16.mxu0 %vm19832_vm0, %v24095_v0 }
 0x245   :  { %v1033_v21 = vpop.f32.mrb[168].mxu0  ;;  %v5026_v23 = vld [vmem:[#allocation2 + $0x289] sm:$0xff] }
 0x246   :  { %1364 = vst [vmem:[#allocation2 + $0x2a0] sm:$0xff] %v1033_v21  ;;  %v14338_v24 = vpop.f32.mrb[169].mxu0  ;;  %v5124_v25 = vpack.c.bf16 %v5026_v23, %v5025_v22  ;;  %v1433_v21 = vld [vmem:[#allocation2 + $0x38] sm:$0xff] }
 0x247   :  { %v1036_v27 = vpop.f32.mrb[170].mxu0  ;;  %v5027_v30 = vld [vmem:[#allocation2 + $0x291] sm:$0xff] }
 0x248   :  { %1365 = vst [vmem:[#allocation2 + $0x2a8] sm:$0xff] %v1036_v27  ;;  %v14339_v28 = vpop.f32.mrb[171].mxu0  ;;  %15505 = vmatmul.mubr.bf16.gmra.mrb[152].mxu1 %v5124_v25  ;;  %v1432_v25 = vld [vmem:[#allocation2 + $0x30] sm:$0xff] }
 0x249   :  { %15508 = vmatprep.mubr.msk.bf16.mxu1 %vm19832_vm0, %v24095_v0  ;;  %v1566_v27 = vpack.c.bf16 %v1433_v21, %v1432_v25 }
 0x24a   :  { %14445 = vmatmul.mubr.bf16.gmra.mrb[20].mxu0 %v19765_v26 }
 0x24b   :  { %14448 = vmatprep.mubr.msk.bf16.mxu0 %vm19832_vm0, %v24095_v0 }
 0x24d   :  { %v1041_v29 = vpop.f32.mrb[172].mxu0  ;;  %v5028_v31 = vld [vmem:[#allocation2 + $0x299] sm:$0xff] }
 0x24e   :  { %1366 = vst [vmem:[#allocation2 + $0x2b0] sm:$0xff] %v1041_v29  ;;  %v14342_v32 = vpop.f32.mrb[173].mxu0  ;;  %v5125_v33 = vpack.c.bf16 %v5028_v31, %v5027_v30  ;;  %v1435_v31 = vld [vmem:[#allocation2 + $0x48] sm:$0xff] }
 0x24f   :  { %v1044_v35 = vpop.f32.mrb[174].mxu0  ;;  %v5029_v38 = vld [vmem:[#allocation2 + $0x2a1] sm:$0xff] }
 0x250   :  { %1367 = vst [vmem:[#allocation2 + $0x2b8] sm:$0xff] %v1044_v35  ;;  %v14343_v36 = vpop.f32.mrb[175].mxu0  ;;  %15509 = vmatmul.mubr.bf16.gmra.mrb[156].mxu1 %v5125_v33  ;;  %v1434_v35 = vld [vmem:[#allocation2 + $0x40] sm:$0xff] }
 0x251   :  { %15512 = vmatprep.mubr.msk.bf16.mxu1 %vm19832_vm0, %v24095_v0 }
 0x252   :  { %14449 = vmatmul.mubr.bf16.gmra.mrb[24].mxu0 %v19766_v34 }
 0x253   :  { %14452 = vmatprep.mubr.msk.bf16.mxu0 %vm19832_vm0, %v24095_v0 }
 0x255   :  { %v1049_v37 = vpop.f32.mrb[176].mxu0  ;;  %v5030_v39 = vld [vmem:[#allocation2 + $0x2a9] sm:$0xff] }
 0x256   :  { %1368 = vst [vmem:[#allocation2 + $0x2c0] sm:$0xff] %v1049_v37  ;;  %v14346_v40 = vpop.f32.mrb[177].mxu0  ;;  %v5126_v41 = vpack.c.bf16 %v5030_v39, %v5029_v38  ;;  %v1567_v37 = vpack.c.bf16 %v1435_v31, %v1434_v35 }
 0x257   :  { %v1052_v43 = vpop.f32.mrb[178].mxu0  ;;  %v5031_v47 = vld [vmem:[#allocation2 + $0x2b1] sm:$0xff] }
 0x258   :  { %1369 = vst [vmem:[#allocation2 + $0x2c8] sm:$0xff] %v1052_v43  ;;  %v14347_v44 = vpop.f32.mrb[179].mxu0  ;;  %15513 = vmatmul.mubr.bf16.gmra.mrb[160].mxu1 %v5126_v41  ;;  %v1437_v41 = vld [vmem:[#allocation2 + $0x58] sm:$0xff] }
 0x259   :  { %15516 = vmatprep.mubr.msk.bf16.mxu1 %vm19832_vm0, %v24095_v0 }
 0x25a   :  { %14453 = vmatmul.mubr.bf16.gmra.mrb[28].mxu0 %v19767_v42 }
 0x25b   :  { %14456 = vmatprep.mubr.msk.bf16.mxu0 %vm19832_vm0, %v24095_v0 }
 0x25d   :  { %v1057_v45 = vpop.f32.mrb[180].mxu0  ;;  %v5032_v48 = vld [vmem:[#allocation2 + $0x2b9] sm:$0xff] }
 0x25e   :  { %1370 = vst [vmem:[#allocation2 + $0x2d0] sm:$0xff] %v1057_v45  ;;  %v14350_v51 = vpop.f32.mrb[181].mxu0  ;;  %v5127_v52 = vpack.c.bf16 %v5032_v48, %v5031_v47  ;;  %v1436_v45 = vld [vmem:[#allocation2 + $0x50] sm:$0xff] }
 0x25f   :  { %v1060_v54 = vpop.f32.mrb[182].mxu0  ;;  %v5033_v57 = vld [vmem:[#allocation2 + $0x2c1] sm:$0xff]  ;;  %v1568_v48 = vpack.c.bf16 %v1437_v41, %v1436_v45 }
 0x260   :  { %1371 = vst [vmem:[#allocation2 + $0x2d8] sm:$0xff] %v1060_v54  ;;  %v14351_v55 = vpop.f32.mrb[183].mxu0  ;;  %15517 = vmatmul.mubr.bf16.gmra.mrb[164].mxu1 %v5127_v52  ;;  %v1439_v54 = vld [vmem:[#allocation2 + $0x68] sm:$0xff] }
 0x261   :  { %15520 = vmatprep.mubr.msk.bf16.mxu1 %vm19832_vm0, %v24095_v0 }
 0x262   :  { %14457 = vmatmul.mubr.bf16.gmra.mrb[32].mxu0 %v19769_v53 }
 0x263   :  { %14476 = vmatprep.mubr.msk.bf16.mxu0 %vm19832_vm0, %v24095_v0 }
 0x265   :  { %v1065_v56 = vpop.f32.mrb[184].mxu0  ;;  %v5034_v58 = vld [vmem:[#allocation2 + $0x2c9] sm:$0xff] }
 0x266   :  { %1372 = vst [vmem:[#allocation2 + $0x2e0] sm:$0xff] %v1065_v56  ;;  %v14354_v59 = vpop.f32.mrb[185].mxu0  ;;  %v5128_v60 = vpack.c.bf16 %v5034_v58, %v5033_v57  ;;  %v1438_v58 = vld [vmem:[#allocation2 + $0x60] sm:$0xff] }
 0x267   :  { %v1068_v61 = vpop.f32.mrb[186].mxu0  ;;  %v5035_v1 = vld [vmem:[#allocation2 + $0x2d1] sm:$0xff] }
 0x268   :  { %1373 = vst [vmem:[#allocation2 + $0x2e8] sm:$0xff] %v1068_v61  ;;  %v14355_v62 = vpop.f32.mrb[187].mxu0  ;;  %15521 = vmatmul.mubr.bf16.gmra.mrb[168].mxu1 %v5128_v60  ;;  %v1569_v60 = vpack.c.bf16 %v1439_v54, %v1438_v58 }
 0x269   :  { %15524 = vmatprep.mubr.msk.bf16.mxu1 %vm19832_vm0, %v24095_v0 }
 0x26a   :  { %14477 = vmatmul.mubr.bf16.vlgmr.msra.gmra.mrb[36].mxu0 %v1563_v50 }
 0x26b   :  { %14480 = vmatprep.mubr.msk.bf16.mxu0 %vm19832_vm0, %v24095_v0 }
 0x26d   :  { %v1073_v63 = vpop.f32.mrb[188].mxu0  ;;  %v5036_v2 = vld [vmem:[#allocation2 + $0x2d9] sm:$0xff] }
 0x26e   :  { %1374 = vst [vmem:[#allocation2 + $0x2f0] sm:$0xff] %v1073_v63  ;;  %v14358_v4 = vpop.f32.mrb[189].mxu0  ;;  %v5129_v5 = vpack.c.bf16 %v5036_v2, %v5035_v1  ;;  %v1441_v1 = vld [vmem:[#allocation2 + $0x78] sm:$0xff] }
 0x26f   :  { %v1076_v6 = vpop.f32.mrb[190].mxu0  ;;  %v5037_v49 = vld [vmem:[#allocation2 + $0x2e1] sm:$0xff] }
 0x270   :  { %1375 = vst [vmem:[#allocation2 + $0x2f8] sm:$0xff] %v1076_v6  ;;  %v14359_v8 = vpop.f32.mrb[191].mxu0  ;;  %15525 = vmatmul.mubr.bf16.gmra.mrb[172].mxu1 %v5129_v5  ;;  %v1440_v5 = vld [vmem:[#allocation2 + $0x70] sm:$0xff] }
 0x271   :  { %15528 = vmatprep.mubr.msk.bf16.mxu1 %vm19832_vm0, %v24095_v0  ;;  %v1570_v7 = vpack.c.bf16 %v1441_v1, %v1440_v5 }
 0x272   :  { %14481 = vmatmul.mubr.bf16.gmra.mrb[40].mxu0 %v1564_v9 }
 0x273   :  { %14484 = vmatprep.mubr.msk.bf16.mxu0 %vm19832_vm0, %v24095_v0 }
 0x275   :  { %v1081_v46 = vpop.f32.mrb[192].mxu0  ;;  %v5038_v50 = vld [vmem:[#allocation2 + $0x2e9] sm:$0xff] }
 0x276   :  { %1376 = vst [vmem:[#allocation2 + $0x300] sm:$0xff] %v1081_v46  ;;  %v14362_v11 = vpop.f32.mrb[193].mxu0  ;;  %v5130_v12 = vpack.c.bf16 %v5038_v50, %v5037_v49  ;;  %v1443_v49 = vld [vmem:[#allocation2 + $0x88] sm:$0xff] }
 0x277   :  { %v1084_v13 = vpop.f32.mrb[194].mxu0  ;;  %v5039_v19 = vld [vmem:[#allocation2 + $0x2f1] sm:$0xff] }
 0x278   :  { %1377 = vst [vmem:[#allocation2 + $0x308] sm:$0xff] %v1084_v13  ;;  %v14363_v15 = vpop.f32.mrb[195].mxu0  ;;  %15529 = vmatmul.mubr.bf16.gmra.mrb[176].mxu1 %v5130_v12  ;;  %v1442_v12 = vld [vmem:[#allocation2 + $0x80] sm:$0xff] }
 0x279   :  { %15532 = vmatprep.mubr.msk.bf16.mxu1 %vm19832_vm0, %v24095_v0  ;;  %v1571_v14 = vpack.c.bf16 %v1443_v49, %v1442_v12  ;;  %v19776_v12 = vld [vmem:[%s24093_s2 + $0x40] sm:$0xff]  }
 0x27a   :  { %14485 = vmatmul.mubr.bf16.gmra.mrb[44].mxu0 %v1565_v16 }
 0x27b   :  { %14488 = vmatprep.mubr.msk.bf16.mxu0 %vm19832_vm0, %v24095_v0  ;;  %14753 = vmatpush3.bf16.msra.mxu0 %v19776_v12 }
 0x27c   :  { %14754 = vmatprep.subr.bf16.mxu0 %v24095_v0 }
 0x27d   :  { %v1089_v18 = vpop.f32.mrb[196].mxu0  ;;  %v5040_v20 = vld [vmem:[#allocation2 + $0x2f9] sm:$0xff] }
 0x27e   :  { %1378 = vst [vmem:[#allocation2 + $0x310] sm:$0xff] %v1089_v18  ;;  %v14366_v22 = vpop.f32.mrb[197].mxu0  ;;  %v5131_v23 = vpack.c.bf16 %v5040_v20, %v5039_v19  ;;  %v1445_v18 = vld [vmem:[#allocation2 + $0x98] sm:$0xff] }
 0x27f   :  { %v1092_v24 = vpop.f32.mrb[198].mxu0  ;;  %v5041_v29 = vld [vmem:[#allocation2 + $0x301] sm:$0xff]  ;;  %v1444_v22 = vld [vmem:[#allocation2 + $0x90] sm:$0xff] }
 0x280   :  { %1379 = vst [vmem:[#allocation2 + $0x318] sm:$0xff] %v1092_v24  ;;  %v14367_v26 = vpop.f32.mrb[199].mxu0  ;;  %15533 = vmatmul.mubr.bf16.gmra.mrb[180].mxu1 %v5131_v23  ;;  %v1572_v24 = vpack.c.bf16 %v1445_v18, %v1444_v22 }
 0x281   :  { %15536 = vmatprep.mubr.msk.bf16.mxu1 %vm19832_vm0, %v24095_v0 }
 0x282   :  { %14489 = vmatmul.mubr.bf16.gmra.mrb[48].mxu0 %v1566_v27 }
 0x283   :  { %14492 = vmatprep.mubr.msk.bf16.mxu0 %vm19832_vm0, %v24095_v0 }
 0x285   :  { %v1097_v28 = vpop.f32.mrb[200].mxu0  ;;  %v5042_v30 = vld [vmem:[#allocation2 + $0x309] sm:$0xff] }
 0x286   :  { %1380 = vst [vmem:[#allocation2 + $0x320] sm:$0xff] %v1097_v28  ;;  %v14370_v32 = vpop.f32.mrb[201].mxu0  ;;  %v5132_v33 = vpack.c.bf16 %v5042_v30, %v5041_v29  ;;  %v1447_v28 = vld [vmem:[#allocation2 + $0xa8] sm:$0xff] }
 0x287   :  { %v1100_v34 = vpop.f32.mrb[202].mxu0  ;;  %v5043_v39 = vld [vmem:[#allocation2 + $0x311] sm:$0xff]  ;;  %v1446_v32 = vld [vmem:[#allocation2 + $0xa0] sm:$0xff] }
 0x288   :  { %1381 = vst [vmem:[#allocation2 + $0x328] sm:$0xff] %v1100_v34  ;;  %v14371_v36 = vpop.f32.mrb[203].mxu0  ;;  %15537 = vmatmul.mubr.bf16.gmra.mrb[184].mxu1 %v5132_v33  ;;  %v1573_v34 = vpack.c.bf16 %v1447_v28, %v1446_v32 }
 0x289   :  { %15540 = vmatprep.mubr.msk.bf16.mxu1 %vm19832_vm0, %v24095_v0 }
 0x28a   :  { %14493 = vmatmul.mubr.bf16.gmra.mrb[52].mxu0 %v1567_v37 }
 0x28b   :  { %14496 = vmatprep.mubr.msk.bf16.mxu0 %vm19832_vm0, %v24095_v0 }
 0x28d   :  { %v1105_v38 = vpop.f32.mrb[204].mxu0  ;;  %v5044_v40 = vld [vmem:[#allocation2 + $0x319] sm:$0xff] }
 0x28e   :  { %1382 = vst [vmem:[#allocation2 + $0x330] sm:$0xff] %v1105_v38  ;;  %v14374_v42 = vpop.f32.mrb[205].mxu0  ;;  %v5133_v43 = vpack.c.bf16 %v5044_v40, %v5043_v39  ;;  %v1449_v38 = vld [vmem:[#allocation2 + $0xb8] sm:$0xff] }
 0x28f   :  { %v1108_v44 = vpop.f32.mrb[206].mxu0  ;;  %v5045_v52 = vld [vmem:[#allocation2 + $0x321] sm:$0xff]  ;;  %v1448_v42 = vld [vmem:[#allocation2 + $0xb0] sm:$0xff] }
 0x290   :  { %1383 = vst [vmem:[#allocation2 + $0x338] sm:$0xff] %v1108_v44  ;;  %v14375_v47 = vpop.f32.mrb[207].mxu0  ;;  %15541 = vmatmul.mubr.bf16.gmra.mrb[188].mxu1 %v5133_v43  ;;  %v1574_v44 = vpack.c.bf16 %v1449_v38, %v1448_v42 }
 0x291   :  { %15544 = vmatprep.mubr.msk.bf16.mxu1 %vm19832_vm0, %v24095_v0 }
 0x292   :  { %14497 = vmatmul.mubr.bf16.gmra.mrb[56].mxu0 %v1568_v48 }
 0x293   :  { %14500 = vmatprep.mubr.msk.bf16.mxu0 %vm19832_vm0, %v24095_v0 }
 0x295   :  { %v1113_v51 = vpop.f32.mrb[208].mxu0  ;;  %v5046_v53 = vld [vmem:[#allocation2 + $0x329] sm:$0xff] }
 0x296   :  { %1384 = vst [vmem:[#allocation2 + $0x340] sm:$0xff] %v1113_v51  ;;  %v14378_v55 = vpop.f32.mrb[209].mxu0  ;;  %v5134_v56 = vpack.c.bf16 %v5046_v53, %v5045_v52  ;;  %v1451_v51 = vld [vmem:[#allocation2 + $0xc8] sm:$0xff] }
 0x297   :  { %v1116_v57 = vpop.f32.mrb[210].mxu0  ;;  %v5047_v62 = vld [vmem:[#allocation2 + $0x331] sm:$0xff]  ;;  %v1450_v55 = vld [vmem:[#allocation2 + $0xc0] sm:$0xff] }
 0x298   :  { %1385 = vst [vmem:[#allocation2 + $0x348] sm:$0xff] %v1116_v57  ;;  %v14379_v59 = vpop.f32.mrb[211].mxu0  ;;  %15545 = vmatmul.mubr.bf16.gmra.mrb[192].mxu1 %v5134_v56  ;;  %v1575_v57 = vpack.c.bf16 %v1451_v51, %v1450_v55 }
 0x299   :  { %15548 = vmatprep.mubr.msk.bf16.mxu1 %vm19832_vm0, %v24095_v0 }
 0x29a   :  { %14501 = vmatmul.mubr.bf16.gmra.mrb[60].mxu0 %v1569_v60 }
 0x29b   :  { %14504 = vmatprep.mubr.msk.bf16.mxu0 %vm19832_vm0, %v24095_v0 }
 0x29d   :  { %v1121_v61 = vpop.f32.mrb[212].mxu0  ;;  %v5048_v63 = vld [vmem:[#allocation2 + $0x339] sm:$0xff] }
 0x29e   :  { %1386 = vst [vmem:[#allocation2 + $0x350] sm:$0xff] %v1121_v61  ;;  %v14382_v2 = vpop.f32.mrb[213].mxu0  ;;  %v5135_v3 = vpack.c.bf16 %v5048_v63, %v5047_v62  ;;  %v1453_v61 = vld [vmem:[#allocation2 + $0xd8] sm:$0xff] }
 0x29f   :  { %v1124_v4 = vpop.f32.mrb[214].mxu0  ;;  %v5049_v9 = vld [vmem:[#allocation2 + $0x341] sm:$0xff]  ;;  %v1452_v2 = vld [vmem:[#allocation2 + $0xd0] sm:$0xff] }
 0x2a0   :  { %1387 = vst [vmem:[#allocation2 + $0x358] sm:$0xff] %v1124_v4  ;;  %v14383_v6 = vpop.f32.mrb[215].mxu0  ;;  %15549 = vmatmul.mubr.bf16.gmra.mrb[196].mxu1 %v5135_v3  ;;  %v1576_v4 = vpack.c.bf16 %v1453_v61, %v1452_v2 }
 0x2a1   :  { %15552 = vmatprep.mubr.msk.bf16.mxu1 %vm19832_vm0, %v24095_v0 }
 0x2a2   :  { %14505 = vmatmul.mubr.bf16.gmra.mrb[64].mxu0 %v1570_v7 }
 0x2a3   :  { %14508 = vmatprep.mubr.msk.bf16.mxu0 %vm19832_vm0, %v24095_v0 }
 0x2a5   :  { %v1129_v8 = vpop.f32.mrb[216].mxu0  ;;  %v5050_v46 = vld [vmem:[#allocation2 + $0x349] sm:$0xff] }
 0x2a6   :  { %1388 = vst [vmem:[#allocation2 + $0x360] sm:$0xff] %v1129_v8  ;;  %v14386_v50 = vpop.f32.mrb[217].mxu0  ;;  %v5136_v10 = vpack.c.bf16 %v5050_v46, %v5049_v9  ;;  %v1455_v8 = vld [vmem:[#allocation2 + $0xe8] sm:$0xff] }
 0x2a7   :  { %v1132_v11 = vpop.f32.mrb[218].mxu0  ;;  %v5051_v16 = vld [vmem:[#allocation2 + $0x351] sm:$0xff]  ;;  %v1454_v50 = vld [vmem:[#allocation2 + $0xe0] sm:$0xff] }
 0x2a8   :  { %1389 = vst [vmem:[#allocation2 + $0x368] sm:$0xff] %v1132_v11  ;;  %v14387_v13 = vpop.f32.mrb[219].mxu0  ;;  %15553 = vmatmul.mubr.bf16.gmra.mrb[200].mxu1 %v5136_v10  ;;  %v1577_v11 = vpack.c.bf16 %v1455_v8, %v1454_v50 }
 0x2a9   :  { %15556 = vmatprep.mubr.msk.bf16.mxu1 %vm19832_vm0, %v24095_v0 }
 0x2aa   :  { %14509 = vmatmul.mubr.bf16.gmra.mrb[68].mxu0 %v1571_v14 }
 0x2ab   :  { %14512 = vmatprep.mubr.msk.bf16.mxu0 %vm19832_vm0, %v24095_v0 }
 0x2ad   :  { %v1137_v15 = vpop.f32.mrb[220].mxu0  ;;  %v5052_v17 = vld [vmem:[#allocation2 + $0x359] sm:$0xff] }
 0x2ae   :  { %1390 = vst [vmem:[#allocation2 + $0x370] sm:$0xff] %v1137_v15  ;;  %v14390_v19 = vpop.f32.mrb[221].mxu0  ;;  %v5137_v20 = vpack.c.bf16 %v5052_v17, %v5051_v16  ;;  %v1457_v16 = vld [vmem:[#allocation2 + $0xf8] sm:$0xff] }
 0x2af   :  { %v1140_v21 = vpop.f32.mrb[222].mxu0  ;;  %v5053_v26 = vld [vmem:[#allocation2 + $0x361] sm:$0xff] }
 0x2b0   :  { %1391 = vst [vmem:[#allocation2 + $0x378] sm:$0xff] %v1140_v21  ;;  %v14391_v23 = vpop.f32.mrb[223].mxu0  ;;  %15557 = vmatmul.mubr.bf16.gmra.mrb[204].mxu1 %v5137_v20  ;;  %v1456_v20 = vld [vmem:[#allocation2 + $0xf0] sm:$0xff] }
 0x2b1   :  { %15560 = vmatprep.mubr.msk.bf16.mxu1 %vm19832_vm0, %v24095_v0  ;;  %v1578_v22 = vpack.c.bf16 %v1457_v16, %v1456_v20 }
 0x2b2   :  { %14513 = vmatmul.mubr.bf16.gmra.mrb[72].mxu0 %v1572_v24 }
 0x2b3   :  { %14516 = vmatprep.mubr.msk.bf16.mxu0 %vm19832_vm0, %v24095_v0 }
 0x2b5   :  { %v1145_v25 = vpop.f32.mrb[224].mxu0  ;;  %v5054_v27 = vld [vmem:[#allocation2 + $0x369] sm:$0xff] }
 0x2b6   :  { %1392 = vst [vmem:[#allocation2 + $0x380] sm:$0xff] %v1145_v25  ;;  %v14394_v29 = vpop.f32.mrb[225].mxu0  ;;  %v5138_v30 = vpack.c.bf16 %v5054_v27, %v5053_v26  ;;  %v1459_v26 = vld [vmem:[#allocation2 + $0x108] sm:$0xff] }
 0x2b7   :  { %v1148_v31 = vpop.f32.mrb[226].mxu0  ;;  %v5055_v36 = vld [vmem:[#allocation2 + $0x371] sm:$0xff] }
 0x2b8   :  { %1393 = vst [vmem:[#allocation2 + $0x388] sm:$0xff] %v1148_v31  ;;  %v14395_v33 = vpop.f32.mrb[227].mxu0  ;;  %15561 = vmatmul.mubr.bf16.gmra.mrb[208].mxu1 %v5138_v30  ;;  %v1458_v30 = vld [vmem:[#allocation2 + $0x100] sm:$0xff] }
 0x2b9   :  { %15564 = vmatprep.mubr.msk.bf16.mxu1 %vm19832_vm0, %v24095_v0  ;;  %v1579_v32 = vpack.c.bf16 %v1459_v26, %v1458_v30  ;;  %v1471_v26 = vld [vmem:[#allocation2 + $0x168] sm:$0xff] }
 0x2ba   :  { %14517 = vmatmul.mubr.bf16.gmra.mrb[76].mxu0 %v1573_v34 }
 0x2bb   :  { %14520 = vmatprep.mubr.msk.bf16.mxu0 %vm19832_vm0, %v24095_v0 }
 0x2bd   :  { %v1153_v35 = vpop.f32.mrb[228].mxu0  ;;  %v5056_v37 = vld [vmem:[#allocation2 + $0x379] sm:$0xff] }
 0x2be   :  { %1394 = vst [vmem:[#allocation2 + $0x390] sm:$0xff] %v1153_v35  ;;  %v14398_v39 = vpop.f32.mrb[229].mxu0  ;;  %v5139_v40 = vpack.c.bf16 %v5056_v37, %v5055_v36  ;;  %v1461_v36 = vld [vmem:[#allocation2 + $0x118] sm:$0xff] }
 0x2bf   :  { %v1156_v41 = vpop.f32.mrb[230].mxu0  ;;  %v5057_v47 = vld [vmem:[#allocation2 + $0x381] sm:$0xff] }
 0x2c0   :  { %1395 = vst [vmem:[#allocation2 + $0x398] sm:$0xff] %v1156_v41  ;;  %v14399_v43 = vpop.f32.mrb[231].mxu0  ;;  %15565 = vmatmul.mubr.bf16.gmra.mrb[212].mxu1 %v5139_v40  ;;  %v1460_v40 = vld [vmem:[#allocation2 + $0x110] sm:$0xff] }
 0x2c1   :  { %15568 = vmatprep.mubr.msk.bf16.mxu1 %vm19832_vm0, %v24095_v0  ;;  %v1580_v42 = vpack.c.bf16 %v1461_v36, %v1460_v40  ;;  %v1473_v40 = vld [vmem:[#allocation2 + $0x178] sm:$0xff] }
 0x2c2   :  { %14521 = vmatmul.mubr.bf16.gmra.mrb[80].mxu0 %v1574_v44 }
 0x2c3   :  { %14524 = vmatprep.mubr.msk.bf16.mxu0 %vm19832_vm0, %v24095_v0 }
 0x2c5   :  { %v1161_v45 = vpop.f32.mrb[232].mxu0  ;;  %v5058_v48 = vld [vmem:[#allocation2 + $0x389] sm:$0xff] }
 0x2c6   :  { %1396 = vst [vmem:[#allocation2 + $0x3a0] sm:$0xff] %v1161_v45  ;;  %v14402_v52 = vpop.f32.mrb[233].mxu0  ;;  %v5140_v53 = vpack.c.bf16 %v5058_v48, %v5057_v47  ;;  %v1463_v47 = vld [vmem:[#allocation2 + $0x128] sm:$0xff] }
 0x2c7   :  { %v1164_v54 = vpop.f32.mrb[234].mxu0  ;;  %v5059_v59 = vld [vmem:[#allocation2 + $0x391] sm:$0xff] }
 0x2c8   :  { %1397 = vst [vmem:[#allocation2 + $0x3a8] sm:$0xff] %v1164_v54  ;;  %v14403_v56 = vpop.f32.mrb[235].mxu0  ;;  %15569 = vmatmul.mubr.bf16.gmra.mrb[216].mxu1 %v5140_v53  ;;  %v1462_v53 = vld [vmem:[#allocation2 + $0x120] sm:$0xff] }
 0x2c9   :  { %15572 = vmatprep.mubr.msk.bf16.mxu1 %vm19832_vm0, %v24095_v0  ;;  %v1581_v55 = vpack.c.bf16 %v1463_v47, %v1462_v53 }
 0x2ca   :  { %14525 = vmatmul.mubr.bf16.gmra.mrb[84].mxu0 %v1575_v57 }
 0x2cb   :  { %14528 = vmatprep.mubr.msk.bf16.mxu0 %vm19832_vm0, %v24095_v0 }
 0x2cd   :  { %v1169_v58 = vpop.f32.mrb[236].mxu0  ;;  %v5060_v60 = vld [vmem:[#allocation2 + $0x399] sm:$0xff] }
 0x2ce   :  { %1398 = vst [vmem:[#allocation2 + $0x3b0] sm:$0xff] %v1169_v58  ;;  %v14406_v62 = vpop.f32.mrb[237].mxu0  ;;  %v5141_v63 = vpack.c.bf16 %v5060_v60, %v5059_v59  ;;  %v1465_v59 = vld [vmem:[#allocation2 + $0x138] sm:$0xff] }
 0x2cf   :  { %v1172_v1 = vpop.f32.mrb[238].mxu0  ;;  %v5061_v6 = vld [vmem:[#allocation2 + $0x3a1] sm:$0xff] }
 0x2d0   :  { %1399 = vst [vmem:[#allocation2 + $0x3b8] sm:$0xff] %v1172_v1  ;;  %v14407_v3 = vpop.f32.mrb[239].mxu0  ;;  %15573 = vmatmul.mubr.bf16.gmra.mrb[220].mxu1 %v5141_v63  ;;  %v1464_v63 = vld [vmem:[#allocation2 + $0x130] sm:$0xff] }
 0x2d1   :  { %15576 = vmatprep.mubr.msk.bf16.mxu1 %vm19832_vm0, %v24095_v0  ;;  %v1582_v2 = vpack.c.bf16 %v1465_v59, %v1464_v63  ;;  %v1474_v63 = vld [vmem:[#allocation2 + $0x180] sm:$0xff] }
 0x2d2   :  { %14529 = vmatmul.mubr.bf16.gmra.mrb[88].mxu0 %v1576_v4 }
 0x2d3   :  { %14532 = vmatprep.mubr.msk.bf16.mxu0 %vm19832_vm0, %v24095_v0 }
 0x2d5   :  { %v1177_v5 = vpop.f32.mrb[240].mxu0  ;;  %v5062_v7 = vld [vmem:[#allocation2 + $0x3a9] sm:$0xff] }
 0x2d6   :  { %1400 = vst [vmem:[#allocation2 + $0x3c0] sm:$0xff] %v1177_v5  ;;  %v14410_v9 = vpop.f32.mrb[241].mxu0  ;;  %v5142_v46 = vpack.c.bf16 %v5062_v7, %v5061_v6  ;;  %v1467_v6 = vld [vmem:[#allocation2 + $0x148] sm:$0xff] }
 0x2d7   :  { %v1180_v49 = vpop.f32.mrb[242].mxu0  ;;  %v5063_v14 = vld [vmem:[#allocation2 + $0x3b1] sm:$0xff] }
 0x2d8   :  { %1401 = vst [vmem:[#allocation2 + $0x3c8] sm:$0xff] %v1180_v49  ;;  %v14411_v10 = vpop.f32.mrb[243].mxu0  ;;  %15577 = vmatmul.mubr.bf16.gmra.mrb[224].mxu1 %v5142_v46  ;;  %v1466_v46 = vld [vmem:[#allocation2 + $0x140] sm:$0xff] }
 0x2d9   :  { %15580 = vmatprep.mubr.msk.bf16.mxu1 %vm19832_vm0, %v24095_v0  ;;  %v1583_v50 = vpack.c.bf16 %v1467_v6, %v1466_v46 }
 0x2da   :  { %14533 = vmatmul.mubr.bf16.gmra.mrb[92].mxu0 %v1577_v11 }
 0x2db   :  { %14536 = vmatprep.mubr.msk.bf16.mxu0 %vm19832_vm0, %v24095_v0 }
 0x2dd   :  { %v1185_v13 = vpop.f32.mrb[244].mxu0  ;;  %v5064_v15 = vld [vmem:[#allocation2 + $0x3b9] sm:$0xff] }
 0x2de   :  { %1402 = vst [vmem:[#allocation2 + $0x3d0] sm:$0xff] %v1185_v13  ;;  %v14414_v17 = vpop.f32.mrb[245].mxu0  ;;  %v5143_v18 = vpack.c.bf16 %v5064_v15, %v5063_v14  ;;  %v1469_v13 = vld [vmem:[#allocation2 + $0x158] sm:$0xff] }
 0x2df   :  { %v1188_v19 = vpop.f32.mrb[246].mxu0  ;;  %v5065_v24 = vld [vmem:[#allocation2 + $0x3c1] sm:$0xff]  ;;  %v1468_v17 = vld [vmem:[#allocation2 + $0x150] sm:$0xff] }
 0x2e0   :  { %1403 = vst [vmem:[#allocation2 + $0x3d8] sm:$0xff] %v1188_v19  ;;  %v14415_v21 = vpop.f32.mrb[247].mxu0  ;;  %15581 = vmatmul.mubr.bf16.gmra.mrb[228].mxu1 %v5143_v18  ;;  %v1584_v19 = vpack.c.bf16 %v1469_v13, %v1468_v17 }
 0x2e1   :  { %15584 = vmatprep.mubr.msk.bf16.mxu1 %vm19832_vm0, %v24095_v0 }
 0x2e2   :  { %14537 = vmatmul.mubr.bf16.gmra.mrb[96].mxu0 %v1578_v22 }
 0x2e3   :  { %14540 = vmatprep.mubr.msk.bf16.mxu0 %vm19832_vm0, %v24095_v0 }
 0x2e5   :  { %v1193_v23 = vpop.f32.mrb[248].mxu0  ;;  %v5066_v25 = vld [vmem:[#allocation2 + $0x3c9] sm:$0xff] }
 0x2e6   :  { %1404 = vst [vmem:[#allocation2 + $0x3e0] sm:$0xff] %v1193_v23  ;;  %v14418_v27 = vpop.f32.mrb[249].mxu0  ;;  %v5144_v28 = vpack.c.bf16 %v5066_v25, %v5065_v24 }
 0x2e7   :  { %v1196_v29 = vpop.f32.mrb[250].mxu0  ;;  %v5067_v34 = vld [vmem:[#allocation2 + $0x3d1] sm:$0xff] }
 0x2e8   :  { %1405 = vst [vmem:[#allocation2 + $0x3e8] sm:$0xff] %v1196_v29  ;;  %v14419_v31 = vpop.f32.mrb[251].mxu0  ;;  %15585 = vmatmul.mubr.bf16.gmra.mrb[232].mxu1 %v5144_v28 }
 0x2e9   :  { %15588 = vmatprep.mubr.msk.bf16.mxu1 %vm19832_vm0, %v24095_v0  ;;  %v1470_v31 = vld [vmem:[#allocation2 + $0x160] sm:$0xff] }
 0x2ea   :  { %14541 = vmatmul.mubr.bf16.gmra.mrb[100].mxu0 %v1579_v32 }
 0x2eb   :  { %14544 = vmatprep.mubr.msk.bf16.mxu0 %vm19832_vm0, %v24095_v0 }
 0x2ed   :  { %v1201_v33 = vpop.f32.mrb[252].mxu0  ;;  %v5068_v35 = vld [vmem:[#allocation2 + $0x3d9] sm:$0xff] }
 0x2ee   :  { %1406 = vst [vmem:[#allocation2 + $0x3f0] sm:$0xff] %v1201_v33  ;;  %v14422_v37 = vpop.f32.mrb[253].mxu0  ;;  %v5145_v38 = vpack.c.bf16 %v5068_v35, %v5067_v34  ;;  %v1585_v33 = vpack.c.bf16 %v1471_v26, %v1470_v31  ;;  %v1481_v26 = vld [vmem:[#allocation2 + $0x1b8] sm:$0xff] }
 0x2ef   :  { %v1204_v39 = vpop.f32.mrb[254].mxu0  ;;  %v5069_v44 = vld [vmem:[#allocation2 + $0x3e1] sm:$0xff] }
 0x2f0   :  { %1407 = vst [vmem:[#allocation2 + $0x3f8] sm:$0xff] %v1204_v39  ;;  %v14423_v41 = vpop.f32.mrb[255].mxu0  ;;  %15589 = vmatmul.mubr.bf16.gmra.mrb[236].mxu1 %v5145_v38  ;;  %v6218_v31 = vld [vmem:[#allocation2 + $0x3a] sm:$0xff] }
 0x2f1   :  { %15592 = vmatprep.mubr.msk.bf16.mxu1 %vm19832_vm0, %v24095_v0 }
 0x2f2   :  { %14545 = vmatmul.mubr.bf16.gmra.mrb[104].mxu0 %v1580_v42 }
 0x2f3   :  { %14548 = vmatprep.mubr.msk.bf16.mxu0 %vm19832_vm0, %v24095_v0 }
 0x2f5   :  { %v1209_v43 = vpop.f32.mrb[0].mxu0  ;;  %v5070_v45 = vld [vmem:[#allocation2 + $0x3e9] sm:$0xff] }
 0x2f6   :  { %1408 = vst [vmem:[#allocation2 + $0x400] sm:$0xff] %v1209_v43  ;;  %v14426_v48 = vpop.f32.mrb[1].mxu0  ;;  %v5146_v51 = vpack.c.bf16 %v5070_v45, %v5069_v44  ;;  %v1472_v45 = vld [vmem:[#allocation2 + $0x170] sm:$0xff] }
 0x2f7   :  { %v1212_v52 = vpop.f32.mrb[2].mxu0  ;;  %v5071_v57 = vld [vmem:[#allocation2 + $0x3f1] sm:$0xff]  ;;  %v1586_v48 = vpack.c.bf16 %v1473_v40, %v1472_v45 }
 0x2f8   :  { %1409 = vst [vmem:[#allocation2 + $0x408] sm:$0xff] %v1212_v52  ;;  %v14427_v54 = vpop.f32.mrb[3].mxu0  ;;  %15593 = vmatmul.mubr.bf16.gmra.mrb[240].mxu1 %v5146_v51  ;;  %v19778_v51 = vld [vmem:[%s24093_s2 + $0x48] sm:$0xff]  }
 0x2f9   :  { %15596 = vmatprep.mubr.msk.bf16.mxu1 %vm19832_vm0, %v24095_v0  ;;  %14755 = vmatpush3.bf16.msra.mxu0 %v19778_v51  ;;  %v6220_v40 = vld [vmem:[#allocation2 + $0x4a] sm:$0xff] }
 0x2fa   :  { %14549 = vmatmul.mubr.bf16.gmra.mrb[108].mxu0 %v1581_v55  ;;  %14756 = vmatprep.subr.bf16.mxu0 %v24095_v0  ;;  %v1487_v51 = vld [vmem:[#allocation2 + $0x1e8] sm:$0xff] }
 0x2fb   :  { %14552 = vmatprep.mubr.msk.bf16.mxu0 %vm19832_vm0, %v24095_v0 }
 0x2fd   :  { %v1217_v56 = vpop.f32.mrb[4].mxu0  ;;  %v5072_v58 = vld [vmem:[#allocation2 + $0x3f9] sm:$0xff] }
 0x2fe   :  { %1410 = vst [vmem:[#allocation2 + $0x410] sm:$0xff] %v1217_v56  ;;  %v14430_v60 = vpop.f32.mrb[5].mxu0  ;;  %v5147_v61 = vpack.c.bf16 %v5072_v58, %v5071_v57  ;;  %v1475_v58 = vld [vmem:[#allocation2 + $0x188] sm:$0xff] }
 0x2ff   :  { %v1220_v62 = vpop.f32.mrb[6].mxu0  ;;  %v5073_v4 = vld [vmem:[#allocation2 + $0x401] sm:$0xff] }
 0x300   :  { %1411 = vst [vmem:[#allocation2 + $0x418] sm:$0xff] %v1220_v62  ;;  %v14431_v1 = vpop.f32.mrb[7].mxu0  ;;  %15597 = vmatmul.mubr.bf16.gmra.mrb[244].mxu1 %v5147_v61 }
 0x301   :  { %15600 = vmatprep.mubr.msk.bf16.mxu1 %vm19832_vm0, %v24095_v0 }
 0x302   :  { %14553 = vmatmul.mubr.bf16.gmra.mrb[112].mxu0 %v1582_v2  ;;  %v1587_v2 = vpack.c.bf16 %v1475_v58, %v1474_v63  ;;  %v6223_v58 = vld [vmem:[#allocation2 + $0x62] sm:$0xff]  ;;  %v19780_v63 = vld [vmem:[%s24093_s2 + $0x50] sm:$0xff]  }
 0x303   :  { %14556 = vmatprep.mubr.msk.bf16.mxu0 %vm19832_vm0, %v24095_v0  ;;  %14757 = vmatpush3.bf16.msra.mxu0 %v19780_v63 }
 0x304   :  { %14758 = vmatprep.subr.bf16.mxu0 %v24095_v0 }
 0x305   :  { %v1225_v3 = vpop.f32.mrb[8].mxu0  ;;  %v5074_v5 = vld [vmem:[#allocation2 + $0x409] sm:$0xff] }
 0x306   :  { %1412 = vst [vmem:[#allocation2 + $0x420] sm:$0xff] %v1225_v3  ;;  %v14434_v7 = vpop.f32.mrb[9].mxu0  ;;  %v5148_v8 = vpack.c.bf16 %v5074_v5, %v5073_v4 }
 0x307   :  { %v1228_v9 = vpop.f32.mrb[10].mxu0  ;;  %v5075_v11 = vld [vmem:[#allocation2 + $0x411] sm:$0xff] }
 0x308   :  { %1413 = vst [vmem:[#allocation2 + $0x428] sm:$0xff] %v1228_v9  ;;  %v14435_v49 = vpop.f32.mrb[11].mxu0  ;;  %15601 = vmatmul.mubr.bf16.gmra.mrb[248].mxu1 %v5148_v8  ;;  %v1477_v9 = vld [vmem:[#allocation2 + $0x198] sm:$0xff] }
 0x309   :  { %15604 = vmatprep.mubr.msk.bf16.mxu1 %vm19832_vm0, %v24095_v0 }
 0x30a   :  { %14557 = vmatmul.mubr.bf16.gmra.mrb[116].mxu0 %v1583_v50 }
 0x30b   :  { %14560 = vmatprep.mubr.msk.bf16.mxu0 %vm19832_vm0, %v24095_v0 }
 0x30d   :  { %v1233_v10 = vpop.f32.mrb[12].mxu0  ;;  %v5076_v12 = vld [vmem:[#allocation2 + $0x419] sm:$0xff] }
 0x30e   :  { %1414 = vst [vmem:[#allocation2 + $0x430] sm:$0xff] %v1233_v10  ;;  %v14438_v14 = vpop.f32.mrb[13].mxu0  ;;  %v5149_v15 = vpack.c.bf16 %v5076_v12, %v5075_v11  ;;  %v1476_v10 = vld [vmem:[#allocation2 + $0x190] sm:$0xff] }
 0x30f   :  { %v1236_v16 = vpop.f32.mrb[14].mxu0  ;;  %v5077_v24 = vld [vmem:[#allocation2 + $0x421] sm:$0xff]  ;;  %v1588_v11 = vpack.c.bf16 %v1477_v9, %v1476_v10  ;;  %v6228_v9 = vld [vmem:[#allocation2 + $0x8a] sm:$0xff] }
 0x310   :  { %1415 = vst [vmem:[#allocation2 + $0x438] sm:$0xff] %v1236_v16  ;;  %v14439_v18 = vpop.f32.mrb[15].mxu0  ;;  %15605 = vmatmul.mubr.bf16.gmra.mrb[252].mxu1 %v5149_v15  ;;  %v1479_v16 = vld [vmem:[#allocation2 + $0x1a8] sm:$0xff]  ;;  %v1492_v10 = vld [vmem:[#allocation2 + $0x210] sm:$0xff] }
 0x311   :  { %15608 = vmatprep.mubr.msk.bf16.mxu1 %vm19832_vm0, %v24095_v0 }
 0x312   :  { %14561 = vmatmul.mubr.bf16.gmra.mrb[120].mxu0 %v1584_v19  ;;  %v1478_v19 = vld [vmem:[#allocation2 + $0x1a0] sm:$0xff] }
 0x313   :  { %v20537_v20 = vpop.f32.mrb[148].mxu1  ;;  %14564 = vmatprep.mubr.msk.bf16.mxu0 %vm19832_vm0, %v24095_v0 }
 0x314   :  { %24097 = vst [vmem:[#allocation3_spill] sm:$0xff] %v20537_v20  ;;  %v15502_v21 = vpop.f32.mrb[149].mxu1  ;;  %v11373_v20 = vld [vmem:[#allocation2 + $0x334] sm:$0xff] }
 0x315   :  { %v1241_v22 = vpop.f32.mrb[16].mxu0  ;;  %v20541_v23 = vpop.f32.mrb[150].mxu1  ;;  %v5078_v25 = vld [vmem:[#allocation2 + $0x429] sm:$0xff]  ;;  %v1589_v21 = vpack.c.bf16 %v1479_v16, %v1478_v19 }
 0x316   :  { %24098 = vst [vmem:[#allocation4_spill] sm:$0xff] %v20541_v23  ;;  %1416 = vst [vmem:[#allocation2 + $0x440] sm:$0xff] %v1241_v22  ;;  %v14442_v27 = vpop.f32.mrb[17].mxu0  ;;  %v15503_v28 = vpop.f32.mrb[151].mxu1  ;;  %v5150_v29 = vpack.c.bf16 %v5078_v25, %v5077_v24  ;;  %v6216_v22 = vld [vmem:[#allocation2 + $0x2a] sm:$0xff]  ;;  %v6215_v24 = vld [vmem:[#allocation2 + $0x22] sm:$0xff] }
 0x317   :  { %v1244_v30 = vpop.f32.mrb[18].mxu0  ;;  %v5079_v38 = vld [vmem:[#allocation2 + $0x431] sm:$0xff]  ;;  %v19775_v25 = vld [vmem:[%s24093_s2 + $0x140] sm:$0xff]   ;;  %v6352_v27 = vpack.c.bf16 %v6216_v22, %v6215_v24  ;;  %v1495_v16 = vld [vmem:[#allocation2 + $0x228] sm:$0xff] }
 0x318   :  { %1417 = vst [vmem:[#allocation2 + $0x448] sm:$0xff] %v1244_v30  ;;  %v14443_v32 = vpop.f32.mrb[19].mxu0  ;;  %15609 = vmatmul.mubr.bf16.gmra.mrb[148].mxu1 %v5150_v29  ;;  %v1480_v28 = vld [vmem:[#allocation2 + $0x1b0] sm:$0xff]  ;;  %v19777_v30 = vld [vmem:[%s24093_s2 + $0x148] sm:$0xff]   ;;  %v1497_v24 = vld [vmem:[#allocation2 + $0x238] sm:$0xff] }
 0x319   :  { %15612 = vmatprep.mubr.msk.bf16.mxu1 %vm19832_vm0, %v24095_v0  ;;  %v1590_v29 = vpack.c.bf16 %v1481_v26, %v1480_v28  ;;  %v6217_v32 = vld [vmem:[#allocation2 + $0x32] sm:$0xff]  ;;  %v6231_v22 = vld [vmem:[#allocation2 + $0xa2] sm:$0xff]  ;;  %v6234_v28 = vld [vmem:[#allocation2 + $0xba] sm:$0xff] }
 0x31a   :  { %14565 = vmatmul.mubr.bf16.gmra.mrb[124].mxu0 %v1585_v33  ;;  %v1483_v33 = vld [vmem:[#allocation2 + $0x1c8] sm:$0xff]  ;;  %v1496_v26 = vld [vmem:[#allocation2 + $0x230] sm:$0xff]  ;;  %v11374_v23 = vld [vmem:[#allocation2 + $0x33c] sm:$0xff] }
 0x31b   :  { %v20545_v34 = vpop.f32.mrb[152].mxu1  ;;  %14568 = vmatprep.mubr.msk.bf16.mxu0 %vm19832_vm0, %v24095_v0 }
 0x31c   :  { %24099 = vst [vmem:[#allocation5_spill] sm:$0xff] %v20545_v34  ;;  %v15506_v35 = vpop.f32.mrb[153].mxu1 }
 0x31d   :  { %v1249_v36 = vpop.f32.mrb[20].mxu0  ;;  %v20549_v37 = vpop.f32.mrb[154].mxu1  ;;  %v5080_v39 = vld [vmem:[#allocation2 + $0x439] sm:$0xff]  ;;  %v6353_v35 = vpack.c.bf16 %v6218_v31, %v6217_v32 }
 0x31e   :  { %24100 = vst [vmem:[#allocation6_spill] sm:$0xff] %v20549_v37  ;;  %1418 = vst [vmem:[#allocation2 + $0x450] sm:$0xff] %v1249_v36  ;;  %v14446_v41 = vpop.f32.mrb[21].mxu0  ;;  %v15507_v42 = vpop.f32.mrb[155].mxu1  ;;  %v5151_v43 = vpack.c.bf16 %v5080_v39, %v5079_v38  ;;  %v1482_v36 = vld [vmem:[#allocation2 + $0x1c0] sm:$0xff]  ;;  %v19779_v39 = vld [vmem:[%s24093_s2 + $0x150] sm:$0xff]  }
 0x31f   :  { %v1252_v44 = vpop.f32.mrb[22].mxu0  ;;  %v5081_v56 = vld [vmem:[#allocation2 + $0x441] sm:$0xff]  ;;  %v1591_v38 = vpack.c.bf16 %v1483_v33, %v1482_v36  ;;  %v1485_v42 = vld [vmem:[#allocation2 + $0x1d8] sm:$0xff]  ;;  %v6236_v36 = vld [vmem:[#allocation2 + $0xca] sm:$0xff] }
 0x320   :  { %1419 = vst [vmem:[#allocation2 + $0x458] sm:$0xff] %v1252_v44  ;;  %v14447_v47 = vpop.f32.mrb[23].mxu0  ;;  %15613 = vmatmul.mubr.bf16.gmra.mrb[152].mxu1 %v5151_v43  ;;  %v6219_v41 = vld [vmem:[#allocation2 + $0x42] sm:$0xff]  ;;  %v1484_v44 = vld [vmem:[#allocation2 + $0x1d0] sm:$0xff] }
 0x321   :  { %15616 = vmatprep.mubr.msk.bf16.mxu1 %vm19832_vm0, %v24095_v0  ;;  %v6354_v43 = vpack.c.bf16 %v6220_v40, %v6219_v41  ;;  %v1592_v45 = vpack.c.bf16 %v1485_v42, %v1484_v44  ;;  %v6222_v47 = vld [vmem:[#allocation2 + $0x5a] sm:$0xff]  ;;  %v1500_v41 = vld [vmem:[#allocation2 + $0x250] sm:$0xff] }
 0x322   :  { %14569 = vmatmul.mubr.bf16.gmra.mrb[128].mxu0 %v1586_v48  ;;  %v6221_v48 = vld [vmem:[#allocation2 + $0x52] sm:$0xff]  ;;  %v1498_v32 = vld [vmem:[#allocation2 + $0x240] sm:$0xff] }
 0x323   :  { %v20556_v52 = vpop.f32.mrb[156].mxu1  ;;  %14572 = vmatprep.mubr.msk.bf16.mxu0 %vm19832_vm0, %v24095_v0  ;;  %v6237_v44 = vld [vmem:[#allocation2 + $0xd2] sm:$0xff] }
 0x324   :  { %24101 = vst [vmem:[#allocation7_spill] sm:$0xff] %v20556_v52  ;;  %v15510_v53 = vpop.f32.mrb[157].mxu1  ;;  %v24113_v52 = vmov 0.0  }
 0x325   :  { %v1257_v54 = vpop.f32.mrb[24].mxu0  ;;  %v20560_v55 = vpop.f32.mrb[158].mxu1  ;;  %v5082_v57 = vld [vmem:[#allocation2 + $0x449] sm:$0xff]  ;;  %v6355_v53 = vpack.c.bf16 %v6222_v47, %v6221_v48  ;;  %v1502_v48 = vld [vmem:[#allocation2 + $0x260] sm:$0xff] }
 0x326   :  { %24102 = vst [vmem:[#allocation8_spill] sm:$0xff] %v20560_v55  ;;  %1420 = vst [vmem:[#allocation2 + $0x460] sm:$0xff] %v1257_v54  ;;  %v14450_v59 = vpop.f32.mrb[25].mxu0  ;;  %v15511_v60 = vpop.f32.mrb[159].mxu1  ;;  %v5152_v61 = vpack.c.bf16 %v5082_v57, %v5081_v56  ;;  %v1486_v54 = vld [vmem:[#allocation2 + $0x1e0] sm:$0xff]  ;;  %v6224_v57 = vld [vmem:[#allocation2 + $0x6a] sm:$0xff] }
 0x327   :  { %v1260_v62 = vpop.f32.mrb[26].mxu0  ;;  %v5083_v7 = vld [vmem:[#allocation2 + $0x451] sm:$0xff]  ;;  %v1593_v56 = vpack.c.bf16 %v1487_v51, %v1486_v54  ;;  %v6356_v60 = vpack.c.bf16 %v6224_v57, %v6223_v58  ;;  %v6239_v57 = vld [vmem:[#allocation2 + $0xe2] sm:$0xff] }
 0x328   :  { %1421 = vst [vmem:[#allocation2 + $0x468] sm:$0xff] %v1260_v62  ;;  %v14451_v1 = vpop.f32.mrb[27].mxu0  ;;  %15617 = vmatmul.mubr.bf16.gmra.mrb[156].mxu1 %v5152_v61  ;;  %v1489_v59 = vld [vmem:[#allocation2 + $0x1f8] sm:$0xff]  ;;  %v1488_v61 = vld [vmem:[#allocation2 + $0x1f0] sm:$0xff] }
 0x329   :  { %15620 = vmatprep.mubr.msk.bf16.mxu1 %vm19832_vm0, %v24095_v0  ;;  %v1594_v62 = vpack.c.bf16 %v1489_v59, %v1488_v61  ;;  %v6226_v1 = vld [vmem:[#allocation2 + $0x7a] sm:$0xff]  ;;  %v6240_v54 = vld [vmem:[#allocation2 + $0xea] sm:$0xff] }
 0x32a   :  { %14573 = vmatmul.mubr.bf16.gmra.mrb[132].mxu0 %v1587_v2  ;;  %v6225_v2 = vld [vmem:[#allocation2 + $0x72] sm:$0xff]  ;;  %v6364_v59 = vpack.c.bf16 %v6240_v54, %v6239_v57  ;;  %v1518_v54 = vld [vmem:[#allocation2 + $0x2e0] sm:$0xff]  ;;  %v6256_v57 = vld [vmem:[#allocation2 + $0x16a] sm:$0xff] }
 0x32b   :  { %v20565_v3 = vpop.f32.mrb[160].mxu1  ;;  %14576 = vmatprep.mubr.msk.bf16.mxu0 %vm19832_vm0, %v24095_v0  ;;  %v1505_v58 = vld [vmem:[#allocation2 + $0x278] sm:$0xff] }
 0x32c   :  { %v15514_v4 = vpop.f32.mrb[161].mxu1 }
 0x32d   :  { %v1265_v5 = vpop.f32.mrb[28].mxu0  ;;  %v20569_v6 = vpop.f32.mrb[162].mxu1  ;;  %v5084_v8 = vld [vmem:[#allocation2 + $0x459] sm:$0xff]  ;;  %v1491_v4 = vld [vmem:[#allocation2 + $0x208] sm:$0xff] }
 0x32e   :  { %1422 = vst [vmem:[#allocation2 + $0x470] sm:$0xff] %v1265_v5  ;;  %v15515_v46 = vpop.f32.mrb[163].mxu1  ;;  %v5153_v49 = vpack.c.bf16 %v5084_v8, %v5083_v7  ;;  %v14454_v50 = vpop.f32.mrb[29].mxu0  ;;  %v6357_v5 = vpack.c.bf16 %v6226_v1, %v6225_v2  ;;  %v1490_v7 = vld [vmem:[#allocation2 + $0x200] sm:$0xff] }
 0x32f   :  { %v5085_v13 = vld [vmem:[#allocation2 + $0x461] sm:$0xff]  ;;  %v1595_v8 = vpack.c.bf16 %v1491_v4, %v1490_v7 }
 0x330   :  { %15621 = vmatmul.mubr.bf16.gmra.mrb[160].mxu1 %v5153_v49  ;;  %v5154_v18 = vpack.c.bf16 %v5085_v13, %v5085_v13  ;;  %v6227_v46 = vld [vmem:[#allocation2 + $0x82] sm:$0xff]  ;;  %v1493_v49 = vld [vmem:[#allocation2 + $0x218] sm:$0xff] }
 0x331   :  { %15624 = vmatprep.mubr.msk.bf16.mxu1 %vm19832_vm0, %v24095_v0  ;;  %v6358_v50 = vpack.c.bf16 %v6228_v9, %v6227_v46  ;;  %v6230_v13 = vld [vmem:[#allocation2 + $0x9a] sm:$0xff]  ;;  %v1507_v7 = vld [vmem:[#allocation2 + $0x288] sm:$0xff] }
 0x332   :  { %14577 = vmatmul.mubr.bf16.gmra.mrb[136].mxu0 %v1588_v11  ;;  %v1596_v11 = vpack.c.bf16 %v1493_v49, %v1492_v10  ;;  %v6242_v2 = vld [vmem:[#allocation2 + $0xfa] sm:$0xff]  ;;  %v6243_v10 = vld [vmem:[#allocation2 + $0x102] sm:$0xff] }
 0x333   :  { %v20573_v12 = vpop.f32.mrb[164].mxu1  ;;  %14580 = vmatprep.mubr.msk.bf16.mxu0 %vm19832_vm0, %v24095_v0  ;;  %v1506_v9 = vld [vmem:[#allocation2 + $0x280] sm:$0xff]  ;;  %v19782_v49 = vld [vmem:[%s24093_s2 + $0x58] sm:$0xff]  }
 0x334   :  { %v15518_v14 = vpop.f32.mrb[165].mxu1  ;;  %v1603_v46 = vpack.c.bf16 %v1507_v7, %v1506_v9  ;;  %14759 = vmatpush3.bf16.msra.mxu0 %v19782_v49  ;;  %v6259_v9 = vld [vmem:[#allocation2 + $0x182] sm:$0xff] }
 0x335   :  { %v20577_v15 = vpop.f32.mrb[166].mxu1  ;;  %v6229_v14 = vld [vmem:[#allocation2 + $0x92] sm:$0xff]  ;;  %14760 = vmatprep.subr.bf16.mxu0 %v24095_v0 }
 0x336   :  { %v15519_v17 = vpop.f32.mrb[167].mxu1 }
 0x337   :  { %v6359_v17 = vpack.c.bf16 %v6230_v13, %v6229_v14  ;;  %v1508_v14 = vld [vmem:[#allocation2 + $0x290] sm:$0xff] }
 0x338   :  { %15625 = vmatmul.mubr.bf16.gmra.mrb[164].mxu1 %v5154_v18  ;;  %v1494_v18 = vld [vmem:[#allocation2 + $0x220] sm:$0xff] }
 0x339   :  { %15644 = vmatprep.mubr.msk.bf16.mxu1 %vm19832_vm0, %v24095_v0  ;;  %v1597_v19 = vpack.c.bf16 %v1495_v16, %v1494_v18  ;;  %v6245_v18 = vld [vmem:[#allocation2 + $0x112] sm:$0xff] }
 0x33a   :  { %14581 = vmatmul.mubr.bf16.gmra.mrb[140].mxu0 %v1589_v21  ;;  %v6232_v21 = vld [vmem:[#allocation2 + $0xaa] sm:$0xff] }
 0x33b   :  { %14584 = vmatprep.mubr.msk.bf16.mxu0 %vm19832_vm0, %v24095_v0 }
 0x340   :  { %15645 = vmatmul.mubr.bf16.vlgmr.msra.gmra.mrb[0].mxu1 %v6352_v27  ;;  %v1598_v27 = vpack.c.bf16 %v1497_v24, %v1496_v26  ;;  %v6247_v26 = vld [vmem:[#allocation2 + $0x122] sm:$0xff] }
 0x341   :  { %15921 = vmatpush3.bf16.msra.mxu1 %v19775_v25  ;;  %15648 = vmatprep.mubr.msk.bf16.mxu1 %vm19832_vm0, %v24095_v0  ;;  %v6360_v25 = vpack.c.bf16 %v6232_v21, %v6231_v22  ;;  %v1510_v22 = vld [vmem:[#allocation2 + $0x2a0] sm:$0xff] }
 0x342   :  { %14585 = vmatmul.mubr.bf16.gmra.mrb[144].mxu0 %v1590_v29  ;;  %15922 = vmatprep.subr.bf16.mxu1 %v24095_v0  ;;  %v6233_v29 = vld [vmem:[#allocation2 + $0xb2] sm:$0xff] }
 0x343   :  { %14588 = vmatprep.mubr.msk.bf16.mxu0 %vm19832_vm0, %v24095_v0  ;;  %v6361_v31 = vpack.c.bf16 %v6234_v28, %v6233_v29  ;;  %v1512_v29 = vld [vmem:[#allocation2 + $0x2b0] sm:$0xff] }
 0x345   :  { %15923 = vmatpush3.bf16.msra.mxu1 %v19777_v30  ;;  %v1499_v30 = vld [vmem:[#allocation2 + $0x248] sm:$0xff] }
 0x346   :  { %15924 = vmatprep.subr.bf16.mxu1 %v24095_v0  ;;  %v1599_v33 = vpack.c.bf16 %v1499_v30, %v1498_v32  ;;  %v6249_v32 = vld [vmem:[#allocation2 + $0x132] sm:$0xff] }
 0x348   :  { %15649 = vmatmul.mubr.bf16.gmra.mrb[4].mxu1 %v6353_v35  ;;  %v19781_v35 = vld [vmem:[%s24093_s2 + $0x158] sm:$0xff]  }
 0x349   :  { %15652 = vmatprep.mubr.msk.bf16.mxu1 %vm19832_vm0, %v24095_v0  ;;  %15925 = vmatpush3.bf16.msra.mxu1 %v19779_v39  ;;  %v1501_v39 = vld [vmem:[#allocation2 + $0x258] sm:$0xff] }
 0x34a   :  { %14589 = vmatmul.mubr.bf16.gmra.mrb[148].mxu0 %v1591_v38  ;;  %15926 = vmatprep.subr.bf16.mxu1 %v24095_v0  ;;  %v6235_v38 = vld [vmem:[#allocation2 + $0xc2] sm:$0xff]  ;;  %v1600_v42 = vpack.c.bf16 %v1501_v39, %v1500_v41  ;;  %v6252_v39 = vld [vmem:[#allocation2 + $0x14a] sm:$0xff]  ;;  %v1517_v41 = vld [vmem:[#allocation2 + $0x2d8] sm:$0xff] }
 0x34b   :  { %14592 = vmatprep.mubr.msk.bf16.mxu0 %vm19832_vm0, %v24095_v0  ;;  %v6362_v40 = vpack.c.bf16 %v6236_v36, %v6235_v38  ;;  %v1514_v36 = vld [vmem:[#allocation2 + $0x2c0] sm:$0xff] }
 0x34d   :  { %15927 = vmatpush3.bf16.msra.mxu1 %v19781_v35 }
 0x34e   :  { %15928 = vmatprep.subr.bf16.mxu1 %v24095_v0 }
 0x350   :  { %15653 = vmatmul.mubr.bf16.gmra.mrb[8].mxu1 %v6354_v43  ;;  %v6238_v43 = vld [vmem:[#allocation2 + $0xda] sm:$0xff] }
 0x351   :  { %15656 = vmatprep.mubr.msk.bf16.mxu1 %vm19832_vm0, %v24095_v0  ;;  %v6363_v47 = vpack.c.bf16 %v6238_v43, %v6237_v44  ;;  %v1516_v43 = vld [vmem:[#allocation2 + $0x2d0] sm:$0xff] }
 0x352   :  { %14593 = vmatmul.mubr.bf16.gmra.mrb[152].mxu0 %v1592_v45  ;;  %v1503_v45 = vld [vmem:[#allocation2 + $0x268] sm:$0xff]  ;;  %v1608_v44 = vpack.c.bf16 %v1517_v41, %v1516_v43  ;;  %v1533_v41 = vld [vmem:[#allocation2 + $0x358] sm:$0xff]  ;;  %v1532_v43 = vld [vmem:[#allocation2 + $0x350] sm:$0xff] }
 0x353   :  { %14596 = vmatprep.mubr.msk.bf16.mxu0 %vm19832_vm0, %v24095_v0  ;;  %v1601_v51 = vpack.c.bf16 %v1503_v45, %v1502_v48  ;;  %v19783_v45 = vld [vmem:[%s24093_s2 + $0x160] sm:$0xff]   ;;  %v6253_v48 = vld [vmem:[#allocation2 + $0x152] sm:$0xff] }
 0x354   :  { %15929 = vmatpush3.bf16.msra.mxu1 %v19783_v45  ;;  %v6270_v45 = vld [vmem:[#allocation2 + $0x1da] sm:$0xff] }
 0x355   :  { %15930 = vmatprep.subr.bf16.mxu1 %v24095_v0 }
 0x358   :  { %15657 = vmatmul.mubr.bf16.gmra.mrb[12].mxu1 %v6355_v53  ;;  %v1268_v53 = vpop.f32.mrb[30].mxu0 }
 0x359   :  { %15660 = vmatprep.mubr.msk.bf16.mxu1 %vm19832_vm0, %v24095_v0  ;;  %1423 = vst [vmem:[#allocation2 + $0x478] sm:$0xff] %v1268_v53 }
 0x35a   :  { %14597 = vmatmul.mubr.bf16.gmra.mrb[156].mxu0 %v1593_v56  ;;  %v14455_v56 = vpop.f32.mrb[31].mxu0 }
 0x35b   :  { %14600 = vmatprep.mubr.msk.bf16.mxu0 %vm19832_vm0, %v24095_v0 }
 0x360   :  { %15661 = vmatmul.mubr.bf16.gmra.mrb[16].mxu1 %v6356_v60  ;;  %v1504_v60 = vld [vmem:[#allocation2 + $0x270] sm:$0xff] }
 0x361   :  { %15664 = vmatprep.mubr.msk.bf16.mxu1 %vm19832_vm0, %v24095_v0  ;;  %v1602_v61 = vpack.c.bf16 %v1505_v58, %v1504_v60  ;;  %v6255_v58 = vld [vmem:[#allocation2 + $0x162] sm:$0xff] }
 0x362   :  { %14601 = vmatmul.mubr.bf16.gmra.mrb[160].mxu0 %v1594_v62  ;;  %v1273_v62 = vpop.f32.mrb[32].mxu0  ;;  %v6372_v60 = vpack.c.bf16 %v6256_v57, %v6255_v58  ;;  %v6272_v57 = vld [vmem:[#allocation2 + $0x1ea] sm:$0xff]  ;;  %v6271_v58 = vld [vmem:[#allocation2 + $0x1e2] sm:$0xff] }
 0x363   :  { %14604 = vmatprep.mubr.msk.bf16.mxu0 %vm19832_vm0, %v24095_v0  ;;  %1424 = vst [vmem:[#allocation2 + $0x480] sm:$0xff] %v1273_v62  ;;  %v14458_v63 = vpop.f32.mrb[33].mxu0 }
 0x364   :  { %v1276_v1 = vpop.f32.mrb[34].mxu0  ;;  %v6258_v63 = vld [vmem:[#allocation2 + $0x17a] sm:$0xff] }
 0x365   :  { %1425 = vst [vmem:[#allocation2 + $0x488] sm:$0xff] %v1276_v1  ;;  %v14459_v4 = vpop.f32.mrb[35].mxu0  ;;  %v6257_v1 = vld [vmem:[#allocation2 + $0x172] sm:$0xff] }
 0x366   :  { %v6373_v4 = vpack.c.bf16 %v6258_v63, %v6257_v1  ;;  %v6274_v63 = vld [vmem:[#allocation2 + $0x1fa] sm:$0xff]  ;;  %v6273_v1 = vld [vmem:[#allocation2 + $0x1f2] sm:$0xff] }
 0x368   :  { %15665 = vmatmul.mubr.bf16.gmra.mrb[20].mxu1 %v6357_v5  ;;  %v6241_v5 = vld [vmem:[#allocation2 + $0xf2] sm:$0xff] }
 0x369   :  { %15668 = vmatprep.mubr.msk.bf16.mxu1 %vm19832_vm0, %v24095_v0 }
 0x36a   :  { %14605 = vmatmul.mubr.bf16.gmra.mrb[164].mxu0 %v1595_v8  ;;  %v6365_v8 = vpack.c.bf16 %v6242_v2, %v6241_v5  ;;  %v1523_v2 = vld [vmem:[#allocation2 + $0x308] sm:$0xff]  ;;  %v1522_v5 = vld [vmem:[#allocation2 + $0x300] sm:$0xff] }
 0x36b   :  { %14608 = vmatprep.mubr.msk.bf16.mxu0 %vm19832_vm0, %v24095_v0  ;;  %v1611_v7 = vpack.c.bf16 %v1523_v2, %v1522_v5  ;;  %v1539_v2 = vld [vmem:[#allocation2 + $0x388] sm:$0xff]  ;;  %v1538_v5 = vld [vmem:[#allocation2 + $0x380] sm:$0xff] }
 0x370   :  { %15669 = vmatmul.mubr.bf16.gmra.mrb[24].mxu1 %v6358_v50  ;;  %v6244_v50 = vld [vmem:[#allocation2 + $0x10a] sm:$0xff] }
 0x371   :  { %15672 = vmatprep.mubr.msk.bf16.mxu1 %vm19832_vm0, %v24095_v0  ;;  %v6366_v13 = vpack.c.bf16 %v6244_v50, %v6243_v10  ;;  %v1524_v50 = vld [vmem:[#allocation2 + $0x310] sm:$0xff] }
 0x372   :  { %14609 = vmatmul.mubr.bf16.gmra.mrb[168].mxu0 %v1596_v11  ;;  %v1509_v11 = vld [vmem:[#allocation2 + $0x298] sm:$0xff] }
 0x373   :  { %14612 = vmatprep.mubr.msk.bf16.mxu0 %vm19832_vm0, %v24095_v0  ;;  %v1604_v16 = vpack.c.bf16 %v1509_v11, %v1508_v14  ;;  %v19784_v11 = vld [vmem:[%s24093_s2 + $0x60] sm:$0xff]   ;;  %v6261_v14 = vld [vmem:[#allocation2 + $0x192] sm:$0xff] }
 0x374   :  { %14761 = vmatpush3.bf16.msra.mxu0 %v19784_v11  ;;  %v6278_v11 = vld [vmem:[#allocation2 + $0x21a] sm:$0xff] }
 0x375   :  { %14762 = vmatprep.subr.bf16.mxu0 %v24095_v0 }
 0x378   :  { %15673 = vmatmul.mubr.bf16.gmra.mrb[28].mxu1 %v6359_v17  ;;  %v6246_v17 = vld [vmem:[#allocation2 + $0x11a] sm:$0xff] }
 0x379   :  { %15676 = vmatprep.mubr.msk.bf16.mxu1 %vm19832_vm0, %v24095_v0  ;;  %v6367_v21 = vpack.c.bf16 %v6246_v17, %v6245_v18  ;;  %v1526_v18 = vld [vmem:[#allocation2 + $0x320] sm:$0xff] }
 0x37a   :  { %14613 = vmatmul.mubr.bf16.gmra.mrb[172].mxu0 %v1597_v19  ;;  %v1511_v19 = vld [vmem:[#allocation2 + $0x2a8] sm:$0xff] }
 0x37b   :  { %14616 = vmatprep.mubr.msk.bf16.mxu0 %vm19832_vm0, %v24095_v0  ;;  %v1605_v24 = vpack.c.bf16 %v1511_v19, %v1510_v22  ;;  %v6263_v22 = vld [vmem:[#allocation2 + $0x1a2] sm:$0xff] }
 0x380   :  { %15677 = vmatmul.mubr.bf16.gmra.mrb[32].mxu1 %v6360_v25  ;;  %v6248_v25 = vld [vmem:[#allocation2 + $0x12a] sm:$0xff] }
 0x381   :  { %15680 = vmatprep.mubr.msk.bf16.mxu1 %vm19832_vm0, %v24095_v0  ;;  %v6368_v28 = vpack.c.bf16 %v6248_v25, %v6247_v26  ;;  %v1528_v26 = vld [vmem:[#allocation2 + $0x330] sm:$0xff] }
 0x382   :  { %14617 = vmatmul.mubr.bf16.gmra.mrb[176].mxu0 %v1598_v27  ;;  %v1513_v27 = vld [vmem:[#allocation2 + $0x2b8] sm:$0xff] }
 0x383   :  { %14620 = vmatprep.mubr.msk.bf16.mxu0 %vm19832_vm0, %v24095_v0  ;;  %v1606_v30 = vpack.c.bf16 %v1513_v27, %v1512_v29  ;;  %v6265_v29 = vld [vmem:[#allocation2 + $0x1b2] sm:$0xff] }
 0x388   :  { %15681 = vmatmul.mubr.bf16.gmra.mrb[36].mxu1 %v6361_v31  ;;  %v6250_v31 = vld [vmem:[#allocation2 + $0x13a] sm:$0xff] }
 0x389   :  { %15684 = vmatprep.mubr.msk.bf16.mxu1 %vm19832_vm0, %v24095_v0  ;;  %v6369_v35 = vpack.c.bf16 %v6250_v31, %v6249_v32  ;;  %v19785_v32 = vld [vmem:[%s24093_s2 + $0x68] sm:$0xff]  }
 0x38a   :  { %14621 = vmatmul.mubr.bf16.gmra.mrb[180].mxu0 %v1599_v33  ;;  %v1515_v33 = vld [vmem:[#allocation2 + $0x2c8] sm:$0xff] }
 0x38b   :  { %14624 = vmatprep.mubr.msk.bf16.mxu0 %vm19832_vm0, %v24095_v0  ;;  %v1607_v38 = vpack.c.bf16 %v1515_v33, %v1514_v36  ;;  %v1530_v33 = vld [vmem:[#allocation2 + $0x340] sm:$0xff]  ;;  %14763 = vmatpush3.bf16.msra.mxu0 %v19785_v32  ;;  %v19786_v36 = vld [vmem:[%s24093_s2 + $0x70] sm:$0xff]  }
 0x38c   :  { %14764 = vmatprep.subr.bf16.mxu0 %v24095_v0 }
 0x38f   :  { %14765 = vmatpush3.bf16.msra.mxu0 %v19786_v36  ;;  %v1549_v36 = vld [vmem:[#allocation2 + $0x3d8] sm:$0xff] }
 0x390   :  { %15685 = vmatmul.mubr.bf16.gmra.mrb[40].mxu1 %v6362_v40  ;;  %v6251_v40 = vld [vmem:[#allocation2 + $0x142] sm:$0xff]  ;;  %14766 = vmatprep.subr.bf16.mxu0 %v24095_v0 }
 0x391   :  { %15688 = vmatprep.mubr.msk.bf16.mxu1 %vm19832_vm0, %v24095_v0 }
 0x392   :  { %14625 = vmatmul.mubr.bf16.gmra.mrb[184].mxu0 %v1600_v42  ;;  %v6370_v42 = vpack.c.bf16 %v6252_v39, %v6251_v40  ;;  %v19787_v39 = vld [vmem:[%s24093_s2 + $0x78] sm:$0xff]   ;;  %v6267_v40 = vld [vmem:[#allocation2 + $0x1c2] sm:$0xff] }
 0x393   :  { %14628 = vmatprep.mubr.msk.bf16.mxu0 %vm19832_vm0, %v24095_v0  ;;  %14767 = vmatpush3.bf16.msra.mxu0 %v19787_v39  ;;  %v1548_v39 = vld [vmem:[#allocation2 + $0x3d0] sm:$0xff] }
 0x394   :  { %15044 = vmatprep.subr.bf16.mxu0 %v24095_v0 }
 0x398   :  { %15689 = vmatmul.mubr.bf16.gmra.mrb[44].mxu1 %v6363_v47  ;;  %v6254_v47 = vld [vmem:[#allocation2 + $0x15a] sm:$0xff] }
 0x399   :  { %15692 = vmatprep.mubr.msk.bf16.mxu1 %vm19832_vm0, %v24095_v0  ;;  %v6371_v53 = vpack.c.bf16 %v6254_v47, %v6253_v48  ;;  %v6269_v47 = vld [vmem:[#allocation2 + $0x1d2] sm:$0xff]  ;;  %v1535_v48 = vld [vmem:[#allocation2 + $0x368] sm:$0xff] }
 0x39a   :  { %14629 = vmatmul.mubr.bf16.gmra.mrb[188].mxu0 %v1601_v51  ;;  %v1519_v51 = vld [vmem:[#allocation2 + $0x2e8] sm:$0xff] }
 0x39b   :  { %14632 = vmatprep.mubr.msk.bf16.mxu0 %vm19832_vm0, %v24095_v0  ;;  %v1609_v56 = vpack.c.bf16 %v1519_v51, %v1518_v54  ;;  %v6379_v51 = vpack.c.bf16 %v6270_v45, %v6269_v47  ;;  %v1550_v45 = vld [vmem:[#allocation2 + $0x3e0] sm:$0xff] }
 0x3a0   :  { %15693 = vmatmul.mubr.bf16.gmra.mrb[48].mxu1 %v6364_v59  ;;  %v1521_v59 = vld [vmem:[#allocation2 + $0x2f8] sm:$0xff] }
 0x3a1   :  { %15696 = vmatprep.mubr.msk.bf16.mxu1 %vm19832_vm0, %v24095_v0 }
 0x3a2   :  { %14633 = vmatmul.mubr.bf16.gmra.mrb[192].mxu0 %v1602_v61  ;;  %v1520_v61 = vld [vmem:[#allocation2 + $0x2f0] sm:$0xff] }
 0x3a3   :  { %14636 = vmatprep.mubr.msk.bf16.mxu0 %vm19832_vm0, %v24095_v0  ;;  %v1610_v62 = vpack.c.bf16 %v1521_v59, %v1520_v61  ;;  %v1537_v59 = vld [vmem:[#allocation2 + $0x378] sm:$0xff]  ;;  %v1536_v61 = vld [vmem:[#allocation2 + $0x370] sm:$0xff] }
 0x3a8   :  { %15697 = vmatmul.mubr.bf16.gmra.mrb[52].mxu1 %v6365_v8  ;;  %v6260_v8 = vld [vmem:[#allocation2 + $0x18a] sm:$0xff] }
 0x3a9   :  { %15700 = vmatprep.mubr.msk.bf16.mxu1 %vm19832_vm0, %v24095_v0  ;;  %v6374_v49 = vpack.c.bf16 %v6260_v8, %v6259_v9  ;;  %v6276_v8 = vld [vmem:[#allocation2 + $0x20a] sm:$0xff]  ;;  %v6275_v9 = vld [vmem:[#allocation2 + $0x202] sm:$0xff] }
 0x3aa   :  { %14637 = vmatmul.mubr.bf16.gmra.mrb[196].mxu0 %v1603_v46  ;;  %v1525_v46 = vld [vmem:[#allocation2 + $0x318] sm:$0xff] }
 0x3ab   :  { %14640 = vmatprep.mubr.msk.bf16.mxu0 %vm19832_vm0, %v24095_v0  ;;  %v1612_v10 = vpack.c.bf16 %v1525_v46, %v1524_v50  ;;  %v1541_v46 = vld [vmem:[#allocation2 + $0x398] sm:$0xff]  ;;  %v1540_v50 = vld [vmem:[#allocation2 + $0x390] sm:$0xff] }
 0x3b0   :  { %15701 = vmatmul.mubr.bf16.gmra.mrb[56].mxu1 %v6366_v13  ;;  %v6262_v13 = vld [vmem:[#allocation2 + $0x19a] sm:$0xff] }
 0x3b1   :  { %15704 = vmatprep.mubr.msk.bf16.mxu1 %vm19832_vm0, %v24095_v0  ;;  %v6375_v17 = vpack.c.bf16 %v6262_v13, %v6261_v14  ;;  %v6277_v13 = vld [vmem:[#allocation2 + $0x212] sm:$0xff]  ;;  %v1543_v14 = vld [vmem:[#allocation2 + $0x3a8] sm:$0xff] }
 0x3b2   :  { %14641 = vmatmul.mubr.bf16.gmra.mrb[200].mxu0 %v1604_v16  ;;  %v1527_v16 = vld [vmem:[#allocation2 + $0x328] sm:$0xff] }
 0x3b3   :  { %14644 = vmatprep.mubr.msk.bf16.mxu0 %vm19832_vm0, %v24095_v0  ;;  %v1613_v19 = vpack.c.bf16 %v1527_v16, %v1526_v18  ;;  %v6383_v16 = vpack.c.bf16 %v6278_v11, %v6277_v13 }
 0x3b8   :  { %15705 = vmatmul.mubr.bf16.gmra.mrb[60].mxu1 %v6367_v21  ;;  %v6264_v21 = vld [vmem:[#allocation2 + $0x1aa] sm:$0xff] }
 0x3b9   :  { %15708 = vmatprep.mubr.msk.bf16.mxu1 %vm19832_vm0, %v24095_v0  ;;  %v6376_v25 = vpack.c.bf16 %v6264_v21, %v6263_v22  ;;  %v6279_v21 = vld [vmem:[#allocation2 + $0x222] sm:$0xff]  ;;  %v1545_v22 = vld [vmem:[#allocation2 + $0x3b8] sm:$0xff] }
 0x3ba   :  { %14645 = vmatmul.mubr.bf16.gmra.mrb[204].mxu0 %v1605_v24  ;;  %v1529_v24 = vld [vmem:[#allocation2 + $0x338] sm:$0xff] }
 0x3bb   :  { %14648 = vmatprep.mubr.msk.bf16.mxu0 %vm19832_vm0, %v24095_v0  ;;  %v1614_v27 = vpack.c.bf16 %v1529_v24, %v1528_v26 }
 0x3c0   :  { %15709 = vmatmul.mubr.bf16.gmra.mrb[64].mxu1 %v6368_v28  ;;  %v6266_v28 = vld [vmem:[#allocation2 + $0x1ba] sm:$0xff] }
 0x3c1   :  { %15712 = vmatprep.mubr.msk.bf16.mxu1 %vm19832_vm0, %v24095_v0  ;;  %v6377_v31 = vpack.c.bf16 %v6266_v28, %v6265_v29  ;;  %v6281_v28 = vld [vmem:[#allocation2 + $0x232] sm:$0xff]  ;;  %v1547_v29 = vld [vmem:[#allocation2 + $0x3c8] sm:$0xff] }
 0x3c2   :  { %14649 = vmatmul.mubr.bf16.gmra.mrb[208].mxu0 %v1606_v30  ;;  %v1531_v30 = vld [vmem:[#allocation2 + $0x348] sm:$0xff] }
 0x3c3   :  { %14652 = vmatprep.mubr.msk.bf16.mxu0 %vm19832_vm0, %v24095_v0 }
 0x3c8   :  { %15713 = vmatmul.mubr.bf16.gmra.mrb[68].mxu1 %v6369_v35  ;;  %v1615_v35 = vpack.c.bf16 %v1531_v30, %v1530_v33  ;;  %v6284_v33 = vld [vmem:[#allocation2 + $0x24a] sm:$0xff] }
 0x3c9   :  { %15716 = vmatprep.mubr.msk.bf16.mxu1 %vm19832_vm0, %v24095_v0 }
 0x3ca   :  { %14653 = vmatmul.mubr.bf16.gmra.mrb[212].mxu0 %v1607_v38  ;;  %v6268_v38 = vld [vmem:[#allocation2 + $0x1ca] sm:$0xff] }
 0x3cb   :  { %14656 = vmatprep.mubr.msk.bf16.mxu0 %vm19832_vm0, %v24095_v0 }
 0x3d0   :  { %15717 = vmatmul.mubr.bf16.gmra.mrb[72].mxu1 %v6370_v42  ;;  %v6378_v42 = vpack.c.bf16 %v6268_v38, %v6267_v40  ;;  %v1624_v40 = vpack.c.bf16 %v1549_v36, %v1548_v39 }
 0x3d1   :  { %15720 = vmatprep.mubr.msk.bf16.mxu1 %vm19832_vm0, %v24095_v0 }
 0x3d2   :  { %14657 = vmatmul.mubr.bf16.gmra.mrb[216].mxu0 %v1608_v44  ;;  %v1616_v44 = vpack.c.bf16 %v1533_v41, %v1532_v43  ;;  %v6286_v41 = vld [vmem:[#allocation2 + $0x25a] sm:$0xff]  ;;  %v1551_v43 = vld [vmem:[#allocation2 + $0x3e8] sm:$0xff] }
 0x3d3   :  { %14660 = vmatprep.mubr.msk.bf16.mxu0 %vm19832_vm0, %v24095_v0  ;;  %v1625_v47 = vpack.c.bf16 %v1551_v43, %v1550_v45 }
 0x3d8   :  { %15721 = vmatmul.mubr.bf16.gmra.mrb[76].mxu1 %v6371_v53  ;;  %v1534_v53 = vld [vmem:[#allocation2 + $0x360] sm:$0xff] }
 0x3d9   :  { %15724 = vmatprep.mubr.msk.bf16.mxu1 %vm19832_vm0, %v24095_v0  ;;  %v1617_v54 = vpack.c.bf16 %v1535_v48, %v1534_v53  ;;  %v19789_v48 = vld [vmem:[%s24093_s2 + $0x170] sm:$0xff]   ;;  %v6287_v53 = vld [vmem:[#allocation2 + $0x262] sm:$0xff] }
 0x3da   :  { %14661 = vmatmul.mubr.bf16.gmra.mrb[220].mxu0 %v1609_v56  ;;  %v19788_v56 = vld [vmem:[%s24093_s2 + $0x168] sm:$0xff]  }
 0x3db   :  { %14664 = vmatprep.mubr.msk.bf16.mxu0 %vm19832_vm0, %v24095_v0  ;;  %15931 = vmatpush3.bf16.msra.mxu1 %v19788_v56 }
 0x3dc   :  { %15932 = vmatprep.subr.bf16.mxu1 %v24095_v0 }
 0x3df   :  { %15933 = vmatpush3.bf16.msra.mxu1 %v19789_v48 }
 0x3e0   :  { %15725 = vmatmul.mubr.bf16.gmra.mrb[80].mxu1 %v6372_v60  ;;  %v6380_v60 = vpack.c.bf16 %v6272_v57, %v6271_v58  ;;  %15934 = vmatprep.subr.bf16.mxu1 %v24095_v0  ;;  %v1552_v57 = vld [vmem:[#allocation2 + $0x3f0] sm:$0xff] }
 0x3e1   :  { %15728 = vmatprep.mubr.msk.bf16.mxu1 %vm19832_vm0, %v24095_v0 }
 0x3e2   :  { %14665 = vmatmul.mubr.bf16.gmra.mrb[224].mxu0 %v1610_v62  ;;  %v1618_v62 = vpack.c.bf16 %v1537_v59, %v1536_v61 }
 0x3e3   :  { %14668 = vmatprep.mubr.msk.bf16.mxu0 %vm19832_vm0, %v24095_v0 }
 0x3e8   :  { %15729 = vmatmul.mubr.bf16.gmra.mrb[84].mxu1 %v6373_v4  ;;  %v6381_v4 = vpack.c.bf16 %v6274_v63, %v6273_v1  ;;  %v6289_v1 = vld [vmem:[#allocation2 + $0x272] sm:$0xff] }
 0x3e9   :  { %15732 = vmatprep.mubr.msk.bf16.mxu1 %vm19832_vm0, %v24095_v0 }
 0x3ea   :  { %14669 = vmatmul.mubr.bf16.gmra.mrb[228].mxu0 %v1611_v7  ;;  %v1619_v7 = vpack.c.bf16 %v1539_v2, %v1538_v5  ;;  %v1555_v2 = vld [vmem:[#allocation2 + $0x408] sm:$0xff] }
 0x3eb   :  { %14672 = vmatprep.mubr.msk.bf16.mxu0 %vm19832_vm0, %v24095_v0 }
 0x3f0   :  { %15733 = vmatmul.mubr.bf16.gmra.mrb[88].mxu1 %v6374_v49  ;;  %v6382_v49 = vpack.c.bf16 %v6276_v8, %v6275_v9  ;;  %v1554_v9 = vld [vmem:[#allocation2 + $0x400] sm:$0xff] }
 0x3f1   :  { %15736 = vmatprep.mubr.msk.bf16.mxu1 %vm19832_vm0, %v24095_v0 }
 0x3f2   :  { %14673 = vmatmul.mubr.bf16.gmra.mrb[232].mxu0 %v1612_v10  ;;  %v1620_v10 = vpack.c.bf16 %v1541_v46, %v1540_v50 }
 0x3f3   :  { %14676 = vmatprep.mubr.msk.bf16.mxu0 %vm19832_vm0, %v24095_v0 }
 0x3f8   :  { %15737 = vmatmul.mubr.bf16.gmra.mrb[92].mxu1 %v6375_v17  ;;  %v1542_v17 = vld [vmem:[#allocation2 + $0x3a0] sm:$0xff] }
 0x3f9   :  { %15740 = vmatprep.mubr.msk.bf16.mxu1 %vm19832_vm0, %v24095_v0  ;;  %v1621_v18 = vpack.c.bf16 %v1543_v14, %v1542_v17  ;;  %v1557_v17 = vld [vmem:[#allocation2 + $0x418] sm:$0xff] }
 0x3fa   :  { %14677 = vmatmul.mubr.bf16.gmra.mrb[236].mxu0 %v1613_v19  ;;  %v6280_v19 = vld [vmem:[#allocation2 + $0x22a] sm:$0xff] }
 0x3fb   :  { %14680 = vmatprep.mubr.msk.bf16.mxu0 %vm19832_vm0, %v24095_v0  ;;  %v6384_v24 = vpack.c.bf16 %v6280_v19, %v6279_v21 }
 0x400   :  { %15741 = vmatmul.mubr.bf16.gmra.mrb[96].mxu1 %v6376_v25  ;;  %v1544_v25 = vld [vmem:[#allocation2 + $0x3b0] sm:$0xff] }
 0x401   :  { %15744 = vmatprep.mubr.msk.bf16.mxu1 %vm19832_vm0, %v24095_v0  ;;  %v1622_v26 = vpack.c.bf16 %v1545_v22, %v1544_v25 }
 0x402   :  { %14681 = vmatmul.mubr.bf16.gmra.mrb[240].mxu0 %v1614_v27  ;;  %v6282_v27 = vld [vmem:[#allocation2 + $0x23a] sm:$0xff] }
 0x403   :  { %14684 = vmatprep.mubr.msk.bf16.mxu0 %vm19832_vm0, %v24095_v0  ;;  %v6385_v30 = vpack.c.bf16 %v6282_v27, %v6281_v28  ;;  %v6294_v28 = vld [vmem:[#allocation2 + $0x29a] sm:$0xff] }
 0x408   :  { %15745 = vmatmul.mubr.bf16.gmra.mrb[100].mxu1 %v6377_v31  ;;  %v1546_v31 = vld [vmem:[#allocation2 + $0x3c0] sm:$0xff] }
 0x409   :  { %15748 = vmatprep.mubr.msk.bf16.mxu1 %vm19832_vm0, %v24095_v0  ;;  %v1623_v32 = vpack.c.bf16 %v1547_v29, %v1546_v31 }
 0x40a   :  { %14685 = vmatmul.mubr.bf16.gmra.mrb[244].mxu0 %v1615_v35  ;;  %v6283_v35 = vld [vmem:[#allocation2 + $0x242] sm:$0xff] }
 0x40b   :  { %14688 = vmatprep.mubr.msk.bf16.mxu0 %vm19832_vm0, %v24095_v0  ;;  %v6386_v38 = vpack.c.bf16 %v6284_v33, %v6283_v35  ;;  %v1559_v33 = vld [vmem:[#allocation2 + $0x428] sm:$0xff] }
 0x410   :  { %15749 = vmatmul.mubr.bf16.gmra.mrb[104].mxu1 %v6378_v42  ;;  %v6285_v42 = vld [vmem:[#allocation2 + $0x252] sm:$0xff] }
 0x411   :  { %15752 = vmatprep.mubr.msk.bf16.mxu1 %vm19832_vm0, %v24095_v0 }
 0x412   :  { %14689 = vmatmul.mubr.bf16.gmra.mrb[248].mxu0 %v1616_v44  ;;  %v6387_v44 = vpack.c.bf16 %v6286_v41, %v6285_v42 }
 0x413   :  { %14692 = vmatprep.mubr.msk.bf16.mxu0 %vm19832_vm0, %v24095_v0 }
 0x418   :  { %15753 = vmatmul.mubr.bf16.gmra.mrb[108].mxu1 %v6379_v51  ;;  %v6288_v51 = vld [vmem:[#allocation2 + $0x26a] sm:$0xff] }
 0x419   :  { %15756 = vmatprep.mubr.msk.bf16.mxu1 %vm19832_vm0, %v24095_v0  ;;  %v6388_v56 = vpack.c.bf16 %v6288_v51, %v6287_v53  ;;  %v6295_v51 = vld [vmem:[#allocation2 + $0x2a2] sm:$0xff]  ;;  %v1561_v53 = vld [vmem:[#allocation2 + $0x438] sm:$0xff] }
 0x41a   :  { %14693 = vmatmul.mubr.bf16.gmra.mrb[252].mxu0 %v1617_v54  ;;  %v1553_v54 = vld [vmem:[#allocation2 + $0x3f8] sm:$0xff] }
 0x41b   :  { %14696 = vmatprep.mubr.msk.bf16.mxu0 %vm19832_vm0, %v24095_v0  ;;  %v1626_v58 = vpack.c.bf16 %v1553_v54, %v1552_v57 }
 0x420   :  { %15757 = vmatmul.mubr.bf16.gmra.mrb[112].mxu1 %v6380_v60  ;;  %v6290_v60 = vld [vmem:[#allocation2 + $0x27a] sm:$0xff] }
 0x421   :  { %15760 = vmatprep.mubr.msk.bf16.mxu1 %vm19832_vm0, %v24095_v0 }
 0x422   :  { %14697 = vmatmul.mubr.bf16.gmra.mrb[0].mxu0 %v1618_v62 }
 0x423   :  { %14700 = vmatprep.mubr.msk.bf16.mxu0 %vm19832_vm0, %v24095_v0 }
 0x428   :  { %15761 = vmatmul.mubr.bf16.gmra.mrb[116].mxu1 %v6381_v4 }
 0x429   :  { %15764 = vmatprep.mubr.msk.bf16.mxu1 %vm19832_vm0, %v24095_v0 }
 0x42a   :  { %14701 = vmatmul.mubr.bf16.gmra.mrb[4].mxu0 %v1619_v7  ;;  %v6389_v7 = vpack.c.bf16 %v6290_v60, %v6289_v1  ;;  %v1560_v60 = vld [vmem:[#allocation2 + $0x430] sm:$0xff] }
 0x42b   :  { %14704 = vmatprep.mubr.msk.bf16.mxu0 %vm19832_vm0, %v24095_v0 }
 0x430   :  { %15765 = vmatmul.mubr.bf16.gmra.mrb[120].mxu1 %v6382_v49  ;;  %v1627_v49 = vpack.c.bf16 %v1555_v2, %v1554_v9  ;;  %v6298_v2 = vld [vmem:[#allocation2 + $0x2ba] sm:$0xff] }
 0x431   :  { %15768 = vmatprep.mubr.msk.bf16.mxu1 %vm19832_vm0, %v24095_v0  ;;  %v1562_v9 = vld [vmem:[#allocation2 + $0x440] sm:$0xff] }
 0x432   :  { %14705 = vmatmul.mubr.bf16.gmra.mrb[8].mxu0 %v1620_v10  ;;  %v6292_v10 = vld [vmem:[#allocation2 + $0x28a] sm:$0xff] }
 0x433   :  { %14708 = vmatprep.mubr.msk.bf16.mxu0 %vm19832_vm0, %v24095_v0 }
 0x438   :  { %15769 = vmatmul.mubr.bf16.gmra.mrb[124].mxu1 %v6383_v16  ;;  %v6291_v16 = vld [vmem:[#allocation2 + $0x282] sm:$0xff] }
 0x439   :  { %15772 = vmatprep.mubr.msk.bf16.mxu1 %vm19832_vm0, %v24095_v0  ;;  %v6390_v21 = vpack.c.bf16 %v6292_v10, %v6291_v16  ;;  %v1631_v16 = vpack.c.bf16 %v1562_v9, %v1562_v9 }
 0x43a   :  { %14709 = vmatmul.mubr.bf16.gmra.mrb[12].mxu0 %v1621_v18 }
 0x43b   :  { %14712 = vmatprep.mubr.msk.bf16.mxu0 %vm19832_vm0, %v24095_v0 }
 0x440   :  { %15773 = vmatmul.mubr.bf16.gmra.mrb[128].mxu1 %v6384_v24  ;;  %v1556_v24 = vld [vmem:[#allocation2 + $0x410] sm:$0xff] }
 0x441   :  { %15776 = vmatprep.mubr.msk.bf16.mxu1 %vm19832_vm0, %v24095_v0 }
 0x442   :  { %14713 = vmatmul.mubr.bf16.gmra.mrb[16].mxu0 %v1622_v26  ;;  %v1628_v26 = vpack.c.bf16 %v1557_v17, %v1556_v24  ;;  %v6300_v17 = vld [vmem:[#allocation2 + $0x2ca] sm:$0xff] }
 0x443   :  { %14716 = vmatprep.mubr.msk.bf16.mxu0 %vm19832_vm0, %v24095_v0 }
 0x448   :  { %15777 = vmatmul.mubr.bf16.gmra.mrb[132].mxu1 %v6385_v30 }
 0x449   :  { %15780 = vmatprep.mubr.msk.bf16.mxu1 %vm19832_vm0, %v24095_v0 }
 0x44a   :  { %14717 = vmatmul.mubr.bf16.gmra.mrb[20].mxu0 %v1623_v32  ;;  %v6293_v32 = vld [vmem:[#allocation2 + $0x292] sm:$0xff] }
 0x44b   :  { %14720 = vmatprep.mubr.msk.bf16.mxu0 %vm19832_vm0, %v24095_v0 }
 0x450   :  { %15781 = vmatmul.mubr.bf16.gmra.mrb[136].mxu1 %v6386_v38  ;;  %v6391_v38 = vpack.c.bf16 %v6294_v28, %v6293_v32  ;;  %v2420_v28 = vld [vmem:[#allocation2 + $0x19] sm:$0xff] }
 0x451   :  { %15784 = vmatprep.mubr.msk.bf16.mxu1 %vm19832_vm0, %v24095_v0 }
 0x452   :  { %14721 = vmatmul.mubr.bf16.gmra.mrb[24].mxu0 %v1624_v40  ;;  %v1558_v40 = vld [vmem:[#allocation2 + $0x420] sm:$0xff] }
 0x453   :  { %14724 = vmatprep.mubr.msk.bf16.mxu0 %vm19832_vm0, %v24095_v0  ;;  %v1629_v42 = vpack.c.bf16 %v1559_v33, %v1558_v40  ;;  %v6304_v33 = vld [vmem:[#allocation2 + $0x2ea] sm:$0xff] }
 0x458   :  { %15785 = vmatmul.mubr.bf16.gmra.mrb[140].mxu1 %v6387_v44  ;;  %v6296_v44 = vld [vmem:[#allocation2 + $0x2aa] sm:$0xff] }
 0x459   :  { %15788 = vmatprep.mubr.msk.bf16.mxu1 %vm19832_vm0, %v24095_v0  ;;  %v6392_v57 = vpack.c.bf16 %v6296_v44, %v6295_v51  ;;  %v6305_v44 = vld [vmem:[#allocation2 + $0x2f2] sm:$0xff] }
 0x45a   :  { %14725 = vmatmul.mubr.bf16.gmra.mrb[28].mxu0 %v1625_v47  ;;  %v2423_v51 = vld [vmem:[#allocation2 + $0x31] sm:$0xff] }
 0x45b   :  { %14728 = vmatprep.mubr.msk.bf16.mxu0 %vm19832_vm0, %v24095_v0 }
 0x460   :  { %15789 = vmatmul.mubr.bf16.gmra.mrb[144].mxu1 %v6388_v56 }
 0x461   :  { %15792 = vmatprep.mubr.msk.bf16.mxu1 %vm19832_vm0, %v24095_v0 }
 0x462   :  { %14729 = vmatmul.mubr.bf16.gmra.mrb[32].mxu0 %v1626_v58 }
 0x463   :  { %v20781_v59 = vpop.f32.mrb[40].mxu1  ;;  %14732 = vmatprep.mubr.msk.bf16.mxu0 %vm19832_vm0, %v24095_v0 }
 0x464   :  { %v15686_v61 = vpop.f32.mrb[41].mxu1 }
 0x465   :  { %v2026_v62 = vpop.f32.mrb[184].mxu0  ;;  %v20785_v63 = vpop.f32.mrb[42].mxu1 }
 0x466   :  { %17656 = vst [vmem:[%s24094_s3 + $0x250] sm:$0xff] %v2026_v62  ;;  %v14626_v4 = vpop.f32.mrb[185].mxu0  ;;  %v15687_v5 = vpop.f32.mrb[43].mxu1  ;;  %v1630_v62 = vpack.c.bf16 %v1561_v53, %v1560_v60  ;;  %v2425_v60 = vld [vmem:[#allocation2 + $0x41] sm:$0xff] }
 0x467   :  { %v2029_v8 = vpop.f32.mrb[186].mxu0 }
 0x468   :  { %17668 = vst [vmem:[%s24094_s3 + $0x258] sm:$0xff] %v2029_v8  ;;  %v14627_v46 = vpop.f32.mrb[187].mxu0  ;;  %15793 = vmatmul.mubr.bf16.gmra.mrb[40].mxu1 %v6389_v7  ;;  %v6297_v8 = vld [vmem:[#allocation2 + $0x2b2] sm:$0xff] }
 0x469   :  { %15796 = vmatprep.mubr.msk.bf16.mxu1 %vm19832_vm0, %v24095_v0  ;;  %v6393_v10 = vpack.c.bf16 %v6298_v2, %v6297_v8  ;;  %v6309_v2 = vld [vmem:[#allocation2 + $0x312] sm:$0xff] }
 0x46a   :  { %14733 = vmatmul.mubr.bf16.gmra.mrb[184].mxu0 %v1627_v49  ;;  %v2427_v8 = vld [vmem:[#allocation2 + $0x51] sm:$0xff] }
 0x46b   :  { %v20795_v50 = vpop.f32.mrb[44].mxu1  ;;  %14736 = vmatprep.mubr.msk.bf16.mxu0 %vm19832_vm0, %v24095_v0 }
 0x46c   :  { %v15690_v11 = vpop.f32.mrb[45].mxu1 }
 0x46d   :  { %v2034_v13 = vpop.f32.mrb[188].mxu0  ;;  %v20799_v14 = vpop.f32.mrb[46].mxu1 }
 0x46e   :  { %17680 = vst [vmem:[%s24094_s3 + $0x260] sm:$0xff] %v2034_v13  ;;  %v14630_v18 = vpop.f32.mrb[189].mxu0  ;;  %v15691_v19 = vpop.f32.mrb[47].mxu1 }
 0x46f   :  { %v2037_v22 = vpop.f32.mrb[190].mxu0  ;;  %v2418_v18 = vld [vmem:[#allocation2 + $0x9] sm:$0xff] }
 0x470   :  { %17692 = vst [vmem:[%s24094_s3 + $0x268] sm:$0xff] %v2037_v22  ;;  %v14631_v25 = vpop.f32.mrb[191].mxu0  ;;  %15797 = vmatmul.mubr.bf16.gmra.mrb[44].mxu1 %v6390_v21  ;;  %v6299_v19 = vld [vmem:[#allocation2 + $0x2c2] sm:$0xff] }
 0x471   :  { %15800 = vmatprep.mubr.msk.bf16.mxu1 %vm19832_vm0, %v24095_v0  ;;  %v6394_v21 = vpack.c.bf16 %v6300_v17, %v6299_v19  ;;  %v2417_v22 = vld [vmem:[#allocation2 + $0x1] sm:$0xff]  ;;  %v2432_v19 = vld [vmem:[#allocation2 + $0x79] sm:$0xff] }
 0x472   :  { %14737 = vmatmul.mubr.bf16.gmra.mrb[188].mxu0 %v1628_v26  ;;  %v2554_v24 = vpack.c.bf16 %v2418_v18, %v2417_v22  ;;  %v6302_v25 = vld [vmem:[#allocation2 + $0x2da] sm:$0xff]  ;;  %v6301_v26 = vld [vmem:[#allocation2 + $0x2d2] sm:$0xff] }
 0x473   :  { %v20809_v27 = vpop.f32.mrb[48].mxu1  ;;  %14740 = vmatprep.mubr.msk.bf16.mxu0 %vm19832_vm0, %v24095_v0  ;;  %v6314_v17 = vld [vmem:[#allocation2 + $0x33a] sm:$0xff]  ;;  %v6313_v18 = vld [vmem:[#allocation2 + $0x332] sm:$0xff] }
 0x474   :  { %v15694_v29 = vpop.f32.mrb[49].mxu1  ;;  %v2431_v22 = vld [vmem:[#allocation2 + $0x71] sm:$0xff] }
 0x475   :  { %v2042_v30 = vpop.f32.mrb[192].mxu0  ;;  %v20813_v31 = vpop.f32.mrb[50].mxu1  ;;  %v6395_v29 = vpack.c.bf16 %v6302_v25, %v6301_v26  ;;  %v6316_v25 = vld [vmem:[#allocation2 + $0x34a] sm:$0xff]  ;;  %v6315_v26 = vld [vmem:[#allocation2 + $0x342] sm:$0xff] }
 0x476   :  { %17704 = vst [vmem:[%s24094_s3 + $0x270] sm:$0xff] %v2042_v30  ;;  %v14634_v35 = vpop.f32.mrb[193].mxu0  ;;  %v15695_v36 = vpop.f32.mrb[51].mxu1  ;;  %v2419_v30 = vld [vmem:[#allocation2 + $0x11] sm:$0xff] }
 0x477   :  { %v2045_v39 = vpop.f32.mrb[194].mxu0  ;;  %v2555_v32 = vpack.c.bf16 %v2420_v28, %v2419_v30  ;;  %v6303_v35 = vld [vmem:[#allocation2 + $0x2e2] sm:$0xff] }
 0x478   :  { %17716 = vst [vmem:[%s24094_s3 + $0x278] sm:$0xff] %v2045_v39  ;;  %v14635_v41 = vpop.f32.mrb[195].mxu0  ;;  %15801 = vmatmul.mubr.bf16.gmra.mrb[48].mxu1 %v6391_v38  ;;  %v2422_v36 = vld [vmem:[#allocation2 + $0x29] sm:$0xff]  ;;  %v6396_v38 = vpack.c.bf16 %v6304_v33, %v6303_v35  ;;  %v2421_v39 = vld [vmem:[#allocation2 + $0x21] sm:$0xff]  ;;  %v6317_v35 = vld [vmem:[#allocation2 + $0x352] sm:$0xff] }
 0x479   :  { %15804 = vmatprep.mubr.msk.bf16.mxu1 %vm19832_vm0, %v24095_v0  ;;  %v2556_v40 = vpack.c.bf16 %v2422_v36, %v2421_v39  ;;  %v19790_v41 = vld [vmem:[%s24093_s2 + $0x178] sm:$0xff]   ;;  %v2434_v28 = vld [vmem:[#allocation2 + $0x89] sm:$0xff]  ;;  %v2433_v30 = vld [vmem:[#allocation2 + $0x81] sm:$0xff] }
 0x47a   :  { %14741 = vmatmul.mubr.bf16.gmra.mrb[192].mxu0 %v1629_v42  ;;  %v6306_v42 = vld [vmem:[#allocation2 + $0x2fa] sm:$0xff]  ;;  %15935 = vmatpush3.bf16.msra.mxu1 %v19790_v41  ;;  %v2435_v39 = vld [vmem:[#allocation2 + $0x91] sm:$0xff] }
 0x47b   :  { %v20823_v43 = vpop.f32.mrb[52].mxu1  ;;  %14744 = vmatprep.mubr.msk.bf16.mxu0 %vm19832_vm0, %v24095_v0  ;;  %16212 = vmatprep.subr.bf16.mxu1 %v24095_v0  ;;  %v6318_v33 = vld [vmem:[#allocation2 + $0x35a] sm:$0xff]  ;;  %v6320_v41 = vld [vmem:[#allocation2 + $0x36a] sm:$0xff] }
 0x47c   :  { %v15698_v45 = vpop.f32.mrb[53].mxu1  ;;  %v2436_v36 = vld [vmem:[#allocation2 + $0x99] sm:$0xff] }
 0x47d   :  { %v2050_v47 = vpop.f32.mrb[196].mxu0  ;;  %v20827_v48 = vpop.f32.mrb[54].mxu1  ;;  %v2424_v45 = vld [vmem:[#allocation2 + $0x39] sm:$0xff] }
 0x47e   :  { %17728 = vst [vmem:[%s24094_s3 + $0x280] sm:$0xff] %v2050_v47  ;;  %v14638_v54 = vpop.f32.mrb[197].mxu0  ;;  %v15699_v56 = vpop.f32.mrb[55].mxu1  ;;  %v6397_v47 = vpack.c.bf16 %v6306_v42, %v6305_v44  ;;  %v2557_v53 = vpack.c.bf16 %v2424_v45, %v2423_v51  ;;  %v6319_v42 = vld [vmem:[#allocation2 + $0x362] sm:$0xff] }
 0x47f   :  { %v2053_v58 = vpop.f32.mrb[198].mxu0  ;;  %v6308_v54 = vld [vmem:[#allocation2 + $0x30a] sm:$0xff]  ;;  %v6307_v56 = vld [vmem:[#allocation2 + $0x302] sm:$0xff]  ;;  %v6404_v45 = vpack.c.bf16 %v6320_v41, %v6319_v42  ;;  %v6334_v41 = vld [vmem:[#allocation2 + $0x3da] sm:$0xff] }
 0x480   :  { %17743 = vst [vmem:[%s24094_s3 + $0x288] sm:$0xff] %v2053_v58  ;;  %v14639_v61 = vpop.f32.mrb[199].mxu0  ;;  %15805 = vmatmul.mubr.bf16.gmra.mrb[52].mxu1 %v6392_v57  ;;  %v2426_v57 = vld [vmem:[#allocation2 + $0x49] sm:$0xff]  ;;  %v6398_v58 = vpack.c.bf16 %v6308_v54, %v6307_v56  ;;  %v6321_v54 = vld [vmem:[#allocation2 + $0x372] sm:$0xff] }
 0x481   :  { %15808 = vmatprep.mubr.msk.bf16.mxu1 %vm19832_vm0, %v24095_v0  ;;  %v2558_v61 = vpack.c.bf16 %v2426_v57, %v2425_v60  ;;  %v2438_v44 = vld [vmem:[#allocation2 + $0xa9] sm:$0xff]  ;;  %v2440_v56 = vld [vmem:[#allocation2 + $0xb9] sm:$0xff] }
 0x482   :  { %14745 = vmatmul.mubr.bf16.gmra.mrb[196].mxu0 %v1630_v62  ;;  %v6310_v62 = vld [vmem:[#allocation2 + $0x31a] sm:$0xff]  ;;  %v6333_v42 = vld [vmem:[#allocation2 + $0x3d2] sm:$0xff] }
 0x483   :  { %v20837_v1 = vpop.f32.mrb[56].mxu1  ;;  %14748 = vmatprep.mubr.msk.bf16.mxu0 %vm19832_vm0, %v24095_v0 }
 0x484   :  { %v15702_v4 = vpop.f32.mrb[57].mxu1 }
 0x485   :  { %v2058_v5 = vpop.f32.mrb[200].mxu0  ;;  %v20841_v7 = vpop.f32.mrb[58].mxu1  ;;  %v2428_v4 = vld [vmem:[#allocation2 + $0x59] sm:$0xff] }
 0x486   :  { %17758 = vst [vmem:[%s24094_s3 + $0x290] sm:$0xff] %v2058_v5  ;;  %v14642_v46 = vpop.f32.mrb[201].mxu0  ;;  %v15703_v49 = vpop.f32.mrb[59].mxu1  ;;  %v6399_v5 = vpack.c.bf16 %v6310_v62, %v6309_v2  ;;  %v2559_v9 = vpack.c.bf16 %v2428_v4, %v2427_v8  ;;  %v6323_v62 = vld [vmem:[#allocation2 + $0x382] sm:$0xff] }
 0x487   :  { %v2061_v11 = vpop.f32.mrb[202].mxu0  ;;  %v6312_v46 = vld [vmem:[#allocation2 + $0x32a] sm:$0xff]  ;;  %v6311_v49 = vld [vmem:[#allocation2 + $0x322] sm:$0xff] }
 0x488   :  { %17773 = vst [vmem:[%s24094_s3 + $0x298] sm:$0xff] %v2061_v11  ;;  %v14643_v13 = vpop.f32.mrb[203].mxu0  ;;  %15809 = vmatmul.mubr.bf16.gmra.mrb[56].mxu1 %v6393_v10  ;;  %v2430_v10 = vld [vmem:[#allocation2 + $0x69] sm:$0xff]  ;;  %v6400_v11 = vpack.c.bf16 %v6312_v46, %v6311_v49  ;;  %v6325_v46 = vld [vmem:[#allocation2 + $0x392] sm:$0xff] }
 0x489   :  { %15812 = vmatprep.mubr.msk.bf16.mxu1 %vm19832_vm0, %v24095_v0  ;;  %v2429_v13 = vld [vmem:[#allocation2 + $0x61] sm:$0xff]  ;;  %v2442_v2 = vld [vmem:[#allocation2 + $0xc9] sm:$0xff]  ;;  %v2444_v49 = vld [vmem:[#allocation2 + $0xd9] sm:$0xff] }
 0x48a   :  { %14749 = vmatmul.mubr.bf16.gmra.mrb[200].mxu0 %v1631_v16  ;;  %v2560_v16 = vpack.c.bf16 %v2430_v10, %v2429_v13 }
 0x48b   :  { %14768 = vmatprep.mubr.msk.bf16.mxu0 %vm19832_vm0, %v24095_v0 }
 0x490   :  { %15813 = vmatmul.mubr.bf16.gmra.mrb[168].mxu1 %v6394_v21  ;;  %v6401_v21 = vpack.c.bf16 %v6314_v17, %v6313_v18  ;;  %v6327_v17 = vld [vmem:[#allocation2 + $0x3a2] sm:$0xff] }
 0x491   :  { %15816 = vmatprep.mubr.msk.bf16.mxu1 %vm19832_vm0, %v24095_v0  ;;  %v2446_v18 = vld [vmem:[#allocation2 + $0xe9] sm:$0xff] }
 0x492   :  { %14769 = vmatmul.mubr.bf16.vlgmr.msra.gmra.mrb[36].mxu0 %v2554_v24  ;;  %v2561_v24 = vpack.c.bf16 %v2432_v19, %v2431_v22 }
 0x493   :  { %14772 = vmatprep.mubr.msk.bf16.mxu0 %vm19832_vm0, %v24095_v0 }
 0x498   :  { %15817 = vmatmul.mubr.bf16.gmra.mrb[172].mxu1 %v6395_v29  ;;  %v6402_v29 = vpack.c.bf16 %v6316_v25, %v6315_v26  ;;  %v6330_v25 = vld [vmem:[#allocation2 + $0x3ba] sm:$0xff]  ;;  %v6329_v26 = vld [vmem:[#allocation2 + $0x3b2] sm:$0xff] }
 0x499   :  { %15820 = vmatprep.mubr.msk.bf16.mxu1 %vm19832_vm0, %v24095_v0 }
 0x49a   :  { %14773 = vmatmul.mubr.bf16.gmra.mrb[40].mxu0 %v2555_v32  ;;  %v2562_v32 = vpack.c.bf16 %v2434_v28, %v2433_v30  ;;  %v2448_v28 = vld [vmem:[#allocation2 + $0xf9] sm:$0xff]  ;;  %v2447_v30 = vld [vmem:[#allocation2 + $0xf1] sm:$0xff] }
 0x49b   :  { %14776 = vmatprep.mubr.msk.bf16.mxu0 %vm19832_vm0, %v24095_v0 }
 0x4a0   :  { %15821 = vmatmul.mubr.bf16.gmra.mrb[176].mxu1 %v6396_v38  ;;  %v6403_v38 = vpack.c.bf16 %v6318_v33, %v6317_v35  ;;  %v6332_v33 = vld [vmem:[#allocation2 + $0x3ca] sm:$0xff]  ;;  %v6331_v35 = vld [vmem:[#allocation2 + $0x3c2] sm:$0xff] }
 0x4a1   :  { %15824 = vmatprep.mubr.msk.bf16.mxu1 %vm19832_vm0, %v24095_v0 }
 0x4a2   :  { %14777 = vmatmul.mubr.bf16.gmra.mrb[44].mxu0 %v2556_v40  ;;  %v2563_v40 = vpack.c.bf16 %v2436_v36, %v2435_v39  ;;  %v2450_v36 = vld [vmem:[#allocation2 + $0x109] sm:$0xff]  ;;  %v2449_v39 = vld [vmem:[#allocation2 + $0x101] sm:$0xff] }
 0x4a3   :  { %14780 = vmatprep.mubr.msk.bf16.mxu0 %vm19832_vm0, %v24095_v0 }
 0x4a8   :  { %15825 = vmatmul.mubr.bf16.gmra.mrb[180].mxu1 %v6397_v47  ;;  %v2437_v47 = vld [vmem:[#allocation2 + $0xa1] sm:$0xff] }
 0x4a9   :  { %15828 = vmatprep.mubr.msk.bf16.mxu1 %vm19832_vm0, %v24095_v0  ;;  %v2564_v51 = vpack.c.bf16 %v2438_v44, %v2437_v47  ;;  %v2452_v44 = vld [vmem:[#allocation2 + $0x119] sm:$0xff]  ;;  %v2451_v47 = vld [vmem:[#allocation2 + $0x111] sm:$0xff] }
 0x4aa   :  { %14781 = vmatmul.mubr.bf16.gmra.mrb[48].mxu0 %v2557_v53  ;;  %v6322_v53 = vld [vmem:[#allocation2 + $0x37a] sm:$0xff] }
 0x4ab   :  { %14784 = vmatprep.mubr.msk.bf16.mxu0 %vm19832_vm0, %v24095_v0  ;;  %v6405_v57 = vpack.c.bf16 %v6322_v53, %v6321_v54  ;;  %v6336_v53 = vld [vmem:[#allocation2 + $0x3ea] sm:$0xff]  ;;  %v6335_v54 = vld [vmem:[#allocation2 + $0x3e2] sm:$0xff] }
 0x4b0   :  { %15829 = vmatmul.mubr.bf16.gmra.mrb[184].mxu1 %v6398_v58  ;;  %v2439_v58 = vld [vmem:[#allocation2 + $0xb1] sm:$0xff] }
 0x4b1   :  { %15832 = vmatprep.mubr.msk.bf16.mxu1 %vm19832_vm0, %v24095_v0  ;;  %v2565_v60 = vpack.c.bf16 %v2440_v56, %v2439_v58  ;;  %v2454_v56 = vld [vmem:[#allocation2 + $0x129] sm:$0xff]  ;;  %v2453_v58 = vld [vmem:[#allocation2 + $0x121] sm:$0xff] }
 0x4b2   :  { %14785 = vmatmul.mubr.bf16.gmra.mrb[52].mxu0 %v2558_v61  ;;  %v6324_v61 = vld [vmem:[#allocation2 + $0x38a] sm:$0xff] }
 0x4b3   :  { %14788 = vmatprep.mubr.msk.bf16.mxu0 %vm19832_vm0, %v24095_v0  ;;  %v6406_v4 = vpack.c.bf16 %v6324_v61, %v6323_v62  ;;  %v6338_v61 = vld [vmem:[#allocation2 + $0x3fa] sm:$0xff]  ;;  %v6337_v62 = vld [vmem:[#allocation2 + $0x3f2] sm:$0xff] }
 0x4b8   :  { %15833 = vmatmul.mubr.bf16.gmra.mrb[188].mxu1 %v6399_v5  ;;  %v2441_v5 = vld [vmem:[#allocation2 + $0xc1] sm:$0xff] }
 0x4b9   :  { %15836 = vmatprep.mubr.msk.bf16.mxu1 %vm19832_vm0, %v24095_v0  ;;  %v2566_v8 = vpack.c.bf16 %v2442_v2, %v2441_v5  ;;  %v2456_v2 = vld [vmem:[#allocation2 + $0x139] sm:$0xff]  ;;  %v2455_v5 = vld [vmem:[#allocation2 + $0x131] sm:$0xff] }
 0x4ba   :  { %14789 = vmatmul.mubr.bf16.gmra.mrb[56].mxu0 %v2559_v9  ;;  %v6326_v9 = vld [vmem:[#allocation2 + $0x39a] sm:$0xff] }
 0x4bb   :  { %14792 = vmatprep.mubr.msk.bf16.mxu0 %vm19832_vm0, %v24095_v0  ;;  %v6407_v10 = vpack.c.bf16 %v6326_v9, %v6325_v46  ;;  %v6340_v9 = vld [vmem:[#allocation2 + $0x40a] sm:$0xff]  ;;  %v6339_v46 = vld [vmem:[#allocation2 + $0x402] sm:$0xff] }
 0x4c0   :  { %15837 = vmatmul.mubr.bf16.gmra.mrb[192].mxu1 %v6400_v11  ;;  %v2443_v11 = vld [vmem:[#allocation2 + $0xd1] sm:$0xff] }
 0x4c1   :  { %15840 = vmatprep.mubr.msk.bf16.mxu1 %vm19832_vm0, %v24095_v0  ;;  %v2567_v13 = vpack.c.bf16 %v2444_v49, %v2443_v11  ;;  %v2458_v49 = vld [vmem:[#allocation2 + $0x149] sm:$0xff]  ;;  %v2457_v11 = vld [vmem:[#allocation2 + $0x141] sm:$0xff] }
 0x4c2   :  { %14793 = vmatmul.mubr.bf16.gmra.mrb[60].mxu0 %v2560_v16  ;;  %v6328_v16 = vld [vmem:[#allocation2 + $0x3aa] sm:$0xff] }
 0x4c3   :  { %14796 = vmatprep.mubr.msk.bf16.mxu0 %vm19832_vm0, %v24095_v0  ;;  %v6408_v19 = vpack.c.bf16 %v6328_v16, %v6327_v17  ;;  %v6342_v16 = vld [vmem:[#allocation2 + $0x41a] sm:$0xff]  ;;  %v6341_v17 = vld [vmem:[#allocation2 + $0x412] sm:$0xff] }
 0x4c8   :  { %15841 = vmatmul.mubr.bf16.gmra.mrb[196].mxu1 %v6401_v21  ;;  %v2445_v21 = vld [vmem:[#allocation2 + $0xe1] sm:$0xff] }
 0x4c9   :  { %15844 = vmatprep.mubr.msk.bf16.mxu1 %vm19832_vm0, %v24095_v0  ;;  %v2568_v22 = vpack.c.bf16 %v2446_v18, %v2445_v21  ;;  %v2460_v18 = vld [vmem:[#allocation2 + $0x159] sm:$0xff]  ;;  %v2459_v21 = vld [vmem:[#allocation2 + $0x151] sm:$0xff] }
 0x4ca   :  { %14797 = vmatmul.mubr.bf16.gmra.mrb[64].mxu0 %v2561_v24  ;;  %v19792_v24 = vld [vmem:[%s24093_s2 + $0x80] sm:$0xff]  }
 0x4cb   :  { %14800 = vmatprep.mubr.msk.bf16.mxu0 %vm19832_vm0, %v24095_v0  ;;  %15045 = vmatpush3.bf16.msra.mxu0 %v19792_v24  ;;  %v6344_v24 = vld [vmem:[#allocation2 + $0x42a] sm:$0xff] }
 0x4cc   :  { %15046 = vmatprep.subr.bf16.mxu0 %v24095_v0 }
 0x4d0   :  { %15845 = vmatmul.mubr.bf16.gmra.mrb[200].mxu1 %v6402_v29  ;;  %v6409_v29 = vpack.c.bf16 %v6330_v25, %v6329_v26  ;;  %v6343_v25 = vld [vmem:[#allocation2 + $0x422] sm:$0xff] }
 0x4d1   :  { %15848 = vmatprep.mubr.msk.bf16.mxu1 %vm19832_vm0, %v24095_v0  ;;  %v2462_v26 = vld [vmem:[#allocation2 + $0x169] sm:$0xff] }
 0x4d2   :  { %14801 = vmatmul.mubr.bf16.gmra.mrb[68].mxu0 %v2562_v32  ;;  %v2569_v32 = vpack.c.bf16 %v2448_v28, %v2447_v30  ;;  %v6416_v28 = vpack.c.bf16 %v6344_v24, %v6343_v25  ;;  %v19795_v25 = vld [vmem:[%s24093_s2 + $0x190] sm:$0xff]  }
 0x4d3   :  { %14804 = vmatprep.mubr.msk.bf16.mxu0 %vm19832_vm0, %v24095_v0 }
 0x4d8   :  { %15849 = vmatmul.mubr.bf16.gmra.mrb[204].mxu1 %v6403_v38  ;;  %v6410_v38 = vpack.c.bf16 %v6332_v33, %v6331_v35  ;;  %v6345_v33 = vld [vmem:[#allocation2 + $0x432] sm:$0xff] }
 0x4d9   :  { %15852 = vmatprep.mubr.msk.bf16.mxu1 %vm19832_vm0, %v24095_v0  ;;  %v2464_v35 = vld [vmem:[#allocation2 + $0x179] sm:$0xff] }
 0x4da   :  { %14805 = vmatmul.mubr.bf16.gmra.mrb[72].mxu0 %v2563_v40  ;;  %v2570_v40 = vpack.c.bf16 %v2450_v36, %v2449_v39 }
 0x4db   :  { %14808 = vmatprep.mubr.msk.bf16.mxu0 %vm19832_vm0, %v24095_v0 }
 0x4e0   :  { %15853 = vmatmul.mubr.bf16.gmra.mrb[208].mxu1 %v6404_v45  ;;  %v6411_v45 = vpack.c.bf16 %v6334_v41, %v6333_v42  ;;  %v6348_v41 = vld [vmem:[#allocation2 + $0x44a] sm:$0xff]  ;;  %v6347_v42 = vld [vmem:[#allocation2 + $0x442] sm:$0xff] }
 0x4e1   :  { %15856 = vmatprep.mubr.msk.bf16.mxu1 %vm19832_vm0, %v24095_v0 }
 0x4e2   :  { %14809 = vmatmul.mubr.bf16.gmra.mrb[76].mxu0 %v2564_v51  ;;  %v2571_v51 = vpack.c.bf16 %v2452_v44, %v2451_v47  ;;  %v2466_v44 = vld [vmem:[#allocation2 + $0x189] sm:$0xff]  ;;  %v2465_v47 = vld [vmem:[#allocation2 + $0x181] sm:$0xff] }
 0x4e3   :  { %14812 = vmatprep.mubr.msk.bf16.mxu0 %vm19832_vm0, %v24095_v0 }
 0x4e8   :  { %15857 = vmatmul.mubr.bf16.gmra.mrb[212].mxu1 %v6405_v57  ;;  %v6412_v57 = vpack.c.bf16 %v6336_v53, %v6335_v54  ;;  %v6350_v53 = vld [vmem:[#allocation2 + $0x45a] sm:$0xff]  ;;  %v6349_v54 = vld [vmem:[#allocation2 + $0x452] sm:$0xff] }
 0x4e9   :  { %15860 = vmatprep.mubr.msk.bf16.mxu1 %vm19832_vm0, %v24095_v0 }
 0x4ea   :  { %14813 = vmatmul.mubr.bf16.gmra.mrb[80].mxu0 %v2565_v60  ;;  %v2572_v60 = vpack.c.bf16 %v2454_v56, %v2453_v58  ;;  %v2468_v56 = vld [vmem:[#allocation2 + $0x199] sm:$0xff]  ;;  %v2467_v58 = vld [vmem:[#allocation2 + $0x191] sm:$0xff] }
 0x4eb   :  { %14816 = vmatprep.mubr.msk.bf16.mxu0 %vm19832_vm0, %v24095_v0 }
 0x4f0   :  { %15861 = vmatmul.mubr.bf16.gmra.mrb[216].mxu1 %v6406_v4  ;;  %v6413_v4 = vpack.c.bf16 %v6338_v61, %v6337_v62  ;;  %v6351_v61 = vld [vmem:[#allocation2 + $0x462] sm:$0xff] }
 0x4f1   :  { %15864 = vmatprep.mubr.msk.bf16.mxu1 %vm19832_vm0, %v24095_v0  ;;  %v2470_v62 = vld [vmem:[#allocation2 + $0x1a9] sm:$0xff] }
 0x4f2   :  { %14817 = vmatmul.mubr.bf16.gmra.mrb[84].mxu0 %v2566_v8  ;;  %v2573_v8 = vpack.c.bf16 %v2456_v2, %v2455_v5  ;;  %v6420_v2 = vpack.c.bf16 %v6351_v61, %v6351_v61  ;;  %v2481_v61 = vld [vmem:[#allocation2 + $0x201] sm:$0xff] }
 0x4f3   :  { %14820 = vmatprep.mubr.msk.bf16.mxu0 %vm19832_vm0, %v24095_v0 }
 0x4f8   :  { %15865 = vmatmul.mubr.bf16.gmra.mrb[220].mxu1 %v6407_v10  ;;  %v6414_v10 = vpack.c.bf16 %v6340_v9, %v6339_v46  ;;  %v7481_v9 = vld [vmem:[#allocation2 + $0x23] sm:$0xff] }
 0x4f9   :  { %15868 = vmatprep.mubr.msk.bf16.mxu1 %vm19832_vm0, %v24095_v0  ;;  %v19791_v46 = vld [vmem:[%s24093_s2 + $0x180] sm:$0xff]  }
 0x4fa   :  { %14821 = vmatmul.mubr.bf16.gmra.mrb[88].mxu0 %v2567_v13  ;;  %v2574_v13 = vpack.c.bf16 %v2458_v49, %v2457_v11  ;;  %v2472_v49 = vld [vmem:[#allocation2 + $0x1b9] sm:$0xff]  ;;  %v2471_v11 = vld [vmem:[#allocation2 + $0x1b1] sm:$0xff] }
 0x4fb   :  { %14824 = vmatprep.mubr.msk.bf16.mxu0 %vm19832_vm0, %v24095_v0 }
 0x500   :  { %15869 = vmatmul.mubr.bf16.gmra.mrb[224].mxu1 %v6408_v19  ;;  %v6415_v19 = vpack.c.bf16 %v6342_v16, %v6341_v17  ;;  %v19793_v16 = vld [vmem:[%s24093_s2 + $0x188] sm:$0xff]   ;;  %v7484_v17 = vld [vmem:[#allocation2 + $0x3b] sm:$0xff] }
 0x501   :  { %15872 = vmatprep.mubr.msk.bf16.mxu1 %vm19832_vm0, %v24095_v0 }
 0x502   :  { %14825 = vmatmul.mubr.bf16.gmra.mrb[92].mxu0 %v2568_v22  ;;  %v2575_v22 = vpack.c.bf16 %v2460_v18, %v2459_v21  ;;  %v7483_v18 = vld [vmem:[#allocation2 + $0x33] sm:$0xff] }
 0x503   :  { %14828 = vmatprep.mubr.msk.bf16.mxu0 %vm19832_vm0, %v24095_v0  ;;  %v7619_v21 = vpack.c.bf16 %v7484_v17, %v7483_v18  ;;  %v7498_v18 = vld [vmem:[#allocation2 + $0xab] sm:$0xff] }
 0x508   :  { %15873 = vmatmul.mubr.bf16.gmra.mrb[228].mxu1 %v6409_v29  ;;  %v2461_v29 = vld [vmem:[#allocation2 + $0x161] sm:$0xff] }
 0x509   :  { %15876 = vmatprep.mubr.msk.bf16.mxu1 %vm19832_vm0, %v24095_v0  ;;  %v2576_v30 = vpack.c.bf16 %v2462_v26, %v2461_v29  ;;  %v7486_v26 = vld [vmem:[#allocation2 + $0x4b] sm:$0xff]  ;;  %v2476_v29 = vld [vmem:[#allocation2 + $0x1d9] sm:$0xff] }
 0x50a   :  { %14829 = vmatmul.mubr.bf16.gmra.mrb[96].mxu0 %v2569_v32  ;;  %v6346_v32 = vld [vmem:[#allocation2 + $0x43a] sm:$0xff] }
 0x50b   :  { %14832 = vmatprep.mubr.msk.bf16.mxu0 %vm19832_vm0, %v24095_v0  ;;  %v6417_v36 = vpack.c.bf16 %v6346_v32, %v6345_v33  ;;  %v2475_v32 = vld [vmem:[#allocation2 + $0x1d1] sm:$0xff] }
 0x50c   :  { %v2583_v33 = vpack.c.bf16 %v2476_v29, %v2475_v32  ;;  %v2490_v29 = vld [vmem:[#allocation2 + $0x249] sm:$0xff]  ;;  %v2489_v32 = vld [vmem:[#allocation2 + $0x241] sm:$0xff] }
 0x510   :  { %15877 = vmatmul.mubr.bf16.gmra.mrb[232].mxu1 %v6410_v38  ;;  %v2463_v38 = vld [vmem:[#allocation2 + $0x171] sm:$0xff] }
 0x511   :  { %15880 = vmatprep.mubr.msk.bf16.mxu1 %vm19832_vm0, %v24095_v0  ;;  %v2577_v39 = vpack.c.bf16 %v2464_v35, %v2463_v38  ;;  %v7488_v35 = vld [vmem:[#allocation2 + $0x5b] sm:$0xff]  ;;  %v2478_v38 = vld [vmem:[#allocation2 + $0x1e9] sm:$0xff] }
 0x512   :  { %14833 = vmatmul.mubr.bf16.gmra.mrb[100].mxu0 %v2570_v40  ;;  %v19794_v40 = vld [vmem:[%s24093_s2 + $0x88] sm:$0xff]  }
 0x513   :  { %14836 = vmatprep.mubr.msk.bf16.mxu0 %vm19832_vm0, %v24095_v0  ;;  %15047 = vmatpush3.bf16.msra.mxu0 %v19794_v40  ;;  %v2477_v40 = vld [vmem:[#allocation2 + $0x1e1] sm:$0xff] }
 0x514   :  { %15048 = vmatprep.subr.bf16.mxu0 %v24095_v0 }
 0x518   :  { %15881 = vmatmul.mubr.bf16.gmra.mrb[236].mxu1 %v6411_v45  ;;  %v6418_v45 = vpack.c.bf16 %v6348_v41, %v6347_v42  ;;  %v2584_v41 = vpack.c.bf16 %v2478_v38, %v2477_v40  ;;  %v7490_v42 = vld [vmem:[#allocation2 + $0x6b] sm:$0xff] }
 0x519   :  { %15884 = vmatprep.mubr.msk.bf16.mxu1 %vm19832_vm0, %v24095_v0  ;;  %v7502_v38 = vld [vmem:[#allocation2 + $0xcb] sm:$0xff] }
 0x51a   :  { %14837 = vmatmul.mubr.bf16.gmra.mrb[104].mxu0 %v2571_v51  ;;  %v2578_v51 = vpack.c.bf16 %v2466_v44, %v2465_v47  ;;  %v7489_v44 = vld [vmem:[#allocation2 + $0x63] sm:$0xff] }
 0x51b   :  { %14840 = vmatprep.mubr.msk.bf16.mxu0 %vm19832_vm0, %v24095_v0  ;;  %v7622_v47 = vpack.c.bf16 %v7490_v42, %v7489_v44  ;;  %v7501_v42 = vld [vmem:[#allocation2 + $0xc3] sm:$0xff]  ;;  %v2492_v44 = vld [vmem:[#allocation2 + $0x259] sm:$0xff] }
 0x520   :  { %15885 = vmatmul.mubr.bf16.gmra.mrb[240].mxu1 %v6412_v57  ;;  %v6419_v57 = vpack.c.bf16 %v6350_v53, %v6349_v54  ;;  %v19796_v54 = vld [vmem:[%s24093_s2 + $0x90] sm:$0xff]  }
 0x521   :  { %15888 = vmatprep.mubr.msk.bf16.mxu1 %vm19832_vm0, %v24095_v0  ;;  %15049 = vmatpush3.bf16.msra.mxu0 %v19796_v54  ;;  %v2491_v54 = vld [vmem:[#allocation2 + $0x251] sm:$0xff] }
 0x522   :  { %14841 = vmatmul.mubr.bf16.gmra.mrb[108].mxu0 %v2572_v60  ;;  %v2579_v60 = vpack.c.bf16 %v2468_v56, %v2467_v58  ;;  %v7492_v56 = vld [vmem:[#allocation2 + $0x7b] sm:$0xff]  ;;  %v2482_v58 = vld [vmem:[#allocation2 + $0x209] sm:$0xff]  ;;  %15050 = vmatprep.subr.bf16.mxu0 %v24095_v0 }
 0x523   :  { %14844 = vmatprep.mubr.msk.bf16.mxu0 %vm19832_vm0, %v24095_v0 }
 0x528   :  { %15889 = vmatmul.mubr.bf16.gmra.mrb[244].mxu1 %v6413_v4  ;;  %v2469_v4 = vld [vmem:[#allocation2 + $0x1a1] sm:$0xff] }
 0x529   :  { %15892 = vmatprep.mubr.msk.bf16.mxu1 %vm19832_vm0, %v24095_v0  ;;  %v2580_v5 = vpack.c.bf16 %v2470_v62, %v2469_v4  ;;  %v2586_v62 = vpack.c.bf16 %v2482_v58, %v2481_v61  ;;  %v7493_v4 = vld [vmem:[#allocation2 + $0x83] sm:$0xff] }
 0x52a   :  { %14845 = vmatmul.mubr.bf16.gmra.mrb[112].mxu0 %v2573_v8  ;;  %v7482_v8 = vld [vmem:[#allocation2 + $0x2b] sm:$0xff] }
 0x52b   :  { %14848 = vmatprep.mubr.msk.bf16.mxu0 %vm19832_vm0, %v24095_v0 }
 0x530   :  { %15893 = vmatmul.mubr.bf16.gmra.mrb[248].mxu1 %v6414_v10  ;;  %v7618_v10 = vpack.c.bf16 %v7482_v8, %v7481_v9  ;;  %v2483_v9 = vld [vmem:[#allocation2 + $0x211] sm:$0xff] }
 0x531   :  { %15896 = vmatprep.mubr.msk.bf16.mxu1 %vm19832_vm0, %v24095_v0 }
 0x532   :  { %14849 = vmatmul.mubr.bf16.gmra.mrb[116].mxu0 %v2574_v13  ;;  %v2581_v13 = vpack.c.bf16 %v2472_v49, %v2471_v11  ;;  %v7496_v49 = vld [vmem:[#allocation2 + $0x9b] sm:$0xff]  ;;  %v2486_v11 = vld [vmem:[#allocation2 + $0x229] sm:$0xff] }
 0x533   :  { %14852 = vmatprep.mubr.msk.bf16.mxu0 %vm19832_vm0, %v24095_v0 }
 0x538   :  { %15897 = vmatmul.mubr.bf16.gmra.mrb[252].mxu1 %v6415_v19  ;;  %v2474_v19 = vld [vmem:[#allocation2 + $0x1c9] sm:$0xff] }
 0x539   :  { %15900 = vmatprep.mubr.msk.bf16.mxu1 %vm19832_vm0, %v24095_v0 }
 0x53a   :  { %14853 = vmatmul.mubr.bf16.gmra.mrb[120].mxu0 %v2575_v22  ;;  %v2473_v22 = vld [vmem:[#allocation2 + $0x1c1] sm:$0xff] }
 0x53b   :  { %14856 = vmatprep.mubr.msk.bf16.mxu0 %vm19832_vm0, %v24095_v0  ;;  %v2582_v24 = vpack.c.bf16 %v2474_v19, %v2473_v22  ;;  %v7497_v19 = vld [vmem:[#allocation2 + $0xa3] sm:$0xff] }
 0x53c   :  { %v7626_v22 = vpack.c.bf16 %v7498_v18, %v7497_v19 }
 0x540   :  { %15901 = vmatmul.mubr.bf16.gmra.mrb[148].mxu1 %v6416_v28  ;;  %v7485_v28 = vld [vmem:[#allocation2 + $0x43] sm:$0xff] }
 0x541   :  { %15904 = vmatprep.mubr.msk.bf16.mxu1 %vm19832_vm0, %v24095_v0 }
 0x542   :  { %14857 = vmatmul.mubr.bf16.gmra.mrb[124].mxu0 %v2576_v30  ;;  %v7620_v30 = vpack.c.bf16 %v7486_v26, %v7485_v28  ;;  %v7500_v26 = vld [vmem:[#allocation2 + $0xbb] sm:$0xff]  ;;  %v7499_v28 = vld [vmem:[#allocation2 + $0xb3] sm:$0xff] }
 0x543   :  { %14860 = vmatprep.mubr.msk.bf16.mxu0 %vm19832_vm0, %v24095_v0 }
 0x548   :  { %15905 = vmatmul.mubr.bf16.gmra.mrb[152].mxu1 %v6417_v36  ;;  %v7487_v36 = vld [vmem:[#allocation2 + $0x53] sm:$0xff] }
 0x549   :  { %15908 = vmatprep.mubr.msk.bf16.mxu1 %vm19832_vm0, %v24095_v0 }
 0x54a   :  { %14861 = vmatmul.mubr.bf16.gmra.mrb[128].mxu0 %v2577_v39  ;;  %v7621_v39 = vpack.c.bf16 %v7488_v35, %v7487_v36  ;;  %v19797_v35 = vld [vmem:[%s24093_s2 + $0x198] sm:$0xff]  }
 0x54b   :  { %14864 = vmatprep.mubr.msk.bf16.mxu0 %vm19832_vm0, %v24095_v0 }
 0x550   :  { %15909 = vmatmul.mubr.bf16.gmra.mrb[156].mxu1 %v6418_v45  ;;  %v2480_v45 = vld [vmem:[#allocation2 + $0x1f9] sm:$0xff] }
 0x551   :  { %15912 = vmatprep.mubr.msk.bf16.mxu1 %vm19832_vm0, %v24095_v0 }
 0x552   :  { %14865 = vmatmul.mubr.bf16.gmra.mrb[132].mxu0 %v2578_v51  ;;  %v2479_v51 = vld [vmem:[#allocation2 + $0x1f1] sm:$0xff] }
 0x553   :  { %14868 = vmatprep.mubr.msk.bf16.mxu0 %vm19832_vm0, %v24095_v0  ;;  %v2585_v53 = vpack.c.bf16 %v2480_v45, %v2479_v51  ;;  %v7628_v51 = vpack.c.bf16 %v7502_v38, %v7501_v42  ;;  %v7508_v38 = vld [vmem:[#allocation2 + $0xfb] sm:$0xff] }
 0x558   :  { %15913 = vmatmul.mubr.bf16.gmra.mrb[160].mxu1 %v6419_v57  ;;  %v7491_v57 = vld [vmem:[#allocation2 + $0x73] sm:$0xff] }
 0x559   :  { %15916 = vmatprep.mubr.msk.bf16.mxu1 %vm19832_vm0, %v24095_v0 }
 0x55a   :  { %14869 = vmatmul.mubr.bf16.gmra.mrb[136].mxu0 %v2579_v60  ;;  %v7623_v60 = vpack.c.bf16 %v7492_v56, %v7491_v57  ;;  %v2591_v57 = vpack.c.bf16 %v2492_v44, %v2491_v54  ;;  %v7507_v44 = vld [vmem:[#allocation2 + $0xf3] sm:$0xff] }
 0x55b   :  { %14872 = vmatprep.mubr.msk.bf16.mxu0 %vm19832_vm0, %v24095_v0 }
 0x560   :  { %15917 = vmatmul.mubr.bf16.gmra.mrb[164].mxu1 %v6420_v2  ;;  %v7494_v2 = vld [vmem:[#allocation2 + $0x8b] sm:$0xff] }
 0x561   :  { %15936 = vmatprep.mubr.msk.bf16.mxu1 %vm19832_vm0, %v24095_v0  ;;  %v7624_v8 = vpack.c.bf16 %v7494_v2, %v7493_v4  ;;  %v7503_v4 = vld [vmem:[#allocation2 + $0xd3] sm:$0xff] }
 0x562   :  { %14873 = vmatmul.mubr.bf16.gmra.mrb[140].mxu0 %v2580_v5  ;;  %v2484_v5 = vld [vmem:[#allocation2 + $0x219] sm:$0xff] }
 0x563   :  { %14876 = vmatprep.mubr.msk.bf16.mxu0 %vm19832_vm0, %v24095_v0 }
 0x568   :  { %15937 = vmatmul.mubr.bf16.vlgmr.msra.gmra.mrb[0].mxu1 %v7618_v10  ;;  %v7495_v10 = vld [vmem:[#allocation2 + $0x93] sm:$0xff] }
 0x569   :  { %16213 = vmatpush3.bf16.msra.mxu1 %v19791_v46  ;;  %15940 = vmatprep.mubr.msk.bf16.mxu1 %vm19832_vm0, %v24095_v0  ;;  %v2587_v46 = vpack.c.bf16 %v2484_v5, %v2483_v9  ;;  %v2494_v5 = vld [vmem:[#allocation2 + $0x269] sm:$0xff] }
 0x56a   :  { %14877 = vmatmul.mubr.bf16.gmra.mrb[144].mxu0 %v2581_v13  ;;  %16214 = vmatprep.subr.bf16.mxu1 %v24095_v0  ;;  %v7625_v13 = vpack.c.bf16 %v7496_v49, %v7495_v10  ;;  %v2493_v10 = vld [vmem:[#allocation2 + $0x261] sm:$0xff] }
 0x56b   :  { %14880 = vmatprep.mubr.msk.bf16.mxu0 %vm19832_vm0, %v24095_v0 }
 0x56d   :  { %16215 = vmatpush3.bf16.msra.mxu1 %v19793_v16  ;;  %v2485_v16 = vld [vmem:[#allocation2 + $0x221] sm:$0xff] }
 0x56e   :  { %16216 = vmatprep.subr.bf16.mxu1 %v24095_v0  ;;  %v2588_v17 = vpack.c.bf16 %v2486_v11, %v2485_v16 }
 0x570   :  { %15941 = vmatmul.mubr.bf16.gmra.mrb[4].mxu1 %v7619_v21  ;;  %v2488_v21 = vld [vmem:[#allocation2 + $0x239] sm:$0xff] }
 0x571   :  { %15944 = vmatprep.mubr.msk.bf16.mxu1 %vm19832_vm0, %v24095_v0  ;;  %16217 = vmatpush3.bf16.msra.mxu1 %v19795_v25 }
 0x572   :  { %14881 = vmatmul.mubr.bf16.gmra.mrb[148].mxu0 %v2582_v24  ;;  %16218 = vmatprep.subr.bf16.mxu1 %v24095_v0  ;;  %v2487_v24 = vld [vmem:[#allocation2 + $0x231] sm:$0xff] }
 0x573   :  { %14884 = vmatprep.mubr.msk.bf16.mxu0 %vm19832_vm0, %v24095_v0  ;;  %v2589_v25 = vpack.c.bf16 %v2488_v21, %v2487_v24  ;;  %v2496_v24 = vld [vmem:[#allocation2 + $0x279] sm:$0xff] }
 0x575   :  { %16219 = vmatpush3.bf16.msra.mxu1 %v19797_v35 }
 0x576   :  { %16220 = vmatprep.subr.bf16.mxu1 %v24095_v0 }
 0x578   :  { %15945 = vmatmul.mubr.bf16.gmra.mrb[8].mxu1 %v7620_v30  ;;  %v7627_v30 = vpack.c.bf16 %v7500_v26, %v7499_v28 }
 0x579   :  { %15948 = vmatprep.mubr.msk.bf16.mxu1 %vm19832_vm0, %v24095_v0 }
 0x57a   :  { %14885 = vmatmul.mubr.bf16.gmra.mrb[152].mxu0 %v2583_v33  ;;  %v2590_v33 = vpack.c.bf16 %v2490_v29, %v2489_v32 }
 0x57b   :  { %14888 = vmatprep.mubr.msk.bf16.mxu0 %vm19832_vm0, %v24095_v0 }
 0x580   :  { %15949 = vmatmul.mubr.bf16.gmra.mrb[12].mxu1 %v7621_v39 }
 0x581   :  { %15952 = vmatprep.mubr.msk.bf16.mxu1 %vm19832_vm0, %v24095_v0 }
 0x582   :  { %14889 = vmatmul.mubr.bf16.gmra.mrb[156].mxu0 %v2584_v41 }
 0x583   :  { %14892 = vmatprep.mubr.msk.bf16.mxu0 %vm19832_vm0, %v24095_v0 }
 0x588   :  { %15953 = vmatmul.mubr.bf16.gmra.mrb[16].mxu1 %v7622_v47 }
 0x589   :  { %15956 = vmatprep.mubr.msk.bf16.mxu1 %vm19832_vm0, %v24095_v0 }
 0x58a   :  { %14893 = vmatmul.mubr.bf16.gmra.mrb[160].mxu0 %v2585_v53 }
 0x58b   :  { %14896 = vmatprep.mubr.msk.bf16.mxu0 %vm19832_vm0, %v24095_v0 }
 0x590   :  { %15957 = vmatmul.mubr.bf16.gmra.mrb[20].mxu1 %v7623_v60  ;;  %v7504_v60 = vld [vmem:[#allocation2 + $0xdb] sm:$0xff] }
 0x591   :  { %15960 = vmatprep.mubr.msk.bf16.mxu1 %vm19832_vm0, %v24095_v0 }
 0x592   :  { %14897 = vmatmul.mubr.bf16.gmra.mrb[164].mxu0 %v2586_v62 }
 0x593   :  { %14900 = vmatprep.mubr.msk.bf16.mxu0 %vm19832_vm0, %v24095_v0 }
 0x598   :  { %15961 = vmatmul.mubr.bf16.gmra.mrb[24].mxu1 %v7624_v8 }
 0x599   :  { %15964 = vmatprep.mubr.msk.bf16.mxu1 %vm19832_vm0, %v24095_v0 }
 0x59a   :  { %14901 = vmatmul.mubr.bf16.gmra.mrb[168].mxu0 %v2587_v46  ;;  %v7629_v46 = vpack.c.bf16 %v7504_v60, %v7503_v4  ;;  %v7510_v4 = vld [vmem:[#allocation2 + $0x10b] sm:$0xff] }
 0x59b   :  { %14904 = vmatprep.mubr.msk.bf16.mxu0 %vm19832_vm0, %v24095_v0 }
 0x5a0   :  { %15965 = vmatmul.mubr.bf16.gmra.mrb[28].mxu1 %v7625_v13  ;;  %v2592_v13 = vpack.c.bf16 %v2494_v5, %v2493_v10 }
 0x5a1   :  { %15968 = vmatprep.mubr.msk.bf16.mxu1 %vm19832_vm0, %v24095_v0 }
 0x5a2   :  { %14905 = vmatmul.mubr.bf16.gmra.mrb[172].mxu0 %v2588_v17  ;;  %v7506_v17 = vld [vmem:[#allocation2 + $0xeb] sm:$0xff] }
 0x5a3   :  { %14908 = vmatprep.mubr.msk.bf16.mxu0 %vm19832_vm0, %v24095_v0 }
 0x5a8   :  { %15969 = vmatmul.mubr.bf16.gmra.mrb[32].mxu1 %v7626_v22  ;;  %v7505_v22 = vld [vmem:[#allocation2 + $0xe3] sm:$0xff] }
 0x5a9   :  { %15972 = vmatprep.mubr.msk.bf16.mxu1 %vm19832_vm0, %v24095_v0  ;;  %v7630_v28 = vpack.c.bf16 %v7506_v17, %v7505_v22 }
 0x5aa   :  { %14909 = vmatmul.mubr.bf16.gmra.mrb[176].mxu0 %v2589_v25 }
 0x5ab   :  { %14912 = vmatprep.mubr.msk.bf16.mxu0 %vm19832_vm0, %v24095_v0 }
 0x5b0   :  { %15973 = vmatmul.mubr.bf16.gmra.mrb[36].mxu1 %v7627_v30  ;;  %v2495_v30 = vld [vmem:[#allocation2 + $0x271] sm:$0xff] }
 0x5b1   :  { %15976 = vmatprep.mubr.msk.bf16.mxu1 %vm19832_vm0, %v24095_v0 }
 0x5b2   :  { %14913 = vmatmul.mubr.bf16.gmra.mrb[180].mxu0 %v2590_v33  ;;  %v2593_v33 = vpack.c.bf16 %v2496_v24, %v2495_v30  ;;  %v7512_v24 = vld [vmem:[#allocation2 + $0x11b] sm:$0xff] }
 0x5b3   :  { %v21030_v36 = vpop.f32.mrb[208].mxu1  ;;  %14916 = vmatprep.mubr.msk.bf16.mxu0 %vm19832_vm0, %v24095_v0 }
 0x5b4   :  { %24103 = vst [vmem:[#allocation9_spill] sm:$0xff] %v21030_v36  ;;  %v15854_v39 = vpop.f32.mrb[209].mxu1 }
 0x5b5   :  { %v2802_v40 = vpop.f32.mrb[76].mxu0  ;;  %v21034_v41 = vpop.f32.mrb[210].mxu1 }
 0x5b6   :  { %24104 = vst [vmem:[#allocation10_spill] sm:$0xff] %v21034_v41  ;;  %17242 = vst [vmem:[%s24094_s3 + $0xa0] sm:$0xff] %v2802_v40  ;;  %v14810_v45 = vpop.f32.mrb[77].mxu0  ;;  %v15855_v47 = vpop.f32.mrb[211].mxu1 }
 0x5b7   :  { %v2805_v53 = vpop.f32.mrb[78].mxu0  ;;  %v2498_v45 = vld [vmem:[#allocation2 + $0x289] sm:$0xff] }
 0x5b8   :  { %17254 = vst [vmem:[%s24094_s3 + $0xa8] sm:$0xff] %v2805_v53  ;;  %v14811_v56 = vpop.f32.mrb[79].mxu0  ;;  %15977 = vmatmul.mubr.bf16.gmra.mrb[208].mxu1 %v7628_v51  ;;  %v7631_v53 = vpack.c.bf16 %v7508_v38, %v7507_v44  ;;  %v2504_v38 = vld [vmem:[#allocation2 + $0x2b9] sm:$0xff] }
 0x5b9   :  { %15980 = vmatprep.mubr.msk.bf16.mxu1 %vm19832_vm0, %v24095_v0  ;;  %v2497_v56 = vld [vmem:[#allocation2 + $0x281] sm:$0xff] }
 0x5ba   :  { %14917 = vmatmul.mubr.bf16.gmra.mrb[76].mxu0 %v2591_v57  ;;  %v2594_v60 = vpack.c.bf16 %v2498_v45, %v2497_v56  ;;  %v7516_v45 = vld [vmem:[#allocation2 + $0x13b] sm:$0xff] }
 0x5bb   :  { %v21045_v58 = vpop.f32.mrb[212].mxu1  ;;  %14920 = vmatprep.mubr.msk.bf16.mxu0 %vm19832_vm0, %v24095_v0 }
 0x5bc   :  { %24105 = vst [vmem:[#allocation11_spill] sm:$0xff] %v21045_v58  ;;  %v15858_v61 = vpop.f32.mrb[213].mxu1  ;;  %v3733_v58 = vld [vmem:[#allocation2 + $0x192] sm:$0xff] }
 0x5bd   :  { %v2810_v62 = vpop.f32.mrb[80].mxu0  ;;  %v21049_v2 = vpop.f32.mrb[214].mxu1  ;;  %v19798_v61 = vld [vmem:[%s24093_s2 + $0x98] sm:$0xff]  }
 0x5be   :  { %24106 = vst [vmem:[#allocation12_spill] sm:$0xff] %v21049_v2  ;;  %17266 = vst [vmem:[%s24094_s3 + $0xb0] sm:$0xff] %v2810_v62  ;;  %v14814_v8 = vpop.f32.mrb[81].mxu0  ;;  %v15859_v9 = vpop.f32.mrb[215].mxu1  ;;  %15051 = vmatpush3.bf16.msra.mxu0 %v19798_v61  ;;  %v2508_v61 = vld [vmem:[#allocation2 + $0x2d9] sm:$0xff] }
 0x5bf   :  { %v2813_v49 = vpop.f32.mrb[82].mxu0  ;;  %15052 = vmatprep.subr.bf16.mxu0 %v24095_v0 }
 0x5c0   :  { %17278 = vst [vmem:[%s24094_s3 + $0xb8] sm:$0xff] %v2813_v49  ;;  %v14815_v11 = vpop.f32.mrb[83].mxu0  ;;  %15981 = vmatmul.mubr.bf16.gmra.mrb[212].mxu1 %v7629_v46  ;;  %v7509_v46 = vld [vmem:[#allocation2 + $0x103] sm:$0xff]  ;;  %v2500_v49 = vld [vmem:[#allocation2 + $0x299] sm:$0xff] }
 0x5c1   :  { %15984 = vmatprep.mubr.msk.bf16.mxu1 %vm19832_vm0, %v24095_v0 }
 0x5c2   :  { %14921 = vmatmul.mubr.bf16.gmra.mrb[80].mxu0 %v2592_v13  ;;  %v7632_v13 = vpack.c.bf16 %v7510_v4, %v7509_v46  ;;  %v19799_v46 = vld [vmem:[%s24093_s2 + $0x1a0] sm:$0xff]  }
 0x5c3   :  { %v21059_v16 = vpop.f32.mrb[216].mxu1  ;;  %14924 = vmatprep.mubr.msk.bf16.mxu0 %vm19832_vm0, %v24095_v0  ;;  %16221 = vmatpush3.bf16.msra.mxu1 %v19799_v46  ;;  %v7529_v46 = vld [vmem:[#allocation2 + $0x1a3] sm:$0xff] }
 0x5c4   :  { %24107 = vst [vmem:[#allocation13_spill] sm:$0xff] %v21059_v16  ;;  %v15862_v18 = vpop.f32.mrb[217].mxu1  ;;  %16222 = vmatprep.subr.bf16.mxu1 %v24095_v0 }
 0x5c5   :  { %v2818_v19 = vpop.f32.mrb[84].mxu0  ;;  %v21063_v21 = vpop.f32.mrb[218].mxu1  ;;  %v2499_v18 = vld [vmem:[#allocation2 + $0x291] sm:$0xff] }
 0x5c6   :  { %24108 = vst [vmem:[#allocation14_spill] sm:$0xff] %v21063_v21  ;;  %17290 = vst [vmem:[%s24094_s3 + $0xc0] sm:$0xff] %v2818_v19  ;;  %v14818_v25 = vpop.f32.mrb[85].mxu0  ;;  %v15863_v26 = vpop.f32.mrb[219].mxu1  ;;  %v2595_v22 = vpack.c.bf16 %v2500_v49, %v2499_v18  ;;  %v7520_v49 = vld [vmem:[#allocation2 + $0x15b] sm:$0xff] }
 0x5c7   :  { %v2821_v29 = vpop.f32.mrb[86].mxu0  ;;  %v7511_v25 = vld [vmem:[#allocation2 + $0x113] sm:$0xff]  ;;  %v2502_v26 = vld [vmem:[#allocation2 + $0x2a9] sm:$0xff] }
 0x5c8   :  { %17302 = vst [vmem:[%s24094_s3 + $0xc8] sm:$0xff] %v2821_v29  ;;  %v14819_v32 = vpop.f32.mrb[87].mxu0  ;;  %15985 = vmatmul.mubr.bf16.gmra.mrb[216].mxu1 %v7630_v28  ;;  %v7633_v28 = vpack.c.bf16 %v7512_v24, %v7511_v25  ;;  %v2501_v29 = vld [vmem:[#allocation2 + $0x2a1] sm:$0xff]  ;;  %v2512_v24 = vld [vmem:[#allocation2 + $0x2f9] sm:$0xff] }
 0x5c9   :  { %15988 = vmatprep.mubr.msk.bf16.mxu1 %vm19832_vm0, %v24095_v0  ;;  %v2596_v30 = vpack.c.bf16 %v2502_v26, %v2501_v29  ;;  %v7514_v32 = vld [vmem:[#allocation2 + $0x12b] sm:$0xff]  ;;  %v7524_v29 = vld [vmem:[#allocation2 + $0x17b] sm:$0xff] }
 0x5ca   :  { %14925 = vmatmul.mubr.bf16.gmra.mrb[84].mxu0 %v2593_v33  ;;  %v7513_v33 = vld [vmem:[#allocation2 + $0x123] sm:$0xff]  ;;  %v2511_v26 = vld [vmem:[#allocation2 + $0x2f1] sm:$0xff] }
 0x5cb   :  { %v21073_v35 = vpop.f32.mrb[220].mxu1  ;;  %14928 = vmatprep.mubr.msk.bf16.mxu0 %vm19832_vm0, %v24095_v0 }
 0x5cc   :  { %24109 = vst [vmem:[#allocation15_spill] sm:$0xff] %v21073_v35  ;;  %v15866_v39 = vpop.f32.mrb[221].mxu1 }
 0x5cd   :  { %v2826_v40 = vpop.f32.mrb[88].mxu0  ;;  %v21077_v42 = vpop.f32.mrb[222].mxu1  ;;  %v7634_v39 = vpack.c.bf16 %v7514_v32, %v7513_v33  ;;  %v2514_v32 = vld [vmem:[#allocation2 + $0x309] sm:$0xff] }
 0x5ce   :  { %24110 = vst [vmem:[#allocation16_spill] sm:$0xff] %v21077_v42  ;;  %17314 = vst [vmem:[%s24094_s3 + $0xd0] sm:$0xff] %v2826_v40  ;;  %v14822_v47 = vpop.f32.mrb[89].mxu0  ;;  %v15867_v51 = vpop.f32.mrb[223].mxu1  ;;  %v2503_v40 = vld [vmem:[#allocation2 + $0x2b1] sm:$0xff] }
 0x5cf   :  { %v2829_v54 = vpop.f32.mrb[90].mxu0  ;;  %v2597_v44 = vpack.c.bf16 %v2504_v38, %v2503_v40  ;;  %v7515_v47 = vld [vmem:[#allocation2 + $0x133] sm:$0xff]  ;;  %v2506_v51 = vld [vmem:[#allocation2 + $0x2c9] sm:$0xff]  ;;  %v2513_v38 = vld [vmem:[#allocation2 + $0x301] sm:$0xff] }
 0x5d0   :  { %17326 = vst [vmem:[%s24094_s3 + $0xd8] sm:$0xff] %v2829_v54  ;;  %v14823_v57 = vpop.f32.mrb[91].mxu0  ;;  %15989 = vmatmul.mubr.bf16.gmra.mrb[220].mxu1 %v7631_v53  ;;  %v7635_v53 = vpack.c.bf16 %v7516_v45, %v7515_v47  ;;  %v2505_v54 = vld [vmem:[#allocation2 + $0x2c1] sm:$0xff]  ;;  %v7526_v40 = vld [vmem:[#allocation2 + $0x18b] sm:$0xff]  ;;  %v2516_v45 = vld [vmem:[#allocation2 + $0x319] sm:$0xff] }
 0x5d1   :  { %15992 = vmatprep.mubr.msk.bf16.mxu1 %vm19832_vm0, %v24095_v0  ;;  %v2598_v56 = vpack.c.bf16 %v2506_v51, %v2505_v54  ;;  %v7518_v57 = vld [vmem:[#allocation2 + $0x14b] sm:$0xff]  ;;  %v19800_v54 = vld [vmem:[%s24093_s2 + $0xa0] sm:$0xff]  }
 0x5d2   :  { %14929 = vmatmul.mubr.bf16.gmra.mrb[88].mxu0 %v2594_v60  ;;  %v7517_v60 = vld [vmem:[#allocation2 + $0x143] sm:$0xff]  ;;  %v2515_v51 = vld [vmem:[#allocation2 + $0x311] sm:$0xff] }
 0x5d3   :  { %v21090_v62 = vpop.f32.mrb[224].mxu1  ;;  %14932 = vmatprep.mubr.msk.bf16.mxu0 %vm19832_vm0, %v24095_v0  ;;  %v7636_v4 = vpack.c.bf16 %v7518_v57, %v7517_v60  ;;  %15053 = vmatpush3.bf16.msra.mxu0 %v19800_v54  ;;  %v7527_v57 = vld [vmem:[#allocation2 + $0x193] sm:$0xff]  ;;  %v2518_v60 = vld [vmem:[#allocation2 + $0x329] sm:$0xff] }
 0x5d4   :  { %24111 = vst [vmem:[#allocation17_spill] sm:$0xff] %v21090_v62  ;;  %v15870_v5 = vpop.f32.mrb[225].mxu1  ;;  %15054 = vmatprep.subr.bf16.mxu0 %v24095_v0 }
 0x5d5   :  { %v2834_v8 = vpop.f32.mrb[92].mxu0  ;;  %v21094_v9 = vpop.f32.mrb[226].mxu1  ;;  %v2507_v5 = vld [vmem:[#allocation2 + $0x2d1] sm:$0xff] }
 0x5d6   :  { %24112 = vst [vmem:[#allocation18_spill] sm:$0xff] %v21094_v9  ;;  %17338 = vst [vmem:[%s24094_s3 + $0xe0] sm:$0xff] %v2834_v8  ;;  %v14826_v10 = vpop.f32.mrb[93].mxu0  ;;  %v15871_v11 = vpop.f32.mrb[227].mxu1  ;;  %v2599_v8 = vpack.c.bf16 %v2508_v61, %v2507_v5 }
 0x5d7   :  { %v2837_v17 = vpop.f32.mrb[94].mxu0  ;;  %v7519_v10 = vld [vmem:[#allocation2 + $0x153] sm:$0xff]  ;;  %v2510_v11 = vld [vmem:[#allocation2 + $0x2e9] sm:$0xff] }
 0x5d8   :  { %17350 = vst [vmem:[%s24094_s3 + $0xe8] sm:$0xff] %v2837_v17  ;;  %v14827_v19 = vpop.f32.mrb[95].mxu0  ;;  %15993 = vmatmul.mubr.bf16.gmra.mrb[224].mxu1 %v7632_v13  ;;  %v7637_v13 = vpack.c.bf16 %v7520_v49, %v7519_v10  ;;  %v2509_v17 = vld [vmem:[#allocation2 + $0x2e1] sm:$0xff]  ;;  %v2520_v49 = vld [vmem:[#allocation2 + $0x339] sm:$0xff] }
 0x5d9   :  { %15996 = vmatprep.mubr.msk.bf16.mxu1 %vm19832_vm0, %v24095_v0  ;;  %v2600_v18 = vpack.c.bf16 %v2510_v11, %v2509_v17  ;;  %v7522_v19 = vld [vmem:[#allocation2 + $0x16b] sm:$0xff] }
 0x5da   :  { %14933 = vmatmul.mubr.bf16.gmra.mrb[92].mxu0 %v2595_v22  ;;  %v7521_v22 = vld [vmem:[#allocation2 + $0x163] sm:$0xff]  ;;  %v2519_v11 = vld [vmem:[#allocation2 + $0x331] sm:$0xff] }
 0x5db   :  { %14936 = vmatprep.mubr.msk.bf16.mxu0 %vm19832_vm0, %v24095_v0  ;;  %v7638_v25 = vpack.c.bf16 %v7522_v19, %v7521_v22  ;;  %v19801_v17 = vld [vmem:[%s24093_s2 + $0xa8] sm:$0xff]   ;;  %v7531_v19 = vld [vmem:[#allocation2 + $0x1b3] sm:$0xff] }
 0x5dc   :  { %15055 = vmatpush3.bf16.msra.mxu0 %v19801_v17  ;;  %v2522_v22 = vld [vmem:[#allocation2 + $0x349] sm:$0xff] }
 0x5dd   :  { %15056 = vmatprep.subr.bf16.mxu0 %v24095_v0 }
 0x5e0   :  { %15997 = vmatmul.mubr.bf16.gmra.mrb[60].mxu1 %v7633_v28  ;;  %v2601_v28 = vpack.c.bf16 %v2512_v24, %v2511_v26 }
 0x5e1   :  { %16000 = vmatprep.mubr.msk.bf16.mxu1 %vm19832_vm0, %v24095_v0 }
 0x5e2   :  { %14937 = vmatmul.mubr.bf16.gmra.mrb[204].mxu0 %v2596_v30  ;;  %v7523_v30 = vld [vmem:[#allocation2 + $0x173] sm:$0xff] }
 0x5e3   :  { %14940 = vmatprep.mubr.msk.bf16.mxu0 %vm19832_vm0, %v24095_v0  ;;  %v7639_v33 = vpack.c.bf16 %v7524_v29, %v7523_v30  ;;  %v7534_v29 = vld [vmem:[#allocation2 + $0x1cb] sm:$0xff]  ;;  %v19803_v30 = vld [vmem:[%s24093_s2 + $0xb8] sm:$0xff]  }
 0x5e8   :  { %16001 = vmatmul.mubr.bf16.gmra.mrb[64].mxu1 %v7634_v39  ;;  %v2602_v39 = vpack.c.bf16 %v2514_v32, %v2513_v38  ;;  %v7533_v32 = vld [vmem:[#allocation2 + $0x1c3] sm:$0xff] }
 0x5e9   :  { %16004 = vmatprep.mubr.msk.bf16.mxu1 %vm19832_vm0, %v24095_v0  ;;  %v7644_v38 = vpack.c.bf16 %v7534_v29, %v7533_v32  ;;  %v7543_v29 = vld [vmem:[#allocation2 + $0x213] sm:$0xff] }
 0x5ea   :  { %14941 = vmatmul.mubr.bf16.gmra.mrb[208].mxu0 %v2597_v44  ;;  %v7525_v44 = vld [vmem:[#allocation2 + $0x183] sm:$0xff] }
 0x5eb   :  { %14944 = vmatprep.mubr.msk.bf16.mxu0 %vm19832_vm0, %v24095_v0  ;;  %v7640_v47 = vpack.c.bf16 %v7526_v40, %v7525_v44  ;;  %v7536_v44 = vld [vmem:[#allocation2 + $0x1db] sm:$0xff] }
 0x5f0   :  { %16005 = vmatmul.mubr.bf16.gmra.mrb[68].mxu1 %v7635_v53  ;;  %v2603_v53 = vpack.c.bf16 %v2516_v45, %v2515_v51  ;;  %v7535_v45 = vld [vmem:[#allocation2 + $0x1d3] sm:$0xff] }
 0x5f1   :  { %16008 = vmatprep.mubr.msk.bf16.mxu1 %vm19832_vm0, %v24095_v0  ;;  %v7645_v51 = vpack.c.bf16 %v7536_v44, %v7535_v45  ;;  %v2536_v44 = vld [vmem:[#allocation2 + $0x3b9] sm:$0xff] }
 0x5f2   :  { %14945 = vmatmul.mubr.bf16.gmra.mrb[212].mxu0 %v2598_v56  ;;  %v7528_v56 = vld [vmem:[#allocation2 + $0x19b] sm:$0xff] }
 0x5f3   :  { %14948 = vmatprep.mubr.msk.bf16.mxu0 %vm19832_vm0, %v24095_v0  ;;  %v7641_v61 = vpack.c.bf16 %v7528_v56, %v7527_v57  ;;  %v19804_v56 = vld [vmem:[%s24093_s2 + $0x1a8] sm:$0xff]  }
 0x5f4   :  { %16223 = vmatpush3.bf16.msra.mxu1 %v19804_v56  ;;  %v7538_v57 = vld [vmem:[#allocation2 + $0x1eb] sm:$0xff] }
 0x5f5   :  { %16224 = vmatprep.subr.bf16.mxu1 %v24095_v0  ;;  %v2538_v56 = vld [vmem:[#allocation2 + $0x3c9] sm:$0xff] }
 0x5f8   :  { %16009 = vmatmul.mubr.bf16.gmra.mrb[72].mxu1 %v7636_v4  ;;  %v2517_v4 = vld [vmem:[#allocation2 + $0x321] sm:$0xff] }
 0x5f9   :  { %16012 = vmatprep.mubr.msk.bf16.mxu1 %vm19832_vm0, %v24095_v0  ;;  %v2604_v5 = vpack.c.bf16 %v2518_v60, %v2517_v4  ;;  %v7537_v60 = vld [vmem:[#allocation2 + $0x1e3] sm:$0xff] }
 0x5fa   :  { %14949 = vmatmul.mubr.bf16.gmra.mrb[216].mxu0 %v2599_v8  ;;  %v7530_v8 = vld [vmem:[#allocation2 + $0x1ab] sm:$0xff]  ;;  %v7646_v4 = vpack.c.bf16 %v7538_v57, %v7537_v60  ;;  %v2537_v60 = vld [vmem:[#allocation2 + $0x3c1] sm:$0xff] }
 0x5fb   :  { %14952 = vmatprep.mubr.msk.bf16.mxu0 %vm19832_vm0, %v24095_v0  ;;  %v7642_v10 = vpack.c.bf16 %v7530_v8, %v7529_v46  ;;  %v7540_v46 = vld [vmem:[#allocation2 + $0x1fb] sm:$0xff] }
 0x600   :  { %16013 = vmatmul.mubr.bf16.gmra.mrb[76].mxu1 %v7637_v13  ;;  %v2605_v13 = vpack.c.bf16 %v2520_v49, %v2519_v11  ;;  %v7539_v49 = vld [vmem:[#allocation2 + $0x1f3] sm:$0xff] }
 0x601   :  { %16016 = vmatprep.mubr.msk.bf16.mxu1 %vm19832_vm0, %v24095_v0  ;;  %v7647_v11 = vpack.c.bf16 %v7540_v46, %v7539_v49  ;;  %v2539_v49 = vld [vmem:[#allocation2 + $0x3d1] sm:$0xff] }
 0x602   :  { %14953 = vmatmul.mubr.bf16.gmra.mrb[220].mxu0 %v2600_v18  ;;  %v7532_v18 = vld [vmem:[#allocation2 + $0x1bb] sm:$0xff] }
 0x603   :  { %14956 = vmatprep.mubr.msk.bf16.mxu0 %vm19832_vm0, %v24095_v0  ;;  %v7643_v24 = vpack.c.bf16 %v7532_v18, %v7531_v19  ;;  %v7542_v18 = vld [vmem:[#allocation2 + $0x20b] sm:$0xff]  ;;  %v7541_v19 = vld [vmem:[#allocation2 + $0x203] sm:$0xff] }
 0x608   :  { %16017 = vmatmul.mubr.bf16.gmra.mrb[80].mxu1 %v7638_v25  ;;  %v2521_v25 = vld [vmem:[#allocation2 + $0x341] sm:$0xff] }
 0x609   :  { %16020 = vmatprep.mubr.msk.bf16.mxu1 %vm19832_vm0, %v24095_v0  ;;  %v2606_v26 = vpack.c.bf16 %v2522_v22, %v2521_v25  ;;  %v2532_v22 = vld [vmem:[#allocation2 + $0x399] sm:$0xff]  ;;  %v2531_v25 = vld [vmem:[#allocation2 + $0x391] sm:$0xff] }
 0x60a   :  { %14957 = vmatmul.mubr.bf16.gmra.mrb[224].mxu0 %v2601_v28  ;;  %v19802_v28 = vld [vmem:[%s24093_s2 + $0xb0] sm:$0xff]  }
 0x60b   :  { %14960 = vmatprep.mubr.msk.bf16.mxu0 %vm19832_vm0, %v24095_v0  ;;  %15057 = vmatpush3.bf16.msra.mxu0 %v19802_v28  ;;  %v7544_v28 = vld [vmem:[#allocation2 + $0x21b] sm:$0xff] }
 0x60c   :  { %15058 = vmatprep.subr.bf16.mxu0 %v24095_v0  ;;  %v7649_v32 = vpack.c.bf16 %v7544_v28, %v7543_v29  ;;  %v19805_v29 = vld [vmem:[%s24093_s2 + $0x1b0] sm:$0xff]  }
 0x60d   :  { %16225 = vmatpush3.bf16.msra.mxu1 %v19805_v29  ;;  %v3684_v29 = vld [vmem:[#allocation2 + $0xa] sm:$0xff] }
 0x60e   :  { %16226 = vmatprep.subr.bf16.mxu1 %v24095_v0 }
 0x60f   :  { %15059 = vmatpush3.bf16.msra.mxu0 %v19803_v30  ;;  %v2534_v30 = vld [vmem:[#allocation2 + $0x3a9] sm:$0xff] }
 0x610   :  { %16021 = vmatmul.mubr.bf16.gmra.mrb[84].mxu1 %v7639_v33  ;;  %v2524_v33 = vld [vmem:[#allocation2 + $0x359] sm:$0xff]  ;;  %16796 = vmatprep.subr.bf16.mxu0 %v24095_v0 }
 0x611   :  { %16024 = vmatprep.mubr.msk.bf16.mxu1 %vm19832_vm0, %v24095_v0 }
 0x612   :  { %14961 = vmatmul.mubr.bf16.gmra.mrb[228].mxu0 %v2602_v39  ;;  %v2523_v39 = vld [vmem:[#allocation2 + $0x351] sm:$0xff] }
 0x613   :  { %14964 = vmatprep.mubr.msk.bf16.mxu0 %vm19832_vm0, %v24095_v0  ;;  %v2607_v40 = vpack.c.bf16 %v2524_v33, %v2523_v39  ;;  %v2533_v33 = vld [vmem:[#allocation2 + $0x3a1] sm:$0xff]  ;;  %v7546_v39 = vld [vmem:[#allocation2 + $0x22b] sm:$0xff] }
 0x618   :  { %16025 = vmatmul.mubr.bf16.gmra.mrb[88].mxu1 %v7640_v47  ;;  %v2526_v47 = vld [vmem:[#allocation2 + $0x369] sm:$0xff] }
 0x619   :  { %16028 = vmatprep.mubr.msk.bf16.mxu1 %vm19832_vm0, %v24095_v0 }
 0x61a   :  { %14965 = vmatmul.mubr.bf16.gmra.mrb[232].mxu0 %v2603_v53  ;;  %v2525_v53 = vld [vmem:[#allocation2 + $0x361] sm:$0xff] }
 0x61b   :  { %14968 = vmatprep.mubr.msk.bf16.mxu0 %vm19832_vm0, %v24095_v0  ;;  %v2608_v54 = vpack.c.bf16 %v2526_v47, %v2525_v53  ;;  %v2535_v47 = vld [vmem:[#allocation2 + $0x3b1] sm:$0xff]  ;;  %v7548_v53 = vld [vmem:[#allocation2 + $0x23b] sm:$0xff] }
 0x620   :  { %16029 = vmatmul.mubr.bf16.gmra.mrb[92].mxu1 %v7641_v61  ;;  %v2528_v61 = vld [vmem:[#allocation2 + $0x379] sm:$0xff] }
 0x621   :  { %16032 = vmatprep.mubr.msk.bf16.mxu1 %vm19832_vm0, %v24095_v0 }
 0x622   :  { %14969 = vmatmul.mubr.bf16.gmra.mrb[236].mxu0 %v2604_v5  ;;  %v2527_v5 = vld [vmem:[#allocation2 + $0x371] sm:$0xff] }
 0x623   :  { %14972 = vmatprep.mubr.msk.bf16.mxu0 %vm19832_vm0, %v24095_v0  ;;  %v2609_v8 = vpack.c.bf16 %v2528_v61, %v2527_v5  ;;  %v2614_v61 = vpack.c.bf16 %v2538_v56, %v2537_v60  ;;  %v7549_v5 = vld [vmem:[#allocation2 + $0x243] sm:$0xff]  ;;  %v2547_v56 = vld [vmem:[#allocation2 + $0x411] sm:$0xff]  ;;  %v7560_v60 = vld [vmem:[#allocation2 + $0x29b] sm:$0xff] }
 0x628   :  { %16033 = vmatmul.mubr.bf16.gmra.mrb[96].mxu1 %v7642_v10  ;;  %v2530_v10 = vld [vmem:[#allocation2 + $0x389] sm:$0xff] }
 0x629   :  { %16036 = vmatprep.mubr.msk.bf16.mxu1 %vm19832_vm0, %v24095_v0 }
 0x62a   :  { %14973 = vmatmul.mubr.bf16.gmra.mrb[240].mxu0 %v2605_v13  ;;  %v2529_v13 = vld [vmem:[#allocation2 + $0x381] sm:$0xff] }
 0x62b   :  { %14976 = vmatprep.mubr.msk.bf16.mxu0 %vm19832_vm0, %v24095_v0  ;;  %v2610_v17 = vpack.c.bf16 %v2530_v10, %v2529_v13  ;;  %v7551_v13 = vld [vmem:[#allocation2 + $0x253] sm:$0xff] }
 0x630   :  { %16037 = vmatmul.mubr.bf16.gmra.mrb[100].mxu1 %v7643_v24  ;;  %v7648_v24 = vpack.c.bf16 %v7542_v18, %v7541_v19  ;;  %v2541_v19 = vld [vmem:[#allocation2 + $0x3e1] sm:$0xff] }
 0x631   :  { %16040 = vmatprep.mubr.msk.bf16.mxu1 %vm19832_vm0, %v24095_v0 }
 0x632   :  { %14977 = vmatmul.mubr.bf16.gmra.mrb[244].mxu0 %v2606_v26  ;;  %v2611_v26 = vpack.c.bf16 %v2532_v22, %v2531_v25  ;;  %v7553_v25 = vld [vmem:[#allocation2 + $0x263] sm:$0xff] }
 0x633   :  { %14980 = vmatprep.mubr.msk.bf16.mxu0 %vm19832_vm0, %v24095_v0 }
 0x638   :  { %16041 = vmatmul.mubr.bf16.gmra.mrb[104].mxu1 %v7644_v38  ;;  %v2612_v38 = vpack.c.bf16 %v2534_v30, %v2533_v33  ;;  %v2543_v30 = vld [vmem:[#allocation2 + $0x3f1] sm:$0xff]  ;;  %v7556_v33 = vld [vmem:[#allocation2 + $0x27b] sm:$0xff] }
 0x639   :  { %16044 = vmatprep.mubr.msk.bf16.mxu1 %vm19832_vm0, %v24095_v0 }
 0x63a   :  { %14981 = vmatmul.mubr.bf16.gmra.mrb[248].mxu0 %v2607_v40  ;;  %v7545_v40 = vld [vmem:[#allocation2 + $0x223] sm:$0xff] }
 0x63b   :  { %14984 = vmatprep.mubr.msk.bf16.mxu0 %vm19832_vm0, %v24095_v0  ;;  %v7650_v45 = vpack.c.bf16 %v7546_v39, %v7545_v40  ;;  %v2546_v39 = vld [vmem:[#allocation2 + $0x409] sm:$0xff] }
 0x640   :  { %16045 = vmatmul.mubr.bf16.gmra.mrb[108].mxu1 %v7645_v51  ;;  %v2613_v51 = vpack.c.bf16 %v2536_v44, %v2535_v47  ;;  %v2545_v44 = vld [vmem:[#allocation2 + $0x401] sm:$0xff]  ;;  %v7558_v47 = vld [vmem:[#allocation2 + $0x28b] sm:$0xff] }
 0x641   :  { %16048 = vmatprep.mubr.msk.bf16.mxu1 %vm19832_vm0, %v24095_v0 }
 0x642   :  { %14985 = vmatmul.mubr.bf16.gmra.mrb[252].mxu0 %v2608_v54  ;;  %v7547_v54 = vld [vmem:[#allocation2 + $0x233] sm:$0xff] }
 0x643   :  { %14988 = vmatprep.mubr.msk.bf16.mxu0 %vm19832_vm0, %v24095_v0  ;;  %v7651_v57 = vpack.c.bf16 %v7548_v53, %v7547_v54  ;;  %v2548_v53 = vld [vmem:[#allocation2 + $0x419] sm:$0xff] }
 0x648   :  { %16049 = vmatmul.mubr.bf16.gmra.mrb[112].mxu1 %v7646_v4  ;;  %v7550_v4 = vld [vmem:[#allocation2 + $0x24b] sm:$0xff] }
 0x649   :  { %16052 = vmatprep.mubr.msk.bf16.mxu1 %vm19832_vm0, %v24095_v0  ;;  %v7652_v46 = vpack.c.bf16 %v7550_v4, %v7549_v5  ;;  %v2550_v4 = vld [vmem:[#allocation2 + $0x429] sm:$0xff] }
 0x64a   :  { %14989 = vmatmul.mubr.bf16.gmra.mrb[0].mxu0 %v2609_v8  ;;  %v2540_v8 = vld [vmem:[#allocation2 + $0x3d9] sm:$0xff] }
 0x64b   :  { %14992 = vmatprep.mubr.msk.bf16.mxu0 %vm19832_vm0, %v24095_v0  ;;  %v2615_v10 = vpack.c.bf16 %v2540_v8, %v2539_v49  ;;  %v2549_v8 = vld [vmem:[#allocation2 + $0x421] sm:$0xff]  ;;  %v7562_v49 = vld [vmem:[#allocation2 + $0x2ab] sm:$0xff] }
 0x650   :  { %16053 = vmatmul.mubr.bf16.gmra.mrb[116].mxu1 %v7647_v11  ;;  %v7552_v11 = vld [vmem:[#allocation2 + $0x25b] sm:$0xff] }
 0x651   :  { %16056 = vmatprep.mubr.msk.bf16.mxu1 %vm19832_vm0, %v24095_v0  ;;  %v7653_v18 = vpack.c.bf16 %v7552_v11, %v7551_v13  ;;  %v2552_v11 = vld [vmem:[#allocation2 + $0x439] sm:$0xff] }
 0x652   :  { %14993 = vmatmul.mubr.bf16.gmra.mrb[4].mxu0 %v2610_v17  ;;  %v2542_v17 = vld [vmem:[#allocation2 + $0x3e9] sm:$0xff] }
 0x653   :  { %14996 = vmatprep.mubr.msk.bf16.mxu0 %vm19832_vm0, %v24095_v0  ;;  %v2616_v22 = vpack.c.bf16 %v2542_v17, %v2541_v19  ;;  %v2551_v17 = vld [vmem:[#allocation2 + $0x431] sm:$0xff]  ;;  %v7564_v19 = vld [vmem:[#allocation2 + $0x2bb] sm:$0xff] }
 0x658   :  { %16057 = vmatmul.mubr.bf16.gmra.mrb[120].mxu1 %v7648_v24  ;;  %v7554_v24 = vld [vmem:[#allocation2 + $0x26b] sm:$0xff] }
 0x659   :  { %16060 = vmatprep.mubr.msk.bf16.mxu1 %vm19832_vm0, %v24095_v0  ;;  %v7654_v28 = vpack.c.bf16 %v7554_v24, %v7553_v25  ;;  %v2553_v24 = vld [vmem:[#allocation2 + $0x441] sm:$0xff] }
 0x65a   :  { %14997 = vmatmul.mubr.bf16.gmra.mrb[8].mxu0 %v2611_v26  ;;  %v2544_v26 = vld [vmem:[#allocation2 + $0x3f9] sm:$0xff] }
 0x65b   :  { %15000 = vmatprep.mubr.msk.bf16.mxu0 %vm19832_vm0, %v24095_v0 }
 0x660   :  { %16061 = vmatmul.mubr.bf16.gmra.mrb[124].mxu1 %v7649_v32  ;;  %v2617_v32 = vpack.c.bf16 %v2544_v26, %v2543_v30  ;;  %v2622_v26 = vpack.c.bf16 %v2553_v24, %v2553_v24  ;;  %v7565_v30 = vld [vmem:[#allocation2 + $0x2c3] sm:$0xff] }
 0x661   :  { %16064 = vmatprep.mubr.msk.bf16.mxu1 %vm19832_vm0, %v24095_v0 }
 0x662   :  { %15001 = vmatmul.mubr.bf16.gmra.mrb[12].mxu0 %v2612_v38  ;;  %v7555_v38 = vld [vmem:[#allocation2 + $0x273] sm:$0xff] }
 0x663   :  { %15004 = vmatprep.mubr.msk.bf16.mxu0 %vm19832_vm0, %v24095_v0  ;;  %v7655_v40 = vpack.c.bf16 %v7556_v33, %v7555_v38  ;;  %v3683_v33 = vld [vmem:[#allocation2 + $0x2] sm:$0xff] }
 0x664   :  { %v3820_v38 = vpack.c.bf16 %v3684_v29, %v3683_v33  ;;  %v7578_v33 = vld [vmem:[#allocation2 + $0x32b] sm:$0xff] }
 0x668   :  { %16065 = vmatmul.mubr.bf16.gmra.mrb[128].mxu1 %v7650_v45  ;;  %v2618_v45 = vpack.c.bf16 %v2546_v39, %v2545_v44  ;;  %v7568_v39 = vld [vmem:[#allocation2 + $0x2db] sm:$0xff] }
 0x669   :  { %16068 = vmatprep.mubr.msk.bf16.mxu1 %vm19832_vm0, %v24095_v0  ;;  %v3686_v44 = vld [vmem:[#allocation2 + $0x1a] sm:$0xff] }
 0x66a   :  { %15005 = vmatmul.mubr.bf16.gmra.mrb[16].mxu0 %v2613_v51  ;;  %v7557_v51 = vld [vmem:[#allocation2 + $0x283] sm:$0xff] }
 0x66b   :  { %15008 = vmatprep.mubr.msk.bf16.mxu0 %vm19832_vm0, %v24095_v0  ;;  %v7656_v54 = vpack.c.bf16 %v7558_v47, %v7557_v51  ;;  %v3685_v47 = vld [vmem:[#allocation2 + $0x12] sm:$0xff] }
 0x66c   :  { %v3821_v51 = vpack.c.bf16 %v3686_v44, %v3685_v47  ;;  %v3695_v44 = vld [vmem:[#allocation2 + $0x62] sm:$0xff] }
 0x66d   :  { %v7580_v47 = vld [vmem:[#allocation2 + $0x33b] sm:$0xff] }
 0x670   :  { %16069 = vmatmul.mubr.bf16.gmra.mrb[132].mxu1 %v7651_v57  ;;  %v2619_v57 = vpack.c.bf16 %v2548_v53, %v2547_v56  ;;  %v7570_v53 = vld [vmem:[#allocation2 + $0x2eb] sm:$0xff] }
 0x671   :  { %16072 = vmatprep.mubr.msk.bf16.mxu1 %vm19832_vm0, %v24095_v0  ;;  %v3688_v56 = vld [vmem:[#allocation2 + $0x2a] sm:$0xff] }
 0x672   :  { %15009 = vmatmul.mubr.bf16.gmra.mrb[20].mxu0 %v2614_v61  ;;  %v7559_v61 = vld [vmem:[#allocation2 + $0x293] sm:$0xff] }
 0x673   :  { %15012 = vmatprep.mubr.msk.bf16.mxu0 %vm19832_vm0, %v24095_v0  ;;  %v7657_v5 = vpack.c.bf16 %v7560_v60, %v7559_v61  ;;  %v3687_v60 = vld [vmem:[#allocation2 + $0x22] sm:$0xff] }
 0x674   :  { %v3822_v61 = vpack.c.bf16 %v3688_v56, %v3687_v60  ;;  %v3697_v56 = vld [vmem:[#allocation2 + $0x72] sm:$0xff] }
 0x675   :  { %v7582_v60 = vld [vmem:[#allocation2 + $0x34b] sm:$0xff] }
 0x678   :  { %16073 = vmatmul.mubr.bf16.gmra.mrb[136].mxu1 %v7652_v46  ;;  %v2620_v46 = vpack.c.bf16 %v2550_v4, %v2549_v8  ;;  %v19806_v4 = vld [vmem:[%s24093_s2 + $0x1b8] sm:$0xff]  }
 0x679   :  { %16076 = vmatprep.mubr.msk.bf16.mxu1 %vm19832_vm0, %v24095_v0  ;;  %16227 = vmatpush3.bf16.msra.mxu1 %v19806_v4  ;;  %v7571_v8 = vld [vmem:[#allocation2 + $0x2f3] sm:$0xff]  ;;  %v3700_v4 = vld [vmem:[#allocation2 + $0x8a] sm:$0xff] }
 0x67a   :  { %15013 = vmatmul.mubr.bf16.gmra.mrb[24].mxu0 %v2615_v10  ;;  %v7561_v10 = vld [vmem:[#allocation2 + $0x2a3] sm:$0xff]  ;;  %16504 = vmatprep.subr.bf16.mxu1 %v24095_v0 }
 0x67b   :  { %15016 = vmatprep.mubr.msk.bf16.mxu0 %vm19832_vm0, %v24095_v0  ;;  %v7658_v13 = vpack.c.bf16 %v7562_v49, %v7561_v10  ;;  %v3689_v10 = vld [vmem:[#allocation2 + $0x32] sm:$0xff] }
 0x680   :  { %16077 = vmatmul.mubr.bf16.gmra.mrb[140].mxu1 %v7653_v18  ;;  %v2621_v18 = vpack.c.bf16 %v2552_v11, %v2551_v17  ;;  %v7573_v17 = vld [vmem:[#allocation2 + $0x303] sm:$0xff] }
 0x681   :  { %16080 = vmatprep.mubr.msk.bf16.mxu1 %vm19832_vm0, %v24095_v0 }
 0x682   :  { %15017 = vmatmul.mubr.bf16.gmra.mrb[28].mxu0 %v2616_v22  ;;  %v7563_v22 = vld [vmem:[#allocation2 + $0x2b3] sm:$0xff] }
 0x683   :  { %15020 = vmatprep.mubr.msk.bf16.mxu0 %vm19832_vm0, %v24095_v0  ;;  %v7659_v25 = vpack.c.bf16 %v7564_v19, %v7563_v22  ;;  %v3691_v22 = vld [vmem:[#allocation2 + $0x42] sm:$0xff] }
 0x688   :  { %16081 = vmatmul.mubr.bf16.gmra.mrb[144].mxu1 %v7654_v28  ;;  %v7566_v28 = vld [vmem:[#allocation2 + $0x2cb] sm:$0xff] }
 0x689   :  { %16084 = vmatprep.mubr.msk.bf16.mxu1 %vm19832_vm0, %v24095_v0 }
 0x68a   :  { %15021 = vmatmul.mubr.bf16.gmra.mrb[32].mxu0 %v2617_v32  ;;  %v7660_v32 = vpack.c.bf16 %v7566_v28, %v7565_v30  ;;  %v3694_v28 = vld [vmem:[#allocation2 + $0x5a] sm:$0xff]  ;;  %v3693_v30 = vld [vmem:[#allocation2 + $0x52] sm:$0xff] }
 0x68b   :  { %15024 = vmatprep.mubr.msk.bf16.mxu0 %vm19832_vm0, %v24095_v0 }
 0x690   :  { %16085 = vmatmul.mubr.bf16.gmra.mrb[40].mxu1 %v7655_v40  ;;  %v7567_v40 = vld [vmem:[#allocation2 + $0x2d3] sm:$0xff] }
 0x691   :  { %16088 = vmatprep.mubr.msk.bf16.mxu1 %vm19832_vm0, %v24095_v0 }
 0x692   :  { %15025 = vmatmul.mubr.bf16.gmra.mrb[184].mxu0 %v2618_v45  ;;  %v7661_v45 = vpack.c.bf16 %v7568_v39, %v7567_v40  ;;  %v3696_v39 = vld [vmem:[#allocation2 + $0x6a] sm:$0xff] }
 0x693   :  { %15028 = vmatprep.mubr.msk.bf16.mxu0 %vm19832_vm0, %v24095_v0 }
 0x698   :  { %16089 = vmatmul.mubr.bf16.gmra.mrb[44].mxu1 %v7656_v54  ;;  %v7569_v54 = vld [vmem:[#allocation2 + $0x2e3] sm:$0xff] }
 0x699   :  { %16092 = vmatprep.mubr.msk.bf16.mxu1 %vm19832_vm0, %v24095_v0 }
 0x69a   :  { %15029 = vmatmul.mubr.bf16.gmra.mrb[188].mxu0 %v2619_v57  ;;  %v7662_v57 = vpack.c.bf16 %v7570_v53, %v7569_v54  ;;  %v3698_v53 = vld [vmem:[#allocation2 + $0x7a] sm:$0xff] }
 0x69b   :  { %15032 = vmatprep.mubr.msk.bf16.mxu0 %vm19832_vm0, %v24095_v0 }
 0x6a0   :  { %16093 = vmatmul.mubr.bf16.gmra.mrb[48].mxu1 %v7657_v5  ;;  %v7572_v5 = vld [vmem:[#allocation2 + $0x2fb] sm:$0xff] }
 0x6a1   :  { %16096 = vmatprep.mubr.msk.bf16.mxu1 %vm19832_vm0, %v24095_v0  ;;  %v7663_v49 = vpack.c.bf16 %v7572_v5, %v7571_v8  ;;  %v3699_v8 = vld [vmem:[#allocation2 + $0x82] sm:$0xff] }
 0x6a2   :  { %15033 = vmatmul.mubr.bf16.gmra.mrb[192].mxu0 %v2620_v46  ;;  %v3690_v46 = vld [vmem:[#allocation2 + $0x3a] sm:$0xff] }
 0x6a3   :  { %15036 = vmatprep.mubr.msk.bf16.mxu0 %vm19832_vm0, %v24095_v0  ;;  %v3823_v11 = vpack.c.bf16 %v3690_v46, %v3689_v10  ;;  %v21291_v46 = vpack.c.bf16 %v3700_v4, %v3699_v8  ;;  %v7583_v10 = vld [vmem:[#allocation2 + $0x353] sm:$0xff] }
 0x6a4   :  { %v7587_v4 = vld [vmem:[#allocation2 + $0x373] sm:$0xff] }
 0x6a8   :  { %16097 = vmatmul.mubr.bf16.gmra.mrb[52].mxu1 %v7658_v13  ;;  %v7574_v13 = vld [vmem:[#allocation2 + $0x30b] sm:$0xff] }
 0x6a9   :  { %16100 = vmatprep.mubr.msk.bf16.mxu1 %vm19832_vm0, %v24095_v0  ;;  %v7664_v19 = vpack.c.bf16 %v7574_v13, %v7573_v17  ;;  %v3701_v17 = vld [vmem:[#allocation2 + $0x92] sm:$0xff] }
 0x6aa   :  { %15037 = vmatmul.mubr.bf16.gmra.mrb[196].mxu0 %v2621_v18  ;;  %v3692_v18 = vld [vmem:[#allocation2 + $0x4a] sm:$0xff] }
 0x6ab   :  { %15040 = vmatprep.mubr.msk.bf16.mxu0 %vm19832_vm0, %v24095_v0  ;;  %v21263_v24 = vpack.c.bf16 %v3692_v18, %v3691_v22  ;;  %v7586_v22 = vld [vmem:[#allocation2 + $0x36b] sm:$0xff] }
 0x6b0   :  { %16101 = vmatmul.mubr.bf16.gmra.mrb[56].mxu1 %v7659_v25  ;;  %v7576_v25 = vld [vmem:[#allocation2 + $0x31b] sm:$0xff] }
 0x6b1   :  { %16104 = vmatprep.mubr.msk.bf16.mxu1 %vm19832_vm0, %v24095_v0 }
 0x6b2   :  { %15041 = vmatmul.mubr.bf16.gmra.mrb[200].mxu0 %v2622_v26  ;;  %v7575_v26 = vld [vmem:[#allocation2 + $0x313] sm:$0xff] }
 0x6b3   :  { %15060 = vmatprep.mubr.msk.bf16.mxu0 %vm19832_vm0, %v24095_v0  ;;  %v7665_v29 = vpack.c.bf16 %v7576_v25, %v7575_v26 }
 0x6b8   :  { %16105 = vmatmul.mubr.bf16.gmra.mrb[168].mxu1 %v7660_v32  ;;  %v21270_v32 = vpack.c.bf16 %v3694_v28, %v3693_v30  ;;  %v3704_v30 = vld [vmem:[#allocation2 + $0xaa] sm:$0xff] }
 0x6b9   :  { %16108 = vmatprep.mubr.msk.bf16.mxu1 %vm19832_vm0, %v24095_v0 }
 0x6ba   :  { %15061 = vmatmul.mubr.bf16.vlgmr.msra.gmra.mrb[36].mxu0 %v3820_v38  ;;  %v7577_v38 = vld [vmem:[#allocation2 + $0x323] sm:$0xff] }
 0x6bb   :  { %15064 = vmatprep.mubr.msk.bf16.mxu0 %vm19832_vm0, %v24095_v0  ;;  %v7666_v40 = vpack.c.bf16 %v7578_v33, %v7577_v38 }
 0x6c0   :  { %16109 = vmatmul.mubr.bf16.gmra.mrb[172].mxu1 %v7661_v45  ;;  %v21277_v45 = vpack.c.bf16 %v3696_v39, %v3695_v44  ;;  %v3703_v44 = vld [vmem:[#allocation2 + $0xa2] sm:$0xff] }
 0x6c1   :  { %16112 = vmatprep.mubr.msk.bf16.mxu1 %vm19832_vm0, %v24095_v0 }
 0x6c2   :  { %15065 = vmatmul.mubr.bf16.gmra.mrb[40].mxu0 %v3821_v51  ;;  %v7579_v51 = vld [vmem:[#allocation2 + $0x333] sm:$0xff] }
 0x6c3   :  { %15068 = vmatprep.mubr.msk.bf16.mxu0 %vm19832_vm0, %v24095_v0  ;;  %v7667_v54 = vpack.c.bf16 %v7580_v47, %v7579_v51  ;;  %v21315_v51 = vpack.c.bf16 %v3704_v30, %v3703_v44 }
 0x6c8   :  { %16113 = vmatmul.mubr.bf16.gmra.mrb[176].mxu1 %v7662_v57  ;;  %v21284_v57 = vpack.c.bf16 %v3698_v53, %v3697_v56 }
 0x6c9   :  { %16116 = vmatprep.mubr.msk.bf16.mxu1 %vm19832_vm0, %v24095_v0 }
 0x6ca   :  { %15069 = vmatmul.mubr.bf16.gmra.mrb[44].mxu0 %v3822_v61  ;;  %v7581_v61 = vld [vmem:[#allocation2 + $0x343] sm:$0xff] }
 0x6cb   :  { %15072 = vmatprep.mubr.msk.bf16.mxu0 %vm19832_vm0, %v24095_v0  ;;  %v7668_v5 = vpack.c.bf16 %v7582_v60, %v7581_v61 }
 0x6d0   :  { %16117 = vmatmul.mubr.bf16.gmra.mrb[180].mxu1 %v7663_v49  ;;  %v7584_v49 = vld [vmem:[#allocation2 + $0x35b] sm:$0xff] }
 0x6d1   :  { %16120 = vmatprep.mubr.msk.bf16.mxu1 %vm19832_vm0, %v24095_v0  ;;  %v7669_v13 = vpack.c.bf16 %v7584_v49, %v7583_v10 }
 0x6d2   :  { %15073 = vmatmul.mubr.bf16.gmra.mrb[48].mxu0 %v3823_v11  ;;  %v3702_v11 = vld [vmem:[#allocation2 + $0x9a] sm:$0xff] }
 0x6d3   :  { %15076 = vmatprep.mubr.msk.bf16.mxu0 %vm19832_vm0, %v24095_v0  ;;  %v21298_v18 = vpack.c.bf16 %v3702_v11, %v3701_v17 }
 0x6d8   :  { %16121 = vmatmul.mubr.bf16.gmra.mrb[184].mxu1 %v7664_v19 }
 0x6d9   :  { %16124 = vmatprep.mubr.msk.bf16.mxu1 %vm19832_vm0, %v24095_v0 }
 0x6da   :  { %15077 = vmatmul.mubr.bf16.gmra.mrb[52].mxu0 %v21263_v24 }
 0x6db   :  { %15080 = vmatprep.mubr.msk.bf16.mxu0 %vm19832_vm0, %v24095_v0 }
 0x6e0   :  { %16125 = vmatmul.mubr.bf16.gmra.mrb[188].mxu1 %v7665_v29  ;;  %v7585_v29 = vld [vmem:[#allocation2 + $0x363] sm:$0xff] }
 0x6e1   :  { %16128 = vmatprep.mubr.msk.bf16.mxu1 %vm19832_vm0, %v24095_v0  ;;  %v7670_v39 = vpack.c.bf16 %v7586_v22, %v7585_v29 }
 0x6e2   :  { %15081 = vmatmul.mubr.bf16.gmra.mrb[56].mxu0 %v21270_v32 }
 0x6e3   :  { %15084 = vmatprep.mubr.msk.bf16.mxu0 %vm19832_vm0, %v24095_v0 }
 0x6e8   :  { %16129 = vmatmul.mubr.bf16.gmra.mrb[192].mxu1 %v7666_v40 }
 0x6e9   :  { %16132 = vmatprep.mubr.msk.bf16.mxu1 %vm19832_vm0, %v24095_v0 }
 0x6ea   :  { %15085 = vmatmul.mubr.bf16.gmra.mrb[60].mxu0 %v21277_v45 }
 0x6eb   :  { %15088 = vmatprep.mubr.msk.bf16.mxu0 %vm19832_vm0, %v24095_v0 }
 0x6f0   :  { %16133 = vmatmul.mubr.bf16.gmra.mrb[196].mxu1 %v7667_v54  ;;  %v7588_v54 = vld [vmem:[#allocation2 + $0x37b] sm:$0xff] }
 0x6f1   :  { %16136 = vmatprep.mubr.msk.bf16.mxu1 %vm19832_vm0, %v24095_v0  ;;  %v7671_v10 = vpack.c.bf16 %v7588_v54, %v7587_v4 }
 0x6f2   :  { %15089 = vmatmul.mubr.bf16.gmra.mrb[64].mxu0 %v21284_v57 }
 0x6f3   :  { %15092 = vmatprep.mubr.msk.bf16.mxu0 %vm19832_vm0, %v24095_v0 }
 0x6f8   :  { %16137 = vmatmul.mubr.bf16.gmra.mrb[200].mxu1 %v7668_v5  ;;  %v3706_v5 = vld [vmem:[#allocation2 + $0xba] sm:$0xff] }
 0x6f9   :  { %16140 = vmatprep.mubr.msk.bf16.mxu1 %vm19832_vm0, %v24095_v0 }
 0x6fa   :  { %15093 = vmatmul.mubr.bf16.gmra.mrb[68].mxu0 %v21291_v46 }
 0x6fb   :  { %15096 = vmatprep.mubr.msk.bf16.mxu0 %vm19832_vm0, %v24095_v0 }
 0x700   :  { %16141 = vmatmul.mubr.bf16.gmra.mrb[204].mxu1 %v7669_v13  ;;  %v3705_v13 = vld [vmem:[#allocation2 + $0xb2] sm:$0xff] }
 0x701   :  { %16144 = vmatprep.mubr.msk.bf16.mxu1 %vm19832_vm0, %v24095_v0  ;;  %v21332_v22 = vpack.c.bf16 %v3706_v5, %v3705_v13  ;;  %v7591_v13 = vld [vmem:[#allocation2 + $0x393] sm:$0xff] }
 0x702   :  { %15097 = vmatmul.mubr.bf16.gmra.mrb[72].mxu0 %v21298_v18 }
 0x703   :  { %v21303_v19 = vpop.f32.mrb[100].mxu1  ;;  %15100 = vmatprep.mubr.msk.bf16.mxu0 %vm19832_vm0, %v24095_v0 }
 0x704   :  { %v16038_v25 = vpop.f32.mrb[101].mxu1 }
 0x705   :  { %v3138_v26 = vpop.f32.mrb[244].mxu0  ;;  %v21307_v28 = vpop.f32.mrb[102].mxu1 }
 0x706   :  { %17926 = vst [vmem:[%s24094_s3 + $0x340] sm:$0xff] %v3138_v26  ;;  %v14978_v33 = vpop.f32.mrb[245].mxu0  ;;  %v16039_v38 = vpop.f32.mrb[103].mxu1  ;;  %v7590_v26 = vld [vmem:[#allocation2 + $0x38b] sm:$0xff] }
 0x707   :  { %v3141_v40 = vpop.f32.mrb[246].mxu0  ;;  %v7589_v38 = vld [vmem:[#allocation2 + $0x383] sm:$0xff] }
 0x708   :  { %17938 = vst [vmem:[%s24094_s3 + $0x348] sm:$0xff] %v3141_v40  ;;  %v14979_v47 = vpop.f32.mrb[247].mxu0  ;;  %16145 = vmatmul.mubr.bf16.gmra.mrb[100].mxu1 %v7670_v39  ;;  %v3708_v39 = vld [vmem:[#allocation2 + $0xca] sm:$0xff] }
 0x709   :  { %16148 = vmatprep.mubr.msk.bf16.mxu1 %vm19832_vm0, %v24095_v0  ;;  %v7672_v47 = vpack.c.bf16 %v7590_v26, %v7589_v38 }
 0x70a   :  { %15101 = vmatmul.mubr.bf16.gmra.mrb[244].mxu0 %v21315_v51 }
 0x70b   :  { %v21320_v53 = vpop.f32.mrb[104].mxu1  ;;  %15104 = vmatprep.mubr.msk.bf16.mxu0 %vm19832_vm0, %v24095_v0 }
 0x70c   :  { %v16042_v56 = vpop.f32.mrb[105].mxu1 }
 0x70d   :  { %v3146_v60 = vpop.f32.mrb[248].mxu0  ;;  %v21324_v61 = vpop.f32.mrb[106].mxu1  ;;  %v3707_v56 = vld [vmem:[#allocation2 + $0xc2] sm:$0xff] }
 0x70e   :  { %17950 = vst [vmem:[%s24094_s3 + $0x350] sm:$0xff] %v3146_v60  ;;  %v14982_v8 = vpop.f32.mrb[249].mxu0  ;;  %v16043_v49 = vpop.f32.mrb[107].mxu1  ;;  %v21349_v4 = vpack.c.bf16 %v3708_v39, %v3707_v56  ;;  %v3709_v39 = vld [vmem:[#allocation2 + $0xd2] sm:$0xff] }
 0x70f   :  { %v3149_v11 = vpop.f32.mrb[250].mxu0  ;;  %v7592_v8 = vld [vmem:[#allocation2 + $0x39b] sm:$0xff] }
 0x710   :  { %17962 = vst [vmem:[%s24094_s3 + $0x358] sm:$0xff] %v3149_v11  ;;  %v14983_v17 = vpop.f32.mrb[251].mxu0  ;;  %16149 = vmatmul.mubr.bf16.gmra.mrb[104].mxu1 %v7671_v10 }
 0x711   :  { %16152 = vmatprep.mubr.msk.bf16.mxu1 %vm19832_vm0, %v24095_v0  ;;  %v3710_v17 = vld [vmem:[#allocation2 + $0xda] sm:$0xff] }
 0x712   :  { %15105 = vmatmul.mubr.bf16.gmra.mrb[248].mxu0 %v21332_v22 }
 0x713   :  { %v21337_v25 = vpop.f32.mrb[108].mxu1  ;;  %15108 = vmatprep.mubr.msk.bf16.mxu0 %vm19832_vm0, %v24095_v0 }
 0x714   :  { %v16046_v29 = vpop.f32.mrb[109].mxu1 }
 0x715   :  { %v3154_v30 = vpop.f32.mrb[252].mxu0  ;;  %v21341_v33 = vpop.f32.mrb[110].mxu1 }
 0x716   :  { %17974 = vst [vmem:[%s24094_s3 + $0x360] sm:$0xff] %v3154_v30  ;;  %v14986_v40 = vpop.f32.mrb[253].mxu0  ;;  %v16047_v44 = vpop.f32.mrb[111].mxu1  ;;  %v7673_v30 = vpack.c.bf16 %v7592_v8, %v7591_v13 }
 0x717   :  { %v3157_v54 = vpop.f32.mrb[254].mxu0  ;;  %v21366_v44 = vpack.c.bf16 %v3710_v17, %v3709_v39 }
 0x718   :  { %17986 = vst [vmem:[%s24094_s3 + $0x368] sm:$0xff] %v3157_v54  ;;  %v14987_v60 = vpop.f32.mrb[255].mxu0  ;;  %16153 = vmatmul.mubr.bf16.gmra.mrb[108].mxu1 %v7672_v47  ;;  %v7594_v54 = vld [vmem:[#allocation2 + $0x3ab] sm:$0xff] }
 0x719   :  { %16156 = vmatprep.mubr.msk.bf16.mxu1 %vm19832_vm0, %v24095_v0 }
 0x71a   :  { %15109 = vmatmul.mubr.bf16.gmra.mrb[252].mxu0 %v21349_v4 }
 0x71b   :  { %v21354_v5 = vpop.f32.mrb[112].mxu1  ;;  %15112 = vmatprep.mubr.msk.bf16.mxu0 %vm19832_vm0, %v24095_v0 }
 0x71c   :  { %v16050_v49 = vpop.f32.mrb[113].mxu1 }
 0x71d   :  { %v3162_v10 = vpop.f32.mrb[0].mxu0  ;;  %v21358_v11 = vpop.f32.mrb[114].mxu1  ;;  %v7593_v49 = vld [vmem:[#allocation2 + $0x3a3] sm:$0xff] }
 0x71e   :  { %17998 = vst [vmem:[%s24094_s3 + $0x370] sm:$0xff] %v3162_v10  ;;  %v14990_v26 = vpop.f32.mrb[1].mxu0  ;;  %v16051_v29 = vpop.f32.mrb[115].mxu1  ;;  %v3712_v10 = vld [vmem:[#allocation2 + $0xea] sm:$0xff] }
 0x71f   :  { %v3165_v38 = vpop.f32.mrb[2].mxu0  ;;  %v7674_v26 = vpack.c.bf16 %v7594_v54, %v7593_v49  ;;  %v7595_v54 = vld [vmem:[#allocation2 + $0x3b3] sm:$0xff]  ;;  %v19808_v49 = vld [vmem:[%s24093_s2 + $0x200] sm:$0xff]  }
 0x720   :  { %18010 = vst [vmem:[%s24094_s3 + $0x378] sm:$0xff] %v3165_v38  ;;  %v14991_v40 = vpop.f32.mrb[3].mxu0  ;;  %16157 = vmatmul.mubr.bf16.gmra.mrb[112].mxu1 %v7673_v30  ;;  %v3711_v30 = vld [vmem:[#allocation2 + $0xe2] sm:$0xff]  ;;  %16797 = vmatpush3.bf16.msra.mxu0 %v19808_v49 }
 0x721   :  { %16160 = vmatprep.mubr.msk.bf16.mxu1 %vm19832_vm0, %v24095_v0  ;;  %v21383_v39 = vpack.c.bf16 %v3712_v10, %v3711_v30  ;;  %v7596_v40 = vld [vmem:[#allocation2 + $0x3bb] sm:$0xff]  ;;  %16798 = vmatprep.subr.bf16.mxu0 %v24095_v0 }
 0x722   :  { %15113 = vmatmul.mubr.bf16.gmra.mrb[0].mxu0 %v21366_v44 }
 0x723   :  { %v21371_v47 = vpop.f32.mrb[116].mxu1  ;;  %15116 = vmatprep.mubr.msk.bf16.mxu0 %vm19832_vm0, %v24095_v0 }
 0x724   :  { %v16054_v56 = vpop.f32.mrb[117].mxu1 }
 0x725   :  { %v3170_v60 = vpop.f32.mrb[4].mxu0  ;;  %v21375_v8 = vpop.f32.mrb[118].mxu1  ;;  %v3714_v56 = vld [vmem:[#allocation2 + $0xfa] sm:$0xff] }
 0x726   :  { %18022 = vst [vmem:[%s24094_s3 + $0x380] sm:$0xff] %v3170_v60  ;;  %v14994_v13 = vpop.f32.mrb[5].mxu0  ;;  %v16055_v17 = vpop.f32.mrb[119].mxu1  ;;  %v7675_v60 = vpack.c.bf16 %v7596_v40, %v7595_v54  ;;  %v7600_v54 = vld [vmem:[#allocation2 + $0x3db] sm:$0xff] }
 0x727   :  { %v3173_v29 = vpop.f32.mrb[6].mxu0  ;;  %v3713_v13 = vld [vmem:[#allocation2 + $0xf2] sm:$0xff] }
 0x728   :  { %18034 = vst [vmem:[%s24094_s3 + $0x388] sm:$0xff] %v3173_v29  ;;  %v14995_v38 = vpop.f32.mrb[7].mxu0  ;;  %16161 = vmatmul.mubr.bf16.gmra.mrb[116].mxu1 %v7674_v26  ;;  %v21393_v10 = vpack.c.bf16 %v3714_v56, %v3713_v13  ;;  %v7598_v17 = vld [vmem:[#allocation2 + $0x3cb] sm:$0xff]  ;;  %v7597_v26 = vld [vmem:[#allocation2 + $0x3c3] sm:$0xff]  ;;  %v7599_v56 = vld [vmem:[#allocation2 + $0x3d3] sm:$0xff] }
 0x729   :  { %16164 = vmatprep.mubr.msk.bf16.mxu1 %vm19832_vm0, %v24095_v0  ;;  %v3716_v29 = vld [vmem:[#allocation2 + $0x10a] sm:$0xff]  ;;  %v7676_v30 = vpack.c.bf16 %v7598_v17, %v7597_v26  ;;  %v3715_v38 = vld [vmem:[#allocation2 + $0x102] sm:$0xff]  ;;  %v7677_v49 = vpack.c.bf16 %v7600_v54, %v7599_v56  ;;  %v3717_v13 = vld [vmem:[#allocation2 + $0x112] sm:$0xff] }
 0x72a   :  { %15117 = vmatmul.mubr.bf16.gmra.mrb[4].mxu0 %v21383_v39  ;;  %v21401_v40 = vpack.c.bf16 %v3716_v29, %v3715_v38  ;;  %v7602_v17 = vld [vmem:[#allocation2 + $0x3eb] sm:$0xff]  ;;  %v7601_v26 = vld [vmem:[#allocation2 + $0x3e3] sm:$0xff]  ;;  %v7604_v54 = vld [vmem:[#allocation2 + $0x3fb] sm:$0xff] }
 0x72b   :  { %15120 = vmatprep.mubr.msk.bf16.mxu0 %vm19832_vm0, %v24095_v0  ;;  %v3720_v29 = vld [vmem:[#allocation2 + $0x12a] sm:$0xff]  ;;  %v3719_v38 = vld [vmem:[#allocation2 + $0x122] sm:$0xff]  ;;  %v7603_v56 = vld [vmem:[#allocation2 + $0x3f3] sm:$0xff] }
 0x72c   :  { %v21415_v62 = vpack.c.bf16 %v3720_v29, %v3719_v38  ;;  %v3724_v29 = vld [vmem:[#allocation2 + $0x14a] sm:$0xff]  ;;  %v3723_v38 = vld [vmem:[#allocation2 + $0x142] sm:$0xff] }
 0x72d   :  { %v21429_v35 = vpack.c.bf16 %v3724_v29, %v3723_v38  ;;  %v3728_v29 = vld [vmem:[#allocation2 + $0x16a] sm:$0xff]  ;;  %v3727_v38 = vld [vmem:[#allocation2 + $0x162] sm:$0xff] }
 0x72e   :  { %v21443_v16 = vpack.c.bf16 %v3728_v29, %v3727_v38  ;;  %v7613_v29 = vld [vmem:[#allocation2 + $0x443] sm:$0xff] }
 0x730   :  { %16165 = vmatmul.mubr.bf16.gmra.mrb[228].mxu1 %v7675_v60  ;;  %v3718_v60 = vld [vmem:[#allocation2 + $0x11a] sm:$0xff] }
 0x731   :  { %16168 = vmatprep.mubr.msk.bf16.mxu1 %vm19832_vm0, %v24095_v0  ;;  %v21408_v9 = vpack.c.bf16 %v3718_v60, %v3717_v13  ;;  %v3722_v60 = vld [vmem:[#allocation2 + $0x13a] sm:$0xff]  ;;  %v3721_v13 = vld [vmem:[#allocation2 + $0x132] sm:$0xff] }
 0x732   :  { %15121 = vmatmul.mubr.bf16.gmra.mrb[96].mxu0 %v21393_v10  ;;  %v21422_v42 = vpack.c.bf16 %v3722_v60, %v3721_v13  ;;  %v3726_v60 = vld [vmem:[#allocation2 + $0x15a] sm:$0xff]  ;;  %v3725_v13 = vld [vmem:[#allocation2 + $0x152] sm:$0xff] }
 0x733   :  { %15124 = vmatprep.mubr.msk.bf16.mxu0 %vm19832_vm0, %v24095_v0  ;;  %v21436_v21 = vpack.c.bf16 %v3726_v60, %v3725_v13  ;;  %v3730_v60 = vld [vmem:[#allocation2 + $0x17a] sm:$0xff]  ;;  %v3729_v13 = vld [vmem:[#allocation2 + $0x172] sm:$0xff] }
 0x734   :  { %v21450_v2 = vpack.c.bf16 %v3730_v60, %v3729_v13  ;;  %v7616_v60 = vld [vmem:[#allocation2 + $0x45b] sm:$0xff] }
 0x735   :  { %v3734_v13 = vld [vmem:[#allocation2 + $0x19a] sm:$0xff] }
 0x736   :  { %v21468_v41 = vpack.c.bf16 %v3734_v13, %v3733_v58 }
 0x738   :  { %16169 = vmatmul.mubr.bf16.gmra.mrb[232].mxu1 %v7676_v30  ;;  %v7678_v30 = vpack.c.bf16 %v7602_v17, %v7601_v26  ;;  %v7606_v17 = vld [vmem:[#allocation2 + $0x40b] sm:$0xff]  ;;  %v7605_v26 = vld [vmem:[#allocation2 + $0x403] sm:$0xff] }
 0x739   :  { %16172 = vmatprep.mubr.msk.bf16.mxu1 %vm19832_vm0, %v24095_v0 }
 0x73a   :  { %15125 = vmatmul.mubr.bf16.gmra.mrb[100].mxu0 %v21401_v40 }
 0x73b   :  { %15128 = vmatprep.mubr.msk.bf16.mxu0 %vm19832_vm0, %v24095_v0 }
 0x740   :  { %16173 = vmatmul.mubr.bf16.gmra.mrb[236].mxu1 %v7677_v49  ;;  %v7679_v49 = vpack.c.bf16 %v7604_v54, %v7603_v56  ;;  %v7608_v54 = vld [vmem:[#allocation2 + $0x41b] sm:$0xff]  ;;  %v7607_v56 = vld [vmem:[#allocation2 + $0x413] sm:$0xff] }
 0x741   :  { %16176 = vmatprep.mubr.msk.bf16.mxu1 %vm19832_vm0, %v24095_v0 }
 0x742   :  { %15129 = vmatmul.mubr.bf16.gmra.mrb[104].mxu0 %v21408_v9 }
 0x743   :  { %15132 = vmatprep.mubr.msk.bf16.mxu0 %vm19832_vm0, %v24095_v0 }
 0x748   :  { %16177 = vmatmul.mubr.bf16.gmra.mrb[240].mxu1 %v7678_v30  ;;  %v7680_v30 = vpack.c.bf16 %v7606_v17, %v7605_v26  ;;  %v7610_v17 = vld [vmem:[#allocation2 + $0x42b] sm:$0xff]  ;;  %v7609_v26 = vld [vmem:[#allocation2 + $0x423] sm:$0xff] }
 0x749   :  { %16180 = vmatprep.mubr.msk.bf16.mxu1 %vm19832_vm0, %v24095_v0 }
 0x74a   :  { %15133 = vmatmul.mubr.bf16.gmra.mrb[108].mxu0 %v21415_v62 }
 0x74b   :  { %15136 = vmatprep.mubr.msk.bf16.mxu0 %vm19832_vm0, %v24095_v0 }
 0x750   :  { %16181 = vmatmul.mubr.bf16.gmra.mrb[244].mxu1 %v7679_v49  ;;  %v7681_v49 = vpack.c.bf16 %v7608_v54, %v7607_v56  ;;  %v7612_v54 = vld [vmem:[#allocation2 + $0x43b] sm:$0xff]  ;;  %v7611_v56 = vld [vmem:[#allocation2 + $0x433] sm:$0xff] }
 0x751   :  { %16184 = vmatprep.mubr.msk.bf16.mxu1 %vm19832_vm0, %v24095_v0 }
 0x752   :  { %15137 = vmatmul.mubr.bf16.gmra.mrb[112].mxu0 %v21422_v42 }
 0x753   :  { %15140 = vmatprep.mubr.msk.bf16.mxu0 %vm19832_vm0, %v24095_v0 }
 0x758   :  { %16185 = vmatmul.mubr.bf16.gmra.mrb[248].mxu1 %v7680_v30  ;;  %v7682_v30 = vpack.c.bf16 %v7610_v17, %v7609_v26  ;;  %v19810_v17 = vld [vmem:[%s24093_s2 + $0x208] sm:$0xff]  }
 0x759   :  { %16188 = vmatprep.mubr.msk.bf16.mxu1 %vm19832_vm0, %v24095_v0  ;;  %v7614_v26 = vld [vmem:[#allocation2 + $0x44b] sm:$0xff]  ;;  %16799 = vmatpush3.bf16.msra.mxu0 %v19810_v17 }
 0x75a   :  { %15141 = vmatmul.mubr.bf16.gmra.mrb[116].mxu0 %v21429_v35  ;;  %16800 = vmatprep.subr.bf16.mxu0 %v24095_v0  ;;  %v7684_v38 = vpack.c.bf16 %v7614_v26, %v7613_v29  ;;  %v7617_v26 = vld [vmem:[#allocation2 + $0x463] sm:$0xff] }
 0x75b   :  { %15144 = vmatprep.mubr.msk.bf16.mxu0 %vm19832_vm0, %v24095_v0  ;;  %v3736_v29 = vld [vmem:[#allocation2 + $0x1aa] sm:$0xff] }
 0x760   :  { %16189 = vmatmul.mubr.bf16.gmra.mrb[252].mxu1 %v7681_v49  ;;  %v7683_v49 = vpack.c.bf16 %v7612_v54, %v7611_v56  ;;  %v3731_v54 = vld [vmem:[#allocation2 + $0x182] sm:$0xff] }
 0x761   :  { %16192 = vmatprep.mubr.msk.bf16.mxu1 %vm19832_vm0, %v24095_v0 }
 0x762   :  { %15145 = vmatmul.mubr.bf16.gmra.mrb[120].mxu0 %v21436_v21 }
 0x763   :  { %15148 = vmatprep.mubr.msk.bf16.mxu0 %vm19832_vm0, %v24095_v0 }
 0x768   :  { %16193 = vmatmul.mubr.bf16.gmra.mrb[148].mxu1 %v7682_v30  ;;  %v3732_v30 = vld [vmem:[#allocation2 + $0x18a] sm:$0xff] }
 0x769   :  { %16196 = vmatprep.mubr.msk.bf16.mxu1 %vm19832_vm0, %v24095_v0  ;;  %v21461_v56 = vpack.c.bf16 %v3732_v30, %v3731_v54  ;;  %v7686_v30 = vpack.c.bf16 %v7617_v26, %v7617_v26  ;;  %v3737_v26 = vld [vmem:[#allocation2 + $0x1b2] sm:$0xff] }
 0x76a   :  { %15149 = vmatmul.mubr.bf16.gmra.mrb[124].mxu0 %v21443_v16 }
 0x76b   :  { %15152 = vmatprep.mubr.msk.bf16.mxu0 %vm19832_vm0, %v24095_v0 }
 0x770   :  { %16197 = vmatmul.mubr.bf16.gmra.mrb[152].mxu1 %v7683_v49  ;;  %v7615_v49 = vld [vmem:[#allocation2 + $0x453] sm:$0xff] }
 0x771   :  { %16200 = vmatprep.mubr.msk.bf16.mxu1 %vm19832_vm0, %v24095_v0  ;;  %v7685_v17 = vpack.c.bf16 %v7616_v60, %v7615_v49  ;;  %v19807_v60 = vld [vmem:[%s24093_s2 + $0x1c0] sm:$0xff]  }
 0x772   :  { %15153 = vmatmul.mubr.bf16.gmra.mrb[128].mxu0 %v21450_v2  ;;  %v3738_v49 = vld [vmem:[#allocation2 + $0x1ba] sm:$0xff] }
 0x773   :  { %15156 = vmatprep.mubr.msk.bf16.mxu0 %vm19832_vm0, %v24095_v0 }
 0x778   :  { %16201 = vmatmul.mubr.bf16.gmra.mrb[156].mxu1 %v7684_v38  ;;  %v3735_v38 = vld [vmem:[#allocation2 + $0x1a2] sm:$0xff] }
 0x779   :  { %16204 = vmatprep.mubr.msk.bf16.mxu1 %vm19832_vm0, %v24095_v0  ;;  %v21475_v54 = vpack.c.bf16 %v3736_v29, %v3735_v38  ;;  %v19809_v38 = vld [vmem:[%s24093_s2 + $0x1c8] sm:$0xff]  }
 0x77a   :  { %15157 = vmatmul.mubr.bf16.gmra.mrb[132].mxu0 %v21461_v56 }
 0x77b   :  { %15160 = vmatprep.mubr.msk.bf16.mxu0 %vm19832_vm0, %v24095_v0 }
 0x780   :  { %16205 = vmatmul.mubr.bf16.gmra.mrb[160].mxu1 %v7685_v17 }
 0x781   :  { %16208 = vmatprep.mubr.msk.bf16.mxu1 %vm19832_vm0, %v24095_v0 }
 0x782   :  { %15161 = vmatmul.mubr.bf16.gmra.mrb[136].mxu0 %v21468_v41 }
 0x783   :  { %15164 = vmatprep.mubr.msk.bf16.mxu0 %vm19832_vm0, %v24095_v0 }
 0x788   :  { %16209 = vmatmul.mubr.bf16.gmra.mrb[164].mxu1 %v7686_v30  ;;  %v21491_v30 = vpack.c.bf16 %v3738_v49, %v3737_v26  ;;  %v3739_v49 = vld [vmem:[#allocation2 + $0x1c2] sm:$0xff] }
 0x789   :  { %16228 = vmatprep.mubr.msk.bf16.mxu1 %vm19832_vm0, %v24095_v0 }
 0x78a   :  { %15165 = vmatmul.mubr.bf16.gmra.mrb[140].mxu0 %v21475_v54 }
 0x78b   :  { %15168 = vmatprep.mubr.msk.bf16.mxu0 %vm19832_vm0, %v24095_v0 }
 0x78d   :  { %v21482_v58 = vpop.f32.mrb[36].mxu0 }
 0x78e   :  { %v15062_v13 = vpop.f32.mrb[37].mxu0 }
 0x78f   :  { %v3991_v17 = vpop.f32.mrb[38].mxu0 }
 0x790   :  { %17113 = vst [vmem:[%s24094_s3 + $0x8] sm:$0xff] %v3991_v17  ;;  %v15063_v29 = vpop.f32.mrb[39].mxu0  ;;  %16229 = vmatmul.mubr.bf16.vlgmr.msra.gmra.mrb[0].mxu1 %v21263_v24  ;;  %v3740_v17 = vld [vmem:[#allocation2 + $0x1ca] sm:$0xff] }
 0x791   :  { %16505 = vmatpush3.bf16.msra.mxu1 %v19807_v60  ;;  %16232 = vmatprep.mubr.msk.bf16.mxu1 %vm19832_vm0, %v24095_v0  ;;  %v21510_v29 = vpack.c.bf16 %v3740_v17, %v3739_v49 }
 0x792   :  { %15169 = vmatmul.mubr.bf16.gmra.mrb[144].mxu0 %v21491_v30  ;;  %16506 = vmatprep.subr.bf16.mxu1 %v24095_v0 }
 0x793   :  { %15172 = vmatprep.mubr.msk.bf16.mxu0 %vm19832_vm0, %v24095_v0 }
 0x795   :  { %v3996_v13 = vpop.f32.mrb[40].mxu0  ;;  %16507 = vmatpush3.bf16.msra.mxu1 %v19809_v38  ;;  %v19811_v38 = vld [vmem:[%s24093_s2 + $0x1d0] sm:$0xff]  }
 0x796   :  { %17122 = vst [vmem:[%s24094_s3 + $0x10] sm:$0xff] %v3996_v13  ;;  %v15066_v24 = vpop.f32.mrb[41].mxu0  ;;  %16508 = vmatprep.subr.bf16.mxu1 %v24095_v0 }
 0x797   :  { %v3999_v60 = vpop.f32.mrb[42].mxu0  ;;  %v3742_v24 = vld [vmem:[#allocation2 + $0x1da] sm:$0xff] }
 0x798   :  { %17131 = vst [vmem:[%s24094_s3 + $0x18] sm:$0xff] %v3999_v60  ;;  %v15067_v26 = vpop.f32.mrb[43].mxu0  ;;  %16233 = vmatmul.mubr.bf16.gmra.mrb[4].mxu1 %v21270_v32  ;;  %v3741_v60 = vld [vmem:[#allocation2 + $0x1d2] sm:$0xff] }
 0x799   :  { %16236 = vmatprep.mubr.msk.bf16.mxu1 %vm19832_vm0, %v24095_v0  ;;  %16509 = vmatpush3.bf16.msra.mxu1 %v19811_v38  ;;  %v21528_v26 = vpack.c.bf16 %v3742_v24, %v3741_v60 }
 0x79a   :  { %15173 = vmatmul.mubr.bf16.gmra.mrb[148].mxu0 %v21510_v29  ;;  %16510 = vmatprep.subr.bf16.mxu1 %v24095_v0 }
 0x79b   :  { %15176 = vmatprep.mubr.msk.bf16.mxu0 %vm19832_vm0, %v24095_v0 }
 0x79d   :  { %v4004_v13 = vpop.f32.mrb[44].mxu0 }
 0x79e   :  { %17140 = vst [vmem:[%s24094_s3 + $0x20] sm:$0xff] %v4004_v13  ;;  %v15070_v32 = vpop.f32.mrb[45].mxu0  ;;  %v3744_v13 = vld [vmem:[#allocation2 + $0x1ea] sm:$0xff] }
 0x79f   :  { %v4007_v17 = vpop.f32.mrb[46].mxu0 }
 0x7a0   :  { %17149 = vst [vmem:[%s24094_s3 + $0x28] sm:$0xff] %v4007_v17  ;;  %v15071_v49 = vpop.f32.mrb[47].mxu0  ;;  %16237 = vmatmul.mubr.bf16.gmra.mrb[8].mxu1 %v21277_v45 }
 0x7a1   :  { %16240 = vmatprep.mubr.msk.bf16.mxu1 %vm19832_vm0, %v24095_v0  ;;  %v3743_v49 = vld [vmem:[#allocation2 + $0x1e2] sm:$0xff] }
 0x7a2   :  { %15177 = vmatmul.mubr.bf16.gmra.mrb[152].mxu0 %v21528_v26  ;;  %v21542_v24 = vpack.c.bf16 %v3744_v13, %v3743_v49 }
 0x7a3   :  { %15180 = vmatprep.mubr.msk.bf16.mxu0 %vm19832_vm0, %v24095_v0 }
 0x7a5   :  { %v4012_v38 = vpop.f32.mrb[48].mxu0 }
 0x7a6   :  { %17158 = vst [vmem:[%s24094_s3 + $0x30] sm:$0xff] %v4012_v38  ;;  %v15074_v32 = vpop.f32.mrb[49].mxu0  ;;  %v3746_v38 = vld [vmem:[#allocation2 + $0x1fa] sm:$0xff] }
 0x7a7   :  { %v4015_v17 = vpop.f32.mrb[50].mxu0 }
 0x7a8   :  { %17164 = vst [vmem:[%s24094_s3 + $0x38] sm:$0xff] %v4015_v17  ;;  %v15075_v45 = vpop.f32.mrb[51].mxu0  ;;  %16241 = vmatmul.mubr.bf16.gmra.mrb[12].mxu1 %v21284_v57 }
 0x7a9   :  { %16244 = vmatprep.mubr.msk.bf16.mxu1 %vm19832_vm0, %v24095_v0  ;;  %v3745_v45 = vld [vmem:[#allocation2 + $0x1f2] sm:$0xff] }
 0x7aa   :  { %15181 = vmatmul.mubr.bf16.gmra.mrb[156].mxu0 %v21542_v24  ;;  %v21556_v13 = vpack.c.bf16 %v3746_v38, %v3745_v45  ;;  %v19812_v45 = vld [vmem:[%s24093_s2 + $0x210] sm:$0xff]  }
 0x7ab   :  { %15184 = vmatprep.mubr.msk.bf16.mxu0 %vm19832_vm0, %v24095_v0  ;;  %16801 = vmatpush3.bf16.msra.mxu0 %v19812_v45 }
 0x7ac   :  { %16802 = vmatprep.subr.bf16.mxu0 %v24095_v0 }
 0x7ad   :  { %v4020_v60 = vpop.f32.mrb[52].mxu0 }
 0x7ae   :  { %17170 = vst [vmem:[%s24094_s3 + $0x40] sm:$0xff] %v4020_v60  ;;  %v15078_v32 = vpop.f32.mrb[53].mxu0  ;;  %v3748_v60 = vld [vmem:[#allocation2 + $0x20a] sm:$0xff] }
 0x7af   :  { %v4023_v17 = vpop.f32.mrb[54].mxu0 }
 0x7b0   :  { %17176 = vst [vmem:[%s24094_s3 + $0x48] sm:$0xff] %v4023_v17  ;;  %v15079_v57 = vpop.f32.mrb[55].mxu0  ;;  %16245 = vmatmul.mubr.bf16.gmra.mrb[16].mxu1 %v21291_v46 }
 0x7b1   :  { %16248 = vmatprep.mubr.msk.bf16.mxu1 %vm19832_vm0, %v24095_v0  ;;  %v3747_v57 = vld [vmem:[#allocation2 + $0x202] sm:$0xff] }
 0x7b2   :  { %15185 = vmatmul.mubr.bf16.gmra.mrb[160].mxu0 %v21556_v13  ;;  %v21570_v38 = vpack.c.bf16 %v3748_v60, %v3747_v57 }
 0x7b3   :  { %15188 = vmatprep.mubr.msk.bf16.mxu0 %vm19832_vm0, %v24095_v0 }
 0x7b5   :  { %v4028_v49 = vpop.f32.mrb[56].mxu0 }
 0x7b6   :  { %17182 = vst [vmem:[%s24094_s3 + $0x50] sm:$0xff] %v4028_v49  ;;  %v15082_v32 = vpop.f32.mrb[57].mxu0 }
 0x7b7   :  { %v4031_v17 = vpop.f32.mrb[58].mxu0  ;;  %v3750_v32 = vld [vmem:[#allocation2 + $0x21a] sm:$0xff] }
 0x7b8   :  { %17188 = vst [vmem:[%s24094_s3 + $0x58] sm:$0xff] %v4031_v17  ;;  %v15083_v46 = vpop.f32.mrb[59].mxu0  ;;  %16249 = vmatmul.mubr.bf16.gmra.mrb[20].mxu1 %v21298_v18  ;;  %v3749_v17 = vld [vmem:[#allocation2 + $0x212] sm:$0xff] }
 0x7b9   :  { %16252 = vmatprep.mubr.msk.bf16.mxu1 %vm19832_vm0, %v24095_v0  ;;  %v21588_v46 = vpack.c.bf16 %v3750_v32, %v3749_v17 }
 0x7ba   :  { %15189 = vmatmul.mubr.bf16.gmra.mrb[164].mxu0 %v21570_v38 }
 0x7bb   :  { %15192 = vmatprep.mubr.msk.bf16.mxu0 %vm19832_vm0, %v24095_v0 }
 0x7bd   :  { %v4036_v49 = vpop.f32.mrb[60].mxu0 }
 0x7be   :  { %17194 = vst [vmem:[%s24094_s3 + $0x60] sm:$0xff] %v4036_v49  ;;  %v15086_v18 = vpop.f32.mrb[61].mxu0  ;;  %v3752_v49 = vld [vmem:[#allocation2 + $0x22a] sm:$0xff] }
 0x7bf   :  { %v4039_v60 = vpop.f32.mrb[62].mxu0 }
 0x7c0   :  { %17200 = vst [vmem:[%s24094_s3 + $0x68] sm:$0xff] %v4039_v60  ;;  %v15087_v57 = vpop.f32.mrb[63].mxu0  ;;  %16253 = vmatmul.mubr.bf16.gmra.mrb[24].mxu1 %v21315_v51 }
 0x7c1   :  { %16256 = vmatprep.mubr.msk.bf16.mxu1 %vm19832_vm0, %v24095_v0  ;;  %v3751_v57 = vld [vmem:[#allocation2 + $0x222] sm:$0xff] }
 0x7c2   :  { %15193 = vmatmul.mubr.bf16.gmra.mrb[168].mxu0 %v21588_v46  ;;  %v21602_v32 = vpack.c.bf16 %v3752_v49, %v3751_v57 }
 0x7c3   :  { %15196 = vmatprep.mubr.msk.bf16.mxu0 %vm19832_vm0, %v24095_v0 }
 0x7c5   :  { %v4044_v45 = vpop.f32.mrb[64].mxu0 }
 0x7c6   :  { %17206 = vst [vmem:[%s24094_s3 + $0x70] sm:$0xff] %v4044_v45  ;;  %v15090_v18 = vpop.f32.mrb[65].mxu0  ;;  %v3754_v45 = vld [vmem:[#allocation2 + $0x23a] sm:$0xff] }
 0x7c7   :  { %v4047_v60 = vpop.f32.mrb[66].mxu0 }
 0x7c8   :  { %17212 = vst [vmem:[%s24094_s3 + $0x78] sm:$0xff] %v4047_v60  ;;  %v15091_v51 = vpop.f32.mrb[67].mxu0  ;;  %16257 = vmatmul.mubr.bf16.gmra.mrb[28].mxu1 %v21332_v22 }
 0x7c9   :  { %16260 = vmatprep.mubr.msk.bf16.mxu1 %vm19832_vm0, %v24095_v0  ;;  %v3753_v51 = vld [vmem:[#allocation2 + $0x232] sm:$0xff] }
 0x7ca   :  { %15197 = vmatmul.mubr.bf16.gmra.mrb[172].mxu0 %v21602_v32  ;;  %v21616_v49 = vpack.c.bf16 %v3754_v45, %v3753_v51 }
 0x7cb   :  { %15200 = vmatprep.mubr.msk.bf16.mxu0 %vm19832_vm0, %v24095_v0 }
 0x7cd   :  { %v4052_v17 = vpop.f32.mrb[68].mxu0 }
 0x7ce   :  { %17218 = vst [vmem:[%s24094_s3 + $0x80] sm:$0xff] %v4052_v17  ;;  %v15094_v18 = vpop.f32.mrb[69].mxu0  ;;  %v3756_v17 = vld [vmem:[#allocation2 + $0x24a] sm:$0xff] }
 0x7cf   :  { %v4055_v60 = vpop.f32.mrb[70].mxu0 }
 0x7d0   :  { %17224 = vst [vmem:[%s24094_s3 + $0x88] sm:$0xff] %v4055_v60  ;;  %v15095_v22 = vpop.f32.mrb[71].mxu0  ;;  %16261 = vmatmul.mubr.bf16.gmra.mrb[32].mxu1 %v21349_v4 }
 0x7d1   :  { %16264 = vmatprep.mubr.msk.bf16.mxu1 %vm19832_vm0, %v24095_v0  ;;  %v3755_v22 = vld [vmem:[#allocation2 + $0x242] sm:$0xff] }
 0x7d2   :  { %15201 = vmatmul.mubr.bf16.gmra.mrb[176].mxu0 %v21616_v49  ;;  %v21630_v45 = vpack.c.bf16 %v3756_v17, %v3755_v22  ;;  %v3757_v17 = vld [vmem:[#allocation2 + $0x252] sm:$0xff] }
 0x7d3   :  { %15204 = vmatprep.mubr.msk.bf16.mxu0 %vm19832_vm0, %v24095_v0 }
 0x7d5   :  { %v4060_v57 = vpop.f32.mrb[72].mxu0 }
 0x7d6   :  { %17230 = vst [vmem:[%s24094_s3 + $0x90] sm:$0xff] %v4060_v57  ;;  %v15098_v18 = vpop.f32.mrb[73].mxu0  ;;  %v17243_v57 = vld [vmem:[%s24094_s3 + $0xa0] sm:$0xff] }
 0x7d7   :  { %v4063_v60 = vpop.f32.mrb[74].mxu0  ;;  %v3758_v18 = vld [vmem:[#allocation2 + $0x25a] sm:$0xff] }
 0x7d8   :  { %17236 = vst [vmem:[%s24094_s3 + $0x98] sm:$0xff] %v4063_v60  ;;  %v15099_v4 = vpop.f32.mrb[75].mxu0  ;;  %16265 = vmatmul.mubr.bf16.gmra.mrb[36].mxu1 %v21366_v44  ;;  %v17255_v44 = vld [vmem:[%s24094_s3 + $0xa8] sm:$0xff]  ;;  %v21647_v55 = vpack.c.bf16 %v3758_v18, %v3757_v17 }
 0x7d9   :  { %16268 = vmatprep.mubr.msk.bf16.mxu1 %vm19832_vm0, %v24095_v0 }
 0x7da   :  { %15205 = vmatmul.mubr.bf16.gmra.mrb[180].mxu0 %v21630_v45 }
 0x7db   :  { %15208 = vmatprep.mubr.msk.bf16.mxu0 %vm19832_vm0, %v24095_v0 }
 0x7dd   :  { %v4068_v51 = vpop.f32.mrb[244].mxu0 }
 0x7de   :  { %v17244_v60 = vadd.f32 %v17243_v57, %v4068_v51  ;;  %v15102_v4 = vpop.f32.mrb[245].mxu0  ;;  %v19813_v51 = vld [vmem:[%s24093_s2 + $0x1d8] sm:$0xff]  }
 0x7df   :  { %v4071_v36 = vpop.f32.mrb[246].mxu0  ;;  %16511 = vmatpush3.bf16.msra.mxu1 %v19813_v51  ;;  %v17279_v4 = vld [vmem:[%s24094_s3 + $0xb8] sm:$0xff] }
 0x7e0   :  { %17245 = vst [vmem:[%s24094_s3 + $0xa0] sm:$0xff] %v17244_v60  ;;  %v17256_v22 = vadd.f32 %v17255_v44, %v4071_v36  ;;  %v15103_v0 = vpop.f32.mrb[247].mxu0  ;;  %16269 = vmatmul.mubr.bf16.gmra.mrb[208].mxu1 %v21383_v39  ;;  %v17267_v36 = vld [vmem:[%s24094_s3 + $0xb0] sm:$0xff]  ;;  %16512 = vmatprep.subr.bf16.mxu1 %v24113_v52  ;;  %v3759_v44 = vld [vmem:[#allocation2 + $0x262] sm:$0xff] }
 0x7e1   :  { %16272 = vmatprep.mubr.msk.bf16.mxu1 %vm19832_vm0, %v24113_v52  ;;  %v3760_v39 = vld [vmem:[#allocation2 + $0x26a] sm:$0xff] }
 0x7e2   :  { %17257 = vst [vmem:[%s24094_s3 + $0xa8] sm:$0xff] %v17256_v22  ;;  %15209 = vmatmul.mubr.bf16.gmra.mrb[76].mxu0 %v21647_v55  ;;  %v21671_v51 = vpack.c.bf16 %v3760_v39, %v3759_v44 }
 0x7e3   :  { %15212 = vmatprep.mubr.msk.bf16.mxu0 %vm19832_vm0, %v24113_v52 }
 0x7e5   :  { %v4076_v0 = vpop.f32.mrb[248].mxu0 }
 0x7e6   :  { %v17268_v57 = vadd.f32 %v17267_v36, %v4076_v0  ;;  %v15106_v18 = vpop.f32.mrb[249].mxu0  ;;  %v17291_v36 = vld [vmem:[%s24094_s3 + $0xc0] sm:$0xff] }
 0x7e7   :  { %v4079_v60 = vpop.f32.mrb[250].mxu0 }
 0x7e8   :  { %17269 = vst [vmem:[%s24094_s3 + $0xb0] sm:$0xff] %v17268_v57  ;;  %v17280_v17 = vadd.f32 %v17279_v4, %v4079_v60  ;;  %v15107_v22 = vpop.f32.mrb[251].mxu0  ;;  %16273 = vmatmul.mubr.bf16.gmra.mrb[212].mxu1 %v21393_v10  ;;  %v3762_v10 = vld [vmem:[#allocation2 + $0x27a] sm:$0xff]  ;;  %v17303_v60 = vld [vmem:[%s24094_s3 + $0xc8] sm:$0xff]  ;;  %v3761_v4 = vld [vmem:[#allocation2 + $0x272] sm:$0xff] }
 0x7e9   :  { %16276 = vmatprep.mubr.msk.bf16.mxu1 %vm19832_vm0, %v24113_v52  ;;  %v21691_v22 = vpack.c.bf16 %v3762_v10, %v3761_v4 }
 0x7ea   :  { %17281 = vst [vmem:[%s24094_s3 + $0xb8] sm:$0xff] %v17280_v17  ;;  %15213 = vmatmul.mubr.bf16.gmra.mrb[80].mxu0 %v21671_v51 }
 0x7eb   :  { %15216 = vmatprep.mubr.msk.bf16.mxu0 %vm19832_vm0, %v24113_v52 }
 0x7ed   :  { %v4084_v0 = vpop.f32.mrb[252].mxu0 }
 0x7ee   :  { %v17292_v39 = vadd.f32 %v17291_v36, %v4084_v0  ;;  %v15110_v57 = vpop.f32.mrb[253].mxu0  ;;  %v17315_v36 = vld [vmem:[%s24094_s3 + $0xd0] sm:$0xff] }
 0x7ef   :  { %v4087_v18 = vpop.f32.mrb[254].mxu0 }
 0x7f0   :  { %17293 = vst [vmem:[%s24094_s3 + $0xc0] sm:$0xff] %v17292_v39  ;;  %v17304_v44 = vadd.f32 %v17303_v60, %v4087_v18  ;;  %v15111_v17 = vpop.f32.mrb[255].mxu0  ;;  %16277 = vmatmul.mubr.bf16.gmra.mrb[216].mxu1 %v21401_v40  ;;  %v3764_v40 = vld [vmem:[#allocation2 + $0x28a] sm:$0xff]  ;;  %v17327_v18 = vld [vmem:[%s24094_s3 + $0xd8] sm:$0xff]  ;;  %v3763_v60 = vld [vmem:[#allocation2 + $0x282] sm:$0xff] }
 0x7f1   :  { %16280 = vmatprep.mubr.msk.bf16.mxu1 %vm19832_vm0, %v24113_v52  ;;  %v21711_v17 = vpack.c.bf16 %v3764_v40, %v3763_v60  ;;  %v3765_v60 = vld [vmem:[#allocation2 + $0x292] sm:$0xff] }
 0x7f2   :  { %17305 = vst [vmem:[%s24094_s3 + $0xc8] sm:$0xff] %v17304_v44  ;;  %15217 = vmatmul.mubr.bf16.gmra.mrb[84].mxu0 %v21691_v22 }
 0x7f3   :  { %15220 = vmatprep.mubr.msk.bf16.mxu0 %vm19832_vm0, %v24113_v52 }
 0x7f5   :  { %v4092_v0 = vpop.f32.mrb[0].mxu0 }
 0x7f6   :  { %v17316_v10 = vadd.f32 %v17315_v36, %v4092_v0  ;;  %v15114_v39 = vpop.f32.mrb[1].mxu0  ;;  %v17339_v36 = vld [vmem:[%s24094_s3 + $0xe0] sm:$0xff] }
 0x7f7   :  { %v4095_v57 = vpop.f32.mrb[2].mxu0  ;;  %v19814_v39 = vld [vmem:[%s24093_s2 + $0x218] sm:$0xff]  }
 0x7f8   :  { %17317 = vst [vmem:[%s24094_s3 + $0xd0] sm:$0xff] %v17316_v10  ;;  %v17328_v4 = vadd.f32 %v17327_v18, %v4095_v57  ;;  %v15115_v44 = vpop.f32.mrb[3].mxu0  ;;  %16281 = vmatmul.mubr.bf16.gmra.mrb[220].mxu1 %v21408_v9  ;;  %v3766_v9 = vld [vmem:[#allocation2 + $0x29a] sm:$0xff]  ;;  %v17351_v18 = vld [vmem:[%s24094_s3 + $0xe8] sm:$0xff]  ;;  %16803 = vmatpush3.bf16.msra.mxu0 %v19814_v39 }
 0x7f9   :  { %16284 = vmatprep.mubr.msk.bf16.mxu1 %vm19832_vm0, %v24113_v52  ;;  %16804 = vmatprep.subr.bf16.mxu0 %v24113_v52 }
 0x7fa   :  { %17329 = vst [vmem:[%s24094_s3 + $0xd8] sm:$0xff] %v17328_v4  ;;  %15221 = vmatmul.mubr.bf16.gmra.mrb[88].mxu0 %v21711_v17 }
 0x7fb   :  { %15224 = vmatprep.mubr.msk.bf16.mxu0 %vm19832_vm0, %v24113_v52 }
 0x7fd   :  { %v4100_v0 = vpop.f32.mrb[4].mxu0 }
 0x7fe   :  { %v17340_v40 = vadd.f32 %v17339_v36, %v4100_v0  ;;  %v15118_v10 = vpop.f32.mrb[5].mxu0  ;;  %v21734_v0 = vpack.c.bf16 %v3766_v9, %v3765_v60  ;;  %v3770_v60 = vld [vmem:[#allocation2 + $0x2ba] sm:$0xff] }
 0x7ff   :  { %v4103_v57 = vpop.f32.mrb[6].mxu0  ;;  %v3767_v10 = vld [vmem:[#allocation2 + $0x2a2] sm:$0xff] }
 0x800   :  { %17341 = vst [vmem:[%s24094_s3 + $0xe0] sm:$0xff] %v17340_v40  ;;  %v17352_v4 = vadd.f32 %v17351_v18, %v4103_v57  ;;  %v15119_v44 = vpop.f32.mrb[7].mxu0  ;;  %16285 = vmatmul.mubr.bf16.gmra.mrb[224].mxu1 %v21415_v62  ;;  %v3768_v40 = vld [vmem:[#allocation2 + $0x2aa] sm:$0xff] }
 0x801   :  { %16288 = vmatprep.mubr.msk.bf16.mxu1 %vm19832_vm0, %v24113_v52  ;;  %v21752_v57 = vpack.c.bf16 %v3768_v40, %v3767_v10 }
 0x802   :  { %17353 = vst [vmem:[%s24094_s3 + $0xe8] sm:$0xff] %v17352_v4  ;;  %15225 = vmatmul.mubr.bf16.gmra.mrb[92].mxu0 %v21734_v0 }
 0x803   :  { %15228 = vmatprep.mubr.msk.bf16.mxu0 %vm19832_vm0, %v24113_v52 }
 0x805   :  { %v4108_v36 = vpop.f32.mrb[96].mxu0 }
 0x806   :  { %17362 = vst [vmem:[%s24094_s3 + $0xf0] sm:$0xff] %v4108_v36  ;;  %v15122_v62 = vpop.f32.mrb[97].mxu0  ;;  %v3769_v36 = vld [vmem:[#allocation2 + $0x2b2] sm:$0xff] }
 0x807   :  { %v4111_v9 = vpop.f32.mrb[98].mxu0  ;;  %v21766_v40 = vpack.c.bf16 %v3770_v60, %v3769_v36 }
 0x808   :  { %17368 = vst [vmem:[%s24094_s3 + $0xf8] sm:$0xff] %v4111_v9  ;;  %v15123_v39 = vpop.f32.mrb[99].mxu0  ;;  %16289 = vmatmul.mubr.bf16.gmra.mrb[60].mxu1 %v21422_v42  ;;  %v3772_v9 = vld [vmem:[#allocation2 + $0x2ca] sm:$0xff] }
 0x809   :  { %16292 = vmatprep.mubr.msk.bf16.mxu1 %vm19832_vm0, %v24113_v52 }
 0x80a   :  { %15229 = vmatmul.mubr.bf16.gmra.mrb[204].mxu0 %v21752_v57 }
 0x80b   :  { %15232 = vmatprep.mubr.msk.bf16.mxu0 %vm19832_vm0, %v24113_v52 }
 0x80d   :  { %v4116_v18 = vpop.f32.mrb[100].mxu0 }
 0x80e   :  { %17374 = vst [vmem:[%s24094_s3 + $0x100] sm:$0xff] %v4116_v18  ;;  %v15126_v4 = vpop.f32.mrb[101].mxu0  ;;  %v3771_v18 = vld [vmem:[#allocation2 + $0x2c2] sm:$0xff] }
 0x80f   :  { %v4119_v44 = vpop.f32.mrb[102].mxu0  ;;  %v21780_v60 = vpack.c.bf16 %v3772_v9, %v3771_v18  ;;  %v3776_v18 = vld [vmem:[#allocation2 + $0x2ea] sm:$0xff] }
 0x810   :  { %17380 = vst [vmem:[%s24094_s3 + $0x108] sm:$0xff] %v4119_v44  ;;  %v15127_v42 = vpop.f32.mrb[103].mxu0  ;;  %16293 = vmatmul.mubr.bf16.gmra.mrb[64].mxu1 %v21429_v35  ;;  %v3774_v44 = vld [vmem:[#allocation2 + $0x2da] sm:$0xff] }
 0x811   :  { %16296 = vmatprep.mubr.msk.bf16.mxu1 %vm19832_vm0, %v24113_v52 }
 0x812   :  { %15233 = vmatmul.mubr.bf16.gmra.mrb[208].mxu0 %v21766_v40 }
 0x813   :  { %15236 = vmatprep.mubr.msk.bf16.mxu0 %vm19832_vm0, %v24113_v52 }
 0x815   :  { %v4124_v62 = vpop.f32.mrb[104].mxu0 }
 0x816   :  { %17386 = vst [vmem:[%s24094_s3 + $0x110] sm:$0xff] %v4124_v62  ;;  %v15130_v10 = vpop.f32.mrb[105].mxu0  ;;  %v3773_v62 = vld [vmem:[#allocation2 + $0x2d2] sm:$0xff] }
 0x817   :  { %v4127_v39 = vpop.f32.mrb[106].mxu0  ;;  %v21794_v9 = vpack.c.bf16 %v3774_v44, %v3773_v62  ;;  %v19815_v10 = vld [vmem:[%s24093_s2 + $0x1e0] sm:$0xff]  }
 0x818   :  { %17392 = vst [vmem:[%s24094_s3 + $0x118] sm:$0xff] %v4127_v39  ;;  %v15131_v35 = vpop.f32.mrb[107].mxu0  ;;  %16297 = vmatmul.mubr.bf16.gmra.mrb[68].mxu1 %v21436_v21  ;;  %v3778_v62 = vld [vmem:[#allocation2 + $0x2fa] sm:$0xff] }
 0x819   :  { %16300 = vmatprep.mubr.msk.bf16.mxu1 %vm19832_vm0, %v24113_v52  ;;  %16513 = vmatpush3.bf16.msra.mxu1 %v19815_v10 }
 0x81a   :  { %15237 = vmatmul.mubr.bf16.gmra.mrb[212].mxu0 %v21780_v60  ;;  %16514 = vmatprep.subr.bf16.mxu1 %v24113_v52 }
 0x81b   :  { %15240 = vmatprep.mubr.msk.bf16.mxu0 %vm19832_vm0, %v24113_v52 }
 0x81d   :  { %v4132_v4 = vpop.f32.mrb[108].mxu0 }
 0x81e   :  { %17398 = vst [vmem:[%s24094_s3 + $0x120] sm:$0xff] %v4132_v4  ;;  %v15134_v36 = vpop.f32.mrb[109].mxu0  ;;  %v3775_v4 = vld [vmem:[#allocation2 + $0x2e2] sm:$0xff] }
 0x81f   :  { %v4135_v42 = vpop.f32.mrb[110].mxu0  ;;  %v21812_v36 = vpack.c.bf16 %v3776_v18, %v3775_v4 }
 0x820   :  { %17404 = vst [vmem:[%s24094_s3 + $0x128] sm:$0xff] %v4135_v42  ;;  %v15135_v21 = vpop.f32.mrb[111].mxu0  ;;  %16301 = vmatmul.mubr.bf16.gmra.mrb[72].mxu1 %v21443_v16 }
 0x821   :  { %16304 = vmatprep.mubr.msk.bf16.mxu1 %vm19832_vm0, %v24113_v52 }
 0x822   :  { %15241 = vmatmul.mubr.bf16.gmra.mrb[216].mxu0 %v21794_v9 }
 0x823   :  { %15244 = vmatprep.mubr.msk.bf16.mxu0 %vm19832_vm0, %v24113_v52 }
 0x825   :  { %v4140_v39 = vpop.f32.mrb[112].mxu0 }
 0x826   :  { %17410 = vst [vmem:[%s24094_s3 + $0x130] sm:$0xff] %v4140_v39  ;;  %v15138_v16 = vpop.f32.mrb[113].mxu0  ;;  %v3777_v39 = vld [vmem:[#allocation2 + $0x2f2] sm:$0xff] }
 0x827   :  { %v4143_v35 = vpop.f32.mrb[114].mxu0  ;;  %v21826_v18 = vpack.c.bf16 %v3778_v62, %v3777_v39 }
 0x828   :  { %17416 = vst [vmem:[%s24094_s3 + $0x138] sm:$0xff] %v4143_v35  ;;  %v15139_v44 = vpop.f32.mrb[115].mxu0  ;;  %16305 = vmatmul.mubr.bf16.gmra.mrb[76].mxu1 %v21450_v2  ;;  %v3780_v35 = vld [vmem:[#allocation2 + $0x30a] sm:$0xff] }
 0x829   :  { %16308 = vmatprep.mubr.msk.bf16.mxu1 %vm19832_vm0, %v24113_v52 }
 0x82a   :  { %15245 = vmatmul.mubr.bf16.gmra.mrb[220].mxu0 %v21812_v36 }
 0x82b   :  { %15248 = vmatprep.mubr.msk.bf16.mxu0 %vm19832_vm0, %v24113_v52 }
 0x82d   :  { %v4148_v42 = vpop.f32.mrb[116].mxu0 }
 0x82e   :  { %17422 = vst [vmem:[%s24094_s3 + $0x140] sm:$0xff] %v4148_v42  ;;  %v15142_v21 = vpop.f32.mrb[117].mxu0  ;;  %v3779_v42 = vld [vmem:[#allocation2 + $0x302] sm:$0xff] }
 0x82f   :  { %v4151_v10 = vpop.f32.mrb[118].mxu0  ;;  %v21840_v62 = vpack.c.bf16 %v3780_v35, %v3779_v42  ;;  %v3784_v42 = vld [vmem:[#allocation2 + $0x32a] sm:$0xff] }
 0x830   :  { %17428 = vst [vmem:[%s24094_s3 + $0x148] sm:$0xff] %v4151_v10  ;;  %v15143_v2 = vpop.f32.mrb[119].mxu0  ;;  %16309 = vmatmul.mubr.bf16.gmra.mrb[80].mxu1 %v21461_v56  ;;  %v3782_v10 = vld [vmem:[#allocation2 + $0x31a] sm:$0xff] }
 0x831   :  { %16312 = vmatprep.mubr.msk.bf16.mxu1 %vm19832_vm0, %v24113_v52 }
 0x832   :  { %15249 = vmatmul.mubr.bf16.gmra.mrb[224].mxu0 %v21826_v18 }
 0x833   :  { %15252 = vmatprep.mubr.msk.bf16.mxu0 %vm19832_vm0, %v24113_v52 }
 0x835   :  { %v4156_v16 = vpop.f32.mrb[120].mxu0 }
 0x836   :  { %17434 = vst [vmem:[%s24094_s3 + $0x150] sm:$0xff] %v4156_v16  ;;  %v15146_v4 = vpop.f32.mrb[121].mxu0  ;;  %v3781_v16 = vld [vmem:[#allocation2 + $0x312] sm:$0xff] }
 0x837   :  { %v4159_v44 = vpop.f32.mrb[122].mxu0  ;;  %v21854_v35 = vpack.c.bf16 %v3782_v10, %v3781_v16  ;;  %v19816_v4 = vld [vmem:[%s24093_s2 + $0x220] sm:$0xff]  }
 0x838   :  { %17440 = vst [vmem:[%s24094_s3 + $0x158] sm:$0xff] %v4159_v44  ;;  %v15147_v56 = vpop.f32.mrb[123].mxu0  ;;  %16313 = vmatmul.mubr.bf16.gmra.mrb[84].mxu1 %v21468_v41  ;;  %16805 = vmatpush3.bf16.msra.mxu0 %v19816_v4  ;;  %v3786_v16 = vld [vmem:[#allocation2 + $0x33a] sm:$0xff] }
 0x839   :  { %16316 = vmatprep.mubr.msk.bf16.mxu1 %vm19832_vm0, %v24113_v52  ;;  %16806 = vmatprep.subr.bf16.mxu0 %v24113_v52 }
 0x83a   :  { %15253 = vmatmul.mubr.bf16.gmra.mrb[228].mxu0 %v21840_v62 }
 0x83b   :  { %15256 = vmatprep.mubr.msk.bf16.mxu0 %vm19832_vm0, %v24113_v52 }
 0x83d   :  { %v4164_v21 = vpop.f32.mrb[124].mxu0 }
 0x83e   :  { %17446 = vst [vmem:[%s24094_s3 + $0x160] sm:$0xff] %v4164_v21  ;;  %v15150_v39 = vpop.f32.mrb[125].mxu0  ;;  %v3783_v21 = vld [vmem:[#allocation2 + $0x322] sm:$0xff] }
 0x83f   :  { %v4167_v2 = vpop.f32.mrb[126].mxu0  ;;  %v21872_v39 = vpack.c.bf16 %v3784_v42, %v3783_v21 }
 0x840   :  { %17452 = vst [vmem:[%s24094_s3 + $0x168] sm:$0xff] %v4167_v2  ;;  %v15151_v41 = vpop.f32.mrb[127].mxu0  ;;  %16317 = vmatmul.mubr.bf16.gmra.mrb[88].mxu1 %v21475_v54 }
 0x841   :  { %16320 = vmatprep.mubr.msk.bf16.mxu1 %vm19832_vm0, %v24113_v52 }
 0x842   :  { %15257 = vmatmul.mubr.bf16.gmra.mrb[232].mxu0 %v21854_v35 }
 0x843   :  { %15260 = vmatprep.mubr.msk.bf16.mxu0 %vm19832_vm0, %v24113_v52 }
 0x845   :  { %v4172_v44 = vpop.f32.mrb[128].mxu0 }
 0x846   :  { %17458 = vst [vmem:[%s24094_s3 + $0x170] sm:$0xff] %v4172_v44  ;;  %v15154_v54 = vpop.f32.mrb[129].mxu0  ;;  %v3785_v44 = vld [vmem:[#allocation2 + $0x332] sm:$0xff] }
 0x847   :  { %v4175_v56 = vpop.f32.mrb[130].mxu0  ;;  %v21886_v42 = vpack.c.bf16 %v3786_v16, %v3785_v44  ;;  %v3787_v44 = vld [vmem:[#allocation2 + $0x342] sm:$0xff] }
 0x848   :  { %17464 = vst [vmem:[%s24094_s3 + $0x178] sm:$0xff] %v4175_v56  ;;  %v15155_v10 = vpop.f32.mrb[131].mxu0  ;;  %16321 = vmatmul.mubr.bf16.gmra.mrb[92].mxu1 %v21491_v30 }
 0x849   :  { %16324 = vmatprep.mubr.msk.bf16.mxu1 %vm19832_vm0, %v24113_v52 }
 0x84a   :  { %15261 = vmatmul.mubr.bf16.gmra.mrb[236].mxu0 %v21872_v39 }
 0x84b   :  { %15264 = vmatprep.mubr.msk.bf16.mxu0 %vm19832_vm0, %v24113_v52 }
 0x84d   :  { %v4180_v2 = vpop.f32.mrb[132].mxu0 }
 0x84e   :  { %17470 = vst [vmem:[%s24094_s3 + $0x180] sm:$0xff] %v4180_v2  ;;  %v15158_v41 = vpop.f32.mrb[133].mxu0  ;;  %v3788_v2 = vld [vmem:[#allocation2 + $0x34a] sm:$0xff] }
 0x84f   :  { %v4183_v4 = vpop.f32.mrb[134].mxu0 }
 0x850   :  { %17476 = vst [vmem:[%s24094_s3 + $0x188] sm:$0xff] %v4183_v4  ;;  %v15159_v30 = vpop.f32.mrb[135].mxu0  ;;  %16325 = vmatmul.mubr.bf16.gmra.mrb[96].mxu1 %v21510_v29 }
 0x851   :  { %16328 = vmatprep.mubr.msk.bf16.mxu1 %vm19832_vm0, %v24113_v52 }
 0x852   :  { %15265 = vmatmul.mubr.bf16.gmra.mrb[240].mxu0 %v21886_v42 }
 0x853   :  { %v21891_v54 = vpop.f32.mrb[160].mxu1  ;;  %15268 = vmatprep.mubr.msk.bf16.mxu0 %vm19832_vm0, %v24113_v52 }
 0x854   :  { %v16206_v56 = vpop.f32.mrb[161].mxu1 }
 0x855   :  { %v4188_v21 = vpop.f32.mrb[136].mxu0  ;;  %v21895_v10 = vpop.f32.mrb[162].mxu1  ;;  %v21903_v56 = vpack.c.bf16 %v3788_v2, %v3787_v44 }
 0x856   :  { %v17484_v41 = vadd.f32 %v21303_v19, %v4188_v21  ;;  %v15162_v29 = vpop.f32.mrb[137].mxu0  ;;  %v16207_v16 = vpop.f32.mrb[163].mxu1  ;;  %v19817_v19 = vld [vmem:[%s24093_s2 + $0x228] sm:$0xff]  }
 0x857   :  { %v4191_v4 = vpop.f32.mrb[138].mxu0  ;;  %16807 = vmatpush3.bf16.msra.mxu0 %v19817_v19  ;;  %v19819_v19 = vld [vmem:[%s24093_s2 + $0x238] sm:$0xff]  }
 0x858   :  { %17485 = vst [vmem:[%s24094_s3 + $0x190] sm:$0xff] %v17484_v41  ;;  %v17493_v30 = vadd.f32 %v21307_v28, %v4191_v4  ;;  %v15163_v37 = vpop.f32.mrb[139].mxu0  ;;  %16329 = vmatmul.mubr.bf16.gmra.mrb[160].mxu1 %v21528_v26  ;;  %16808 = vmatprep.subr.bf16.mxu0 %v24113_v52  ;;  %v3790_v41 = vld [vmem:[#allocation2 + $0x35a] sm:$0xff] }
 0x859   :  { %16332 = vmatprep.mubr.msk.bf16.mxu1 %vm19832_vm0, %v24113_v52  ;;  %v19818_v37 = vld [vmem:[%s24093_s2 + $0x230] sm:$0xff]  }
 0x85a   :  { %17494 = vst [vmem:[%s24094_s3 + $0x198] sm:$0xff] %v17493_v30  ;;  %15269 = vmatmul.mubr.bf16.gmra.mrb[136].mxu0 %v21903_v56  ;;  %v3789_v30 = vld [vmem:[#allocation2 + $0x352] sm:$0xff] }
 0x85b   :  { %v21914_v21 = vpop.f32.mrb[164].mxu1  ;;  %15272 = vmatprep.mubr.msk.bf16.mxu0 %vm19832_vm0, %v24113_v52  ;;  %16809 = vmatpush3.bf16.msra.mxu0 %v19818_v37 }
 0x85c   :  { %v16210_v28 = vpop.f32.mrb[165].mxu1  ;;  %16810 = vmatprep.subr.bf16.mxu0 %v24113_v52 }
 0x85d   :  { %v4196_v26 = vpop.f32.mrb[140].mxu0  ;;  %v8333_v2 = vpop.f32.mrb[166].mxu1 }
 0x85e   :  { %v17502_v29 = vadd.f32 %v21320_v53, %v4196_v26  ;;  %v15166_v16 = vpop.f32.mrb[141].mxu0  ;;  %v16211_v4 = vpop.f32.mrb[167].mxu1  ;;  %v21931_v2 = vpack.c.bf16 %v3790_v41, %v3789_v30  ;;  %v17114_v26 = vld [vmem:[%s24094_s3 + $0x8] sm:$0xff] }
 0x85f   :  { %v4199_v44 = vpop.f32.mrb[142].mxu0  ;;  %16811 = vmatpush3.bf16.msra.mxu0 %v19819_v19  ;;  %v3792_v41 = vld [vmem:[#allocation2 + $0x36a] sm:$0xff]  ;;  %v3791_v19 = vld [vmem:[#allocation2 + $0x362] sm:$0xff] }
 0x860   :  { %17503 = vst [vmem:[%s24094_s3 + $0x1a0] sm:$0xff] %v17502_v29  ;;  %v17511_v28 = vadd.f32 %v21324_v61, %v4199_v44  ;;  %v15167_v34 = vpop.f32.mrb[143].mxu0  ;;  %16333 = vmatmul.mubr.bf16.gmra.mrb[164].mxu1 %v21542_v24 }
 0x861   :  { %16336 = vmatprep.mubr.msk.bf16.mxu1 %vm19832_vm0, %v24113_v52 }
 0x862   :  { %17512 = vst [vmem:[%s24094_s3 + $0x1a8] sm:$0xff] %v17511_v28  ;;  %15273 = vmatmul.mubr.bf16.gmra.mrb[140].mxu0 %v21931_v2 }
 0x863   :  { %v9052_v53 = vpop.f32.mrb[0].mxu1  ;;  %15276 = vmatprep.mubr.msk.bf16.mxu0 %vm19832_vm0, %v24113_v52 }
 0x864   :  { %v17106_v34 = vadd.f32 %v9052_v53, %v21482_v58  ;;  %v16230_v61 = vpop.f32.mrb[1].mxu1  ;;  %v21958_v53 = vpack.c.bf16 %v3792_v41, %v3791_v19  ;;  %v3794_v41 = vld [vmem:[#allocation2 + $0x37a] sm:$0xff]  ;;  %v3793_v19 = vld [vmem:[#allocation2 + $0x372] sm:$0xff] }
 0x865   :  { %v4204_v24 = vpop.f32.mrb[144].mxu0  ;;  %v9055_v37 = vpop.f32.mrb[2].mxu1 }
 0x866   :  { %17107 = vst [vmem:[%s24094_s3] sm:$0xff] %v17106_v34  ;;  %v17520_v29 = vadd.f32 %v21337_v25, %v4204_v24  ;;  %v17115_v16 = vadd.f32 %v17114_v26, %v9055_v37  ;;  %v15170_v4 = vpop.f32.mrb[145].mxu0  ;;  %v16231_v44 = vpop.f32.mrb[3].mxu1  ;;  %v19820_v25 = vld [vmem:[%s24093_s2 + $0x1e8] sm:$0xff]   ;;  %v17132_v26 = vld [vmem:[%s24094_s3 + $0x18] sm:$0xff] }
 0x867   :  { %v4207_v30 = vpop.f32.mrb[146].mxu0  ;;  %16515 = vmatpush3.bf16.msra.mxu1 %v19820_v25  ;;  %v21990_v25 = vpack.c.bf16 %v3794_v41, %v3793_v19 }
 0x868   :  { %17521 = vst [vmem:[%s24094_s3 + $0x1b0] sm:$0xff] %v17520_v29  ;;  %17116 = vst [vmem:[%s24094_s3 + $0x8] sm:$0xff] %v17115_v16  ;;  %v17529_v58 = vadd.f32 %v21341_v33, %v4207_v30  ;;  %v15171_v28 = vpop.f32.mrb[147].mxu0  ;;  %16337 = vmatmul.mubr.bf16.gmra.mrb[0].mxu1 %v21556_v13  ;;  %v17123_v13 = vld [vmem:[%s24094_s3 + $0x10] sm:$0xff]  ;;  %16516 = vmatprep.subr.bf16.mxu1 %v24113_v52 }
 0x869   :  { %16340 = vmatprep.mubr.msk.bf16.mxu1 %vm19832_vm0, %v24113_v52 }
 0x86a   :  { %17530 = vst [vmem:[%s24094_s3 + $0x1b8] sm:$0xff] %v17529_v58  ;;  %15277 = vmatmul.mubr.bf16.gmra.mrb[144].mxu0 %v21958_v53 }
 0x86b   :  { %v9060_v33 = vpop.f32.mrb[4].mxu1  ;;  %15280 = vmatprep.mubr.msk.bf16.mxu0 %vm19832_vm0, %v24113_v52 }
 0x86c   :  { %v17124_v34 = vadd.f32 %v17123_v13, %v9060_v33  ;;  %v16234_v61 = vpop.f32.mrb[5].mxu1  ;;  %v17141_v33 = vld [vmem:[%s24094_s3 + $0x20] sm:$0xff] }
 0x86d   :  { %v4212_v24 = vpop.f32.mrb[148].mxu0  ;;  %v9063_v37 = vpop.f32.mrb[6].mxu1  ;;  %v17150_v61 = vld [vmem:[%s24094_s3 + $0x28] sm:$0xff] }
 0x86e   :  { %17125 = vst [vmem:[%s24094_s3 + $0x10] sm:$0xff] %v17124_v34  ;;  %v17538_v29 = vadd.f32 %v21354_v5, %v4212_v24  ;;  %v17133_v16 = vadd.f32 %v17132_v26, %v9063_v37  ;;  %v15174_v4 = vpop.f32.mrb[149].mxu0  ;;  %v16235_v44 = vpop.f32.mrb[7].mxu1  ;;  %v3796_v24 = vld [vmem:[#allocation2 + $0x38a] sm:$0xff] }
 0x86f   :  { %v4215_v30 = vpop.f32.mrb[150].mxu0  ;;  %v3795_v4 = vld [vmem:[#allocation2 + $0x382] sm:$0xff] }
 0x870   :  { %17539 = vst [vmem:[%s24094_s3 + $0x1c0] sm:$0xff] %v17538_v29  ;;  %17134 = vst [vmem:[%s24094_s3 + $0x18] sm:$0xff] %v17133_v16  ;;  %v17547_v58 = vadd.f32 %v21358_v11, %v4215_v30  ;;  %v15175_v28 = vpop.f32.mrb[151].mxu0  ;;  %16341 = vmatmul.mubr.bf16.gmra.mrb[4].mxu1 %v21570_v38  ;;  %v22018_v19 = vpack.c.bf16 %v3796_v24, %v3795_v4 }
 0x871   :  { %16344 = vmatprep.mubr.msk.bf16.mxu1 %vm19832_vm0, %v24113_v52  ;;  %v3797_v28 = vld [vmem:[#allocation2 + $0x392] sm:$0xff] }
 0x872   :  { %17548 = vst [vmem:[%s24094_s3 + $0x1c8] sm:$0xff] %v17547_v58  ;;  %15281 = vmatmul.mubr.bf16.gmra.mrb[148].mxu0 %v21990_v25  ;;  %v3798_v58 = vld [vmem:[#allocation2 + $0x39a] sm:$0xff] }
 0x873   :  { %v9068_v5 = vpop.f32.mrb[8].mxu1  ;;  %15284 = vmatprep.mubr.msk.bf16.mxu0 %vm19832_vm0, %v24113_v52 }
 0x874   :  { %v17142_v11 = vadd.f32 %v17141_v33, %v9068_v5  ;;  %v16238_v38 = vpop.f32.mrb[9].mxu1  ;;  %v22035_v33 = vpack.c.bf16 %v3798_v58, %v3797_v28 }
 0x875   :  { %v4220_v13 = vpop.f32.mrb[152].mxu0  ;;  %v9071_v34 = vpop.f32.mrb[10].mxu1  ;;  %v3800_v38 = vld [vmem:[#allocation2 + $0x3aa] sm:$0xff] }
 0x876   :  { %17143 = vst [vmem:[%s24094_s3 + $0x20] sm:$0xff] %v17142_v11  ;;  %v17556_v37 = vadd.f32 %v21371_v47, %v4220_v13  ;;  %v17151_v26 = vadd.f32 %v17150_v61, %v9071_v34  ;;  %v15178_v41 = vpop.f32.mrb[153].mxu0  ;;  %v16239_v29 = vpop.f32.mrb[11].mxu1  ;;  %v3799_v61 = vld [vmem:[#allocation2 + $0x3a2] sm:$0xff] }
 0x877   :  { %v4223_v16 = vpop.f32.mrb[154].mxu0  ;;  %v22049_v24 = vpack.c.bf16 %v3800_v38, %v3799_v61 }
 0x878   :  { %17557 = vst [vmem:[%s24094_s3 + $0x1d0] sm:$0xff] %v17556_v37  ;;  %17152 = vst [vmem:[%s24094_s3 + $0x28] sm:$0xff] %v17151_v26  ;;  %v17565_v44 = vadd.f32 %v21375_v8, %v4223_v16  ;;  %v15179_v30 = vpop.f32.mrb[155].mxu0  ;;  %16345 = vmatmul.mubr.bf16.gmra.mrb[8].mxu1 %v21588_v46  ;;  %v3802_v26 = vld [vmem:[#allocation2 + $0x3ba] sm:$0xff]  ;;  %v3801_v16 = vld [vmem:[#allocation2 + $0x3b2] sm:$0xff] }
 0x879   :  { %16348 = vmatprep.mubr.msk.bf16.mxu1 %vm19832_vm0, %v24113_v52  ;;  %v22063_v4 = vpack.c.bf16 %v3802_v26, %v3801_v16  ;;  %v3804_v30 = vld [vmem:[#allocation2 + $0x3ca] sm:$0xff] }
 0x87a   :  { %17566 = vst [vmem:[%s24094_s3 + $0x1d8] sm:$0xff] %v17565_v44  ;;  %15285 = vmatmul.mubr.bf16.gmra.mrb[152].mxu0 %v22018_v19 }
 0x87b   :  { %15288 = vmatprep.mubr.msk.bf16.mxu0 %vm19832_vm0, %v24113_v52 }
 0x87d   :  { %v4228_v47 = vpop.f32.mrb[156].mxu0 }
 0x87e   :  { %17572 = vst [vmem:[%s24094_s3 + $0x1e0] sm:$0xff] %v4228_v47  ;;  %v15182_v8 = vpop.f32.mrb[157].mxu0 }
 0x87f   :  { %v4231_v46 = vpop.f32.mrb[158].mxu0  ;;  %v3803_v8 = vld [vmem:[#allocation2 + $0x3c2] sm:$0xff] }
 0x880   :  { %17578 = vst [vmem:[%s24094_s3 + $0x1e8] sm:$0xff] %v4231_v46  ;;  %v15183_v5 = vpop.f32.mrb[159].mxu0  ;;  %16349 = vmatmul.mubr.bf16.gmra.mrb[120].mxu1 %v21602_v32  ;;  %v22077_v46 = vpack.c.bf16 %v3804_v30, %v3803_v8  ;;  %v19821_v8 = vld [vmem:[%s24093_s2 + $0x1f0] sm:$0xff]  }
 0x881   :  { %16352 = vmatprep.mubr.msk.bf16.mxu1 %vm19832_vm0, %v24113_v52  ;;  %v3806_v5 = vld [vmem:[#allocation2 + $0x3da] sm:$0xff]  ;;  %16517 = vmatpush3.bf16.msra.mxu1 %v19821_v8 }
 0x882   :  { %15289 = vmatmul.mubr.bf16.gmra.mrb[8].mxu0 %v22035_v33  ;;  %16518 = vmatprep.subr.bf16.mxu1 %v24113_v52 }
 0x883   :  { %15292 = vmatprep.mubr.msk.bf16.mxu0 %vm19832_vm0, %v24113_v52 }
 0x885   :  { %v4236_v11 = vpop.f32.mrb[160].mxu0 }
 0x886   :  { %17584 = vst [vmem:[%s24094_s3 + $0x1f0] sm:$0xff] %v4236_v11  ;;  %v15186_v13 = vpop.f32.mrb[161].mxu0 }
 0x887   :  { %v4239_v34 = vpop.f32.mrb[162].mxu0  ;;  %v3805_v13 = vld [vmem:[#allocation2 + $0x3d2] sm:$0xff] }
 0x888   :  { %17590 = vst [vmem:[%s24094_s3 + $0x1f8] sm:$0xff] %v4239_v34  ;;  %v15187_v32 = vpop.f32.mrb[163].mxu0  ;;  %16353 = vmatmul.mubr.bf16.gmra.mrb[124].mxu1 %v21616_v49  ;;  %v22091_v34 = vpack.c.bf16 %v3806_v5, %v3805_v13  ;;  %v17669_v13 = vld [vmem:[%s24094_s3 + $0x258] sm:$0xff] }
 0x889   :  { %16356 = vmatprep.mubr.msk.bf16.mxu1 %vm19832_vm0, %v24113_v52  ;;  %v3808_v32 = vld [vmem:[#allocation2 + $0x3ea] sm:$0xff] }
 0x88a   :  { %15293 = vmatmul.mubr.bf16.gmra.mrb[12].mxu0 %v22049_v24 }
 0x88b   :  { %15296 = vmatprep.mubr.msk.bf16.mxu0 %vm19832_vm0, %v24113_v52 }
 0x88d   :  { %v4244_v37 = vpop.f32.mrb[164].mxu0 }
 0x88e   :  { %17596 = vst [vmem:[%s24094_s3 + $0x200] sm:$0xff] %v4244_v37  ;;  %v15190_v41 = vpop.f32.mrb[165].mxu0 }
 0x88f   :  { %v4247_v29 = vpop.f32.mrb[166].mxu0  ;;  %v3807_v41 = vld [vmem:[#allocation2 + $0x3e2] sm:$0xff] }
 0x890   :  { %17602 = vst [vmem:[%s24094_s3 + $0x208] sm:$0xff] %v4247_v29  ;;  %v15191_v49 = vpop.f32.mrb[167].mxu0  ;;  %16357 = vmatmul.mubr.bf16.gmra.mrb[128].mxu1 %v21630_v45  ;;  %v22105_v29 = vpack.c.bf16 %v3808_v32, %v3807_v41  ;;  %v17681_v41 = vld [vmem:[%s24094_s3 + $0x260] sm:$0xff] }
 0x891   :  { %16360 = vmatprep.mubr.msk.bf16.mxu1 %vm19832_vm0, %v24113_v52  ;;  %v3810_v49 = vld [vmem:[#allocation2 + $0x3fa] sm:$0xff] }
 0x892   :  { %15297 = vmatmul.mubr.bf16.gmra.mrb[16].mxu0 %v22063_v4 }
 0x893   :  { %15300 = vmatprep.mubr.msk.bf16.mxu0 %vm19832_vm0, %v24113_v52 }
 0x895   :  { %v4252_v44 = vpop.f32.mrb[168].mxu0 }
 0x896   :  { %17608 = vst [vmem:[%s24094_s3 + $0x210] sm:$0xff] %v4252_v44  ;;  %v15194_v47 = vpop.f32.mrb[169].mxu0 }
 0x897   :  { %v4255_v58 = vpop.f32.mrb[170].mxu0  ;;  %v3809_v47 = vld [vmem:[#allocation2 + $0x3f2] sm:$0xff] }
 0x898   :  { %17614 = vst [vmem:[%s24094_s3 + $0x218] sm:$0xff] %v4255_v58  ;;  %v15195_v45 = vpop.f32.mrb[171].mxu0  ;;  %16361 = vmatmul.mubr.bf16.gmra.mrb[132].mxu1 %v21647_v55  ;;  %v22119_v58 = vpack.c.bf16 %v3810_v49, %v3809_v47 }
 0x899   :  { %16364 = vmatprep.mubr.msk.bf16.mxu1 %vm19832_vm0, %v24113_v52 }
 0x89a   :  { %15301 = vmatmul.mubr.bf16.gmra.mrb[20].mxu0 %v22077_v46 }
 0x89b   :  { %15304 = vmatprep.mubr.msk.bf16.mxu0 %vm19832_vm0, %v24113_v52 }
 0x89d   :  { %v4260_v28 = vpop.f32.mrb[172].mxu0 }
 0x89e   :  { %17620 = vst [vmem:[%s24094_s3 + $0x220] sm:$0xff] %v4260_v28  ;;  %v15198_v11 = vpop.f32.mrb[173].mxu0  ;;  %v3812_v28 = vld [vmem:[#allocation2 + $0x40a] sm:$0xff] }
 0x89f   :  { %v4263_v38 = vpop.f32.mrb[174].mxu0 }
 0x8a0   :  { %17626 = vst [vmem:[%s24094_s3 + $0x228] sm:$0xff] %v4263_v38  ;;  %v15199_v55 = vpop.f32.mrb[175].mxu0  ;;  %16365 = vmatmul.mubr.bf16.gmra.mrb[136].mxu1 %v21671_v51 }
 0x8a1   :  { %16368 = vmatprep.mubr.msk.bf16.mxu1 %vm19832_vm0, %v24113_v52  ;;  %v3811_v55 = vld [vmem:[#allocation2 + $0x402] sm:$0xff] }
 0x8a2   :  { %15305 = vmatmul.mubr.bf16.gmra.mrb[24].mxu0 %v22091_v34 }
 0x8a3   :  { %15308 = vmatprep.mubr.msk.bf16.mxu0 %vm19832_vm0, %v24113_v52 }
 0x8a5   :  { %v4268_v61 = vpop.f32.mrb[176].mxu0 }
 0x8a6   :  { %17632 = vst [vmem:[%s24094_s3 + $0x230] sm:$0xff] %v4268_v61  ;;  %v15202_v37 = vpop.f32.mrb[177].mxu0 }
 0x8a7   :  { %v4271_v26 = vpop.f32.mrb[178].mxu0  ;;  %v22140_v37 = vpack.c.bf16 %v3812_v28, %v3811_v55 }
 0x8a8   :  { %17638 = vst [vmem:[%s24094_s3 + $0x238] sm:$0xff] %v4271_v26  ;;  %v15203_v51 = vpop.f32.mrb[179].mxu0  ;;  %16369 = vmatmul.mubr.bf16.gmra.mrb[140].mxu1 %v21691_v22 }
 0x8a9   :  { %16372 = vmatprep.mubr.msk.bf16.mxu1 %vm19832_vm0, %v24113_v52 }
 0x8aa   :  { %15309 = vmatmul.mubr.bf16.gmra.mrb[28].mxu0 %v22105_v29 }
 0x8ab   :  { %15312 = vmatprep.mubr.msk.bf16.mxu0 %vm19832_vm0, %v24113_v52 }
 0x8ad   :  { %v4276_v16 = vpop.f32.mrb[180].mxu0 }
 0x8ae   :  { %17644 = vst [vmem:[%s24094_s3 + $0x240] sm:$0xff] %v4276_v16  ;;  %v15206_v44 = vpop.f32.mrb[181].mxu0 }
 0x8af   :  { %v4279_v30 = vpop.f32.mrb[182].mxu0  ;;  %v17693_v44 = vld [vmem:[%s24094_s3 + $0x268] sm:$0xff] }
 0x8b0   :  { %17650 = vst [vmem:[%s24094_s3 + $0x248] sm:$0xff] %v4279_v30  ;;  %v15207_v22 = vpop.f32.mrb[183].mxu0  ;;  %16373 = vmatmul.mubr.bf16.gmra.mrb[144].mxu1 %v21711_v17  ;;  %v17657_v17 = vld [vmem:[%s24094_s3 + $0x250] sm:$0xff] }
 0x8b1   :  { %16376 = vmatprep.mubr.msk.bf16.mxu1 %vm19832_vm0, %v24113_v52  ;;  %v3813_v30 = vld [vmem:[#allocation2 + $0x412] sm:$0xff] }
 0x8b2   :  { %15313 = vmatmul.mubr.bf16.gmra.mrb[32].mxu0 %v22119_v58 }
 0x8b3   :  { %15316 = vmatprep.mubr.msk.bf16.mxu0 %vm19832_vm0, %v24113_v52 }
 0x8b5   :  { %v4284_v45 = vpop.f32.mrb[76].mxu0 }
 0x8b6   :  { %v17658_v5 = vadd.f32 %v17657_v17, %v4284_v45  ;;  %v15210_v11 = vpop.f32.mrb[77].mxu0  ;;  %v17705_v17 = vld [vmem:[%s24094_s3 + $0x270] sm:$0xff] }
 0x8b7   :  { %v4287_v38 = vpop.f32.mrb[78].mxu0 }
 0x8b8   :  { %17659 = vst [vmem:[%s24094_s3 + $0x250] sm:$0xff] %v17658_v5  ;;  %v17670_v61 = vadd.f32 %v17669_v13, %v4287_v38  ;;  %v15211_v32 = vpop.f32.mrb[79].mxu0  ;;  %16377 = vmatmul.mubr.bf16.gmra.mrb[40].mxu1 %v21734_v0  ;;  %v3814_v0 = vld [vmem:[#allocation2 + $0x41a] sm:$0xff]  ;;  %v3815_v13 = vld [vmem:[#allocation2 + $0x422] sm:$0xff] }
 0x8b9   :  { %16380 = vmatprep.mubr.msk.bf16.mxu1 %vm19832_vm0, %v24113_v52  ;;  %v22160_v8 = vpack.c.bf16 %v3814_v0, %v3813_v30  ;;  %v17717_v38 = vld [vmem:[%s24094_s3 + $0x278] sm:$0xff] }
 0x8ba   :  { %17671 = vst [vmem:[%s24094_s3 + $0x258] sm:$0xff] %v17670_v61  ;;  %15317 = vmatmul.mubr.bf16.gmra.mrb[184].mxu0 %v22140_v37 }
 0x8bb   :  { %15320 = vmatprep.mubr.msk.bf16.mxu0 %vm19832_vm0, %v24113_v52 }
 0x8bd   :  { %v4292_v26 = vpop.f32.mrb[80].mxu0 }
 0x8be   :  { %v17682_v51 = vadd.f32 %v17681_v41, %v4292_v26  ;;  %v15214_v16 = vpop.f32.mrb[81].mxu0  ;;  %v17729_v41 = vld [vmem:[%s24094_s3 + $0x280] sm:$0xff] }
 0x8bf   :  { %v4295_v49 = vpop.f32.mrb[82].mxu0 }
 0x8c0   :  { %17683 = vst [vmem:[%s24094_s3 + $0x260] sm:$0xff] %v17682_v51  ;;  %v17694_v47 = vadd.f32 %v17693_v44, %v4295_v49  ;;  %v15215_v22 = vpop.f32.mrb[83].mxu0  ;;  %16381 = vmatmul.mubr.bf16.gmra.mrb[44].mxu1 %v21752_v57  ;;  %v3816_v57 = vld [vmem:[#allocation2 + $0x42a] sm:$0xff]  ;;  %v3817_v44 = vld [vmem:[#allocation2 + $0x432] sm:$0xff] }
 0x8c1   :  { %16384 = vmatprep.mubr.msk.bf16.mxu1 %vm19832_vm0, %v24113_v52  ;;  %v22180_v32 = vpack.c.bf16 %v3816_v57, %v3815_v13  ;;  %v17744_v49 = vld [vmem:[%s24094_s3 + $0x288] sm:$0xff] }
 0x8c2   :  { %17695 = vst [vmem:[%s24094_s3 + $0x268] sm:$0xff] %v17694_v47  ;;  %15321 = vmatmul.mubr.bf16.gmra.mrb[188].mxu0 %v22160_v8 }
 0x8c3   :  { %15324 = vmatprep.mubr.msk.bf16.mxu0 %vm19832_vm0, %v24113_v52 }
 0x8c5   :  { %v4300_v45 = vpop.f32.mrb[84].mxu0 }
 0x8c6   :  { %v17706_v28 = vadd.f32 %v17705_v17, %v4300_v45  ;;  %v15218_v5 = vpop.f32.mrb[85].mxu0 }
 0x8c7   :  { %v4303_v11 = vpop.f32.mrb[86].mxu0 }
 0x8c8   :  { %17707 = vst [vmem:[%s24094_s3 + $0x270] sm:$0xff] %v17706_v28  ;;  %v17718_v55 = vadd.f32 %v17717_v38, %v4303_v11  ;;  %v15219_v61 = vpop.f32.mrb[87].mxu0  ;;  %16385 = vmatmul.mubr.bf16.gmra.mrb[48].mxu1 %v21766_v40  ;;  %v3818_v40 = vld [vmem:[#allocation2 + $0x43a] sm:$0xff]  ;;  %v22213_v28 = vld [vmem:[#allocation2 + $0x442] sm:$0xff] }
 0x8c9   :  { %16388 = vmatprep.mubr.msk.bf16.mxu1 %vm19832_vm0, %v24113_v52  ;;  %v22200_v45 = vpack.c.bf16 %v3818_v40, %v3817_v44  ;;  %v3888_v61 = vpack.c.bf16 %v22213_v28, %v22213_v28 }
 0x8ca   :  { %17719 = vst [vmem:[%s24094_s3 + $0x278] sm:$0xff] %v17718_v55  ;;  %15325 = vmatmul.mubr.bf16.gmra.mrb[192].mxu0 %v22180_v32 }
 0x8cb   :  { %15328 = vmatprep.mubr.msk.bf16.mxu0 %vm19832_vm0, %v24113_v52 }
 0x8cd   :  { %v4308_v26 = vpop.f32.mrb[88].mxu0 }
 0x8ce   :  { %v17730_v0 = vadd.f32 %v17729_v41, %v4308_v26  ;;  %v15222_v51 = vpop.f32.mrb[89].mxu0  ;;  %v11280_v41 = vld [vmem:[#allocation2 + $0x4c] sm:$0xff] }
 0x8cf   :  { %v4311_v16 = vpop.f32.mrb[90].mxu0 }
 0x8d0   :  { %v22197_v30 = vadd.f32 %v17730_v0, %v20565_v3  ;;  %v17745_v47 = vadd.f32 %v17744_v49, %v4311_v16  ;;  %v15223_v22 = vpop.f32.mrb[91].mxu0  ;;  %16389 = vmatmul.mubr.bf16.gmra.mrb[52].mxu1 %v21780_v60  ;;  %v17759_v3 = vld [vmem:[%s24094_s3 + $0x290] sm:$0xff]  ;;  %v11279_v0 = vld [vmem:[#allocation2 + $0x44] sm:$0xff]  ;;  %v11282_v49 = vld [vmem:[#allocation2 + $0x5c] sm:$0xff] }
 0x8d1   :  { %16392 = vmatprep.mubr.msk.bf16.mxu1 %vm19832_vm0, %v24113_v52  ;;  %v11281_v22 = vld [vmem:[#allocation2 + $0x54] sm:$0xff] }
 0x8d2   :  { %v22205_v17 = vadd.f32 %v17745_v47, %v20569_v6  ;;  %15329 = vmatmul.mubr.bf16.gmra.mrb[196].mxu0 %v22200_v45  ;;  %v17774_v6 = vld [vmem:[%s24094_s3 + $0x298] sm:$0xff] }
 0x8d3   :  { %15332 = vmatprep.mubr.msk.bf16.mxu0 %vm19832_vm0, %v24113_v52 }
 0x8d5   :  { %v4316_v57 = vpop.f32.mrb[92].mxu0 }
 0x8d6   :  { %v17760_v60 = vadd.f32 %v17759_v3, %v4316_v57  ;;  %v15226_v5 = vpop.f32.mrb[93].mxu0  ;;  %v11417_v3 = vpack.c.bf16 %v11282_v49, %v11281_v22 }
 0x8d7   :  { %v4319_v11 = vpop.f32.mrb[94].mxu0 }
 0x8d8   :  { %v22219_v38 = vadd.f32 %v17760_v60, %v20573_v12  ;;  %v17775_v13 = vadd.f32 %v17774_v6, %v4319_v11  ;;  %v15227_v55 = vpop.f32.mrb[95].mxu0  ;;  %16393 = vmatmul.mubr.bf16.gmra.mrb[56].mxu1 %v21794_v9  ;;  %v11416_v9 = vpack.c.bf16 %v11280_v41, %v11279_v0  ;;  %v11284_v60 = vld [vmem:[#allocation2 + $0x6c] sm:$0xff]  ;;  %v11283_v6 = vld [vmem:[#allocation2 + $0x64] sm:$0xff]  ;;  %v11286_v41 = vld [vmem:[#allocation2 + $0x7c] sm:$0xff] }
 0x8d9   :  { %16396 = vmatprep.mubr.msk.bf16.mxu1 %vm19832_vm0, %v24113_v52  ;;  %v11418_v55 = vpack.c.bf16 %v11284_v60, %v11283_v6  ;;  %v11285_v0 = vld [vmem:[#allocation2 + $0x74] sm:$0xff]  ;;  %v11290_v6 = vld [vmem:[#allocation2 + $0x9c] sm:$0xff] }
 0x8da   :  { %v22227_v26 = vadd.f32 %v17775_v13, %v20577_v15  ;;  %15333 = vmatmul.mubr.bf16.gmra.mrb[200].mxu0 %v3888_v61 }
 0x8db   :  { %16812 = vmatprep.mubr.msk.bf16.mxu0 %vm19832_vm0, %v24113_v52 }
 0x8dd   :  { %v22231_v12 = vpop.f32.mrb[204].mxu0 }
 0x8de   :  { %v15230_v40 = vpop.f32.mrb[205].mxu0 }
 0x8df   :  { %v22233_v51 = vpop.f32.mrb[206].mxu0 }
 0x8e0   :  { %v15231_v16 = vpop.f32.mrb[207].mxu0  ;;  %16397 = vmatmul.mubr.bf16.gmra.mrb[168].mxu1 %v21812_v36 }
 0x8e1   :  { %16400 = vmatprep.mubr.msk.bf16.mxu1 %vm19832_vm0, %v24113_v52  ;;  %v11419_v16 = vpack.c.bf16 %v11286_v41, %v11285_v0 }
 0x8e2   :  { %16813 = vmatmul.mubr.bf16.vlgmr.msra.gmra.mrb[36].mxu0 %v11416_v9 }
 0x8e3   :  { %16816 = vmatprep.mubr.msk.bf16.mxu0 %vm19832_vm0, %v24113_v52 }
 0x8e5   :  { %v22240_v15 = vpop.f32.mrb[208].mxu0 }
 0x8e6   :  { %v15234_v44 = vpop.f32.mrb[209].mxu0 }
 0x8e7   :  { %v22242_v47 = vpop.f32.mrb[210].mxu0  ;;  %v11288_v44 = vld [vmem:[#allocation2 + $0x8c] sm:$0xff] }
 0x8e8   :  { %v15235_v57 = vpop.f32.mrb[211].mxu0  ;;  %16401 = vmatmul.mubr.bf16.gmra.mrb[172].mxu1 %v21826_v18  ;;  %v19822_v18 = vld [vmem:[%s24093_s2 + $0x1f8] sm:$0xff]  }
 0x8e9   :  { %16404 = vmatprep.mubr.msk.bf16.mxu1 %vm19832_vm0, %v24113_v52  ;;  %16519 = vmatpush3.bf16.msra.mxu1 %v19822_v18  ;;  %v11289_v18 = vld [vmem:[#allocation2 + $0x94] sm:$0xff] }
 0x8ea   :  { %16817 = vmatmul.mubr.bf16.gmra.mrb[40].mxu0 %v11417_v3  ;;  %17088 = vmatprep.subr.bf16.mxu1 %v24113_v52  ;;  %v11287_v3 = vld [vmem:[#allocation2 + $0x84] sm:$0xff] }
 0x8eb   :  { %16820 = vmatprep.mubr.msk.bf16.mxu0 %vm19832_vm0, %v24113_v52  ;;  %v11420_v60 = vpack.c.bf16 %v11288_v44, %v11287_v3  ;;  %v11294_v44 = vld [vmem:[#allocation2 + $0xbc] sm:$0xff]  ;;  %v11293_v3 = vld [vmem:[#allocation2 + $0xb4] sm:$0xff] }
 0x8ed   :  { %v22249_v36 = vpop.f32.mrb[212].mxu0 }
 0x8ee   :  { %v15238_v5 = vpop.f32.mrb[213].mxu0 }
 0x8ef   :  { %v22251_v11 = vpop.f32.mrb[214].mxu0 }
 0x8f0   :  { %v15239_v13 = vpop.f32.mrb[215].mxu0  ;;  %16405 = vmatmul.mubr.bf16.gmra.mrb[176].mxu1 %v21840_v62 }
 0x8f1   :  { %16408 = vmatprep.mubr.msk.bf16.mxu1 %vm19832_vm0, %v24113_v52 }
 0x8f2   :  { %16821 = vmatmul.mubr.bf16.gmra.mrb[44].mxu0 %v11418_v55 }
 0x8f3   :  { %16824 = vmatprep.mubr.msk.bf16.mxu0 %vm19832_vm0, %v24113_v52 }
 0x8f5   :  { %v4348_v61 = vpop.f32.mrb[216].mxu0 }
 0x8f6   :  { %17842 = vst [vmem:[%s24094_s3 + $0x2d0] sm:$0xff] %v4348_v61  ;;  %v15242_v62 = vpop.f32.mrb[217].mxu0  ;;  %v11421_v61 = vpack.c.bf16 %v11290_v6, %v11289_v18 }
 0x8f7   :  { %v4351_v40 = vpop.f32.mrb[218].mxu0  ;;  %v11292_v62 = vld [vmem:[#allocation2 + $0xac] sm:$0xff] }
 0x8f8   :  { %17848 = vst [vmem:[%s24094_s3 + $0x2d8] sm:$0xff] %v4351_v40  ;;  %v15243_v9 = vpop.f32.mrb[219].mxu0  ;;  %16409 = vmatmul.mubr.bf16.gmra.mrb[180].mxu1 %v21854_v35 }
 0x8f9   :  { %16412 = vmatprep.mubr.msk.bf16.mxu1 %vm19832_vm0, %v24113_v52  ;;  %v11291_v9 = vld [vmem:[#allocation2 + $0xa4] sm:$0xff] }
 0x8fa   :  { %16825 = vmatmul.mubr.bf16.gmra.mrb[48].mxu0 %v11419_v16  ;;  %v11422_v16 = vpack.c.bf16 %v11292_v62, %v11291_v9 }
 0x8fb   :  { %16828 = vmatprep.mubr.msk.bf16.mxu0 %vm19832_vm0, %v24113_v52 }
 0x8fd   :  { %v4356_v49 = vpop.f32.mrb[220].mxu0 }
 0x8fe   :  { %17854 = vst [vmem:[%s24094_s3 + $0x2e0] sm:$0xff] %v4356_v49  ;;  %v15246_v22 = vpop.f32.mrb[221].mxu0 }
 0x8ff   :  { %v4359_v57 = vpop.f32.mrb[222].mxu0 }
 0x900   :  { %17860 = vst [vmem:[%s24094_s3 + $0x2e8] sm:$0xff] %v4359_v57  ;;  %v15247_v35 = vpop.f32.mrb[223].mxu0  ;;  %16413 = vmatmul.mubr.bf16.gmra.mrb[184].mxu1 %v21872_v39 }
 0x901   :  { %16416 = vmatprep.mubr.msk.bf16.mxu1 %vm19832_vm0, %v24113_v52  ;;  %v11423_v35 = vpack.c.bf16 %v11294_v44, %v11293_v3 }
 0x902   :  { %16829 = vmatmul.mubr.bf16.gmra.mrb[52].mxu0 %v11420_v60 }
 0x903   :  { %16832 = vmatprep.mubr.msk.bf16.mxu0 %vm19832_vm0, %v24113_v52 }
 0x905   :  { %v4364_v5 = vpop.f32.mrb[224].mxu0 }
 0x906   :  { %17866 = vst [vmem:[%s24094_s3 + $0x2f0] sm:$0xff] %v4364_v5  ;;  %v15250_v13 = vpop.f32.mrb[225].mxu0  ;;  %v11296_v5 = vld [vmem:[#allocation2 + $0xcc] sm:$0xff] }
 0x907   :  { %v4367_v55 = vpop.f32.mrb[226].mxu0 }
 0x908   :  { %17872 = vst [vmem:[%s24094_s3 + $0x2f8] sm:$0xff] %v4367_v55  ;;  %v15251_v39 = vpop.f32.mrb[227].mxu0  ;;  %16417 = vmatmul.mubr.bf16.gmra.mrb[188].mxu1 %v21886_v42  ;;  %v11295_v55 = vld [vmem:[#allocation2 + $0xc4] sm:$0xff] }
 0x909   :  { %16420 = vmatprep.mubr.msk.bf16.mxu1 %vm19832_vm0, %v24113_v52  ;;  %v11424_v18 = vpack.c.bf16 %v11296_v5, %v11295_v55  ;;  %v17951_v5 = vld [vmem:[%s24094_s3 + $0x350] sm:$0xff] }
 0x90a   :  { %16833 = vmatmul.mubr.bf16.gmra.mrb[56].mxu0 %v11421_v61  ;;  %v11298_v61 = vld [vmem:[#allocation2 + $0xdc] sm:$0xff] }
 0x90b   :  { %16836 = vmatprep.mubr.msk.bf16.mxu0 %vm19832_vm0, %v24113_v52 }
 0x90d   :  { %v4372_v41 = vpop.f32.mrb[228].mxu0 }
 0x90e   :  { %17878 = vst [vmem:[%s24094_s3 + $0x300] sm:$0xff] %v4372_v41  ;;  %v15254_v40 = vpop.f32.mrb[229].mxu0 }
 0x90f   :  { %v4375_v0 = vpop.f32.mrb[230].mxu0  ;;  %v11297_v40 = vld [vmem:[#allocation2 + $0xd4] sm:$0xff] }
 0x910   :  { %17884 = vst [vmem:[%s24094_s3 + $0x308] sm:$0xff] %v4375_v0  ;;  %v15255_v42 = vpop.f32.mrb[231].mxu0  ;;  %16421 = vmatmul.mubr.bf16.gmra.mrb[192].mxu1 %v21903_v56  ;;  %v11425_v0 = vpack.c.bf16 %v11298_v61, %v11297_v40  ;;  %v17975_v40 = vld [vmem:[%s24094_s3 + $0x360] sm:$0xff] }
 0x911   :  { %16424 = vmatprep.mubr.msk.bf16.mxu1 %vm19832_vm0, %v24113_v52  ;;  %v17927_v42 = vld [vmem:[%s24094_s3 + $0x340] sm:$0xff] }
 0x912   :  { %16837 = vmatmul.mubr.bf16.gmra.mrb[60].mxu0 %v11422_v16  ;;  %v11300_v16 = vld [vmem:[#allocation2 + $0xec] sm:$0xff] }
 0x913   :  { %16840 = vmatprep.mubr.msk.bf16.mxu0 %vm19832_vm0, %v24113_v52 }
 0x915   :  { %v4380_v49 = vpop.f32.mrb[232].mxu0 }
 0x916   :  { %17890 = vst [vmem:[%s24094_s3 + $0x310] sm:$0xff] %v4380_v49  ;;  %v15258_v22 = vpop.f32.mrb[233].mxu0 }
 0x917   :  { %v4383_v57 = vpop.f32.mrb[234].mxu0 }
 0x918   :  { %17896 = vst [vmem:[%s24094_s3 + $0x318] sm:$0xff] %v4383_v57  ;;  %v15259_v56 = vpop.f32.mrb[235].mxu0  ;;  %16425 = vmatmul.mubr.bf16.gmra.mrb[196].mxu1 %v21931_v2  ;;  %v11299_v57 = vld [vmem:[#allocation2 + $0xe4] sm:$0xff] }
 0x919   :  { %16428 = vmatprep.mubr.msk.bf16.mxu1 %vm19832_vm0, %v24113_v52 }
 0x91a   :  { %16841 = vmatmul.mubr.bf16.gmra.mrb[64].mxu0 %v11423_v35  ;;  %v11426_v35 = vpack.c.bf16 %v11300_v16, %v11299_v57  ;;  %v11303_v16 = vld [vmem:[#allocation2 + $0x104] sm:$0xff]  ;;  %v17999_v57 = vld [vmem:[%s24094_s3 + $0x370] sm:$0xff] }
 0x91b   :  { %16844 = vmatprep.mubr.msk.bf16.mxu0 %vm19832_vm0, %v24113_v52 }
 0x91d   :  { %v4388_v60 = vpop.f32.mrb[236].mxu0 }
 0x91e   :  { %17902 = vst [vmem:[%s24094_s3 + $0x320] sm:$0xff] %v4388_v60  ;;  %v15262_v6 = vpop.f32.mrb[237].mxu0 }
 0x91f   :  { %v4391_v13 = vpop.f32.mrb[238].mxu0  ;;  %v11302_v6 = vld [vmem:[#allocation2 + $0xfc] sm:$0xff] }
 0x920   :  { %17908 = vst [vmem:[%s24094_s3 + $0x328] sm:$0xff] %v4391_v13  ;;  %v15263_v2 = vpop.f32.mrb[239].mxu0  ;;  %16429 = vmatmul.mubr.bf16.gmra.mrb[200].mxu1 %v21958_v53 }
 0x921   :  { %16432 = vmatprep.mubr.msk.bf16.mxu1 %vm19832_vm0, %v24113_v52  ;;  %v17963_v2 = vld [vmem:[%s24094_s3 + $0x358] sm:$0xff] }
 0x922   :  { %16845 = vmatmul.mubr.bf16.gmra.mrb[68].mxu0 %v11424_v18  ;;  %v11301_v18 = vld [vmem:[#allocation2 + $0xf4] sm:$0xff] }
 0x923   :  { %16848 = vmatprep.mubr.msk.bf16.mxu0 %vm19832_vm0, %v24113_v52 }
 0x925   :  { %v4396_v39 = vpop.f32.mrb[240].mxu0 }
 0x926   :  { %17914 = vst [vmem:[%s24094_s3 + $0x330] sm:$0xff] %v4396_v39  ;;  %v15266_v41 = vpop.f32.mrb[241].mxu0 }
 0x927   :  { %v4399_v62 = vpop.f32.mrb[242].mxu0  ;;  %v11427_v41 = vpack.c.bf16 %v11302_v6, %v11301_v18  ;;  %v11308_v18 = vld [vmem:[#allocation2 + $0x12c] sm:$0xff] }
 0x928   :  { %17920 = vst [vmem:[%s24094_s3 + $0x338] sm:$0xff] %v4399_v62  ;;  %v15267_v53 = vpop.f32.mrb[243].mxu0  ;;  %16433 = vmatmul.mubr.bf16.gmra.mrb[204].mxu1 %v21990_v25  ;;  %v17939_v25 = vld [vmem:[%s24094_s3 + $0x348] sm:$0xff] }
 0x929   :  { %16436 = vmatprep.mubr.msk.bf16.mxu1 %vm19832_vm0, %v24113_v52  ;;  %v11304_v53 = vld [vmem:[#allocation2 + $0x10c] sm:$0xff] }
 0x92a   :  { %16849 = vmatmul.mubr.bf16.gmra.mrb[72].mxu0 %v11425_v0 }
 0x92b   :  { %16852 = vmatprep.mubr.msk.bf16.mxu0 %vm19832_vm0, %v24113_v52 }
 0x92d   :  { %v4404_v9 = vpop.f32.mrb[136].mxu0 }
 0x92e   :  { %v17928_v49 = vadd.f32 %v17927_v42, %v4404_v9  ;;  %v15270_v44 = vpop.f32.mrb[137].mxu0  ;;  %v17987_v42 = vld [vmem:[%s24094_s3 + $0x368] sm:$0xff] }
 0x92f   :  { %v4407_v22 = vpop.f32.mrb[138].mxu0 }
 0x930   :  { %17929 = vst [vmem:[%s24094_s3 + $0x340] sm:$0xff] %v17928_v49  ;;  %v17940_v3 = vadd.f32 %v17939_v25, %v4407_v22  ;;  %v15271_v56 = vpop.f32.mrb[139].mxu0  ;;  %16437 = vmatmul.mubr.bf16.gmra.mrb[100].mxu1 %v22018_v19  ;;  %v11428_v22 = vpack.c.bf16 %v11304_v53, %v11303_v16  ;;  %v11309_v16 = vld [vmem:[#allocation2 + $0x134] sm:$0xff] }
 0x931   :  { %16440 = vmatprep.mubr.msk.bf16.mxu1 %vm19832_vm0, %v24113_v52 }
 0x932   :  { %17941 = vst [vmem:[%s24094_s3 + $0x348] sm:$0xff] %v17940_v3  ;;  %16853 = vmatmul.mubr.bf16.gmra.mrb[244].mxu0 %v11426_v35  ;;  %v11306_v3 = vld [vmem:[#allocation2 + $0x11c] sm:$0xff] }
 0x933   :  { %16856 = vmatprep.mubr.msk.bf16.mxu0 %vm19832_vm0, %v24113_v52 }
 0x935   :  { %v4412_v60 = vpop.f32.mrb[140].mxu0 }
 0x936   :  { %v17952_v13 = vadd.f32 %v17951_v5, %v4412_v60  ;;  %v15274_v19 = vpop.f32.mrb[141].mxu0  ;;  %v18011_v60 = vld [vmem:[%s24094_s3 + $0x378] sm:$0xff] }
 0x937   :  { %v4415_v55 = vpop.f32.mrb[142].mxu0  ;;  %v11305_v5 = vld [vmem:[#allocation2 + $0x114] sm:$0xff] }
 0x938   :  { %17953 = vst [vmem:[%s24094_s3 + $0x350] sm:$0xff] %v17952_v13  ;;  %v17964_v39 = vadd.f32 %v17963_v2, %v4415_v55  ;;  %v15275_v61 = vpop.f32.mrb[143].mxu0  ;;  %16441 = vmatmul.mubr.bf16.gmra.mrb[104].mxu1 %v22035_v33  ;;  %v11429_v19 = vpack.c.bf16 %v11306_v3, %v11305_v5  ;;  %v18023_v2 = vld [vmem:[%s24094_s3 + $0x380] sm:$0xff] }
 0x939   :  { %16444 = vmatprep.mubr.msk.bf16.mxu1 %vm19832_vm0, %v24113_v52 }
 0x93a   :  { %17965 = vst [vmem:[%s24094_s3 + $0x358] sm:$0xff] %v17964_v39  ;;  %16857 = vmatmul.mubr.bf16.gmra.mrb[248].mxu0 %v11427_v41  ;;  %v18035_v41 = vld [vmem:[%s24094_s3 + $0x388] sm:$0xff] }
 0x93b   :  { %16860 = vmatprep.mubr.msk.bf16.mxu0 %vm19832_vm0, %v24113_v52 }
 0x93d   :  { %v4420_v62 = vpop.f32.mrb[144].mxu0 }
 0x93e   :  { %v17976_v0 = vadd.f32 %v17975_v40, %v4420_v62  ;;  %v15278_v33 = vpop.f32.mrb[145].mxu0  ;;  %v11307_v62 = vld [vmem:[#allocation2 + $0x124] sm:$0xff] }
 0x93f   :  { %v4423_v9 = vpop.f32.mrb[146].mxu0 }
 0x940   :  { %17977 = vst [vmem:[%s24094_s3 + $0x360] sm:$0xff] %v17976_v0  ;;  %v17988_v49 = vadd.f32 %v17987_v42, %v4423_v9  ;;  %v15279_v44 = vpop.f32.mrb[147].mxu0  ;;  %16445 = vmatmul.mubr.bf16.gmra.mrb[108].mxu1 %v22049_v24  ;;  %v11430_v0 = vpack.c.bf16 %v11308_v18, %v11307_v62  ;;  %v11310_v9 = vld [vmem:[#allocation2 + $0x13c] sm:$0xff] }
 0x941   :  { %16448 = vmatprep.mubr.msk.bf16.mxu1 %vm19832_vm0, %v24113_v52  ;;  %v11431_v44 = vpack.c.bf16 %v11310_v9, %v11309_v16  ;;  %v11318_v62 = vld [vmem:[#allocation2 + $0x17c] sm:$0xff] }
 0x942   :  { %17989 = vst [vmem:[%s24094_s3 + $0x368] sm:$0xff] %v17988_v49  ;;  %16861 = vmatmul.mubr.bf16.gmra.mrb[252].mxu0 %v11428_v22 }
 0x943   :  { %16864 = vmatprep.mubr.msk.bf16.mxu0 %vm19832_vm0, %v24113_v52 }
 0x945   :  { %v4428_v25 = vpop.f32.mrb[148].mxu0 }
 0x946   :  { %v18000_v56 = vadd.f32 %v17999_v57, %v4428_v25  ;;  %v15282_v24 = vpop.f32.mrb[149].mxu0  ;;  %v11312_v25 = vld [vmem:[#allocation2 + $0x14c] sm:$0xff] }
 0x947   :  { %v4431_v35 = vpop.f32.mrb[150].mxu0 }
 0x948   :  { %18001 = vst [vmem:[%s24094_s3 + $0x370] sm:$0xff] %v18000_v56  ;;  %v18012_v6 = vadd.f32 %v18011_v60, %v4431_v35  ;;  %v15283_v13 = vpop.f32.mrb[151].mxu0  ;;  %16449 = vmatmul.mubr.bf16.gmra.mrb[112].mxu1 %v22063_v4  ;;  %v11311_v56 = vld [vmem:[#allocation2 + $0x144] sm:$0xff]  ;;  %v11314_v60 = vld [vmem:[#allocation2 + $0x15c] sm:$0xff] }
 0x949   :  { %16452 = vmatprep.mubr.msk.bf16.mxu1 %vm19832_vm0, %v24113_v52  ;;  %v11432_v24 = vpack.c.bf16 %v11312_v25, %v11311_v56  ;;  %v11313_v13 = vld [vmem:[#allocation2 + $0x154] sm:$0xff]  ;;  %v11322_v25 = vld [vmem:[#allocation2 + $0x19c] sm:$0xff] }
 0x94a   :  { %18013 = vst [vmem:[%s24094_s3 + $0x378] sm:$0xff] %v18012_v6  ;;  %16865 = vmatmul.mubr.bf16.gmra.mrb[0].mxu0 %v11429_v19  ;;  %v11433_v19 = vpack.c.bf16 %v11314_v60, %v11313_v13  ;;  %v11321_v56 = vld [vmem:[#allocation2 + $0x194] sm:$0xff]  ;;  %v11324_v60 = vld [vmem:[#allocation2 + $0x1ac] sm:$0xff] }
 0x94b   :  { %16868 = vmatprep.mubr.msk.bf16.mxu0 %vm19832_vm0, %v24113_v52 }
 0x94d   :  { %v4436_v55 = vpop.f32.mrb[152].mxu0 }
 0x94e   :  { %v18024_v39 = vadd.f32 %v18023_v2, %v4436_v55  ;;  %v15286_v4 = vpop.f32.mrb[153].mxu0  ;;  %v11316_v2 = vld [vmem:[#allocation2 + $0x16c] sm:$0xff] }
 0x94f   :  { %v4439_v61 = vpop.f32.mrb[154].mxu0  ;;  %v11315_v4 = vld [vmem:[#allocation2 + $0x164] sm:$0xff] }
 0x950   :  { %18025 = vst [vmem:[%s24094_s3 + $0x380] sm:$0xff] %v18024_v39  ;;  %v18036_v40 = vadd.f32 %v18035_v41, %v4439_v61  ;;  %v15287_v53 = vpop.f32.mrb[155].mxu0  ;;  %16453 = vmatmul.mubr.bf16.gmra.mrb[116].mxu1 %v22077_v46  ;;  %v11434_v61 = vpack.c.bf16 %v11316_v2, %v11315_v4 }
 0x951   :  { %16456 = vmatprep.mubr.msk.bf16.mxu1 %vm19832_vm0, %v24113_v52 }
 0x952   :  { %18037 = vst [vmem:[%s24094_s3 + $0x388] sm:$0xff] %v18036_v40  ;;  %16869 = vmatmul.mubr.bf16.gmra.mrb[4].mxu0 %v11430_v0  ;;  %v11317_v0 = vld [vmem:[#allocation2 + $0x174] sm:$0xff] }
 0x953   :  { %16872 = vmatprep.mubr.msk.bf16.mxu0 %vm19832_vm0, %v24113_v52 }
 0x955   :  { %v4444_v33 = vpop.f32.mrb[8].mxu0 }
 0x956   :  { %18046 = vst [vmem:[%s24094_s3 + $0x390] sm:$0xff] %v4444_v33  ;;  %v15290_v42 = vpop.f32.mrb[9].mxu0  ;;  %v11435_v33 = vpack.c.bf16 %v11318_v62, %v11317_v0  ;;  %v8879_v0 = vld [vmem:[#allocation2 + $0x462] sm:$0xff] }
 0x957   :  { %v4447_v46 = vpop.f32.mrb[10].mxu0  ;;  %v11320_v42 = vld [vmem:[#allocation2 + $0x18c] sm:$0xff] }
 0x958   :  { %18052 = vst [vmem:[%s24094_s3 + $0x398] sm:$0xff] %v4447_v46  ;;  %v15291_v49 = vpop.f32.mrb[11].mxu0  ;;  %16457 = vmatmul.mubr.bf16.gmra.mrb[228].mxu1 %v22091_v34 }
 0x959   :  { %16460 = vmatprep.mubr.msk.bf16.mxu1 %vm19832_vm0, %v24113_v52  ;;  %v11319_v49 = vld [vmem:[#allocation2 + $0x184] sm:$0xff] }
 0x95a   :  { %16873 = vmatmul.mubr.bf16.gmra.mrb[96].mxu0 %v11431_v44  ;;  %v11436_v44 = vpack.c.bf16 %v11320_v42, %v11319_v49 }
 0x95b   :  { %16876 = vmatprep.mubr.msk.bf16.mxu0 %vm19832_vm0, %v24113_v52 }
 0x95d   :  { %v4452_v22 = vpop.f32.mrb[12].mxu0 }
 0x95e   :  { %18058 = vst [vmem:[%s24094_s3 + $0x3a0] sm:$0xff] %v4452_v22  ;;  %v15294_v57 = vpop.f32.mrb[13].mxu0 }
 0x95f   :  { %v4455_v3 = vpop.f32.mrb[14].mxu0 }
 0x960   :  { %18064 = vst [vmem:[%s24094_s3 + $0x3a8] sm:$0xff] %v4455_v3  ;;  %v15295_v34 = vpop.f32.mrb[15].mxu0  ;;  %16461 = vmatmul.mubr.bf16.gmra.mrb[232].mxu1 %v22105_v29 }
 0x961   :  { %16464 = vmatprep.mubr.msk.bf16.mxu1 %vm19832_vm0, %v24113_v52  ;;  %v11437_v34 = vpack.c.bf16 %v11322_v25, %v11321_v56 }
 0x962   :  { %16877 = vmatmul.mubr.bf16.gmra.mrb[100].mxu0 %v11432_v24  ;;  %v8876_v24 = vld [vmem:[#allocation2 + $0x44a] sm:$0xff] }
 0x963   :  { %16880 = vmatprep.mubr.msk.bf16.mxu0 %vm19832_vm0, %v24113_v52 }
 0x965   :  { %v4460_v35 = vpop.f32.mrb[16].mxu0 }
 0x966   :  { %18070 = vst [vmem:[%s24094_s3 + $0x3b0] sm:$0xff] %v4460_v35  ;;  %v15298_v5 = vpop.f32.mrb[17].mxu0 }
 0x967   :  { %v4463_v6 = vpop.f32.mrb[18].mxu0 }
 0x968   :  { %18076 = vst [vmem:[%s24094_s3 + $0x3b8] sm:$0xff] %v4463_v6  ;;  %v15299_v29 = vpop.f32.mrb[19].mxu0  ;;  %16465 = vmatmul.mubr.bf16.gmra.mrb[236].mxu1 %v22119_v58  ;;  %v8948_v6 = vpack.c.bf16 %v8876_v24, %v22213_v28  ;;  %v11326_v28 = vld [vmem:[#allocation2 + $0x1bc] sm:$0xff] }
 0x969   :  { %16468 = vmatprep.mubr.msk.bf16.mxu1 %vm19832_vm0, %v24113_v52 }
 0x96a   :  { %16881 = vmatmul.mubr.bf16.gmra.mrb[104].mxu0 %v11433_v19 }
 0x96b   :  { %16884 = vmatprep.mubr.msk.bf16.mxu0 %vm19832_vm0, %v24113_v52 }
 0x96d   :  { %v4468_v55 = vpop.f32.mrb[20].mxu0 }
 0x96e   :  { %18082 = vst [vmem:[%s24094_s3 + $0x3c0] sm:$0xff] %v4468_v55  ;;  %v15302_v18 = vpop.f32.mrb[21].mxu0  ;;  %v8878_v55 = vld [vmem:[#allocation2 + $0x45a] sm:$0xff] }
 0x96f   :  { %v4471_v39 = vpop.f32.mrb[22].mxu0  ;;  %v8877_v18 = vld [vmem:[#allocation2 + $0x452] sm:$0xff] }
 0x970   :  { %18088 = vst [vmem:[%s24094_s3 + $0x3c8] sm:$0xff] %v4471_v39  ;;  %v15303_v58 = vpop.f32.mrb[23].mxu0  ;;  %16469 = vmatmul.mubr.bf16.gmra.mrb[240].mxu1 %v22140_v37  ;;  %v8949_v4 = vpack.c.bf16 %v8878_v55, %v8877_v18  ;;  %v11332_v18 = vld [vmem:[#allocation2 + $0x1ec] sm:$0xff] }
 0x971   :  { %16472 = vmatprep.mubr.msk.bf16.mxu1 %vm19832_vm0, %v24113_v52 }
 0x972   :  { %16885 = vmatmul.mubr.bf16.gmra.mrb[108].mxu0 %v11434_v61  ;;  %v11325_v61 = vld [vmem:[#allocation2 + $0x1b4] sm:$0xff] }
 0x973   :  { %16888 = vmatprep.mubr.msk.bf16.mxu0 %vm19832_vm0, %v24113_v52  ;;  %v11439_v62 = vpack.c.bf16 %v11326_v28, %v11325_v61 }
 0x975   :  { %v4476_v41 = vpop.f32.mrb[24].mxu0 }
 0x976   :  { %18094 = vst [vmem:[%s24094_s3 + $0x3d0] sm:$0xff] %v4476_v41  ;;  %v15306_v40 = vpop.f32.mrb[25].mxu0 }
 0x977   :  { %v4479_v53 = vpop.f32.mrb[26].mxu0  ;;  %v8880_v40 = vld [vmem:[#allocation2 + $0x46a] sm:$0xff] }
 0x978   :  { %18100 = vst [vmem:[%s24094_s3 + $0x3d8] sm:$0xff] %v4479_v53  ;;  %v15307_v37 = vpop.f32.mrb[27].mxu0  ;;  %16473 = vmatmul.mubr.bf16.gmra.mrb[244].mxu1 %v22160_v8 }
 0x979   :  { %16476 = vmatprep.mubr.msk.bf16.mxu1 %vm19832_vm0, %v24113_v52  ;;  %v11328_v37 = vld [vmem:[#allocation2 + $0x1cc] sm:$0xff] }
 0x97a   :  { %16889 = vmatmul.mubr.bf16.gmra.mrb[112].mxu0 %v11435_v33 }
 0x97b   :  { %16892 = vmatprep.mubr.msk.bf16.mxu0 %vm19832_vm0, %v24113_v52 }
 0x97d   :  { %v4484_v9 = vpop.f32.mrb[28].mxu0 }
 0x97e   :  { %18106 = vst [vmem:[%s24094_s3 + $0x3e0] sm:$0xff] %v4484_v9  ;;  %v15310_v46 = vpop.f32.mrb[29].mxu0  ;;  %v8950_v9 = vpack.c.bf16 %v8880_v40, %v8879_v0 }
 0x97f   :  { %v4487_v16 = vpop.f32.mrb[30].mxu0  ;;  %v11327_v46 = vld [vmem:[#allocation2 + $0x1c4] sm:$0xff] }
 0x980   :  { %18112 = vst [vmem:[%s24094_s3 + $0x3e8] sm:$0xff] %v4487_v16  ;;  %v15311_v8 = vpop.f32.mrb[31].mxu0  ;;  %16477 = vmatmul.mubr.bf16.gmra.mrb[248].mxu1 %v22180_v32  ;;  %v11440_v49 = vpack.c.bf16 %v11328_v37, %v11327_v46  ;;  %v10013_v37 = vld [vmem:[#allocation2 + $0x43] sm:$0xff] }
 0x981   :  { %16480 = vmatprep.mubr.msk.bf16.mxu1 %vm19832_vm0, %v24113_v52 }
 0x982   :  { %16893 = vmatmul.mubr.bf16.gmra.mrb[116].mxu0 %v11436_v44  ;;  %v8881_v44 = vld [vmem:[#allocation2 + $0x472] sm:$0xff] }
 0x983   :  { %16896 = vmatprep.mubr.msk.bf16.mxu0 %vm19832_vm0, %v24113_v52 }
 0x985   :  { %v4492_v22 = vpop.f32.mrb[32].mxu0 }
 0x986   :  { %18118 = vst [vmem:[%s24094_s3 + $0x3f0] sm:$0xff] %v4492_v22  ;;  %v15314_v57 = vpop.f32.mrb[33].mxu0  ;;  %v8882_v22 = vld [vmem:[#allocation2 + $0x47a] sm:$0xff] }
 0x987   :  { %v4495_v3 = vpop.f32.mrb[34].mxu0 }
 0x988   :  { %18124 = vst [vmem:[%s24094_s3 + $0x3f8] sm:$0xff] %v4495_v3  ;;  %v15315_v32 = vpop.f32.mrb[35].mxu0  ;;  %16481 = vmatmul.mubr.bf16.gmra.mrb[252].mxu1 %v22200_v45  ;;  %v11323_v45 = vld [vmem:[#allocation2 + $0x1a4] sm:$0xff] }
 0x989   :  { %16484 = vmatprep.mubr.msk.bf16.mxu1 %vm19832_vm0, %v24113_v52  ;;  %v11438_v19 = vpack.c.bf16 %v11324_v60, %v11323_v45  ;;  %v11330_v32 = vld [vmem:[#allocation2 + $0x1dc] sm:$0xff] }
 0x98a   :  { %16897 = vmatmul.mubr.bf16.gmra.mrb[120].mxu0 %v11437_v34 }
 0x98b   :  { %16900 = vmatprep.mubr.msk.bf16.mxu0 %vm19832_vm0, %v24113_v52 }
 0x98d   :  { %v4500_v35 = vpop.f32.mrb[184].mxu0 }
 0x98e   :  { %18130 = vst [vmem:[%s24094_s3 + $0x400] sm:$0xff] %v4500_v35  ;;  %v15318_v5 = vpop.f32.mrb[185].mxu0 }
 0x98f   :  { %v4503_v13 = vpop.f32.mrb[186].mxu0  ;;  %v8951_v5 = vpack.c.bf16 %v8882_v22, %v8881_v44  ;;  %v11333_v22 = vld [vmem:[#allocation2 + $0x1f4] sm:$0xff] }
 0x990   :  { %18136 = vst [vmem:[%s24094_s3 + $0x408] sm:$0xff] %v4503_v13  ;;  %v15319_v29 = vpop.f32.mrb[187].mxu0  ;;  %16485 = vmatmul.mubr.bf16.gmra.mrb[148].mxu1 %v8948_v6  ;;  %v11329_v13 = vld [vmem:[#allocation2 + $0x1d4] sm:$0xff] }
 0x991   :  { %16488 = vmatprep.mubr.msk.bf16.mxu1 %vm19832_vm0, %v24113_v52  ;;  %v8883_v29 = vld [vmem:[#allocation2 + $0x482] sm:$0xff] }
 0x992   :  { %16901 = vmatmul.mubr.bf16.gmra.mrb[124].mxu0 %v11438_v19  ;;  %v8952_v61 = vpack.c.bf16 %v8883_v29, %v8883_v29 }
 0x993   :  { %16904 = vmatprep.mubr.msk.bf16.mxu0 %vm19832_vm0, %v24113_v52 }
 0x995   :  { %v4508_v2 = vpop.f32.mrb[188].mxu0 }
 0x996   :  { %18142 = vst [vmem:[%s24094_s3 + $0x410] sm:$0xff] %v4508_v2  ;;  %v15322_v39 = vpop.f32.mrb[189].mxu0 }
 0x997   :  { %v4511_v58 = vpop.f32.mrb[190].mxu0 }
 0x998   :  { %18148 = vst [vmem:[%s24094_s3 + $0x418] sm:$0xff] %v4511_v58  ;;  %v15323_v41 = vpop.f32.mrb[191].mxu0  ;;  %16489 = vmatmul.mubr.bf16.gmra.mrb[152].mxu1 %v8949_v4 }
 0x999   :  { %16492 = vmatprep.mubr.msk.bf16.mxu1 %vm19832_vm0, %v24113_v52 }
 0x99a   :  { %16905 = vmatmul.mubr.bf16.gmra.mrb[128].mxu0 %v11439_v62  ;;  %v11331_v62 = vld [vmem:[#allocation2 + $0x1e4] sm:$0xff] }
 0x99b   :  { %16908 = vmatprep.mubr.msk.bf16.mxu0 %vm19832_vm0, %v24113_v52  ;;  %v11442_v40 = vpack.c.bf16 %v11332_v18, %v11331_v62 }
 0x99d   :  { %v4516_v53 = vpop.f32.mrb[192].mxu0 }
 0x99e   :  { %18154 = vst [vmem:[%s24094_s3 + $0x420] sm:$0xff] %v4516_v53  ;;  %v15326_v33 = vpop.f32.mrb[193].mxu0 }
 0x99f   :  { %v4519_v42 = vpop.f32.mrb[194].mxu0 }
 0x9a0   :  { %18160 = vst [vmem:[%s24094_s3 + $0x428] sm:$0xff] %v4519_v42  ;;  %v15327_v16 = vpop.f32.mrb[195].mxu0  ;;  %16493 = vmatmul.mubr.bf16.gmra.mrb[156].mxu1 %v8950_v9  ;;  %v11334_v42 = vld [vmem:[#allocation2 + $0x1fc] sm:$0xff] }
 0x9a1   :  { %16496 = vmatprep.mubr.msk.bf16.mxu1 %vm19832_vm0, %v24113_v52 }
 0x9a2   :  { %16909 = vmatmul.mubr.bf16.gmra.mrb[132].mxu0 %v11440_v49 }
 0x9a3   :  { %v9372_v8 = vpop.f32.mrb[52].mxu1  ;;  %16912 = vmatprep.mubr.msk.bf16.mxu0 %vm19832_vm0, %v24113_v52 }
 0x9a4   :  { %v17736_v25 = vadd.f32 %v22197_v30, %v9372_v8  ;;  %v16390_v57 = vpop.f32.mrb[53].mxu1 }
 0x9a5   :  { %v4524_v3 = vpop.f32.mrb[196].mxu0  ;;  %v9375_v56 = vpop.f32.mrb[54].mxu1  ;;  %v19823_v57 = vld [vmem:[%s24093_s2 + $0x200] sm:$0xff]  }
 0x9a6   :  { %17737 = vst [vmem:[%s24094_s3 + $0x280] sm:$0xff] %v17736_v25  ;;  %v18168_v34 = vadd.f32 %v21891_v54, %v4524_v3  ;;  %v17751_v24 = vadd.f32 %v22205_v17, %v9375_v56  ;;  %v15330_v35 = vpop.f32.mrb[197].mxu0  ;;  %v16391_v60 = vpop.f32.mrb[55].mxu1  ;;  %v11441_v54 = vpack.c.bf16 %v11330_v32, %v11329_v13  ;;  %v11443_v25 = vpack.c.bf16 %v11334_v42, %v11333_v22  ;;  %v10016_v3 = vld [vmem:[#allocation2 + $0x5b] sm:$0xff]  ;;  %v19828_v42 = vld [vmem:[%s24093_s2 + $0x228] sm:$0xff]  }
 0x9a7   :  { %v4527_v6 = vpop.f32.mrb[198].mxu0  ;;  %v10015_v35 = vld [vmem:[#allocation2 + $0x53] sm:$0xff] }
 0x9a8   :  { %18169 = vst [vmem:[%s24094_s3 + $0x430] sm:$0xff] %v18168_v34  ;;  %17752 = vst [vmem:[%s24094_s3 + $0x288] sm:$0xff] %v17751_v24  ;;  %v18174_v30 = vadd.f32 %v21895_v10, %v4527_v6  ;;  %v15331_v45 = vpop.f32.mrb[199].mxu0  ;;  %16497 = vmatmul.mubr.bf16.gmra.mrb[52].mxu1 %v8951_v5  ;;  %v11336_v60 = vld [vmem:[#allocation2 + $0x20c] sm:$0xff] }
 0x9a9   :  { %16500 = vmatprep.mubr.msk.bf16.mxu1 %vm19832_vm0, %v24113_v52  ;;  %v19824_v5 = vld [vmem:[%s24093_s2 + $0x208] sm:$0xff]  }
 0x9aa   :  { %18175 = vst [vmem:[%s24094_s3 + $0x438] sm:$0xff] %v18174_v30  ;;  %16913 = vmatmul.mubr.bf16.gmra.mrb[156].mxu0 %v11441_v54  ;;  %v11335_v54 = vld [vmem:[#allocation2 + $0x204] sm:$0xff] }
 0x9ab   :  { %v9380_v17 = vpop.f32.mrb[56].mxu1  ;;  %16916 = vmatprep.mubr.msk.bf16.mxu0 %vm19832_vm0, %v24113_v52  ;;  %v11444_v29 = vpack.c.bf16 %v11336_v60, %v11335_v54  ;;  %v10023_v54 = vld [vmem:[#allocation2 + $0x93] sm:$0xff] }
 0x9ac   :  { %v17766_v19 = vadd.f32 %v22219_v38, %v9380_v17  ;;  %v16394_v55 = vpop.f32.mrb[57].mxu1 }
 0x9ad   :  { %v4532_v10 = vpop.f32.mrb[200].mxu0  ;;  %v9383_v2 = vpop.f32.mrb[58].mxu1  ;;  %v10018_v55 = vld [vmem:[#allocation2 + $0x6b] sm:$0xff] }
 0x9ae   :  { %17767 = vst [vmem:[%s24094_s3 + $0x290] sm:$0xff] %v17766_v19  ;;  %v18180_v28 = vadd.f32 %v21914_v21, %v4532_v10  ;;  %v17781_v39 = vadd.f32 %v22227_v26, %v9383_v2  ;;  %v15334_v4 = vpop.f32.mrb[201].mxu0  ;;  %v16395_v58 = vpop.f32.mrb[59].mxu1  ;;  %v10014_v21 = vld [vmem:[#allocation2 + $0x4b] sm:$0xff] }
 0x9af   :  { %v4535_v41 = vpop.f32.mrb[202].mxu0  ;;  %v10150_v46 = vpack.c.bf16 %v10014_v21, %v10013_v37  ;;  %v11338_v4 = vld [vmem:[#allocation2 + $0x21c] sm:$0xff]  ;;  %v10019_v37 = vld [vmem:[#allocation2 + $0x73] sm:$0xff] }
 0x9b0   :  { %18181 = vst [vmem:[%s24094_s3 + $0x440] sm:$0xff] %v18180_v28  ;;  %17782 = vst [vmem:[%s24094_s3 + $0x298] sm:$0xff] %v17781_v39  ;;  %v15335_v38 = vpop.f32.mrb[203].mxu0  ;;  %16501 = vmatmul.mubr.bf16.gmra.mrb[56].mxu1 %v8952_v61  ;;  %v10017_v39 = vld [vmem:[#allocation2 + $0x63] sm:$0xff]  ;;  %v19826_v58 = vld [vmem:[%s24093_s2 + $0x218] sm:$0xff]  }
 0x9b1   :  { %16520 = vmatprep.mubr.msk.bf16.mxu1 %vm19832_vm0, %v24113_v52 }
 0x9b2   :  { %16917 = vmatmul.mubr.bf16.gmra.mrb[160].mxu0 %v11442_v40  ;;  %v11337_v40 = vld [vmem:[#allocation2 + $0x214] sm:$0xff] }
 0x9b3   :  { %v9388_v26 = vpop.f32.mrb[168].mxu1  ;;  %16920 = vmatprep.mubr.msk.bf16.mxu0 %vm19832_vm0, %v24113_v52 }
 0x9b4   :  { %v17790_v53 = vadd.f32 %v9388_v26, %v22231_v12  ;;  %v16398_v0 = vpop.f32.mrb[169].mxu1  ;;  %v11445_v26 = vpack.c.bf16 %v11338_v4, %v11337_v40  ;;  %v10025_v4 = vld [vmem:[#allocation2 + $0xa3] sm:$0xff] }
 0x9b5   :  { %v9391_v33 = vpop.f32.mrb[170].mxu1  ;;  %v22569_v9 = vpop.f32.mrb[36].mxu0 }
 0x9b6   :  { %17791 = vst [vmem:[%s24094_s3 + $0x2a0] sm:$0xff] %v17790_v53  ;;  %v17799_v16 = vadd.f32 %v9391_v33, %v22233_v51  ;;  %v16399_v49 = vpop.f32.mrb[171].mxu1  ;;  %v16814_v8 = vpop.f32.mrb[37].mxu0  ;;  %v10020_v53 = vld [vmem:[#allocation2 + $0x7b] sm:$0xff]  ;;  %v11340_v33 = vld [vmem:[#allocation2 + $0x22c] sm:$0xff] }
 0x9b7   :  { %v22575_v44 = vpop.f32.mrb[38].mxu0  ;;  %v11339_v8 = vld [vmem:[#allocation2 + $0x224] sm:$0xff] }
 0x9b8   :  { %17800 = vst [vmem:[%s24094_s3 + $0x2a8] sm:$0xff] %v17799_v16  ;;  %16521 = vmatmul.mubr.bf16.vlgmr.msra.gmra.mrb[168].mxu1 %v10150_v46  ;;  %v16815_v12 = vpop.f32.mrb[39].mxu0  ;;  %v10153_v16 = vpack.c.bf16 %v10020_v53, %v10019_v37  ;;  %v10027_v53 = vld [vmem:[#allocation2 + $0xb3] sm:$0xff] }
 0x9b9   :  { %17096 = vmatpush3.bf16.msra.mxu1 %v19823_v57  ;;  %16524 = vmatprep.mubr.msk.bf16.mxu1 %vm19832_vm0, %v24113_v52  ;;  %v11446_v12 = vpack.c.bf16 %v11340_v33, %v11339_v8  ;;  %v10022_v57 = vld [vmem:[#allocation2 + $0x8b] sm:$0xff] }
 0x9ba   :  { %16921 = vmatmul.mubr.bf16.gmra.mrb[164].mxu0 %v11443_v25  ;;  %17089 = vmatprep.subr.bf16.mxu1 %v24113_v52  ;;  %v19829_v25 = vld [vmem:[%s24093_s2 + $0x230] sm:$0xff]  }
 0x9bb   :  { %v9396_v51 = vpop.f32.mrb[172].mxu1  ;;  %16924 = vmatprep.mubr.msk.bf16.mxu0 %vm19832_vm0, %v24113_v52  ;;  %v11348_v37 = vld [vmem:[#allocation2 + $0x26c] sm:$0xff] }
 0x9bc   :  { %v17808_v56 = vadd.f32 %v9396_v51, %v22240_v15  ;;  %v16402_v32 = vpop.f32.mrb[173].mxu1  ;;  %v10151_v15 = vpack.c.bf16 %v10016_v3, %v10015_v35  ;;  %v10021_v3 = vld [vmem:[#allocation2 + $0x83] sm:$0xff] }
 0x9bd   :  { %v9399_v34 = vpop.f32.mrb[174].mxu1  ;;  %v22589_v24 = vpop.f32.mrb[40].mxu0  ;;  %17097 = vmatpush3.bf16.msra.mxu1 %v19824_v5  ;;  %v19830_v32 = vld [vmem:[%s24093_s2 + $0x238] sm:$0xff]   ;;  %v10154_v35 = vpack.c.bf16 %v10022_v57, %v10021_v3  ;;  %v10029_v57 = vld [vmem:[#allocation2 + $0xc3] sm:$0xff] }
 0x9be   :  { %17809 = vst [vmem:[%s24094_s3 + $0x2b0] sm:$0xff] %v17808_v56  ;;  %v17817_v6 = vadd.f32 %v9399_v34, %v22242_v47  ;;  %v16403_v13 = vpop.f32.mrb[175].mxu1  ;;  %v16818_v30 = vpop.f32.mrb[41].mxu0  ;;  %17090 = vmatprep.subr.bf16.mxu1 %v24113_v52  ;;  %v19825_v47 = vld [vmem:[%s24093_s2 + $0x210] sm:$0xff]   ;;  %v11342_v56 = vld [vmem:[#allocation2 + $0x23c] sm:$0xff] }
 0x9bf   :  { %v22599_v45 = vpop.f32.mrb[42].mxu0  ;;  %v11341_v5 = vld [vmem:[#allocation2 + $0x234] sm:$0xff]  ;;  %v11350_v3 = vld [vmem:[#allocation2 + $0x27c] sm:$0xff] }
 0x9c0   :  { %17818 = vst [vmem:[%s24094_s3 + $0x2b8] sm:$0xff] %v17817_v6  ;;  %16525 = vmatmul.mubr.bf16.gmra.mrb[172].mxu1 %v10151_v15  ;;  %v16819_v17 = vpop.f32.mrb[43].mxu0  ;;  %v11447_v13 = vpack.c.bf16 %v11342_v56, %v11341_v5  ;;  %v10024_v30 = vld [vmem:[#allocation2 + $0x9b] sm:$0xff] }
 0x9c1   :  { %16528 = vmatprep.mubr.msk.bf16.mxu1 %vm19832_vm0, %v24113_v52  ;;  %17098 = vmatpush3.bf16.msra.mxu1 %v19825_v47  ;;  %v11344_v17 = vld [vmem:[#allocation2 + $0x24c] sm:$0xff]  ;;  %v10155_v47 = vpack.c.bf16 %v10024_v30, %v10023_v54 }
 0x9c2   :  { %16925 = vmatmul.mubr.bf16.gmra.mrb[168].mxu0 %v11444_v29  ;;  %17091 = vmatprep.subr.bf16.mxu1 %v24113_v52  ;;  %v10031_v54 = vld [vmem:[#allocation2 + $0xd3] sm:$0xff] }
 0x9c3   :  { %v9404_v19 = vpop.f32.mrb[176].mxu1  ;;  %16928 = vmatprep.mubr.msk.bf16.mxu0 %vm19832_vm0, %v24113_v52 }
 0x9c4   :  { %v17826_v10 = vadd.f32 %v9404_v19, %v22249_v36  ;;  %v16406_v2 = vpop.f32.mrb[177].mxu1  ;;  %v10152_v36 = vpack.c.bf16 %v10018_v55, %v10017_v39  ;;  %v11343_v55 = vld [vmem:[#allocation2 + $0x244] sm:$0xff] }
 0x9c5   :  { %v9407_v18 = vpop.f32.mrb[178].mxu1  ;;  %v22613_v28 = vpop.f32.mrb[44].mxu0  ;;  %17099 = vmatpush3.bf16.msra.mxu1 %v19826_v58  ;;  %v11448_v2 = vpack.c.bf16 %v11344_v17, %v11343_v55  ;;  %v11346_v58 = vld [vmem:[#allocation2 + $0x25c] sm:$0xff]  ;;  %v11352_v17 = vld [vmem:[#allocation2 + $0x28c] sm:$0xff] }
 0x9c6   :  { %17827 = vst [vmem:[%s24094_s3 + $0x2c0] sm:$0xff] %v17826_v10  ;;  %v17835_v61 = vadd.f32 %v9407_v18, %v22251_v11  ;;  %v16407_v41 = vpop.f32.mrb[179].mxu1  ;;  %v16822_v62 = vpop.f32.mrb[45].mxu0  ;;  %17092 = vmatprep.subr.bf16.mxu1 %v24113_v52  ;;  %v19827_v11 = vld [vmem:[%s24093_s2 + $0x220] sm:$0xff]   ;;  %v10026_v18 = vld [vmem:[#allocation2 + $0xab] sm:$0xff] }
 0x9c7   :  { %v22623_v38 = vpop.f32.mrb[46].mxu0  ;;  %v10156_v41 = vpack.c.bf16 %v10026_v18, %v10025_v4  ;;  %v10034_v4 = vld [vmem:[#allocation2 + $0xeb] sm:$0xff] }
 0x9c8   :  { %17836 = vst [vmem:[%s24094_s3 + $0x2c8] sm:$0xff] %v17835_v61  ;;  %16529 = vmatmul.mubr.bf16.gmra.mrb[176].mxu1 %v10152_v36  ;;  %v16823_v21 = vpop.f32.mrb[47].mxu0  ;;  %v11345_v36 = vld [vmem:[#allocation2 + $0x254] sm:$0xff] }
 0x9c9   :  { %16532 = vmatprep.mubr.msk.bf16.mxu1 %vm19832_vm0, %v24113_v52  ;;  %17100 = vmatpush3.bf16.msra.mxu1 %v19827_v11  ;;  %v11449_v21 = vpack.c.bf16 %v11346_v58, %v11345_v36 }
 0x9ca   :  { %16929 = vmatmul.mubr.bf16.gmra.mrb[172].mxu0 %v11445_v26  ;;  %17093 = vmatprep.subr.bf16.mxu1 %v24113_v52  ;;  %v10028_v26 = vld [vmem:[#allocation2 + $0xbb] sm:$0xff] }
 0x9cb   :  { %16932 = vmatprep.mubr.msk.bf16.mxu0 %vm19832_vm0, %v24113_v52 }
 0x9cd   :  { %v22636_v0 = vpop.f32.mrb[48].mxu0  ;;  %17101 = vmatpush3.bf16.msra.mxu1 %v19828_v42  ;;  %v10157_v42 = vpack.c.bf16 %v10028_v26, %v10027_v53  ;;  %v11353_v26 = vld [vmem:[#allocation2 + $0x294] sm:$0xff] }
 0x9ce   :  { %v16826_v46 = vpop.f32.mrb[49].mxu0  ;;  %17094 = vmatprep.subr.bf16.mxu1 %v24113_v52 }
 0x9cf   :  { %v22642_v49 = vpop.f32.mrb[50].mxu0 }
 0x9d0   :  { %16533 = vmatmul.mubr.bf16.gmra.mrb[12].mxu1 %v10153_v16  ;;  %v16827_v22 = vpop.f32.mrb[51].mxu0  ;;  %v11347_v16 = vld [vmem:[#allocation2 + $0x264] sm:$0xff] }
 0x9d1   :  { %16536 = vmatprep.mubr.msk.bf16.mxu1 %vm19832_vm0, %v24113_v52  ;;  %17102 = vmatpush3.bf16.msra.mxu1 %v19829_v25  ;;  %v11450_v22 = vpack.c.bf16 %v11348_v37, %v11347_v16  ;;  %v10035_v16 = vld [vmem:[#allocation2 + $0xf3] sm:$0xff] }
 0x9d2   :  { %16933 = vmatmul.mubr.bf16.gmra.mrb[176].mxu0 %v11446_v12  ;;  %17095 = vmatprep.subr.bf16.mxu1 %v24113_v52  ;;  %v10030_v12 = vld [vmem:[#allocation2 + $0xcb] sm:$0xff] }
 0x9d3   :  { %16936 = vmatprep.mubr.msk.bf16.mxu0 %vm19832_vm0, %v24113_v52 }
 0x9d5   :  { %v22652_v51 = vpop.f32.mrb[52].mxu0  ;;  %17103 = vmatpush3.bf16.msra.mxu1 %v19830_v32  ;;  %v10158_v32 = vpack.c.bf16 %v10030_v12, %v10029_v57 }
 0x9d6   :  { %v16830_v34 = vpop.f32.mrb[53].mxu0 }
 0x9d7   :  { %v22657_v60 = vpop.f32.mrb[54].mxu0 }
 0x9d8   :  { %16537 = vmatmul.mubr.bf16.gmra.mrb[16].mxu1 %v10154_v35  ;;  %v16831_v6 = vpop.f32.mrb[55].mxu0  ;;  %v11349_v35 = vld [vmem:[#allocation2 + $0x274] sm:$0xff] }
 0x9d9   :  { %16540 = vmatprep.mubr.msk.bf16.mxu1 %vm19832_vm0, %v24113_v52  ;;  %v11451_v6 = vpack.c.bf16 %v11350_v3, %v11349_v35  ;;  %v11355_v3 = vld [vmem:[#allocation2 + $0x2a4] sm:$0xff] }
 0x9da   :  { %16937 = vmatmul.mubr.bf16.gmra.mrb[180].mxu0 %v11447_v13  ;;  %v10032_v13 = vld [vmem:[#allocation2 + $0xdb] sm:$0xff]  ;;  %v10038_v35 = vld [vmem:[#allocation2 + $0x10b] sm:$0xff] }
 0x9db   :  { %16940 = vmatprep.mubr.msk.bf16.mxu0 %vm19832_vm0, %v24113_v52 }
 0x9dd   :  { %v22663_v15 = vpop.f32.mrb[56].mxu0 }
 0x9de   :  { %v16834_v29 = vpop.f32.mrb[57].mxu0 }
 0x9df   :  { %v22665_v19 = vpop.f32.mrb[58].mxu0 }
 0x9e0   :  { %16541 = vmatmul.mubr.bf16.gmra.mrb[20].mxu1 %v10155_v47  ;;  %v16835_v10 = vpop.f32.mrb[59].mxu0  ;;  %v10159_v47 = vpack.c.bf16 %v10032_v13, %v10031_v54  ;;  %v11358_v13 = vld [vmem:[#allocation2 + $0x2bc] sm:$0xff] }
 0x9e1   :  { %16544 = vmatprep.mubr.msk.bf16.mxu1 %vm19832_vm0, %v24113_v52  ;;  %v11351_v10 = vld [vmem:[#allocation2 + $0x284] sm:$0xff] }
 0x9e2   :  { %16941 = vmatmul.mubr.bf16.gmra.mrb[76].mxu0 %v11448_v2  ;;  %v11452_v18 = vpack.c.bf16 %v11352_v17, %v11351_v10 }
 0x9e3   :  { %16944 = vmatprep.mubr.msk.bf16.mxu0 %vm19832_vm0, %v24113_v52 }
 0x9e5   :  { %v22671_v39 = vpop.f32.mrb[60].mxu0 }
 0x9e6   :  { %v16838_v61 = vpop.f32.mrb[61].mxu0 }
 0x9e7   :  { %v22673_v62 = vpop.f32.mrb[62].mxu0  ;;  %v10033_v61 = vld [vmem:[#allocation2 + $0xe3] sm:$0xff] }
 0x9e8   :  { %16545 = vmatmul.mubr.bf16.gmra.mrb[24].mxu1 %v10156_v41  ;;  %v16839_v40 = vpop.f32.mrb[63].mxu0  ;;  %v11354_v41 = vld [vmem:[#allocation2 + $0x29c] sm:$0xff] }
 0x9e9   :  { %16548 = vmatprep.mubr.msk.bf16.mxu1 %vm19832_vm0, %v24113_v52  ;;  %v10160_v40 = vpack.c.bf16 %v10034_v4, %v10033_v61  ;;  %v11453_v37 = vpack.c.bf16 %v11354_v41, %v11353_v26  ;;  %v10039_v61 = vld [vmem:[#allocation2 + $0x113] sm:$0xff] }
 0x9ea   :  { %16945 = vmatmul.mubr.bf16.gmra.mrb[80].mxu0 %v11449_v21  ;;  %v11360_v41 = vld [vmem:[#allocation2 + $0x2cc] sm:$0xff] }
 0x9eb   :  { %16948 = vmatprep.mubr.msk.bf16.mxu0 %vm19832_vm0, %v24113_v52 }
 0x9ed   :  { %v22679_v11 = vpop.f32.mrb[64].mxu0 }
 0x9ee   :  { %v16842_v33 = vpop.f32.mrb[65].mxu0 }
 0x9ef   :  { %v22681_v46 = vpop.f32.mrb[66].mxu0  ;;  %v10036_v33 = vld [vmem:[#allocation2 + $0xfb] sm:$0xff] }
 0x9f0   :  { %16549 = vmatmul.mubr.bf16.gmra.mrb[28].mxu1 %v10157_v42  ;;  %v16843_v8 = vpop.f32.mrb[67].mxu0  ;;  %v10161_v12 = vpack.c.bf16 %v10036_v33, %v10035_v16  ;;  %v10042_v16 = vld [vmem:[#allocation2 + $0x12b] sm:$0xff] }
 0x9f1   :  { %16552 = vmatprep.mubr.msk.bf16.mxu1 %vm19832_vm0, %v24113_v52  ;;  %v11356_v8 = vld [vmem:[#allocation2 + $0x2ac] sm:$0xff] }
 0x9f2   :  { %16949 = vmatmul.mubr.bf16.gmra.mrb[84].mxu0 %v11450_v22 }
 0x9f3   :  { %16952 = vmatprep.mubr.msk.bf16.mxu0 %vm19832_vm0, %v24113_v52 }
 0x9f5   :  { %v22687_v25 = vpop.f32.mrb[68].mxu0 }
 0x9f6   :  { %v16846_v56 = vpop.f32.mrb[69].mxu0 }
 0x9f7   :  { %v22689_v34 = vpop.f32.mrb[70].mxu0 }
 0x9f8   :  { %16553 = vmatmul.mubr.bf16.gmra.mrb[32].mxu1 %v10158_v32  ;;  %v16847_v5 = vpop.f32.mrb[71].mxu0  ;;  %v11454_v32 = vpack.c.bf16 %v11356_v8, %v11355_v3 }
 0x9f9   :  { %16556 = vmatprep.mubr.msk.bf16.mxu1 %vm19832_vm0, %v24113_v52 }
 0x9fa   :  { %16953 = vmatmul.mubr.bf16.gmra.mrb[88].mxu0 %v11451_v6  ;;  %v10037_v6 = vld [vmem:[#allocation2 + $0x103] sm:$0xff] }
 0x9fb   :  { %16956 = vmatprep.mubr.msk.bf16.mxu0 %vm19832_vm0, %v24113_v52  ;;  %v10162_v17 = vpack.c.bf16 %v10038_v35, %v10037_v6  ;;  %v11361_v35 = vld [vmem:[#allocation2 + $0x2d4] sm:$0xff] }
 0x9fd   :  { %v22695_v30 = vpop.f32.mrb[72].mxu0 }
 0x9fe   :  { %v16850_v29 = vpop.f32.mrb[73].mxu0 }
 0x9ff   :  { %v22697_v55 = vpop.f32.mrb[74].mxu0 }
 0xa00   :  { %16557 = vmatmul.mubr.bf16.gmra.mrb[36].mxu1 %v10159_v47  ;;  %v16851_v2 = vpop.f32.mrb[75].mxu0  ;;  %v11357_v47 = vld [vmem:[#allocation2 + $0x2b4] sm:$0xff] }
 0xa01   :  { %16560 = vmatprep.mubr.msk.bf16.mxu1 %vm19832_vm0, %v24113_v52  ;;  %v11455_v2 = vpack.c.bf16 %v11358_v13, %v11357_v47  ;;  %v10043_v47 = vld [vmem:[#allocation2 + $0x133] sm:$0xff] }
 0xa02   :  { %16957 = vmatmul.mubr.bf16.gmra.mrb[92].mxu0 %v11452_v18  ;;  %v10040_v18 = vld [vmem:[#allocation2 + $0x11b] sm:$0xff] }
 0xa03   :  { %16960 = vmatprep.mubr.msk.bf16.mxu0 %vm19832_vm0, %v24113_v52 }
 0xa05   :  { %v22703_v58 = vpop.f32.mrb[244].mxu0 }
 0xa06   :  { %v16854_v36 = vpop.f32.mrb[245].mxu0 }
 0xa07   :  { %v22705_v21 = vpop.f32.mrb[246].mxu0 }
 0xa08   :  { %16561 = vmatmul.mubr.bf16.gmra.mrb[208].mxu1 %v10160_v40  ;;  %v16855_v53 = vpop.f32.mrb[247].mxu0  ;;  %v10163_v40 = vpack.c.bf16 %v10040_v18, %v10039_v61 }
 0xa09   :  { %16564 = vmatprep.mubr.msk.bf16.mxu1 %vm19832_vm0, %v24113_v52  ;;  %v11359_v53 = vld [vmem:[#allocation2 + $0x2c4] sm:$0xff] }
 0xa0a   :  { %16961 = vmatmul.mubr.bf16.gmra.mrb[204].mxu0 %v11453_v37  ;;  %v11456_v33 = vpack.c.bf16 %v11360_v41, %v11359_v53  ;;  %v11363_v41 = vld [vmem:[#allocation2 + $0x2e4] sm:$0xff] }
 0xa0b   :  { %16964 = vmatprep.mubr.msk.bf16.mxu0 %vm19832_vm0, %v24113_v52  ;;  %v10046_v53 = vld [vmem:[#allocation2 + $0x14b] sm:$0xff] }
 0xa0d   :  { %v22711_v42 = vpop.f32.mrb[248].mxu0 }
 0xa0e   :  { %v16858_v22 = vpop.f32.mrb[249].mxu0 }
 0xa0f   :  { %v22713_v57 = vpop.f32.mrb[250].mxu0  ;;  %v10041_v22 = vld [vmem:[#allocation2 + $0x123] sm:$0xff] }
 0xa10   :  { %16565 = vmatmul.mubr.bf16.gmra.mrb[212].mxu1 %v10161_v12  ;;  %v16859_v56 = vpop.f32.mrb[251].mxu0  ;;  %v11362_v12 = vld [vmem:[#allocation2 + $0x2dc] sm:$0xff] }
 0xa11   :  { %16568 = vmatprep.mubr.msk.bf16.mxu1 %vm19832_vm0, %v24113_v52  ;;  %v10164_v56 = vpack.c.bf16 %v10042_v16, %v10041_v22  ;;  %v11457_v13 = vpack.c.bf16 %v11362_v12, %v11361_v35  ;;  %v11366_v16 = vld [vmem:[#allocation2 + $0x2fc] sm:$0xff] }
 0xa12   :  { %16965 = vmatmul.mubr.bf16.gmra.mrb[208].mxu0 %v11454_v32 }
 0xa13   :  { %16968 = vmatprep.mubr.msk.bf16.mxu0 %vm19832_vm0, %v24113_v52 }
 0xa15   :  { %v22719_v5 = vpop.f32.mrb[252].mxu0 }
 0xa16   :  { %v16862_v54 = vpop.f32.mrb[253].mxu0 }
 0xa17   :  { %v22721_v29 = vpop.f32.mrb[254].mxu0  ;;  %v10044_v54 = vld [vmem:[#allocation2 + $0x13b] sm:$0xff] }
 0xa18   :  { %16569 = vmatmul.mubr.bf16.gmra.mrb[216].mxu1 %v10162_v17  ;;  %v16863_v10 = vpop.f32.mrb[255].mxu0  ;;  %v10165_v18 = vpack.c.bf16 %v10044_v54, %v10043_v47  ;;  %v10047_v47 = vld [vmem:[#allocation2 + $0x153] sm:$0xff] }
 0xa19   :  { %16572 = vmatprep.mubr.msk.bf16.mxu1 %vm19832_vm0, %v24113_v52  ;;  %v11364_v10 = vld [vmem:[#allocation2 + $0x2ec] sm:$0xff] }
 0xa1a   :  { %16969 = vmatmul.mubr.bf16.gmra.mrb[212].mxu0 %v11455_v2 }
 0xa1b   :  { %16972 = vmatprep.mubr.msk.bf16.mxu0 %vm19832_vm0, %v24113_v52 }
 0xa1d   :  { %v22727_v4 = vpop.f32.mrb[0].mxu0 }
 0xa1e   :  { %v16866_v36 = vpop.f32.mrb[1].mxu0 }
 0xa1f   :  { %v22729_v26 = vpop.f32.mrb[2].mxu0 }
 0xa20   :  { %16573 = vmatmul.mubr.bf16.gmra.mrb[220].mxu1 %v10163_v40  ;;  %v16867_v37 = vpop.f32.mrb[3].mxu0  ;;  %v11458_v40 = vpack.c.bf16 %v11364_v10, %v11363_v41  ;;  %v11368_v10 = vld [vmem:[#allocation2 + $0x30c] sm:$0xff] }
 0xa21   :  { %16576 = vmatprep.mubr.msk.bf16.mxu1 %vm19832_vm0, %v24113_v52 }
 0xa22   :  { %16973 = vmatmul.mubr.bf16.gmra.mrb[216].mxu0 %v11456_v33  ;;  %v10045_v33 = vld [vmem:[#allocation2 + $0x143] sm:$0xff] }
 0xa23   :  { %16976 = vmatprep.mubr.msk.bf16.mxu0 %vm19832_vm0, %v24113_v52  ;;  %v10166_v12 = vpack.c.bf16 %v10046_v53, %v10045_v33  ;;  %v10050_v33 = vld [vmem:[#allocation2 + $0x16b] sm:$0xff] }
 0xa25   :  { %v22735_v8 = vpop.f32.mrb[4].mxu0 }
 0xa26   :  { %v16870_v3 = vpop.f32.mrb[5].mxu0 }
 0xa27   :  { %v22737_v32 = vpop.f32.mrb[6].mxu0 }
 0xa28   :  { %16577 = vmatmul.mubr.bf16.gmra.mrb[224].mxu1 %v10164_v56  ;;  %v16871_v6 = vpop.f32.mrb[7].mxu0  ;;  %v11365_v56 = vld [vmem:[#allocation2 + $0x2f4] sm:$0xff] }
 0xa29   :  { %16580 = vmatprep.mubr.msk.bf16.mxu1 %vm19832_vm0, %v24113_v52  ;;  %v11459_v6 = vpack.c.bf16 %v11366_v16, %v11365_v56 }
 0xa2a   :  { %16977 = vmatmul.mubr.bf16.gmra.mrb[220].mxu0 %v11457_v13  ;;  %v10048_v13 = vld [vmem:[#allocation2 + $0x15b] sm:$0xff] }
 0xa2b   :  { %16980 = vmatprep.mubr.msk.bf16.mxu0 %vm19832_vm0, %v24113_v52 }
 0xa2d   :  { %v22743_v17 = vpop.f32.mrb[96].mxu0 }
 0xa2e   :  { %v16874_v2 = vpop.f32.mrb[97].mxu0 }
 0xa2f   :  { %v22745_v61 = vpop.f32.mrb[98].mxu0 }
 0xa30   :  { %16581 = vmatmul.mubr.bf16.gmra.mrb[60].mxu1 %v10165_v18  ;;  %v16875_v36 = vpop.f32.mrb[99].mxu0  ;;  %v10167_v18 = vpack.c.bf16 %v10048_v13, %v10047_v47  ;;  %v11369_v13 = vld [vmem:[#allocation2 + $0x314] sm:$0xff] }
 0xa31   :  { %16584 = vmatprep.mubr.msk.bf16.mxu1 %vm19832_vm0, %v24113_v52  ;;  %v11367_v36 = vld [vmem:[#allocation2 + $0x304] sm:$0xff] }
 0xa32   :  { %16981 = vmatmul.mubr.bf16.gmra.mrb[224].mxu0 %v11458_v40  ;;  %v11460_v53 = vpack.c.bf16 %v11368_v10, %v11367_v36  ;;  %v10051_v36 = vld [vmem:[#allocation2 + $0x173] sm:$0xff] }
 0xa33   :  { %16984 = vmatprep.mubr.msk.bf16.mxu0 %vm19832_vm0, %v24113_v52 }
 0xa35   :  { %v22751_v37 = vpop.f32.mrb[100].mxu0 }
 0xa36   :  { %v16878_v22 = vpop.f32.mrb[101].mxu0 }
 0xa37   :  { %v22753_v3 = vpop.f32.mrb[102].mxu0  ;;  %v10049_v22 = vld [vmem:[#allocation2 + $0x163] sm:$0xff] }
 0xa38   :  { %16585 = vmatmul.mubr.bf16.gmra.mrb[64].mxu1 %v10166_v12  ;;  %v16879_v35 = vpop.f32.mrb[103].mxu0  ;;  %v11370_v12 = vld [vmem:[#allocation2 + $0x31c] sm:$0xff] }
 0xa39   :  { %16588 = vmatprep.mubr.msk.bf16.mxu1 %vm19832_vm0, %v24113_v52  ;;  %v10168_v35 = vpack.c.bf16 %v10050_v33, %v10049_v22  ;;  %v11461_v10 = vpack.c.bf16 %v11370_v12, %v11369_v13  ;;  %v10054_v13 = vld [vmem:[#allocation2 + $0x18b] sm:$0xff] }
 0xa3a   :  { %16985 = vmatmul.mubr.bf16.gmra.mrb[228].mxu0 %v11459_v6 }
 0xa3b   :  { %16988 = vmatprep.mubr.msk.bf16.mxu0 %vm19832_vm0, %v24113_v52 }
 0xa3d   :  { %v22759_v54 = vpop.f32.mrb[104].mxu0 }
 0xa3e   :  { %24114 = vst [vmem:[#allocation19_spill] sm:$0xff] %v22759_v54  ;;  %v16882_v2 = vpop.f32.mrb[105].mxu0 }
 0xa3f   :  { %v22761_v41 = vpop.f32.mrb[106].mxu0  ;;  %v10052_v2 = vld [vmem:[#allocation2 + $0x17b] sm:$0xff] }
 0xa40   :  { %24115 = vst [vmem:[#allocation20_spill] sm:$0xff] %v22761_v41  ;;  %16589 = vmatmul.mubr.bf16.gmra.mrb[68].mxu1 %v10167_v18  ;;  %v16883_v40 = vpop.f32.mrb[107].mxu0  ;;  %v10169_v33 = vpack.c.bf16 %v10052_v2, %v10051_v36 }
 0xa41   :  { %16592 = vmatprep.mubr.msk.bf16.mxu1 %vm19832_vm0, %v24113_v52  ;;  %v11372_v40 = vld [vmem:[#allocation2 + $0x32c] sm:$0xff] }
 0xa42   :  { %16989 = vmatmul.mubr.bf16.gmra.mrb[232].mxu0 %v11460_v53 }
 0xa43   :  { %16992 = vmatprep.mubr.msk.bf16.mxu0 %vm19832_vm0, %v24113_v52 }
 0xa45   :  { %v22767_v16 = vpop.f32.mrb[108].mxu0 }
 0xa46   :  { %24116 = vst [vmem:[#allocation21_spill] sm:$0xff] %v22767_v16  ;;  %v16886_v56 = vpop.f32.mrb[109].mxu0  ;;  %v11387_v16 = vld [vmem:[#allocation2 + $0x3a4] sm:$0xff] }
 0xa47   :  { %v22769_v6 = vpop.f32.mrb[110].mxu0  ;;  %v11371_v56 = vld [vmem:[#allocation2 + $0x324] sm:$0xff] }
 0xa48   :  { %24117 = vst [vmem:[#allocation22_spill] sm:$0xff] %v22769_v6  ;;  %16593 = vmatmul.mubr.bf16.gmra.mrb[72].mxu1 %v10168_v35  ;;  %v16887_v47 = vpop.f32.mrb[111].mxu0  ;;  %v11462_v12 = vpack.c.bf16 %v11372_v40, %v11371_v56  ;;  %v11463_v40 = vpack.c.bf16 %v11374_v23, %v11373_v20  ;;  %v10056_v56 = vld [vmem:[#allocation2 + $0x19b] sm:$0xff]  ;;  %v10058_v23 = vld [vmem:[#allocation2 + $0x1ab] sm:$0xff] }
 0xa49   :  { %16596 = vmatprep.mubr.msk.bf16.mxu1 %vm19832_vm0, %v24113_v52 }
 0xa4a   :  { %16993 = vmatmul.mubr.bf16.gmra.mrb[236].mxu0 %v11461_v10  ;;  %v10053_v10 = vld [vmem:[#allocation2 + $0x183] sm:$0xff] }
 0xa4b   :  { %16996 = vmatprep.mubr.msk.bf16.mxu0 %vm19832_vm0, %v24113_v52  ;;  %v10170_v2 = vpack.c.bf16 %v10054_v13, %v10053_v10 }
 0xa4d   :  { %v22775_v18 = vpop.f32.mrb[112].mxu0 }
 0xa4e   :  { %24118 = vst [vmem:[#allocation23_spill] sm:$0xff] %v22775_v18  ;;  %v16890_v53 = vpop.f32.mrb[113].mxu0 }
 0xa4f   :  { %v22777_v22 = vpop.f32.mrb[114].mxu0 }
 0xa50   :  { %24119 = vst [vmem:[#allocation24_spill] sm:$0xff] %v22777_v22  ;;  %16597 = vmatmul.mubr.bf16.gmra.mrb[76].mxu1 %v10169_v33  ;;  %v16891_v35 = vpop.f32.mrb[115].mxu0 }
 0xa51   :  { %16600 = vmatprep.mubr.msk.bf16.mxu1 %vm19832_vm0, %v24113_v52 }
 0xa52   :  { %16997 = vmatmul.mubr.bf16.gmra.mrb[240].mxu0 %v11462_v12  ;;  %v10055_v12 = vld [vmem:[#allocation2 + $0x193] sm:$0xff] }
 0xa53   :  { %17000 = vmatprep.mubr.msk.bf16.mxu0 %vm19832_vm0, %v24113_v52  ;;  %v10171_v13 = vpack.c.bf16 %v10056_v56, %v10055_v12 }
 0xa55   :  { %v22783_v47 = vpop.f32.mrb[116].mxu0 }
 0xa56   :  { %24120 = vst [vmem:[#allocation25_spill] sm:$0xff] %v22783_v47  ;;  %v16894_v53 = vpop.f32.mrb[117].mxu0  ;;  %v11376_v47 = vld [vmem:[#allocation2 + $0x34c] sm:$0xff] }
 0xa57   :  { %v22785_v36 = vpop.f32.mrb[118].mxu0 }
 0xa58   :  { %24121 = vst [vmem:[#allocation26_spill] sm:$0xff] %v22785_v36  ;;  %16601 = vmatmul.mubr.bf16.gmra.mrb[80].mxu1 %v10170_v2  ;;  %v16895_v33 = vpop.f32.mrb[119].mxu0  ;;  %v11375_v36 = vld [vmem:[#allocation2 + $0x344] sm:$0xff] }
 0xa59   :  { %16604 = vmatprep.mubr.msk.bf16.mxu1 %vm19832_vm0, %v24113_v52  ;;  %v11464_v20 = vpack.c.bf16 %v11376_v47, %v11375_v36  ;;  %v10060_v36 = vld [vmem:[#allocation2 + $0x1bb] sm:$0xff] }
 0xa5a   :  { %17001 = vmatmul.mubr.bf16.gmra.mrb[136].mxu0 %v11463_v40  ;;  %v10057_v40 = vld [vmem:[#allocation2 + $0x1a3] sm:$0xff] }
 0xa5b   :  { %17004 = vmatprep.mubr.msk.bf16.mxu0 %vm19832_vm0, %v24113_v52  ;;  %v10172_v56 = vpack.c.bf16 %v10058_v23, %v10057_v40 }
 0xa5d   :  { %v22791_v35 = vpop.f32.mrb[120].mxu0 }
 0xa5e   :  { %24122 = vst [vmem:[#allocation27_spill] sm:$0xff] %v22791_v35  ;;  %v16898_v53 = vpop.f32.mrb[121].mxu0  ;;  %v11378_v35 = vld [vmem:[#allocation2 + $0x35c] sm:$0xff] }
 0xa5f   :  { %v22793_v10 = vpop.f32.mrb[122].mxu0 }
 0xa60   :  { %24123 = vst [vmem:[#allocation28_spill] sm:$0xff] %v22793_v10  ;;  %16605 = vmatmul.mubr.bf16.gmra.mrb[84].mxu1 %v10171_v13  ;;  %v16899_v2 = vpop.f32.mrb[123].mxu0  ;;  %v11377_v10 = vld [vmem:[#allocation2 + $0x354] sm:$0xff] }
 0xa61   :  { %16608 = vmatprep.mubr.msk.bf16.mxu1 %vm19832_vm0, %v24113_v52  ;;  %v11465_v47 = vpack.c.bf16 %v11378_v35, %v11377_v10  ;;  %v10062_v10 = vld [vmem:[#allocation2 + $0x1cb] sm:$0xff] }
 0xa62   :  { %17005 = vmatmul.mubr.bf16.gmra.mrb[140].mxu0 %v11464_v20  ;;  %v10059_v20 = vld [vmem:[#allocation2 + $0x1b3] sm:$0xff] }
 0xa63   :  { %17008 = vmatprep.mubr.msk.bf16.mxu0 %vm19832_vm0, %v24113_v52  ;;  %v10173_v23 = vpack.c.bf16 %v10060_v36, %v10059_v20 }
 0xa65   :  { %v22799_v33 = vpop.f32.mrb[124].mxu0 }
 0xa66   :  { %24124 = vst [vmem:[#allocation29_spill] sm:$0xff] %v22799_v33  ;;  %v16902_v53 = vpop.f32.mrb[125].mxu0  ;;  %v11380_v33 = vld [vmem:[#allocation2 + $0x36c] sm:$0xff] }
 0xa67   :  { %v22801_v12 = vpop.f32.mrb[126].mxu0 }
 0xa68   :  { %24125 = vst [vmem:[#allocation30_spill] sm:$0xff] %v22801_v12  ;;  %16609 = vmatmul.mubr.bf16.gmra.mrb[88].mxu1 %v10172_v56  ;;  %v16903_v13 = vpop.f32.mrb[127].mxu0  ;;  %v11379_v12 = vld [vmem:[#allocation2 + $0x364] sm:$0xff] }
 0xa69   :  { %16612 = vmatprep.mubr.msk.bf16.mxu1 %vm19832_vm0, %v24113_v52  ;;  %v11466_v35 = vpack.c.bf16 %v11380_v33, %v11379_v12  ;;  %v10064_v12 = vld [vmem:[#allocation2 + $0x1db] sm:$0xff] }
 0xa6a   :  { %17009 = vmatmul.mubr.bf16.gmra.mrb[144].mxu0 %v11465_v47  ;;  %v10061_v47 = vld [vmem:[#allocation2 + $0x1c3] sm:$0xff] }
 0xa6b   :  { %17012 = vmatprep.mubr.msk.bf16.mxu0 %vm19832_vm0, %v24113_v52  ;;  %v10174_v36 = vpack.c.bf16 %v10062_v10, %v10061_v47 }
 0xa6d   :  { %v22807_v2 = vpop.f32.mrb[128].mxu0 }
 0xa6e   :  { %24126 = vst [vmem:[#allocation31_spill] sm:$0xff] %v22807_v2  ;;  %v16906_v53 = vpop.f32.mrb[129].mxu0  ;;  %v11382_v2 = vld [vmem:[#allocation2 + $0x37c] sm:$0xff] }
 0xa6f   :  { %v22809_v40 = vpop.f32.mrb[130].mxu0 }
 0xa70   :  { %24127 = vst [vmem:[#allocation32_spill] sm:$0xff] %v22809_v40  ;;  %16613 = vmatmul.mubr.bf16.gmra.mrb[92].mxu1 %v10173_v23  ;;  %v16907_v56 = vpop.f32.mrb[131].mxu0  ;;  %v11381_v40 = vld [vmem:[#allocation2 + $0x374] sm:$0xff] }
 0xa71   :  { %16616 = vmatprep.mubr.msk.bf16.mxu1 %vm19832_vm0, %v24113_v52  ;;  %v11467_v33 = vpack.c.bf16 %v11382_v2, %v11381_v40  ;;  %v10066_v40 = vld [vmem:[#allocation2 + $0x1eb] sm:$0xff] }
 0xa72   :  { %17013 = vmatmul.mubr.bf16.gmra.mrb[148].mxu0 %v11466_v35  ;;  %v10063_v35 = vld [vmem:[#allocation2 + $0x1d3] sm:$0xff] }
 0xa73   :  { %17016 = vmatprep.mubr.msk.bf16.mxu0 %vm19832_vm0, %v24113_v52  ;;  %v10175_v10 = vpack.c.bf16 %v10064_v12, %v10063_v35 }
 0xa75   :  { %v22815_v13 = vpop.f32.mrb[132].mxu0 }
 0xa76   :  { %24128 = vst [vmem:[#allocation33_spill] sm:$0xff] %v22815_v13  ;;  %v16910_v53 = vpop.f32.mrb[133].mxu0  ;;  %v11384_v13 = vld [vmem:[#allocation2 + $0x38c] sm:$0xff] }
 0xa77   :  { %v22817_v20 = vpop.f32.mrb[134].mxu0 }
 0xa78   :  { %24129 = vst [vmem:[#allocation34_spill] sm:$0xff] %v22817_v20  ;;  %16617 = vmatmul.mubr.bf16.gmra.mrb[96].mxu1 %v10174_v36  ;;  %v16911_v23 = vpop.f32.mrb[135].mxu0  ;;  %v11383_v20 = vld [vmem:[#allocation2 + $0x384] sm:$0xff] }
 0xa79   :  { %16620 = vmatprep.mubr.msk.bf16.mxu1 %vm19832_vm0, %v24113_v52  ;;  %v11468_v2 = vpack.c.bf16 %v11384_v13, %v11383_v20 }
 0xa7a   :  { %17017 = vmatmul.mubr.bf16.gmra.mrb[152].mxu0 %v11467_v33  ;;  %v10065_v33 = vld [vmem:[#allocation2 + $0x1e3] sm:$0xff] }
 0xa7b   :  { %17020 = vmatprep.mubr.msk.bf16.mxu0 %vm19832_vm0, %v24113_v52  ;;  %v10176_v12 = vpack.c.bf16 %v10066_v40, %v10065_v33 }
 0xa7d   :  { %v22823_v56 = vpop.f32.mrb[156].mxu0 }
 0xa7e   :  { %24130 = vst [vmem:[#allocation35_spill] sm:$0xff] %v22823_v56  ;;  %v16914_v53 = vpop.f32.mrb[157].mxu0  ;;  %v11386_v56 = vld [vmem:[#allocation2 + $0x39c] sm:$0xff] }
 0xa7f   :  { %v22825_v47 = vpop.f32.mrb[158].mxu0 }
 0xa80   :  { %24131 = vst [vmem:[#allocation36_spill] sm:$0xff] %v22825_v47  ;;  %16621 = vmatmul.mubr.bf16.gmra.mrb[160].mxu1 %v10175_v10  ;;  %v16915_v36 = vpop.f32.mrb[159].mxu0  ;;  %v11385_v47 = vld [vmem:[#allocation2 + $0x394] sm:$0xff] }
 0xa81   :  { %16624 = vmatprep.mubr.msk.bf16.mxu1 %vm19832_vm0, %v24113_v52  ;;  %v11469_v13 = vpack.c.bf16 %v11386_v56, %v11385_v47  ;;  %v17108_v36 = vld [vmem:[%s24094_s3] sm:$0xff]  ;;  %v17117_v56 = vld [vmem:[%s24094_s3 + $0x8] sm:$0xff] }
 0xa82   :  { %17021 = vmatmul.mubr.bf16.gmra.mrb[8].mxu0 %v11468_v2  ;;  %v10068_v2 = vld [vmem:[#allocation2 + $0x1fb] sm:$0xff] }
 0xa83   :  { %17024 = vmatprep.mubr.msk.bf16.mxu0 %vm19832_vm0, %v24113_v52 }
 0xa85   :  { %v22831_v23 = vpop.f32.mrb[160].mxu0 }
 0xa86   :  { %24132 = vst [vmem:[#allocation37_spill] sm:$0xff] %v22831_v23  ;;  %v16918_v53 = vpop.f32.mrb[161].mxu0 }
 0xa87   :  { %v22833_v35 = vpop.f32.mrb[162].mxu0 }
 0xa88   :  { %24133 = vst [vmem:[#allocation38_spill] sm:$0xff] %v22833_v35  ;;  %16625 = vmatmul.mubr.bf16.gmra.mrb[164].mxu1 %v10176_v12  ;;  %v16919_v10 = vpop.f32.mrb[163].mxu0  ;;  %v10067_v12 = vld [vmem:[#allocation2 + $0x1f3] sm:$0xff] }
 0xa89   :  { %16628 = vmatprep.mubr.msk.bf16.mxu1 %vm19832_vm0, %v24113_v52  ;;  %v11388_v10 = vld [vmem:[#allocation2 + $0x3ac] sm:$0xff]  ;;  %v10177_v18 = vpack.c.bf16 %v10068_v2, %v10067_v12 }
 0xa8a   :  { %17025 = vmatmul.mubr.bf16.gmra.mrb[12].mxu0 %v11469_v13  ;;  %v11470_v41 = vpack.c.bf16 %v11388_v10, %v11387_v16 }
 0xa8b   :  { %v10318_v20 = vpop.f32.mrb[168].mxu1  ;;  %17028 = vmatprep.mubr.msk.bf16.mxu0 %vm19832_vm0, %v24113_v52 }
 0xa8c   :  { %v17109_v40 = vadd.f32 %v17108_v36, %v10318_v20  ;;  %v16522_v33 = vpop.f32.mrb[169].mxu1 }
 0xa8d   :  { %v10321_v53 = vpop.f32.mrb[170].mxu1  ;;  %v22845_v47 = vpop.f32.mrb[164].mxu0 }
 0xa8e   :  { %24134 = vst [vmem:[#allocation39_spill] sm:$0xff] %v22845_v47  ;;  %v17112_v13 = vadd.f32 %v17109_v40, %v22569_v9  ;;  %v17118_v35 = vadd.f32 %v17117_v56, %v10321_v53  ;;  %v16523_v23 = vpop.f32.mrb[171].mxu1  ;;  %v16922_v22 = vpop.f32.mrb[165].mxu0  ;;  %v10069_v40 = vld [vmem:[#allocation2 + $0x203] sm:$0xff] }
 0xa8f   :  { %v22848_v6 = vpop.f32.mrb[166].mxu0  ;;  %v17126_v22 = vld [vmem:[%s24094_s3 + $0x10] sm:$0xff]  ;;  %v11390_v53 = vld [vmem:[#allocation2 + $0x3bc] sm:$0xff] }
 0xa90   :  { %v12682_v20 = vmax.f32 %v17112_v13, -1.0  ;;  %v17121_v36 = vadd.f32 %v17118_v35, %v22575_v44  ;;  %16629 = vmatmul.mubr.bf16.gmra.mrb[0].mxu1 %v10177_v18  ;;  %v16923_v33 = vpop.f32.mrb[167].mxu0  ;;  %v10070_v23 = vld [vmem:[#allocation2 + $0x20b] sm:$0xff] }
 0xa91   :  { %16632 = vmatprep.mubr.msk.bf16.mxu1 %vm19832_vm0, %v24113_v52  ;;  %v10178_v10 = vpack.c.bf16 %v10070_v23, %v10069_v40  ;;  %v17144_v23 = vld [vmem:[%s24094_s3 + $0x20] sm:$0xff] }
 0xa92   :  { %v12819_v47 = vmin.f32 %v12682_v20, 0.5  ;;  %v12683_v54 = vmax.f32 %v17121_v36, -1.0  ;;  %17029 = vmatmul.mubr.bf16.gmra.mrb[16].mxu0 %v11470_v41  ;;  %v17135_v41 = vld [vmem:[%s24094_s3 + $0x18] sm:$0xff] }
 0xa93   :  { %v10326_v9 = vpop.f32.mrb[172].mxu1  ;;  %17032 = vmatprep.mubr.msk.bf16.mxu0 %vm19832_vm0, %v24113_v52  ;;  %v11389_v20 = vld [vmem:[#allocation2 + $0x3b4] sm:$0xff] }
 0xa94   :  { %12956 = vst [vmem:[%s24094_s3] sm:$0xff] %v12819_v47  ;;  %v12820_v44 = vmin.f32 %v12683_v54, 0.5  ;;  %v17127_v16 = vadd.f32 %v17126_v22, %v10326_v9  ;;  %v16526_v18 = vpop.f32.mrb[173].mxu1  ;;  %v11471_v22 = vpack.c.bf16 %v11390_v53, %v11389_v20  ;;  %v17153_v53 = vld [vmem:[%s24094_s3 + $0x28] sm:$0xff] }
 0xa95   :  { %v10329_v35 = vpop.f32.mrb[174].mxu1  ;;  %v22864_v2 = vpop.f32.mrb[168].mxu0 }
 0xa96   :  { %12957 = vst [vmem:[%s24094_s3 + $0x8] sm:$0xff] %v12820_v44  ;;  %v17130_v56 = vadd.f32 %v17127_v16, %v22589_v24  ;;  %v17136_v12 = vadd.f32 %v17135_v41, %v10329_v35  ;;  %v16527_v47 = vpop.f32.mrb[175].mxu1  ;;  %v16926_v54 = vpop.f32.mrb[169].mxu0  ;;  %v10072_v16 = vld [vmem:[#allocation2 + $0x21b] sm:$0xff] }
 0xa97   :  { %v22870_v13 = vpop.f32.mrb[170].mxu0  ;;  %v11392_v47 = vld [vmem:[#allocation2 + $0x3cc] sm:$0xff] }
 0xa98   :  { %v12684_v36 = vmax.f32 %v17130_v56, -1.0  ;;  %v17139_v33 = vadd.f32 %v17136_v12, %v22599_v45  ;;  %16633 = vmatmul.mubr.bf16.gmra.mrb[4].mxu1 %v10178_v10  ;;  %v16927_v9 = vpop.f32.mrb[171].mxu0  ;;  %v10071_v12 = vld [vmem:[#allocation2 + $0x213] sm:$0xff] }
 0xa99   :  { %16636 = vmatprep.mubr.msk.bf16.mxu1 %vm19832_vm0, %v24113_v52 }
 0xa9a   :  { %v12821_v18 = vmin.f32 %v12684_v36, 0.5  ;;  %v12685_v44 = vmax.f32 %v17139_v33, -1.0  ;;  %17033 = vmatmul.mubr.bf16.gmra.mrb[20].mxu0 %v11471_v22  ;;  %v10179_v33 = vpack.c.bf16 %v10072_v16, %v10071_v12  ;;  %v11391_v22 = vld [vmem:[#allocation2 + $0x3c4] sm:$0xff]  ;;  %v17159_v16 = vld [vmem:[%s24094_s3 + $0x30] sm:$0xff] }
 0xa9b   :  { %v10334_v24 = vpop.f32.mrb[176].mxu1  ;;  %17036 = vmatprep.mubr.msk.bf16.mxu0 %vm19832_vm0, %v24113_v52 }
 0xa9c   :  { %12958 = vst [vmem:[%s24094_s3 + $0x10] sm:$0xff] %v12821_v18  ;;  %v12822_v45 = vmin.f32 %v12685_v44, 0.5  ;;  %v17145_v35 = vadd.f32 %v17144_v23, %v10334_v24  ;;  %v16530_v41 = vpop.f32.mrb[177].mxu1  ;;  %v11472_v23 = vpack.c.bf16 %v11392_v47, %v11391_v22  ;;  %v17165_v47 = vld [vmem:[%s24094_s3 + $0x38] sm:$0xff] }
 0xa9d   :  { %v10337_v40 = vpop.f32.mrb[178].mxu1  ;;  %v22886_v56 = vpop.f32.mrb[172].mxu0 }
 0xa9e   :  { %12959 = vst [vmem:[%s24094_s3 + $0x18] sm:$0xff] %v12822_v45  ;;  %v17148_v54 = vadd.f32 %v17145_v35, %v22613_v28  ;;  %v17154_v10 = vadd.f32 %v17153_v53, %v10337_v40  ;;  %v16531_v20 = vpop.f32.mrb[179].mxu1  ;;  %v16930_v36 = vpop.f32.mrb[173].mxu0  ;;  %v10074_v35 = vld [vmem:[#allocation2 + $0x22b] sm:$0xff] }
 0xa9f   :  { %v22892_v9 = vpop.f32.mrb[174].mxu0  ;;  %v11394_v20 = vld [vmem:[#allocation2 + $0x3dc] sm:$0xff] }
 0xaa0   :  { %v12686_v18 = vmax.f32 %v17148_v54, -1.0  ;;  %v17157_v44 = vadd.f32 %v17154_v10, %v22623_v38  ;;  %16637 = vmatmul.mubr.bf16.gmra.mrb[8].mxu1 %v10179_v33  ;;  %v16931_v24 = vpop.f32.mrb[175].mxu0  ;;  %v10073_v10 = vld [vmem:[#allocation2 + $0x223] sm:$0xff] }
 0xaa1   :  { %16640 = vmatprep.mubr.msk.bf16.mxu1 %vm19832_vm0, %v24113_v52 }
 0xaa2   :  { %v12823_v41 = vmin.f32 %v12686_v18, 0.5  ;;  %v12687_v45 = vmax.f32 %v17157_v44, -1.0  ;;  %17037 = vmatmul.mubr.bf16.gmra.mrb[24].mxu0 %v11472_v23  ;;  %v10180_v44 = vpack.c.bf16 %v10074_v35, %v10073_v10  ;;  %v11393_v23 = vld [vmem:[#allocation2 + $0x3d4] sm:$0xff]  ;;  %v17171_v35 = vld [vmem:[%s24094_s3 + $0x40] sm:$0xff] }
 0xaa3   :  { %v10342_v28 = vpop.f32.mrb[12].mxu1  ;;  %17040 = vmatprep.mubr.msk.bf16.mxu0 %vm19832_vm0, %v24113_v52 }
 0xaa4   :  { %12960 = vst [vmem:[%s24094_s3 + $0x20] sm:$0xff] %v12823_v41  ;;  %v12824_v38 = vmin.f32 %v12687_v45, 0.5  ;;  %v17160_v40 = vadd.f32 %v17159_v16, %v10342_v28  ;;  %v16534_v53 = vpop.f32.mrb[13].mxu1  ;;  %v11473_v16 = vpack.c.bf16 %v11394_v20, %v11393_v23  ;;  %v17177_v20 = vld [vmem:[%s24094_s3 + $0x48] sm:$0xff] }
 0xaa5   :  { %v10345_v12 = vpop.f32.mrb[14].mxu1  ;;  %v22908_v54 = vpop.f32.mrb[176].mxu0 }
 0xaa6   :  { %12961 = vst [vmem:[%s24094_s3 + $0x28] sm:$0xff] %v12824_v38  ;;  %v17163_v36 = vadd.f32 %v17160_v40, %v22636_v0  ;;  %v17166_v33 = vadd.f32 %v17165_v47, %v10345_v12  ;;  %v16535_v22 = vpop.f32.mrb[15].mxu1  ;;  %v16934_v18 = vpop.f32.mrb[177].mxu0  ;;  %v10076_v40 = vld [vmem:[#allocation2 + $0x23b] sm:$0xff] }
 0xaa7   :  { %v22914_v24 = vpop.f32.mrb[178].mxu0  ;;  %v11396_v22 = vld [vmem:[#allocation2 + $0x3ec] sm:$0xff] }
 0xaa8   :  { %v12688_v41 = vmax.f32 %v17163_v36, -1.0  ;;  %v17169_v45 = vadd.f32 %v17166_v33, %v22642_v49  ;;  %16641 = vmatmul.mubr.bf16.gmra.mrb[120].mxu1 %v10180_v44  ;;  %v16935_v28 = vpop.f32.mrb[179].mxu0  ;;  %v10075_v33 = vld [vmem:[#allocation2 + $0x233] sm:$0xff] }
 0xaa9   :  { %16644 = vmatprep.mubr.msk.bf16.mxu1 %vm19832_vm0, %v24113_v52 }
 0xaaa   :  { %v12825_v53 = vmin.f32 %v12688_v41, 0.5  ;;  %v12689_v38 = vmax.f32 %v17169_v45, -1.0  ;;  %17041 = vmatmul.mubr.bf16.gmra.mrb[28].mxu0 %v11473_v16  ;;  %v10181_v45 = vpack.c.bf16 %v10076_v40, %v10075_v33  ;;  %v11395_v16 = vld [vmem:[#allocation2 + $0x3e4] sm:$0xff]  ;;  %v17183_v40 = vld [vmem:[%s24094_s3 + $0x50] sm:$0xff] }
 0xaab   :  { %v10350_v0 = vpop.f32.mrb[16].mxu1  ;;  %17044 = vmatprep.mubr.msk.bf16.mxu0 %vm19832_vm0, %v24113_v52 }
 0xaac   :  { %12962 = vst [vmem:[%s24094_s3 + $0x30] sm:$0xff] %v12825_v53  ;;  %v12826_v49 = vmin.f32 %v12689_v38, 0.5  ;;  %v17172_v12 = vadd.f32 %v17171_v35, %v10350_v0  ;;  %v16538_v47 = vpop.f32.mrb[17].mxu1  ;;  %v11474_v35 = vpack.c.bf16 %v11396_v22, %v11395_v16  ;;  %v17189_v22 = vld [vmem:[%s24094_s3 + $0x58] sm:$0xff] }
 0xaad   :  { %v10353_v10 = vpop.f32.mrb[18].mxu1  ;;  %v22930_v36 = vpop.f32.mrb[180].mxu0 }
 0xaae   :  { %12963 = vst [vmem:[%s24094_s3 + $0x38] sm:$0xff] %v12826_v49  ;;  %v17175_v18 = vadd.f32 %v17172_v12, %v22652_v51  ;;  %v17178_v44 = vadd.f32 %v17177_v20, %v10353_v10  ;;  %v16539_v23 = vpop.f32.mrb[19].mxu1  ;;  %v16938_v41 = vpop.f32.mrb[181].mxu0  ;;  %v10078_v12 = vld [vmem:[#allocation2 + $0x24b] sm:$0xff] }
 0xaaf   :  { %v22936_v28 = vpop.f32.mrb[182].mxu0  ;;  %v11398_v23 = vld [vmem:[#allocation2 + $0x3fc] sm:$0xff] }
 0xab0   :  { %v12690_v53 = vmax.f32 %v17175_v18, -1.0  ;;  %v17181_v38 = vadd.f32 %v17178_v44, %v22657_v60  ;;  %16645 = vmatmul.mubr.bf16.gmra.mrb[124].mxu1 %v10181_v45  ;;  %v16939_v0 = vpop.f32.mrb[183].mxu0  ;;  %v10077_v44 = vld [vmem:[#allocation2 + $0x243] sm:$0xff] }
 0xab1   :  { %16648 = vmatprep.mubr.msk.bf16.mxu1 %vm19832_vm0, %v24113_v52 }
 0xab2   :  { %v12827_v47 = vmin.f32 %v12690_v53, 0.5  ;;  %v12691_v49 = vmax.f32 %v17181_v38, -1.0  ;;  %17045 = vmatmul.mubr.bf16.gmra.mrb[32].mxu0 %v11474_v35  ;;  %v10182_v38 = vpack.c.bf16 %v10078_v12, %v10077_v44  ;;  %v11397_v35 = vld [vmem:[#allocation2 + $0x3f4] sm:$0xff]  ;;  %v17195_v12 = vld [vmem:[%s24094_s3 + $0x60] sm:$0xff] }
 0xab3   :  { %v10358_v51 = vpop.f32.mrb[20].mxu1  ;;  %17048 = vmatprep.mubr.msk.bf16.mxu0 %vm19832_vm0, %v24113_v52 }
 0xab4   :  { %12964 = vst [vmem:[%s24094_s3 + $0x40] sm:$0xff] %v12827_v47  ;;  %v12828_v60 = vmin.f32 %v12691_v49, 0.5  ;;  %v17184_v10 = vadd.f32 %v17183_v40, %v10358_v51  ;;  %v16542_v20 = vpop.f32.mrb[21].mxu1  ;;  %v11475_v40 = vpack.c.bf16 %v11398_v23, %v11397_v35  ;;  %v17201_v23 = vld [vmem:[%s24094_s3 + $0x68] sm:$0xff] }
 0xab5   :  { %v10361_v33 = vpop.f32.mrb[22].mxu1  ;;  %v22952_v18 = vpop.f32.mrb[76].mxu0 }
 0xab6   :  { %12965 = vst [vmem:[%s24094_s3 + $0x48] sm:$0xff] %v12828_v60  ;;  %v17187_v41 = vadd.f32 %v17184_v10, %v22663_v15  ;;  %v17190_v45 = vadd.f32 %v17189_v22, %v10361_v33  ;;  %v16543_v16 = vpop.f32.mrb[23].mxu1  ;;  %v16942_v53 = vpop.f32.mrb[77].mxu0  ;;  %v10080_v10 = vld [vmem:[#allocation2 + $0x25b] sm:$0xff] }
 0xab7   :  { %v22958_v0 = vpop.f32.mrb[78].mxu0  ;;  %v11400_v16 = vld [vmem:[#allocation2 + $0x40c] sm:$0xff] }
 0xab8   :  { %v12692_v47 = vmax.f32 %v17187_v41, -1.0  ;;  %v17193_v49 = vadd.f32 %v17190_v45, %v22665_v19  ;;  %16649 = vmatmul.mubr.bf16.gmra.mrb[128].mxu1 %v10182_v38  ;;  %v16943_v51 = vpop.f32.mrb[79].mxu0  ;;  %v10079_v45 = vld [vmem:[#allocation2 + $0x253] sm:$0xff] }
 0xab9   :  { %16652 = vmatprep.mubr.msk.bf16.mxu1 %vm19832_vm0, %v24113_v52 }
 0xaba   :  { %v12829_v20 = vmin.f32 %v12692_v47, 0.5  ;;  %v12693_v60 = vmax.f32 %v17193_v49, -1.0  ;;  %17049 = vmatmul.mubr.bf16.gmra.mrb[184].mxu0 %v11475_v40  ;;  %v10183_v49 = vpack.c.bf16 %v10080_v10, %v10079_v45  ;;  %v11399_v40 = vld [vmem:[#allocation2 + $0x404] sm:$0xff]  ;;  %v17207_v10 = vld [vmem:[%s24094_s3 + $0x70] sm:$0xff] }
 0xabb   :  { %v10366_v15 = vpop.f32.mrb[24].mxu1  ;;  %17052 = vmatprep.mubr.msk.bf16.mxu0 %vm19832_vm0, %v24113_v52 }
 0xabc   :  { %12966 = vst [vmem:[%s24094_s3 + $0x50] sm:$0xff] %v12829_v20  ;;  %v12830_v19 = vmin.f32 %v12693_v60, 0.5  ;;  %v17196_v33 = vadd.f32 %v17195_v12, %v10366_v15  ;;  %v16546_v22 = vpop.f32.mrb[25].mxu1  ;;  %v11476_v12 = vpack.c.bf16 %v11400_v16, %v11399_v40  ;;  %v17213_v16 = vld [vmem:[%s24094_s3 + $0x78] sm:$0xff] }
 0xabd   :  { %v10369_v44 = vpop.f32.mrb[26].mxu1  ;;  %v22974_v41 = vpop.f32.mrb[80].mxu0 }
 0xabe   :  { %12967 = vst [vmem:[%s24094_s3 + $0x58] sm:$0xff] %v12830_v19  ;;  %v17199_v53 = vadd.f32 %v17196_v33, %v22671_v39  ;;  %v17202_v38 = vadd.f32 %v17201_v23, %v10369_v44  ;;  %v16547_v35 = vpop.f32.mrb[27].mxu1  ;;  %v16946_v47 = vpop.f32.mrb[81].mxu0  ;;  %v10082_v33 = vld [vmem:[#allocation2 + $0x26b] sm:$0xff] }
 0xabf   :  { %v22980_v51 = vpop.f32.mrb[82].mxu0  ;;  %v11402_v35 = vld [vmem:[#allocation2 + $0x41c] sm:$0xff] }
 0xac0   :  { %v12694_v20 = vmax.f32 %v17199_v53, -1.0  ;;  %v17205_v60 = vadd.f32 %v17202_v38, %v22673_v62  ;;  %16653 = vmatmul.mubr.bf16.gmra.mrb[132].mxu1 %v10183_v49  ;;  %v16947_v15 = vpop.f32.mrb[83].mxu0  ;;  %v10081_v38 = vld [vmem:[#allocation2 + $0x263] sm:$0xff] }
 0xac1   :  { %16656 = vmatprep.mubr.msk.bf16.mxu1 %vm19832_vm0, %v24113_v52 }
 0xac2   :  { %v12831_v22 = vmin.f32 %v12694_v20, 0.5  ;;  %v12695_v19 = vmax.f32 %v17205_v60, -1.0  ;;  %17053 = vmatmul.mubr.bf16.gmra.mrb[188].mxu0 %v11476_v12  ;;  %v10184_v60 = vpack.c.bf16 %v10082_v33, %v10081_v38  ;;  %v11401_v12 = vld [vmem:[#allocation2 + $0x414] sm:$0xff]  ;;  %v17219_v33 = vld [vmem:[%s24094_s3 + $0x80] sm:$0xff] }
 0xac3   :  { %v10374_v39 = vpop.f32.mrb[28].mxu1  ;;  %17056 = vmatprep.mubr.msk.bf16.mxu0 %vm19832_vm0, %v24113_v52 }
 0xac4   :  { %12968 = vst [vmem:[%s24094_s3 + $0x60] sm:$0xff] %v12831_v22  ;;  %v12832_v62 = vmin.f32 %v12695_v19, 0.5  ;;  %v17208_v44 = vadd.f32 %v17207_v10, %v10374_v39  ;;  %v16550_v23 = vpop.f32.mrb[29].mxu1  ;;  %v11477_v10 = vpack.c.bf16 %v11402_v35, %v11401_v12  ;;  %v17225_v35 = vld [vmem:[%s24094_s3 + $0x88] sm:$0xff] }
 0xac5   :  { %v10377_v45 = vpop.f32.mrb[30].mxu1  ;;  %v22996_v53 = vpop.f32.mrb[84].mxu0 }
 0xac6   :  { %12969 = vst [vmem:[%s24094_s3 + $0x68] sm:$0xff] %v12832_v62  ;;  %v17211_v47 = vadd.f32 %v17208_v44, %v22679_v11  ;;  %v17214_v49 = vadd.f32 %v17213_v16, %v10377_v45  ;;  %v16551_v40 = vpop.f32.mrb[31].mxu1  ;;  %v16950_v20 = vpop.f32.mrb[85].mxu0  ;;  %v10084_v44 = vld [vmem:[#allocation2 + $0x27b] sm:$0xff] }
 0xac7   :  { %v23002_v15 = vpop.f32.mrb[86].mxu0  ;;  %v11404_v40 = vld [vmem:[#allocation2 + $0x42c] sm:$0xff] }
 0xac8   :  { %v12696_v22 = vmax.f32 %v17211_v47, -1.0  ;;  %v17217_v19 = vadd.f32 %v17214_v49, %v22681_v46  ;;  %16657 = vmatmul.mubr.bf16.gmra.mrb[136].mxu1 %v10184_v60  ;;  %v16951_v39 = vpop.f32.mrb[87].mxu0  ;;  %v10083_v49 = vld [vmem:[#allocation2 + $0x273] sm:$0xff] }
 0xac9   :  { %16660 = vmatprep.mubr.msk.bf16.mxu1 %vm19832_vm0, %v24113_v52 }
 0xaca   :  { %v12833_v23 = vmin.f32 %v12696_v22, 0.5  ;;  %v12697_v62 = vmax.f32 %v17217_v19, -1.0  ;;  %17057 = vmatmul.mubr.bf16.gmra.mrb[192].mxu0 %v11477_v10  ;;  %v10185_v19 = vpack.c.bf16 %v10084_v44, %v10083_v49  ;;  %v11403_v10 = vld [vmem:[#allocation2 + $0x424] sm:$0xff]  ;;  %v17231_v44 = vld [vmem:[%s24094_s3 + $0x90] sm:$0xff] }
 0xacb   :  { %v10382_v11 = vpop.f32.mrb[32].mxu1  ;;  %17060 = vmatprep.mubr.msk.bf16.mxu0 %vm19832_vm0, %v24113_v52 }
 0xacc   :  { %12970 = vst [vmem:[%s24094_s3 + $0x70] sm:$0xff] %v12833_v23  ;;  %v12834_v46 = vmin.f32 %v12697_v62, 0.5  ;;  %v17220_v45 = vadd.f32 %v17219_v33, %v10382_v11  ;;  %v16554_v16 = vpop.f32.mrb[33].mxu1  ;;  %v11478_v33 = vpack.c.bf16 %v11404_v40, %v11403_v10  ;;  %v17237_v40 = vld [vmem:[%s24094_s3 + $0x98] sm:$0xff] }
 0xacd   :  { %v10385_v38 = vpop.f32.mrb[34].mxu1  ;;  %v23018_v47 = vpop.f32.mrb[88].mxu0 }
 0xace   :  { %12971 = vst [vmem:[%s24094_s3 + $0x78] sm:$0xff] %v12834_v46  ;;  %v17223_v20 = vadd.f32 %v17220_v45, %v22687_v25  ;;  %v17226_v60 = vadd.f32 %v17225_v35, %v10385_v38  ;;  %v16555_v12 = vpop.f32.mrb[35].mxu1  ;;  %v16954_v22 = vpop.f32.mrb[89].mxu0  ;;  %v10086_v45 = vld [vmem:[#allocation2 + $0x28b] sm:$0xff] }
 0xacf   :  { %v23024_v39 = vpop.f32.mrb[90].mxu0  ;;  %v11406_v12 = vld [vmem:[#allocation2 + $0x43c] sm:$0xff] }
 0xad0   :  { %v12698_v23 = vmax.f32 %v17223_v20, -1.0  ;;  %v17229_v62 = vadd.f32 %v17226_v60, %v22689_v34  ;;  %16661 = vmatmul.mubr.bf16.gmra.mrb[140].mxu1 %v10185_v19  ;;  %v16955_v11 = vpop.f32.mrb[91].mxu0  ;;  %v10085_v60 = vld [vmem:[#allocation2 + $0x283] sm:$0xff] }
 0xad1   :  { %16664 = vmatprep.mubr.msk.bf16.mxu1 %vm19832_vm0, %v24113_v52 }
 0xad2   :  { %v12835_v16 = vmin.f32 %v12698_v23, 0.5  ;;  %v12699_v46 = vmax.f32 %v17229_v62, -1.0  ;;  %17061 = vmatmul.mubr.bf16.gmra.mrb[196].mxu0 %v11478_v33  ;;  %v10186_v62 = vpack.c.bf16 %v10086_v45, %v10085_v60  ;;  %v11405_v33 = vld [vmem:[#allocation2 + $0x434] sm:$0xff] }
 0xad3   :  { %v10390_v25 = vpop.f32.mrb[36].mxu1  ;;  %17064 = vmatprep.mubr.msk.bf16.mxu0 %vm19832_vm0, %v24113_v52 }
 0xad4   :  { %12972 = vst [vmem:[%s24094_s3 + $0x80] sm:$0xff] %v12835_v16  ;;  %v12836_v34 = vmin.f32 %v12699_v46, 0.5  ;;  %v17232_v38 = vadd.f32 %v17231_v44, %v10390_v25  ;;  %v16558_v35 = vpop.f32.mrb[37].mxu1  ;;  %v17246_v16 = vld [vmem:[%s24094_s3 + $0xa0] sm:$0xff] }
 0xad5   :  { %v10393_v49 = vpop.f32.mrb[38].mxu1  ;;  %v23040_v20 = vpop.f32.mrb[92].mxu0  ;;  %v11479_v35 = vpack.c.bf16 %v11406_v12, %v11405_v33 }
 0xad6   :  { %12973 = vst [vmem:[%s24094_s3 + $0x88] sm:$0xff] %v12836_v34  ;;  %v17235_v22 = vadd.f32 %v17232_v38, %v22695_v30  ;;  %v17238_v19 = vadd.f32 %v17237_v40, %v10393_v49  ;;  %v16559_v10 = vpop.f32.mrb[39].mxu1  ;;  %v16958_v23 = vpop.f32.mrb[93].mxu0  ;;  %v17258_v30 = vld [vmem:[%s24094_s3 + $0xa8] sm:$0xff]  ;;  %v17247_v38 = vadd.f32 %v17246_v16, %v20781_v59  ;;  %v10088_v40 = vld [vmem:[#allocation2 + $0x29b] sm:$0xff] }
 0xad7   :  { %v23046_v11 = vpop.f32.mrb[94].mxu0  ;;  %v10087_v23 = vld [vmem:[#allocation2 + $0x293] sm:$0xff] }
 0xad8   :  { %v12700_v46 = vmax.f32 %v17235_v22, -1.0  ;;  %v17241_v25 = vadd.f32 %v17238_v19, %v22697_v55  ;;  %16665 = vmatmul.mubr.bf16.gmra.mrb[144].mxu1 %v10186_v62  ;;  %v16959_v44 = vpop.f32.mrb[95].mxu0  ;;  %v17259_v22 = vadd.f32 %v17258_v30, %v20785_v63  ;;  %v11408_v62 = vld [vmem:[#allocation2 + $0x44c] sm:$0xff] }
 0xad9   :  { %16668 = vmatprep.mubr.msk.bf16.mxu1 %vm19832_vm0, %v24113_v52  ;;  %v17270_v63 = vld [vmem:[%s24094_s3 + $0xb0] sm:$0xff] }
 0xada   :  { %v12837_v45 = vmin.f32 %v12700_v46, 0.5  ;;  %v12701_v34 = vmax.f32 %v17241_v25, -1.0  ;;  %17065 = vmatmul.mubr.bf16.gmra.mrb[200].mxu0 %v11479_v35  ;;  %v10187_v25 = vpack.c.bf16 %v10088_v40, %v10087_v23  ;;  %v11407_v35 = vld [vmem:[#allocation2 + $0x444] sm:$0xff] }
 0xadb   :  { %v10398_v49 = vpop.f32.mrb[208].mxu1  ;;  %17068 = vmatprep.mubr.msk.bf16.mxu0 %vm19832_vm0, %v24113_v52 }
 0xadc   :  { %12974 = vst [vmem:[%s24094_s3 + $0x90] sm:$0xff] %v12837_v45  ;;  %v12838_v55 = vmin.f32 %v12701_v34, 0.5  ;;  %v17250_v60 = vadd.f32 %v17247_v38, %v10398_v49  ;;  %v16562_v12 = vpop.f32.mrb[209].mxu1  ;;  %v11480_v38 = vpack.c.bf16 %v11408_v62, %v11407_v35 }
 0xadd   :  { %v10401_v19 = vpop.f32.mrb[210].mxu1  ;;  %v23064_v10 = vpop.f32.mrb[204].mxu0  ;;  %v10090_v12 = vld [vmem:[#allocation2 + $0x2ab] sm:$0xff] }
 0xade   :  { %12975 = vst [vmem:[%s24094_s3 + $0x98] sm:$0xff] %v12838_v55  ;;  %v17253_v59 = vadd.f32 %v17250_v60, %v22703_v58  ;;  %v17262_v33 = vadd.f32 %v17259_v22, %v10401_v19  ;;  %v16563_v16 = vpop.f32.mrb[211].mxu1  ;;  %v16962_v46 = vpop.f32.mrb[205].mxu0  ;;  %v17282_v58 = vld [vmem:[%s24094_s3 + $0xb8] sm:$0xff]  ;;  %v17271_v55 = vadd.f32 %v17270_v63, %v20795_v50 }
 0xadf   :  { %v23070_v44 = vpop.f32.mrb[206].mxu0  ;;  %v17283_v23 = vadd.f32 %v17282_v58, %v20799_v14  ;;  %v11410_v16 = vld [vmem:[#allocation2 + $0x45c] sm:$0xff] }
 0xae0   :  { %v12702_v30 = vmax.f32 %v17253_v59, -1.0  ;;  %v17265_v45 = vadd.f32 %v17262_v33, %v22705_v21  ;;  %16669 = vmatmul.mubr.bf16.gmra.mrb[40].mxu1 %v10187_v25  ;;  %v16963_v34 = vpop.f32.mrb[207].mxu0  ;;  %v10089_v33 = vld [vmem:[#allocation2 + $0x2a3] sm:$0xff] }
 0xae1   :  { %16672 = vmatprep.mubr.msk.bf16.mxu1 %vm19832_vm0, %v24113_v52  ;;  %v10188_v63 = vpack.c.bf16 %v10090_v12, %v10089_v33  ;;  %v17294_v14 = vld [vmem:[%s24094_s3 + $0xc0] sm:$0xff] }
 0xae2   :  { %v12839_v49 = vmin.f32 %v12702_v30, 0.5  ;;  %v12703_v40 = vmax.f32 %v17265_v45, -1.0  ;;  %17069 = vmatmul.mubr.bf16.gmra.mrb[36].mxu0 %v11480_v38  ;;  %v11409_v45 = vld [vmem:[#allocation2 + $0x454] sm:$0xff] }
 0xae3   :  { %v10406_v60 = vpop.f32.mrb[212].mxu1  ;;  %17072 = vmatprep.mubr.msk.bf16.mxu0 %vm19832_vm0, %v24113_v52 }
 0xae4   :  { %12976 = vst [vmem:[%s24094_s3 + $0xa0] sm:$0xff] %v12839_v49  ;;  %v12840_v21 = vmin.f32 %v12703_v40, 0.5  ;;  %v17274_v22 = vadd.f32 %v17271_v55, %v10406_v60  ;;  %v16566_v19 = vpop.f32.mrb[213].mxu1  ;;  %v11481_v49 = vpack.c.bf16 %v11410_v16, %v11409_v45  ;;  %v17295_v60 = vadd.f32 %v17294_v14, %v20809_v27  ;;  %v10091_v16 = vld [vmem:[#allocation2 + $0x2b3] sm:$0xff]  ;;  %v11411_v14 = vld [vmem:[#allocation2 + $0x464] sm:$0xff] }
 0xae5   :  { %v10409_v62 = vpop.f32.mrb[214].mxu1  ;;  %v23088_v59 = vpop.f32.mrb[208].mxu0 }
 0xae6   :  { %12977 = vst [vmem:[%s24094_s3 + $0xa8] sm:$0xff] %v12840_v21  ;;  %v17277_v50 = vadd.f32 %v17274_v22, %v22711_v42  ;;  %v17286_v46 = vadd.f32 %v17283_v23, %v10409_v62  ;;  %v16567_v25 = vpop.f32.mrb[215].mxu1  ;;  %v16966_v35 = vpop.f32.mrb[209].mxu0  ;;  %v17306_v42 = vld [vmem:[%s24094_s3 + $0xc8] sm:$0xff]  ;;  %v10092_v21 = vld [vmem:[#allocation2 + $0x2bb] sm:$0xff] }
 0xae7   :  { %v23094_v30 = vpop.f32.mrb[210].mxu0  ;;  %v17307_v23 = vadd.f32 %v17306_v42, %v20813_v31  ;;  %v17318_v31 = vld [vmem:[%s24094_s3 + $0xd0] sm:$0xff] }
 0xae8   :  { %v12704_v34 = vmax.f32 %v17277_v50, -1.0  ;;  %v17289_v38 = vadd.f32 %v17286_v46, %v22713_v57  ;;  %16673 = vmatmul.mubr.bf16.gmra.mrb[44].mxu1 %v10188_v63  ;;  %v16967_v58 = vpop.f32.mrb[211].mxu0  ;;  %v11412_v50 = vld [vmem:[#allocation2 + $0x46c] sm:$0xff]  ;;  %v10189_v63 = vpack.c.bf16 %v10092_v21, %v10091_v16 }
 0xae9   :  { %16676 = vmatprep.mubr.msk.bf16.mxu1 %vm19832_vm0, %v24113_v52 }
 0xaea   :  { %v12841_v40 = vmin.f32 %v12704_v34, 0.5  ;;  %v12705_v55 = vmax.f32 %v17289_v38, -1.0  ;;  %17073 = vmatmul.mubr.bf16.gmra.mrb[40].mxu0 %v11481_v49  ;;  %v11482_v49 = vpack.c.bf16 %v11412_v50, %v11411_v14 }
 0xaeb   :  { %v10414_v12 = vpop.f32.mrb[216].mxu1  ;;  %17076 = vmatprep.mubr.msk.bf16.mxu0 %vm19832_vm0, %v24113_v52 }
 0xaec   :  { %12978 = vst [vmem:[%s24094_s3 + $0xb0] sm:$0xff] %v12841_v40  ;;  %v12842_v57 = vmin.f32 %v12705_v55, 0.5  ;;  %v17298_v22 = vadd.f32 %v17295_v60, %v10414_v12  ;;  %v16570_v19 = vpop.f32.mrb[217].mxu1  ;;  %v17319_v55 = vadd.f32 %v17318_v31, %v20823_v43  ;;  %v10094_v12 = vld [vmem:[#allocation2 + $0x2cb] sm:$0xff] }
 0xaed   :  { %v10417_v62 = vpop.f32.mrb[218].mxu1  ;;  %v23112_v33 = vpop.f32.mrb[212].mxu0  ;;  %v17354_v31 = vld [vmem:[%s24094_s3 + $0xe8] sm:$0xff] }
 0xaee   :  { %12979 = vst [vmem:[%s24094_s3 + $0xb8] sm:$0xff] %v12842_v57  ;;  %v17301_v27 = vadd.f32 %v17298_v22, %v22719_v5  ;;  %v17310_v46 = vadd.f32 %v17307_v23, %v10417_v62  ;;  %v16571_v25 = vpop.f32.mrb[219].mxu1  ;;  %v16970_v35 = vpop.f32.mrb[213].mxu0  ;;  %v17330_v5 = vld [vmem:[%s24094_s3 + $0xd8] sm:$0xff]  ;;  %v10093_v62 = vld [vmem:[#allocation2 + $0x2c3] sm:$0xff] }
 0xaef   :  { %v23118_v45 = vpop.f32.mrb[214].mxu0  ;;  %v17331_v22 = vadd.f32 %v17330_v5, %v20827_v48  ;;  %v17342_v48 = vld [vmem:[%s24094_s3 + $0xe0] sm:$0xff] }
 0xaf0   :  { %v12706_v34 = vmax.f32 %v17301_v27, -1.0  ;;  %v17313_v38 = vadd.f32 %v17310_v46, %v22721_v29  ;;  %16677 = vmatmul.mubr.bf16.gmra.mrb[48].mxu1 %v10189_v63  ;;  %v16971_v58 = vpop.f32.mrb[215].mxu0  ;;  %v10190_v46 = vpack.c.bf16 %v10094_v12, %v10093_v62  ;;  %v10095_v12 = vld [vmem:[#allocation2 + $0x2d3] sm:$0xff] }
 0xaf1   :  { %16680 = vmatprep.mubr.msk.bf16.mxu1 %vm19832_vm0, %v24113_v52 }
 0xaf2   :  { %v12843_v42 = vmin.f32 %v12706_v34, 0.5  ;;  %v12707_v40 = vmax.f32 %v17313_v38, -1.0  ;;  %17077 = vmatmul.mubr.bf16.gmra.mrb[44].mxu0 %v11482_v49  ;;  %v17343_v38 = vadd.f32 %v17342_v48, %v20837_v1  ;;  %v10096_v49 = vld [vmem:[#allocation2 + $0x2db] sm:$0xff] }
 0xaf3   :  { %v10422_v60 = vpop.f32.mrb[220].mxu1 }
 0xaf4   :  { %12980 = vst [vmem:[%s24094_s3 + $0xc0] sm:$0xff] %v12843_v42  ;;  %v12844_v29 = vmin.f32 %v12707_v40, 0.5  ;;  %v17322_v21 = vadd.f32 %v17319_v55, %v10422_v60  ;;  %v16574_v57 = vpop.f32.mrb[221].mxu1  ;;  %v17355_v40 = vadd.f32 %v17354_v31, %v20841_v7 }
 0xaf5   :  { %v10425_v19 = vpop.f32.mrb[222].mxu1  ;;  %v23134_v23 = vpop.f32.mrb[216].mxu0 }
 0xaf6   :  { %12981 = vst [vmem:[%s24094_s3 + $0xc8] sm:$0xff] %v12844_v29  ;;  %v17325_v43 = vadd.f32 %v17322_v21, %v22727_v4  ;;  %v17334_v16 = vadd.f32 %v17331_v22, %v10425_v19  ;;  %v16575_v50 = vpop.f32.mrb[223].mxu1  ;;  %v16974_v27 = vpop.f32.mrb[217].mxu0  ;;  %v10191_v22 = vpack.c.bf16 %v10096_v49, %v10095_v12 }
 0xaf7   :  { %v23140_v25 = vpop.f32.mrb[218].mxu0 }
 0xaf8   :  { %v12708_v35 = vmax.f32 %v17325_v43, -1.0  ;;  %v17337_v63 = vadd.f32 %v17334_v16, %v22729_v26  ;;  %16681 = vmatmul.mubr.bf16.gmra.mrb[220].mxu1 %v10190_v46  ;;  %v16975_v14 = vpop.f32.mrb[219].mxu0  ;;  %v10098_v46 = vld [vmem:[#allocation2 + $0x2eb] sm:$0xff] }
 0xaf9   :  { %16684 = vmatprep.mubr.msk.bf16.mxu1 %vm19832_vm0, %v24113_v52  ;;  %v17369_v14 = vld [vmem:[%s24094_s3 + $0xf8] sm:$0xff] }
 0xafa   :  { %v12845_v4 = vmin.f32 %v12708_v35, 0.5  ;;  %v12709_v34 = vmax.f32 %v17337_v63, -1.0 }
 0xafb   :  { %v10430_v58 = vpop.f32.mrb[224].mxu1 }
 0xafc   :  { %12982 = vst [vmem:[%s24094_s3 + $0xd0] sm:$0xff] %v12845_v4  ;;  %v12846_v26 = vmin.f32 %v12709_v34, 0.5  ;;  %v17346_v5 = vadd.f32 %v17343_v38, %v10430_v58  ;;  %v16578_v42 = vpop.f32.mrb[225].mxu1  ;;  %v10097_v4 = vld [vmem:[#allocation2 + $0x2e3] sm:$0xff] }
 0xafd   :  { %v10433_v55 = vpop.f32.mrb[226].mxu1  ;;  %v23156_v60 = vpop.f32.mrb[220].mxu0 }
 0xafe   :  { %12983 = vst [vmem:[%s24094_s3 + $0xd8] sm:$0xff] %v12846_v26  ;;  %v17349_v1 = vadd.f32 %v17346_v5, %v22735_v8  ;;  %v17358_v29 = vadd.f32 %v17355_v40, %v10433_v55  ;;  %v16579_v21 = vpop.f32.mrb[227].mxu1  ;;  %v16978_v57 = vpop.f32.mrb[221].mxu0  ;;  %v17363_v8 = vld [vmem:[%s24094_s3 + $0xf0] sm:$0xff]  ;;  %v10192_v26 = vpack.c.bf16 %v10098_v46, %v10097_v4 }
 0xaff   :  { %v23162_v19 = vpop.f32.mrb[222].mxu0  ;;  %v10100_v21 = vld [vmem:[#allocation2 + $0x2fb] sm:$0xff] }
 0xb00   :  { %v12710_v62 = vmax.f32 %v17349_v1, -1.0  ;;  %v17361_v43 = vadd.f32 %v17358_v29, %v22737_v32  ;;  %16685 = vmatmul.mubr.bf16.gmra.mrb[224].mxu1 %v10191_v22  ;;  %v16979_v7 = vpop.f32.mrb[223].mxu0 }
 0xb01   :  { %16688 = vmatprep.mubr.msk.bf16.mxu1 %vm19832_vm0, %v24113_v52 }
 0xb02   :  { %v12847_v16 = vmin.f32 %v12710_v62, 0.5  ;;  %v12711_v50 = vmax.f32 %v17361_v43, -1.0  ;;  %v17381_v43 = vld [vmem:[%s24094_s3 + $0x108] sm:$0xff] }
 0xb03   :  { %v10438_v27 = vpop.f32.mrb[60].mxu1 }
 0xb04   :  { %12984 = vst [vmem:[%s24094_s3 + $0xe0] sm:$0xff] %v12847_v16  ;;  %v12848_v48 = vmin.f32 %v12711_v50, 0.5  ;;  %v17364_v35 = vadd.f32 %v17363_v8, %v10438_v27  ;;  %v16582_v32 = vpop.f32.mrb[61].mxu1  ;;  %v10099_v16 = vld [vmem:[#allocation2 + $0x2f3] sm:$0xff] }
 0xb05   :  { %v10441_v63 = vpop.f32.mrb[62].mxu1  ;;  %v23176_v31 = vpop.f32.mrb[224].mxu0 }
 0xb06   :  { %12985 = vst [vmem:[%s24094_s3 + $0xe8] sm:$0xff] %v12848_v48  ;;  %v17367_v34 = vadd.f32 %v17364_v35, %v22743_v17  ;;  %v17370_v38 = vadd.f32 %v17369_v14, %v10441_v63  ;;  %v16583_v58 = vpop.f32.mrb[63].mxu1  ;;  %v16982_v49 = vpop.f32.mrb[225].mxu0  ;;  %v17375_v17 = vld [vmem:[%s24094_s3 + $0x100] sm:$0xff]  ;;  %v10193_v48 = vpack.c.bf16 %v10100_v21, %v10099_v16 }
 0xb07   :  { %v23182_v5 = vpop.f32.mrb[226].mxu0  ;;  %v10102_v58 = vld [vmem:[#allocation2 + $0x30b] sm:$0xff] }
 0xb08   :  { %v12712_v42 = vmax.f32 %v17367_v34, -1.0  ;;  %v17373_v40 = vadd.f32 %v17370_v38, %v22745_v61  ;;  %16689 = vmatmul.mubr.bf16.gmra.mrb[60].mxu1 %v10192_v26  ;;  %v16983_v55 = vpop.f32.mrb[227].mxu0 }
 0xb09   :  { %16692 = vmatprep.mubr.msk.bf16.mxu1 %vm19832_vm0, %v24113_v52 }
 0xb0a   :  { %v12849_v12 = vmin.f32 %v12712_v42, 0.5  ;;  %v12713_v1 = vmax.f32 %v17373_v40, -1.0  ;;  %v17393_v40 = vld [vmem:[%s24094_s3 + $0x118] sm:$0xff] }
 0xb0b   :  { %v10446_v29 = vpop.f32.mrb[64].mxu1 }
 0xb0c   :  { %12986 = vst [vmem:[%s24094_s3 + $0xf0] sm:$0xff] %v12849_v12  ;;  %v12850_v57 = vmin.f32 %v12713_v1, 0.5  ;;  %v17376_v22 = vadd.f32 %v17375_v17, %v10446_v29  ;;  %v16586_v61 = vpop.f32.mrb[65].mxu1  ;;  %v10101_v12 = vld [vmem:[#allocation2 + $0x303] sm:$0xff]  ;;  %v24135_v1 = vld [vmem:[#allocation19_spill] sm:$0xff] }
 0xb0d   :  { %v10449_v62 = vpop.f32.mrb[66].mxu1  ;;  %v23196_v7 = vpop.f32.mrb[228].mxu0 }
 0xb0e   :  { %12987 = vst [vmem:[%s24094_s3 + $0xf8] sm:$0xff] %v12850_v57  ;;  %v17379_v50 = vadd.f32 %v17376_v22, %v22751_v37  ;;  %v17382_v27 = vadd.f32 %v17381_v43, %v10449_v62  ;;  %v16587_v8 = vpop.f32.mrb[67].mxu1  ;;  %v16986_v46 = vpop.f32.mrb[229].mxu0  ;;  %v17387_v37 = vld [vmem:[%s24094_s3 + $0x110] sm:$0xff]  ;;  %v10194_v22 = vpack.c.bf16 %v10102_v58, %v10101_v12  ;;  %v24136_v43 = vld [vmem:[#allocation20_spill] sm:$0xff] }
 0xb0f   :  { %v23202_v35 = vpop.f32.mrb[230].mxu0  ;;  %v10103_v58 = vld [vmem:[#allocation2 + $0x313] sm:$0xff] }
 0xb10   :  { %v12714_v32 = vmax.f32 %v17379_v50, -1.0  ;;  %v17385_v63 = vadd.f32 %v17382_v27, %v22753_v3  ;;  %16693 = vmatmul.mubr.bf16.gmra.mrb[64].mxu1 %v10193_v48  ;;  %v16987_v14 = vpop.f32.mrb[231].mxu0  ;;  %v17399_v48 = vld [vmem:[%s24094_s3 + $0x120] sm:$0xff] }
 0xb11   :  { %16696 = vmatprep.mubr.msk.bf16.mxu1 %vm19832_vm0, %v24113_v52 }
 0xb12   :  { %v12851_v4 = vmin.f32 %v12714_v32, 0.5  ;;  %v12715_v34 = vmax.f32 %v17385_v63, -1.0  ;;  %v10104_v32 = vld [vmem:[#allocation2 + $0x31b] sm:$0xff] }
 0xb13   :  { %v10454_v38 = vpop.f32.mrb[68].mxu1  ;;  %v10195_v12 = vpack.c.bf16 %v10104_v32, %v10103_v58  ;;  %v17417_v32 = vld [vmem:[%s24094_s3 + $0x138] sm:$0xff] }
 0xb14   :  { %12988 = vst [vmem:[%s24094_s3 + $0x100] sm:$0xff] %v12851_v4  ;;  %v12852_v49 = vmin.f32 %v12715_v34, 0.5  ;;  %v17388_v26 = vadd.f32 %v17387_v37, %v10454_v38  ;;  %v16590_v3 = vpop.f32.mrb[69].mxu1  ;;  %v17405_v38 = vld [vmem:[%s24094_s3 + $0x128] sm:$0xff] }
 0xb15   :  { %v10457_v42 = vpop.f32.mrb[70].mxu1  ;;  %v23216_v55 = vpop.f32.mrb[232].mxu0 }
 0xb16   :  { %12989 = vst [vmem:[%s24094_s3 + $0x108] sm:$0xff] %v12852_v49  ;;  %v17391_v29 = vadd.f32 %v17388_v26, %v24135_v1  ;;  %v17394_v17 = vadd.f32 %v17393_v40, %v10457_v42  ;;  %v16591_v21 = vpop.f32.mrb[71].mxu1  ;;  %v16990_v57 = vpop.f32.mrb[233].mxu0  ;;  %v24137_v49 = vld [vmem:[#allocation21_spill] sm:$0xff] }
 0xb17   :  { %v23222_v61 = vpop.f32.mrb[234].mxu0 }
 0xb18   :  { %v12716_v62 = vmax.f32 %v17391_v29, -1.0  ;;  %v17397_v16 = vadd.f32 %v17394_v17, %v24136_v43  ;;  %16697 = vmatmul.mubr.bf16.gmra.mrb[68].mxu1 %v10194_v22  ;;  %v16991_v50 = vpop.f32.mrb[235].mxu0  ;;  %v24138_v17 = vld [vmem:[#allocation22_spill] sm:$0xff] }
 0xb19   :  { %16700 = vmatprep.mubr.msk.bf16.mxu1 %vm19832_vm0, %v24113_v52  ;;  %v10106_v50 = vld [vmem:[#allocation2 + $0x32b] sm:$0xff] }
 0xb1a   :  { %v12853_v27 = vmin.f32 %v12716_v62, 0.5  ;;  %v12717_v8 = vmax.f32 %v17397_v16, -1.0  ;;  %v17411_v16 = vld [vmem:[%s24094_s3 + $0x130] sm:$0xff] }
 0xb1b   :  { %v10462_v46 = vpop.f32.mrb[72].mxu1 }
 0xb1c   :  { %12990 = vst [vmem:[%s24094_s3 + $0x110] sm:$0xff] %v12853_v27  ;;  %v12854_v63 = vmin.f32 %v12717_v8, 0.5  ;;  %v17400_v14 = vadd.f32 %v17399_v48, %v10462_v46  ;;  %v16594_v4 = vpop.f32.mrb[73].mxu1 }
 0xb1d   :  { %v10465_v34 = vpop.f32.mrb[74].mxu1  ;;  %v23236_v37 = vpop.f32.mrb[236].mxu0  ;;  %v24139_v4 = vld [vmem:[#allocation23_spill] sm:$0xff] }
 0xb1e   :  { %12991 = vst [vmem:[%s24094_s3 + $0x118] sm:$0xff] %v12854_v63  ;;  %v17403_v26 = vadd.f32 %v17400_v14, %v24137_v49  ;;  %v17406_v3 = vadd.f32 %v17405_v38, %v10465_v34  ;;  %v16595_v42 = vpop.f32.mrb[75].mxu1  ;;  %v16994_v40 = vpop.f32.mrb[237].mxu0  ;;  %v10105_v14 = vld [vmem:[#allocation2 + $0x323] sm:$0xff] }
 0xb1f   :  { %v23242_v1 = vpop.f32.mrb[238].mxu0  ;;  %v24140_v40 = vld [vmem:[#allocation24_spill] sm:$0xff] }
 0xb20   :  { %v12718_v29 = vmax.f32 %v17403_v26, -1.0  ;;  %v17409_v21 = vadd.f32 %v17406_v3, %v24138_v17  ;;  %16701 = vmatmul.mubr.bf16.gmra.mrb[180].mxu1 %v10195_v12  ;;  %v16995_v57 = vpop.f32.mrb[239].mxu0  ;;  %v10196_v26 = vpack.c.bf16 %v10106_v50, %v10105_v14 }
 0xb21   :  { %16704 = vmatprep.mubr.msk.bf16.mxu1 %vm19832_vm0, %v24113_v52 }
 0xb22   :  { %v12855_v22 = vmin.f32 %v12718_v29, 0.5  ;;  %v12719_v62 = vmax.f32 %v17409_v21, -1.0 }
 0xb23   :  { %v10470_v43 = vpop.f32.mrb[76].mxu1 }
 0xb24   :  { %12992 = vst [vmem:[%s24094_s3 + $0x120] sm:$0xff] %v12855_v22  ;;  %v12856_v27 = vmin.f32 %v12719_v62, 0.5  ;;  %v17412_v8 = vadd.f32 %v17411_v16, %v10470_v43  ;;  %v16598_v46 = vpop.f32.mrb[77].mxu1  ;;  %v17423_v22 = vld [vmem:[%s24094_s3 + $0x140] sm:$0xff] }
 0xb25   :  { %v10473_v48 = vpop.f32.mrb[78].mxu1  ;;  %v23256_v63 = vpop.f32.mrb[240].mxu0  ;;  %v10108_v62 = vld [vmem:[#allocation2 + $0x33b] sm:$0xff] }
 0xb26   :  { %12993 = vst [vmem:[%s24094_s3 + $0x128] sm:$0xff] %v12856_v27  ;;  %v17415_v34 = vadd.f32 %v17412_v8, %v24139_v4  ;;  %v17418_v38 = vadd.f32 %v17417_v32, %v10473_v48  ;;  %v16599_v58 = vpop.f32.mrb[79].mxu1  ;;  %v16998_v49 = vpop.f32.mrb[241].mxu0  ;;  %v17429_v8 = vld [vmem:[%s24094_s3 + $0x148] sm:$0xff]  ;;  %v10107_v48 = vld [vmem:[#allocation2 + $0x333] sm:$0xff]  ;;  %v24141_v32 = vld [vmem:[#allocation25_spill] sm:$0xff] }
 0xb27   :  { %v23262_v3 = vpop.f32.mrb[242].mxu0  ;;  %v10197_v58 = vpack.c.bf16 %v10108_v62, %v10107_v48  ;;  %v10109_v48 = vld [vmem:[#allocation2 + $0x343] sm:$0xff] }
 0xb28   :  { %v12720_v42 = vmax.f32 %v17415_v34, -1.0  ;;  %v17421_v12 = vadd.f32 %v17418_v38, %v24140_v40  ;;  %16705 = vmatmul.mubr.bf16.gmra.mrb[184].mxu1 %v10196_v26  ;;  %v16999_v29 = vpop.f32.mrb[243].mxu0 }
 0xb29   :  { %16708 = vmatprep.mubr.msk.bf16.mxu1 %vm19832_vm0, %v24113_v52 }
 0xb2a   :  { %v12857_v17 = vmin.f32 %v12720_v42, 0.5  ;;  %v12721_v21 = vmax.f32 %v17421_v12, -1.0  ;;  %v24142_v42 = vld [vmem:[#allocation26_spill] sm:$0xff] }
 0xb2b   :  { %v10478_v57 = vpop.f32.mrb[80].mxu1 }
 0xb2c   :  { %12994 = vst [vmem:[%s24094_s3 + $0x130] sm:$0xff] %v12857_v17  ;;  %v12858_v43 = vmin.f32 %v12721_v21, 0.5  ;;  %v17424_v16 = vadd.f32 %v17423_v22, %v10478_v57  ;;  %v16602_v50 = vpop.f32.mrb[81].mxu1  ;;  %v17435_v57 = vld [vmem:[%s24094_s3 + $0x150] sm:$0xff] }
 0xb2d   :  { %v10481_v27 = vpop.f32.mrb[82].mxu1  ;;  %v23276_v46 = vpop.f32.mrb[136].mxu0  ;;  %v10110_v22 = vld [vmem:[#allocation2 + $0x34b] sm:$0xff] }
 0xb2e   :  { %12995 = vst [vmem:[%s24094_s3 + $0x138] sm:$0xff] %v12858_v43  ;;  %v17427_v14 = vadd.f32 %v17424_v16, %v24141_v32  ;;  %v17430_v4 = vadd.f32 %v17429_v8, %v10481_v27  ;;  %v16603_v34 = vpop.f32.mrb[83].mxu1  ;;  %v17002_v38 = vpop.f32.mrb[137].mxu0  ;;  %v17441_v27 = vld [vmem:[%s24094_s3 + $0x158] sm:$0xff]  ;;  %v24143_v32 = vld [vmem:[#allocation27_spill] sm:$0xff] }
 0xb2f   :  { %v23282_v49 = vpop.f32.mrb[138].mxu0 }
 0xb30   :  { %v12722_v26 = vmax.f32 %v17427_v14, -1.0  ;;  %v17433_v40 = vadd.f32 %v17430_v4, %v24142_v42  ;;  %16709 = vmatmul.mubr.bf16.gmra.mrb[188].mxu1 %v10197_v58  ;;  %v17003_v12 = vpop.f32.mrb[139].mxu0  ;;  %v10198_v58 = vpack.c.bf16 %v10110_v22, %v10109_v48  ;;  %v17453_v48 = vld [vmem:[%s24094_s3 + $0x168] sm:$0xff] }
 0xb31   :  { %16712 = vmatprep.mubr.msk.bf16.mxu1 %vm19832_vm0, %v24113_v52 }
 0xb32   :  { %v12859_v29 = vmin.f32 %v12722_v26, 0.5  ;;  %v12723_v17 = vmax.f32 %v17433_v40, -1.0  ;;  %v24144_v40 = vld [vmem:[#allocation28_spill] sm:$0xff] }
 0xb33   :  { %v10486_v21 = vpop.f32.mrb[84].mxu1 }
 0xb34   :  { %12996 = vst [vmem:[%s24094_s3 + $0x140] sm:$0xff] %v12859_v29  ;;  %v12860_v62 = vmin.f32 %v12723_v17, 0.5  ;;  %v17436_v43 = vadd.f32 %v17435_v57, %v10486_v21  ;;  %v16606_v16 = vpop.f32.mrb[85].mxu1 }
 0xb35   :  { %v10489_v50 = vpop.f32.mrb[86].mxu1  ;;  %v23296_v8 = vpop.f32.mrb[140].mxu0 }
 0xb36   :  { %12997 = vst [vmem:[%s24094_s3 + $0x148] sm:$0xff] %v12860_v62  ;;  %v17439_v14 = vadd.f32 %v17436_v43, %v24143_v32  ;;  %v17442_v4 = vadd.f32 %v17441_v27, %v10489_v50  ;;  %v16607_v34 = vpop.f32.mrb[87].mxu1  ;;  %v17006_v38 = vpop.f32.mrb[141].mxu0  ;;  %v17447_v62 = vld [vmem:[%s24094_s3 + $0x160] sm:$0xff] }
 0xb37   :  { %v23302_v26 = vpop.f32.mrb[142].mxu0  ;;  %v10112_v43 = vld [vmem:[#allocation2 + $0x35b] sm:$0xff] }
 0xb38   :  { %v12724_v42 = vmax.f32 %v17439_v14, -1.0  ;;  %v17445_v12 = vadd.f32 %v17442_v4, %v24144_v40  ;;  %16713 = vmatmul.mubr.bf16.gmra.mrb[192].mxu1 %v10198_v58  ;;  %v17007_v29 = vpop.f32.mrb[143].mxu0  ;;  %v10111_v14 = vld [vmem:[#allocation2 + $0x353] sm:$0xff]  ;;  %v24146_v4 = vld [vmem:[#allocation29_spill] sm:$0xff] }
 0xb39   :  { %16716 = vmatprep.mubr.msk.bf16.mxu1 %vm19832_vm0, %v24113_v52  ;;  %v10199_v40 = vpack.c.bf16 %v10112_v43, %v10111_v14 }
 0xb3a   :  { %v12861_v17 = vmin.f32 %v12724_v42, 0.5  ;;  %v12725_v21 = vmax.f32 %v17445_v12, -1.0 }
 0xb3b   :  { %v10494_v57 = vpop.f32.mrb[88].mxu1 }
 0xb3c   :  { %12998 = vst [vmem:[%s24094_s3 + $0x150] sm:$0xff] %v12861_v17  ;;  %v12862_v22 = vmin.f32 %v12725_v21, 0.5  ;;  %v17448_v16 = vadd.f32 %v17447_v62, %v10494_v57  ;;  %v16610_v50 = vpop.f32.mrb[89].mxu1  ;;  %v24148_v17 = vld [vmem:[#allocation30_spill] sm:$0xff] }
 0xb3d   :  { %v10497_v27 = vpop.f32.mrb[90].mxu1  ;;  %v23316_v32 = vpop.f32.mrb[144].mxu0 }
 0xb3e   :  { %24145 = vst [vmem:[#allocation19_spill] sm:$0xff] %v23316_v32  ;;  %12999 = vst [vmem:[%s24094_s3 + $0x158] sm:$0xff] %v12862_v22  ;;  %v17451_v34 = vadd.f32 %v17448_v16, %v24146_v4  ;;  %v17454_v38 = vadd.f32 %v17453_v48, %v10497_v27  ;;  %v16611_v58 = vpop.f32.mrb[91].mxu1  ;;  %v17010_v42 = vpop.f32.mrb[145].mxu0  ;;  %v17459_v22 = vld [vmem:[%s24094_s3 + $0x170] sm:$0xff]  ;;  %v17465_v4 = vld [vmem:[%s24094_s3 + $0x178] sm:$0xff] }
 0xb3f   :  { %v23322_v12 = vpop.f32.mrb[146].mxu0  ;;  %v10114_v16 = vld [vmem:[#allocation2 + $0x36b] sm:$0xff] }
 0xb40   :  { %24147 = vst [vmem:[#allocation20_spill] sm:$0xff] %v23322_v12  ;;  %v12726_v29 = vmax.f32 %v17451_v34, -1.0  ;;  %v17457_v21 = vadd.f32 %v17454_v38, %v24148_v17  ;;  %16717 = vmatmul.mubr.bf16.gmra.mrb[196].mxu1 %v10199_v40  ;;  %v17011_v57 = vpop.f32.mrb[147].mxu0  ;;  %v10113_v38 = vld [vmem:[#allocation2 + $0x363] sm:$0xff]  ;;  %v24150_v58 = vld [vmem:[#allocation31_spill] sm:$0xff] }
 0xb41   :  { %16720 = vmatprep.mubr.msk.bf16.mxu1 %vm19832_vm0, %v24113_v52 }
 0xb42   :  { %v12863_v62 = vmin.f32 %v12726_v29, 0.5  ;;  %v12727_v50 = vmax.f32 %v17457_v21, -1.0  ;;  %v10200_v21 = vpack.c.bf16 %v10114_v16, %v10113_v38 }
 0xb43   :  { %v10502_v32 = vpop.f32.mrb[92].mxu1 }
 0xb44   :  { %13000 = vst [vmem:[%s24094_s3 + $0x160] sm:$0xff] %v12863_v62  ;;  %v12864_v43 = vmin.f32 %v12727_v50, 0.5  ;;  %v17460_v27 = vadd.f32 %v17459_v22, %v10502_v32  ;;  %v16614_v48 = vpop.f32.mrb[93].mxu1  ;;  %v24152_v62 = vld [vmem:[#allocation32_spill] sm:$0xff] }
 0xb45   :  { %v10505_v14 = vpop.f32.mrb[94].mxu1  ;;  %v23336_v34 = vpop.f32.mrb[148].mxu0 }
 0xb46   :  { %24149 = vst [vmem:[#allocation21_spill] sm:$0xff] %v23336_v34  ;;  %13001 = vst [vmem:[%s24094_s3 + $0x168] sm:$0xff] %v12864_v43  ;;  %v17463_v42 = vadd.f32 %v17460_v27, %v24150_v58  ;;  %v17466_v40 = vadd.f32 %v17465_v4, %v10505_v14  ;;  %v16615_v29 = vpop.f32.mrb[95].mxu1  ;;  %v17014_v17 = vpop.f32.mrb[149].mxu0  ;;  %v17471_v43 = vld [vmem:[%s24094_s3 + $0x180] sm:$0xff]  ;;  %v17477_v58 = vld [vmem:[%s24094_s3 + $0x188] sm:$0xff] }
 0xb47   :  { %v23342_v32 = vpop.f32.mrb[150].mxu0  ;;  %v10116_v27 = vld [vmem:[#allocation2 + $0x37b] sm:$0xff] }
 0xb48   :  { %24151 = vst [vmem:[#allocation22_spill] sm:$0xff] %v23342_v32  ;;  %v12728_v57 = vmax.f32 %v17463_v42, -1.0  ;;  %v17469_v50 = vadd.f32 %v17466_v40, %v24152_v62  ;;  %16721 = vmatmul.mubr.bf16.gmra.mrb[200].mxu1 %v10200_v21  ;;  %v17015_v22 = vpop.f32.mrb[151].mxu0  ;;  %v10115_v40 = vld [vmem:[#allocation2 + $0x373] sm:$0xff]  ;;  %v24154_v29 = vld [vmem:[#allocation33_spill] sm:$0xff] }
 0xb49   :  { %16724 = vmatprep.mubr.msk.bf16.mxu1 %vm19832_vm0, %v24113_v52  ;;  %v24156_v22 = vld [vmem:[#allocation34_spill] sm:$0xff] }
 0xb4a   :  { %v12865_v48 = vmin.f32 %v12728_v57, 0.5  ;;  %v12729_v34 = vmax.f32 %v17469_v50, -1.0 }
 0xb4b   :  { %v10510_v12 = vpop.f32.mrb[96].mxu1 }
 0xb4c   :  { %13002 = vst [vmem:[%s24094_s3 + $0x170] sm:$0xff] %v12865_v48  ;;  %v12866_v16 = vmin.f32 %v12729_v34, 0.5  ;;  %v17472_v14 = vadd.f32 %v17471_v43, %v10510_v12  ;;  %v16618_v4 = vpop.f32.mrb[97].mxu1  ;;  %v10201_v34 = vpack.c.bf16 %v10116_v27, %v10115_v40 }
 0xb4d   :  { %v10513_v38 = vpop.f32.mrb[98].mxu1  ;;  %v23356_v42 = vpop.f32.mrb[152].mxu0 }
 0xb4e   :  { %24153 = vst [vmem:[#allocation23_spill] sm:$0xff] %v23356_v42  ;;  %13003 = vst [vmem:[%s24094_s3 + $0x178] sm:$0xff] %v12866_v16  ;;  %v17475_v17 = vadd.f32 %v17472_v14, %v24154_v29  ;;  %v17478_v21 = vadd.f32 %v17477_v58, %v10513_v38  ;;  %v16619_v57 = vpop.f32.mrb[99].mxu1  ;;  %v17018_v62 = vpop.f32.mrb[153].mxu0  ;;  %v17486_v16 = vld [vmem:[%s24094_s3 + $0x190] sm:$0xff]  ;;  %v17495_v29 = vld [vmem:[%s24094_s3 + $0x198] sm:$0xff] }
 0xb4f   :  { %v23362_v12 = vpop.f32.mrb[154].mxu0  ;;  %v10118_v14 = vld [vmem:[#allocation2 + $0x38b] sm:$0xff] }
 0xb50   :  { %24155 = vst [vmem:[#allocation24_spill] sm:$0xff] %v23362_v12  ;;  %v12730_v50 = vmax.f32 %v17475_v17, -1.0  ;;  %v17481_v48 = vadd.f32 %v17478_v21, %v24156_v22  ;;  %16725 = vmatmul.mubr.bf16.gmra.mrb[204].mxu1 %v10201_v34  ;;  %v17019_v43 = vpop.f32.mrb[155].mxu0  ;;  %v10117_v21 = vld [vmem:[#allocation2 + $0x383] sm:$0xff]  ;;  %v24158_v57 = vld [vmem:[#allocation35_spill] sm:$0xff] }
 0xb51   :  { %16728 = vmatprep.mubr.msk.bf16.mxu1 %vm19832_vm0, %v24113_v52  ;;  %v24160_v43 = vld [vmem:[#allocation36_spill] sm:$0xff] }
 0xb52   :  { %v12867_v4 = vmin.f32 %v12730_v50, 0.5  ;;  %v12731_v42 = vmax.f32 %v17481_v48, -1.0 }
 0xb53   :  { %v10518_v32 = vpop.f32.mrb[160].mxu1 }
 0xb54   :  { %13004 = vst [vmem:[%s24094_s3 + $0x180] sm:$0xff] %v12867_v4  ;;  %v12868_v27 = vmin.f32 %v12731_v42, 0.5  ;;  %v17487_v38 = vadd.f32 %v17486_v16, %v10518_v32  ;;  %v16622_v58 = vpop.f32.mrb[161].mxu1  ;;  %v10202_v42 = vpack.c.bf16 %v10118_v14, %v10117_v21 }
 0xb55   :  { %v10521_v40 = vpop.f32.mrb[162].mxu1  ;;  %v23376_v17 = vpop.f32.mrb[8].mxu0 }
 0xb56   :  { %24157 = vst [vmem:[#allocation25_spill] sm:$0xff] %v23376_v17  ;;  %13005 = vst [vmem:[%s24094_s3 + $0x188] sm:$0xff] %v12868_v27  ;;  %v17490_v62 = vadd.f32 %v17487_v38, %v24158_v57  ;;  %v17496_v34 = vadd.f32 %v17495_v29, %v10521_v40  ;;  %v16623_v50 = vpop.f32.mrb[163].mxu1  ;;  %v17022_v22 = vpop.f32.mrb[9].mxu0  ;;  %v17504_v27 = vld [vmem:[%s24094_s3 + $0x1a0] sm:$0xff]  ;;  %v17513_v57 = vld [vmem:[%s24094_s3 + $0x1a8] sm:$0xff] }
 0xb57   :  { %v23382_v32 = vpop.f32.mrb[10].mxu0  ;;  %v10120_v38 = vld [vmem:[#allocation2 + $0x39b] sm:$0xff] }
 0xb58   :  { %24159 = vst [vmem:[#allocation26_spill] sm:$0xff] %v23382_v32  ;;  %v12732_v48 = vmax.f32 %v17490_v62, -1.0  ;;  %v17499_v4 = vadd.f32 %v17496_v34, %v24160_v43  ;;  %16729 = vmatmul.mubr.bf16.gmra.mrb[100].mxu1 %v10202_v42  ;;  %v17023_v16 = vpop.f32.mrb[11].mxu0  ;;  %v10119_v34 = vld [vmem:[#allocation2 + $0x393] sm:$0xff]  ;;  %v24162_v50 = vld [vmem:[#allocation37_spill] sm:$0xff] }
 0xb59   :  { %16732 = vmatprep.mubr.msk.bf16.mxu1 %vm19832_vm0, %v24113_v52  ;;  %v24163_v16 = vld [vmem:[#allocation38_spill] sm:$0xff] }
 0xb5a   :  { %v12869_v58 = vmin.f32 %v12732_v48, 0.5  ;;  %v12733_v17 = vmax.f32 %v17499_v4, -1.0 }
 0xb5b   :  { %v10526_v12 = vpop.f32.mrb[164].mxu1 }
 0xb5c   :  { %13006 = vst [vmem:[%s24094_s3 + $0x190] sm:$0xff] %v12869_v58  ;;  %v12870_v14 = vmin.f32 %v12733_v17, 0.5  ;;  %v17505_v40 = vadd.f32 %v17504_v27, %v10526_v12  ;;  %v16626_v29 = vpop.f32.mrb[165].mxu1  ;;  %v10203_v17 = vpack.c.bf16 %v10120_v38, %v10119_v34 }
 0xb5d   :  { %v10529_v21 = vpop.f32.mrb[166].mxu1  ;;  %v23396_v62 = vpop.f32.mrb[12].mxu0 }
 0xb5e   :  { %24161 = vst [vmem:[#allocation27_spill] sm:$0xff] %v23396_v62  ;;  %13007 = vst [vmem:[%s24094_s3 + $0x198] sm:$0xff] %v12870_v14  ;;  %v17508_v22 = vadd.f32 %v17505_v40, %v24162_v50  ;;  %v17514_v42 = vadd.f32 %v17513_v57, %v10529_v21  ;;  %v16627_v48 = vpop.f32.mrb[167].mxu1  ;;  %v17026_v43 = vpop.f32.mrb[13].mxu0  ;;  %v17522_v14 = vld [vmem:[%s24094_s3 + $0x1b0] sm:$0xff]  ;;  %v17531_v50 = vld [vmem:[%s24094_s3 + $0x1b8] sm:$0xff] }
 0xb5f   :  { %v23402_v12 = vpop.f32.mrb[14].mxu0  ;;  %v10122_v40 = vld [vmem:[#allocation2 + $0x3ab] sm:$0xff] }
 0xb60   :  { %v12734_v4 = vmax.f32 %v17508_v22, -1.0  ;;  %v17517_v58 = vadd.f32 %v17514_v42, %v24163_v16  ;;  %16733 = vmatmul.mubr.bf16.gmra.mrb[104].mxu1 %v10203_v17  ;;  %v17027_v27 = vpop.f32.mrb[15].mxu0  ;;  %v10121_v42 = vld [vmem:[#allocation2 + $0x3a3] sm:$0xff]  ;;  %v24165_v48 = vld [vmem:[#allocation39_spill] sm:$0xff] }
 0xb61   :  { %16736 = vmatprep.mubr.msk.bf16.mxu1 %vm19832_vm0, %v24113_v52 }
 0xb62   :  { %v12871_v29 = vmin.f32 %v12734_v4, 0.5  ;;  %v12735_v62 = vmax.f32 %v17517_v58, -1.0 }
 0xb63   :  { %v10534_v32 = vpop.f32.mrb[0].mxu1 }
 0xb64   :  { %13008 = vst [vmem:[%s24094_s3 + $0x1a0] sm:$0xff] %v12871_v29  ;;  %v12872_v38 = vmin.f32 %v12735_v62, 0.5  ;;  %v17523_v21 = vadd.f32 %v17522_v14, %v10534_v32  ;;  %v16630_v57 = vpop.f32.mrb[1].mxu1  ;;  %v10204_v62 = vpack.c.bf16 %v10122_v40, %v10121_v42  ;;  %v17549_v42 = vld [vmem:[%s24094_s3 + $0x1c8] sm:$0xff] }
 0xb65   :  { %v10537_v34 = vpop.f32.mrb[2].mxu1  ;;  %v23416_v22 = vpop.f32.mrb[16].mxu0 }
 0xb66   :  { %24164 = vst [vmem:[#allocation28_spill] sm:$0xff] %v23416_v22  ;;  %13009 = vst [vmem:[%s24094_s3 + $0x1a8] sm:$0xff] %v12872_v38  ;;  %v17526_v43 = vadd.f32 %v17523_v21, %v24165_v48  ;;  %v17532_v17 = vadd.f32 %v17531_v50, %v10537_v34  ;;  %v16631_v4 = vpop.f32.mrb[3].mxu1  ;;  %v17030_v16 = vpop.f32.mrb[17].mxu0  ;;  %v17540_v38 = vld [vmem:[%s24094_s3 + $0x1c0] sm:$0xff] }
 0xb67   :  { %v23422_v32 = vpop.f32.mrb[18].mxu0  ;;  %v10124_v21 = vld [vmem:[#allocation2 + $0x3bb] sm:$0xff] }
 0xb68   :  { %v12736_v58 = vmax.f32 %v17526_v43, -1.0  ;;  %v17535_v27 = vadd.f32 %v17532_v17, %v22848_v6  ;;  %16737 = vmatmul.mubr.bf16.gmra.mrb[108].mxu1 %v10204_v62  ;;  %v17031_v29 = vpop.f32.mrb[19].mxu0  ;;  %v10123_v43 = vld [vmem:[#allocation2 + $0x3b3] sm:$0xff] }
 0xb69   :  { %16740 = vmatprep.mubr.msk.bf16.mxu1 %vm19832_vm0, %v24113_v52 }
 0xb6a   :  { %v12873_v14 = vmin.f32 %v12736_v58, 0.5  ;;  %v12737_v57 = vmax.f32 %v17535_v27, -1.0  ;;  %v10205_v58 = vpack.c.bf16 %v10124_v21, %v10123_v43 }
 0xb6b   :  { %v10542_v22 = vpop.f32.mrb[4].mxu1 }
 0xb6c   :  { %13010 = vst [vmem:[%s24094_s3 + $0x1b0] sm:$0xff] %v12873_v14  ;;  %v12874_v40 = vmin.f32 %v12737_v57, 0.5  ;;  %v17541_v34 = vadd.f32 %v17540_v38, %v10542_v22  ;;  %v16634_v6 = vpop.f32.mrb[5].mxu1 }
 0xb6d   :  { %v10545_v50 = vpop.f32.mrb[6].mxu1  ;;  %v23436_v48 = vpop.f32.mrb[20].mxu0 }
 0xb6e   :  { %13011 = vst [vmem:[%s24094_s3 + $0x1b8] sm:$0xff] %v12874_v40  ;;  %v17544_v17 = vadd.f32 %v17541_v34, %v22864_v2  ;;  %v17550_v4 = vadd.f32 %v17549_v42, %v10545_v50  ;;  %v16635_v16 = vpop.f32.mrb[7].mxu1  ;;  %v17034_v62 = vpop.f32.mrb[21].mxu0  ;;  %v17558_v2 = vld [vmem:[%s24094_s3 + $0x1d0] sm:$0xff]  ;;  %v17567_v42 = vld [vmem:[%s24094_s3 + $0x1d8] sm:$0xff] }
 0xb6f   :  { %v23442_v22 = vpop.f32.mrb[22].mxu0  ;;  %v10126_v40 = vld [vmem:[#allocation2 + $0x3cb] sm:$0xff] }
 0xb70   :  { %v12738_v27 = vmax.f32 %v17544_v17, -1.0  ;;  %v17553_v29 = vadd.f32 %v17550_v4, %v22870_v13  ;;  %16741 = vmatmul.mubr.bf16.gmra.mrb[112].mxu1 %v10205_v58  ;;  %v17035_v14 = vpop.f32.mrb[23].mxu0  ;;  %v10125_v17 = vld [vmem:[#allocation2 + $0x3c3] sm:$0xff] }
 0xb71   :  { %16744 = vmatprep.mubr.msk.bf16.mxu1 %vm19832_vm0, %v24113_v52 }
 0xb72   :  { %v12875_v57 = vmin.f32 %v12738_v27, 0.5  ;;  %v12739_v38 = vmax.f32 %v17553_v29, -1.0  ;;  %v10206_v27 = vpack.c.bf16 %v10126_v40, %v10125_v17 }
 0xb73   :  { %v10550_v6 = vpop.f32.mrb[8].mxu1 }
 0xb74   :  { %13012 = vst [vmem:[%s24094_s3 + $0x1c0] sm:$0xff] %v12875_v57  ;;  %v12876_v21 = vmin.f32 %v12739_v38, 0.5  ;;  %v17559_v34 = vadd.f32 %v17558_v2, %v10550_v6  ;;  %v16638_v13 = vpop.f32.mrb[9].mxu1 }
 0xb75   :  { %v10553_v50 = vpop.f32.mrb[10].mxu1  ;;  %v23456_v43 = vpop.f32.mrb[24].mxu0 }
 0xb76   :  { %13013 = vst [vmem:[%s24094_s3 + $0x1c8] sm:$0xff] %v12876_v21  ;;  %v17562_v4 = vadd.f32 %v17559_v34, %v22886_v56  ;;  %v17568_v16 = vadd.f32 %v17567_v42, %v10553_v50  ;;  %v16639_v62 = vpop.f32.mrb[11].mxu1  ;;  %v17038_v58 = vpop.f32.mrb[25].mxu0  ;;  %v17573_v56 = vld [vmem:[%s24094_s3 + $0x1e0] sm:$0xff]  ;;  %v17579_v42 = vld [vmem:[%s24094_s3 + $0x1e8] sm:$0xff] }
 0xb77   :  { %v23462_v29 = vpop.f32.mrb[26].mxu0  ;;  %v10128_v21 = vld [vmem:[#allocation2 + $0x3db] sm:$0xff] }
 0xb78   :  { %v12740_v14 = vmax.f32 %v17562_v4, -1.0  ;;  %v17571_v57 = vadd.f32 %v17568_v16, %v22892_v9  ;;  %16745 = vmatmul.mubr.bf16.gmra.mrb[116].mxu1 %v10206_v27  ;;  %v17039_v38 = vpop.f32.mrb[27].mxu0  ;;  %v10127_v4 = vld [vmem:[#allocation2 + $0x3d3] sm:$0xff] }
 0xb79   :  { %16748 = vmatprep.mubr.msk.bf16.mxu1 %vm19832_vm0, %v24113_v52 }
 0xb7a   :  { %v12877_v6 = vmin.f32 %v12740_v14, 0.5  ;;  %v12741_v2 = vmax.f32 %v17571_v57, -1.0  ;;  %v10207_v14 = vpack.c.bf16 %v10128_v21, %v10127_v4 }
 0xb7b   :  { %v10558_v13 = vpop.f32.mrb[120].mxu1 }
 0xb7c   :  { %13014 = vst [vmem:[%s24094_s3 + $0x1d0] sm:$0xff] %v12877_v6  ;;  %v12878_v40 = vmin.f32 %v12741_v2, 0.5  ;;  %v17574_v34 = vadd.f32 %v17573_v56, %v10558_v13  ;;  %v16642_v9 = vpop.f32.mrb[121].mxu1 }
 0xb7d   :  { %v10561_v50 = vpop.f32.mrb[122].mxu1  ;;  %v23476_v17 = vpop.f32.mrb[28].mxu0 }
 0xb7e   :  { %13015 = vst [vmem:[%s24094_s3 + $0x1d8] sm:$0xff] %v12878_v40  ;;  %v17577_v16 = vadd.f32 %v17574_v34, %v22908_v54  ;;  %v17580_v62 = vadd.f32 %v17579_v42, %v10561_v50  ;;  %v16643_v58 = vpop.f32.mrb[123].mxu1  ;;  %v17042_v27 = vpop.f32.mrb[29].mxu0  ;;  %v17585_v54 = vld [vmem:[%s24094_s3 + $0x1f0] sm:$0xff]  ;;  %v17591_v42 = vld [vmem:[%s24094_s3 + $0x1f8] sm:$0xff] }
 0xb7f   :  { %v23482_v57 = vpop.f32.mrb[30].mxu0  ;;  %v10130_v40 = vld [vmem:[#allocation2 + $0x3eb] sm:$0xff] }
 0xb80   :  { %v12742_v38 = vmax.f32 %v17577_v16, -1.0  ;;  %v17583_v6 = vadd.f32 %v17580_v62, %v22914_v24  ;;  %16749 = vmatmul.mubr.bf16.gmra.mrb[228].mxu1 %v10207_v14  ;;  %v17043_v2 = vpop.f32.mrb[31].mxu0  ;;  %v10129_v16 = vld [vmem:[#allocation2 + $0x3e3] sm:$0xff] }
 0xb81   :  { %16752 = vmatprep.mubr.msk.bf16.mxu1 %vm19832_vm0, %v24113_v52 }
 0xb82   :  { %v12879_v13 = vmin.f32 %v12742_v38, 0.5  ;;  %v12743_v56 = vmax.f32 %v17583_v6, -1.0  ;;  %v10208_v38 = vpack.c.bf16 %v10130_v40, %v10129_v16 }
 0xb83   :  { %v10566_v9 = vpop.f32.mrb[124].mxu1 }
 0xb84   :  { %13016 = vst [vmem:[%s24094_s3 + $0x1e0] sm:$0xff] %v12879_v13  ;;  %v12880_v21 = vmin.f32 %v12743_v56, 0.5  ;;  %v17586_v34 = vadd.f32 %v17585_v54, %v10566_v9  ;;  %v16646_v24 = vpop.f32.mrb[125].mxu1 }
 0xb85   :  { %v10569_v50 = vpop.f32.mrb[126].mxu1  ;;  %v23496_v4 = vpop.f32.mrb[32].mxu0 }
 0xb86   :  { %13017 = vst [vmem:[%s24094_s3 + $0x1e8] sm:$0xff] %v12880_v21  ;;  %v17589_v62 = vadd.f32 %v17586_v34, %v22930_v36  ;;  %v17592_v58 = vadd.f32 %v17591_v42, %v10569_v50  ;;  %v16647_v27 = vpop.f32.mrb[127].mxu1  ;;  %v17046_v14 = vpop.f32.mrb[33].mxu0  ;;  %v17597_v36 = vld [vmem:[%s24094_s3 + $0x200] sm:$0xff]  ;;  %v17603_v42 = vld [vmem:[%s24094_s3 + $0x208] sm:$0xff] }
 0xb87   :  { %v23502_v6 = vpop.f32.mrb[34].mxu0  ;;  %v10132_v21 = vld [vmem:[#allocation2 + $0x3fb] sm:$0xff] }
 0xb88   :  { %v12744_v2 = vmax.f32 %v17589_v62, -1.0  ;;  %v17595_v13 = vadd.f32 %v17592_v58, %v22936_v28  ;;  %16753 = vmatmul.mubr.bf16.gmra.mrb[232].mxu1 %v10208_v38  ;;  %v17047_v56 = vpop.f32.mrb[35].mxu0  ;;  %v10131_v62 = vld [vmem:[#allocation2 + $0x3f3] sm:$0xff] }
 0xb89   :  { %16756 = vmatprep.mubr.msk.bf16.mxu1 %vm19832_vm0, %v24113_v52 }
 0xb8a   :  { %v12881_v9 = vmin.f32 %v12744_v2, 0.5  ;;  %v12745_v54 = vmax.f32 %v17595_v13, -1.0  ;;  %v10209_v2 = vpack.c.bf16 %v10132_v21, %v10131_v62 }
 0xb8b   :  { %v10574_v24 = vpop.f32.mrb[128].mxu1 }
 0xb8c   :  { %13018 = vst [vmem:[%s24094_s3 + $0x1f0] sm:$0xff] %v12881_v9  ;;  %v12882_v40 = vmin.f32 %v12745_v54, 0.5  ;;  %v17598_v34 = vadd.f32 %v17597_v36, %v10574_v24  ;;  %v16650_v28 = vpop.f32.mrb[129].mxu1 }
 0xb8d   :  { %v10577_v50 = vpop.f32.mrb[130].mxu1  ;;  %v23516_v16 = vpop.f32.mrb[184].mxu0 }
 0xb8e   :  { %13019 = vst [vmem:[%s24094_s3 + $0x1f8] sm:$0xff] %v12882_v40  ;;  %v17601_v58 = vadd.f32 %v17598_v34, %v22952_v18  ;;  %v17604_v27 = vadd.f32 %v17603_v42, %v10577_v50  ;;  %v16651_v14 = vpop.f32.mrb[131].mxu1  ;;  %v17050_v38 = vpop.f32.mrb[185].mxu0  ;;  %v17609_v18 = vld [vmem:[%s24094_s3 + $0x210] sm:$0xff]  ;;  %v17615_v42 = vld [vmem:[%s24094_s3 + $0x218] sm:$0xff] }
 0xb8f   :  { %v23522_v13 = vpop.f32.mrb[186].mxu0  ;;  %v10134_v40 = vld [vmem:[#allocation2 + $0x40b] sm:$0xff] }
 0xb90   :  { %v12746_v56 = vmax.f32 %v17601_v58, -1.0  ;;  %v17607_v9 = vadd.f32 %v17604_v27, %v22958_v0  ;;  %16757 = vmatmul.mubr.bf16.gmra.mrb[236].mxu1 %v10209_v2  ;;  %v17051_v54 = vpop.f32.mrb[187].mxu0  ;;  %v10133_v58 = vld [vmem:[#allocation2 + $0x403] sm:$0xff] }
 0xb91   :  { %16760 = vmatprep.mubr.msk.bf16.mxu1 %vm19832_vm0, %v24113_v52 }
 0xb92   :  { %v12883_v24 = vmin.f32 %v12746_v56, 0.5  ;;  %v12747_v36 = vmax.f32 %v17607_v9, -1.0  ;;  %v10210_v56 = vpack.c.bf16 %v10134_v40, %v10133_v58 }
 0xb93   :  { %v10582_v28 = vpop.f32.mrb[132].mxu1 }
 0xb94   :  { %13020 = vst [vmem:[%s24094_s3 + $0x200] sm:$0xff] %v12883_v24  ;;  %v12884_v21 = vmin.f32 %v12747_v36, 0.5  ;;  %v17610_v34 = vadd.f32 %v17609_v18, %v10582_v28  ;;  %v16654_v0 = vpop.f32.mrb[133].mxu1 }
 0xb95   :  { %v10585_v50 = vpop.f32.mrb[134].mxu1  ;;  %v23536_v62 = vpop.f32.mrb[188].mxu0 }
 0xb96   :  { %13021 = vst [vmem:[%s24094_s3 + $0x208] sm:$0xff] %v12884_v21  ;;  %v17613_v27 = vadd.f32 %v17610_v34, %v22974_v41  ;;  %v17616_v14 = vadd.f32 %v17615_v42, %v10585_v50  ;;  %v16655_v38 = vpop.f32.mrb[135].mxu1  ;;  %v17054_v2 = vpop.f32.mrb[189].mxu0  ;;  %v17621_v41 = vld [vmem:[%s24094_s3 + $0x220] sm:$0xff]  ;;  %v17627_v42 = vld [vmem:[%s24094_s3 + $0x228] sm:$0xff] }
 0xb97   :  { %v23542_v9 = vpop.f32.mrb[190].mxu0  ;;  %v10136_v21 = vld [vmem:[#allocation2 + $0x41b] sm:$0xff] }
 0xb98   :  { %v12748_v54 = vmax.f32 %v17613_v27, -1.0  ;;  %v17619_v24 = vadd.f32 %v17616_v14, %v22980_v51  ;;  %16761 = vmatmul.mubr.bf16.gmra.mrb[240].mxu1 %v10210_v56  ;;  %v17055_v36 = vpop.f32.mrb[191].mxu0  ;;  %v10135_v27 = vld [vmem:[#allocation2 + $0x413] sm:$0xff] }
 0xb99   :  { %16764 = vmatprep.mubr.msk.bf16.mxu1 %vm19832_vm0, %v24113_v52 }
 0xb9a   :  { %v12885_v28 = vmin.f32 %v12748_v54, 0.5  ;;  %v12749_v18 = vmax.f32 %v17619_v24, -1.0  ;;  %v10211_v54 = vpack.c.bf16 %v10136_v21, %v10135_v27 }
 0xb9b   :  { %v10590_v0 = vpop.f32.mrb[136].mxu1 }
 0xb9c   :  { %13022 = vst [vmem:[%s24094_s3 + $0x210] sm:$0xff] %v12885_v28  ;;  %v12886_v40 = vmin.f32 %v12749_v18, 0.5  ;;  %v17622_v34 = vadd.f32 %v17621_v41, %v10590_v0  ;;  %v16658_v51 = vpop.f32.mrb[137].mxu1 }
 0xb9d   :  { %v10593_v50 = vpop.f32.mrb[138].mxu1  ;;  %v23556_v58 = vpop.f32.mrb[192].mxu0 }
 0xb9e   :  { %13023 = vst [vmem:[%s24094_s3 + $0x218] sm:$0xff] %v12886_v40  ;;  %v17625_v14 = vadd.f32 %v17622_v34, %v22996_v53  ;;  %v17628_v38 = vadd.f32 %v17627_v42, %v10593_v50  ;;  %v16659_v2 = vpop.f32.mrb[139].mxu1  ;;  %v17058_v56 = vpop.f32.mrb[193].mxu0  ;;  %v17633_v53 = vld [vmem:[%s24094_s3 + $0x230] sm:$0xff]  ;;  %v17639_v42 = vld [vmem:[%s24094_s3 + $0x238] sm:$0xff] }
 0xb9f   :  { %v23562_v24 = vpop.f32.mrb[194].mxu0  ;;  %v10138_v40 = vld [vmem:[#allocation2 + $0x42b] sm:$0xff] }
 0xba0   :  { %v12750_v36 = vmax.f32 %v17625_v14, -1.0  ;;  %v17631_v28 = vadd.f32 %v17628_v38, %v23002_v15  ;;  %16765 = vmatmul.mubr.bf16.gmra.mrb[244].mxu1 %v10211_v54  ;;  %v17059_v18 = vpop.f32.mrb[195].mxu0  ;;  %v10137_v14 = vld [vmem:[#allocation2 + $0x423] sm:$0xff] }
 0xba1   :  { %16768 = vmatprep.mubr.msk.bf16.mxu1 %vm19832_vm0, %v24113_v52 }
 0xba2   :  { %v12887_v0 = vmin.f32 %v12750_v36, 0.5  ;;  %v12751_v41 = vmax.f32 %v17631_v28, -1.0  ;;  %v10212_v36 = vpack.c.bf16 %v10138_v40, %v10137_v14 }
 0xba3   :  { %v10598_v51 = vpop.f32.mrb[140].mxu1 }
 0xba4   :  { %13024 = vst [vmem:[%s24094_s3 + $0x220] sm:$0xff] %v12887_v0  ;;  %v12888_v21 = vmin.f32 %v12751_v41, 0.5  ;;  %v17634_v34 = vadd.f32 %v17633_v53, %v10598_v51  ;;  %v16662_v15 = vpop.f32.mrb[141].mxu1 }
 0xba5   :  { %v10601_v50 = vpop.f32.mrb[142].mxu1  ;;  %v23576_v27 = vpop.f32.mrb[196].mxu0 }
 0xba6   :  { %13025 = vst [vmem:[%s24094_s3 + $0x228] sm:$0xff] %v12888_v21  ;;  %v17637_v38 = vadd.f32 %v17634_v34, %v23018_v47  ;;  %v17640_v2 = vadd.f32 %v17639_v42, %v10601_v50  ;;  %v16663_v56 = vpop.f32.mrb[143].mxu1  ;;  %v17062_v54 = vpop.f32.mrb[197].mxu0  ;;  %v17645_v47 = vld [vmem:[%s24094_s3 + $0x240] sm:$0xff]  ;;  %v17651_v42 = vld [vmem:[%s24094_s3 + $0x248] sm:$0xff] }
 0xba7   :  { %v23582_v28 = vpop.f32.mrb[198].mxu0  ;;  %v10140_v21 = vld [vmem:[#allocation2 + $0x43b] sm:$0xff] }
 0xba8   :  { %v12752_v18 = vmax.f32 %v17637_v38, -1.0  ;;  %v17643_v0 = vadd.f32 %v17640_v2, %v23024_v39  ;;  %16769 = vmatmul.mubr.bf16.gmra.mrb[248].mxu1 %v10212_v36  ;;  %v17063_v41 = vpop.f32.mrb[199].mxu0  ;;  %v10139_v38 = vld [vmem:[#allocation2 + $0x433] sm:$0xff] }
 0xba9   :  { %16772 = vmatprep.mubr.msk.bf16.mxu1 %vm19832_vm0, %v24113_v52  ;;  %v17660_v41 = vld [vmem:[%s24094_s3 + $0x250] sm:$0xff] }
 0xbaa   :  { %v12889_v51 = vmin.f32 %v12752_v18, 0.5  ;;  %v12753_v53 = vmax.f32 %v17643_v0, -1.0  ;;  %v10213_v18 = vpack.c.bf16 %v10140_v21, %v10139_v38 }
 0xbab   :  { %v10606_v15 = vpop.f32.mrb[144].mxu1 }
 0xbac   :  { %13026 = vst [vmem:[%s24094_s3 + $0x230] sm:$0xff] %v12889_v51  ;;  %v12890_v40 = vmin.f32 %v12753_v53, 0.5  ;;  %v17646_v34 = vadd.f32 %v17645_v47, %v10606_v15  ;;  %v16666_v39 = vpop.f32.mrb[145].mxu1  ;;  %v17672_v47 = vld [vmem:[%s24094_s3 + $0x258] sm:$0xff] }
 0xbad   :  { %v10609_v50 = vpop.f32.mrb[146].mxu1  ;;  %v23596_v14 = vpop.f32.mrb[200].mxu0 }
 0xbae   :  { %13027 = vst [vmem:[%s24094_s3 + $0x238] sm:$0xff] %v12890_v40  ;;  %v17649_v2 = vadd.f32 %v17646_v34, %v23040_v20  ;;  %v17652_v56 = vadd.f32 %v17651_v42, %v10609_v50  ;;  %v16667_v54 = vpop.f32.mrb[147].mxu1  ;;  %v17066_v36 = vpop.f32.mrb[201].mxu0  ;;  %v24166_v40 = vld [vmem:[#allocation3_spill] sm:$0xff] }
 0xbaf   :  { %v23602_v0 = vpop.f32.mrb[202].mxu0  ;;  %v17661_v34 = vadd.f32 %v17660_v41, %v24166_v40  ;;  %v10142_v50 = vld [vmem:[#allocation2 + $0x44b] sm:$0xff] }
 0xbb0   :  { %v12754_v51 = vmax.f32 %v17649_v2, -1.0  ;;  %v17655_v53 = vadd.f32 %v17652_v56, %v23046_v11  ;;  %16773 = vmatmul.mubr.bf16.gmra.mrb[252].mxu1 %v10213_v18  ;;  %v17067_v15 = vpop.f32.mrb[203].mxu0  ;;  %v24167_v2 = vld [vmem:[#allocation4_spill] sm:$0xff]  ;;  %v10141_v18 = vld [vmem:[#allocation2 + $0x443] sm:$0xff] }
 0xbb1   :  { %16776 = vmatprep.mubr.msk.bf16.mxu1 %vm19832_vm0, %v24113_v52  ;;  %v17673_v56 = vadd.f32 %v17672_v47, %v24167_v2  ;;  %v10214_v40 = vpack.c.bf16 %v10142_v50, %v10141_v18  ;;  %v17684_v47 = vld [vmem:[%s24094_s3 + $0x260] sm:$0xff] }
 0xbb2   :  { %v12891_v20 = vmin.f32 %v12754_v51, 0.5  ;;  %v12755_v21 = vmax.f32 %v17655_v53, -1.0 }
 0xbb3   :  { %v10614_v39 = vpop.f32.mrb[40].mxu1 }
 0xbb4   :  { %13028 = vst [vmem:[%s24094_s3 + $0x240] sm:$0xff] %v12891_v20  ;;  %v12892_v11 = vmin.f32 %v12755_v21, 0.5  ;;  %v17664_v42 = vadd.f32 %v17661_v34, %v10614_v39  ;;  %v16670_v38 = vpop.f32.mrb[41].mxu1 }
 0xbb5   :  { %v10617_v54 = vpop.f32.mrb[42].mxu1  ;;  %v23618_v36 = vpop.f32.mrb[36].mxu0 }
 0xbb6   :  { %13029 = vst [vmem:[%s24094_s3 + $0x248] sm:$0xff] %v12892_v11  ;;  %v17667_v41 = vadd.f32 %v17664_v42, %v23064_v10  ;;  %v17676_v51 = vadd.f32 %v17673_v56, %v10617_v54  ;;  %v16671_v53 = vpop.f32.mrb[43].mxu1  ;;  %v17070_v15 = vpop.f32.mrb[37].mxu0  ;;  %v17696_v11 = vld [vmem:[%s24094_s3 + $0x268] sm:$0xff]  ;;  %v24168_v42 = vld [vmem:[#allocation5_spill] sm:$0xff] }
 0xbb7   :  { %v23624_v20 = vpop.f32.mrb[38].mxu0  ;;  %v17685_v38 = vadd.f32 %v17684_v47, %v24168_v42  ;;  %v10144_v56 = vld [vmem:[#allocation2 + $0x45b] sm:$0xff] }
 0xbb8   :  { %v12756_v21 = vmax.f32 %v17667_v41, -1.0  ;;  %v17679_v34 = vadd.f32 %v17676_v51, %v23070_v44  ;;  %16777 = vmatmul.mubr.bf16.gmra.mrb[148].mxu1 %v10214_v40  ;;  %v17071_v39 = vpop.f32.mrb[39].mxu0  ;;  %v24169_v41 = vld [vmem:[#allocation6_spill] sm:$0xff]  ;;  %v10143_v40 = vld [vmem:[#allocation2 + $0x453] sm:$0xff] }
 0xbb9   :  { %16780 = vmatprep.mubr.msk.bf16.mxu1 %vm19832_vm0, %v24113_v52  ;;  %v17697_v51 = vadd.f32 %v17696_v11, %v24169_v41  ;;  %v10215_v42 = vpack.c.bf16 %v10144_v56, %v10143_v40  ;;  %v17708_v11 = vld [vmem:[%s24094_s3 + $0x270] sm:$0xff] }
 0xbba   :  { %v12893_v10 = vmin.f32 %v12756_v21, 0.5  ;;  %v12757_v50 = vmax.f32 %v17679_v34, -1.0 }
 0xbbb   :  { %v10622_v2 = vpop.f32.mrb[44].mxu1 }
 0xbbc   :  { %13030 = vst [vmem:[%s24094_s3 + $0x250] sm:$0xff] %v12893_v10  ;;  %v12894_v44 = vmin.f32 %v12757_v50, 0.5  ;;  %v17688_v54 = vadd.f32 %v17685_v38, %v10622_v2  ;;  %v16674_v18 = vpop.f32.mrb[45].mxu1 }
 0xbbd   :  { %v10625_v53 = vpop.f32.mrb[46].mxu1  ;;  %v23640_v15 = vpop.f32.mrb[40].mxu0 }
 0xbbe   :  { %13031 = vst [vmem:[%s24094_s3 + $0x258] sm:$0xff] %v12894_v44  ;;  %v17691_v47 = vadd.f32 %v17688_v54, %v23088_v59  ;;  %v17700_v21 = vadd.f32 %v17697_v51, %v10625_v53  ;;  %v16675_v34 = vpop.f32.mrb[47].mxu1  ;;  %v17074_v39 = vpop.f32.mrb[41].mxu0  ;;  %v17720_v44 = vld [vmem:[%s24094_s3 + $0x278] sm:$0xff]  ;;  %v24170_v54 = vld [vmem:[#allocation7_spill] sm:$0xff] }
 0xbbf   :  { %v23646_v10 = vpop.f32.mrb[42].mxu0  ;;  %v17709_v18 = vadd.f32 %v17708_v11, %v24170_v54  ;;  %v10146_v51 = vld [vmem:[#allocation2 + $0x46b] sm:$0xff] }
 0xbc0   :  { %v12758_v50 = vmax.f32 %v17691_v47, -1.0  ;;  %v17703_v38 = vadd.f32 %v17700_v21, %v23094_v30  ;;  %16781 = vmatmul.mubr.bf16.gmra.mrb[152].mxu1 %v10215_v42  ;;  %v17075_v2 = vpop.f32.mrb[43].mxu0  ;;  %v24171_v47 = vld [vmem:[#allocation8_spill] sm:$0xff]  ;;  %v10145_v42 = vld [vmem:[#allocation2 + $0x463] sm:$0xff] }
 0xbc1   :  { %16784 = vmatprep.mubr.msk.bf16.mxu1 %vm19832_vm0, %v24113_v52  ;;  %v17721_v21 = vadd.f32 %v17720_v44, %v24171_v47  ;;  %v10216_v54 = vpack.c.bf16 %v10146_v51, %v10145_v42  ;;  %v17753_v42 = vld [vmem:[%s24094_s3 + $0x288] sm:$0xff] }
 0xbc2   :  { %v12895_v59 = vmin.f32 %v12758_v50, 0.5  ;;  %v12759_v56 = vmax.f32 %v17703_v38, -1.0 }
 0xbc3   :  { %v10630_v41 = vpop.f32.mrb[48].mxu1 }
 0xbc4   :  { %13032 = vst [vmem:[%s24094_s3 + $0x260] sm:$0xff] %v12895_v59  ;;  %v12896_v30 = vmin.f32 %v12759_v56, 0.5  ;;  %v17712_v53 = vadd.f32 %v17709_v18, %v10630_v41  ;;  %v16678_v40 = vpop.f32.mrb[49].mxu1 }
 0xbc5   :  { %v10633_v34 = vpop.f32.mrb[50].mxu1  ;;  %v23662_v39 = vpop.f32.mrb[44].mxu0 }
 0xbc6   :  { %13033 = vst [vmem:[%s24094_s3 + $0x268] sm:$0xff] %v12896_v30  ;;  %v17715_v11 = vadd.f32 %v17712_v53, %v23112_v33  ;;  %v17724_v50 = vadd.f32 %v17721_v21, %v10633_v34  ;;  %v16679_v38 = vpop.f32.mrb[51].mxu1  ;;  %v17078_v2 = vpop.f32.mrb[45].mxu0  ;;  %v17738_v33 = vld [vmem:[%s24094_s3 + $0x280] sm:$0xff]  ;;  %v10147_v30 = vld [vmem:[#allocation2 + $0x473] sm:$0xff] }
 0xbc7   :  { %v23668_v59 = vpop.f32.mrb[46].mxu0  ;;  %v10148_v53 = vld [vmem:[#allocation2 + $0x47b] sm:$0xff] }
 0xbc8   :  { %v12760_v56 = vmax.f32 %v17715_v11, -1.0  ;;  %v17727_v18 = vadd.f32 %v17724_v50, %v23118_v45  ;;  %16785 = vmatmul.mubr.bf16.gmra.mrb[156].mxu1 %v10216_v54  ;;  %v17079_v44 = vpop.f32.mrb[47].mxu0  ;;  %v10217_v2 = vpack.c.bf16 %v10148_v53, %v10147_v30  ;;  %v17783_v53 = vld [vmem:[%s24094_s3 + $0x298] sm:$0xff] }
 0xbc9   :  { %16788 = vmatprep.mubr.msk.bf16.mxu1 %vm19832_vm0, %v24113_v52 }
 0xbca   :  { %v12897_v41 = vmin.f32 %v12760_v56, 0.5  ;;  %v12761_v40 = vmax.f32 %v17727_v18, -1.0 }
 0xbcb   :  { %v10638_v47 = vpop.f32.mrb[220].mxu1 }
 0xbcc   :  { %13034 = vst [vmem:[%s24094_s3 + $0x270] sm:$0xff] %v12897_v41  ;;  %v12898_v51 = vmin.f32 %v12761_v40, 0.5  ;;  %v17739_v45 = vadd.f32 %v17738_v33, %v10638_v47  ;;  %v16682_v21 = vpop.f32.mrb[221].mxu1  ;;  %v17768_v40 = vld [vmem:[%s24094_s3 + $0x290] sm:$0xff]  ;;  %v10149_v47 = vld [vmem:[#allocation2 + $0x483] sm:$0xff] }
 0xbcd   :  { %v10641_v34 = vpop.f32.mrb[222].mxu1 }
 0xbce   :  { %13035 = vst [vmem:[%s24094_s3 + $0x278] sm:$0xff] %v12898_v51  ;;  %v17742_v11 = vadd.f32 %v17739_v45, %v23134_v23  ;;  %v17754_v50 = vadd.f32 %v17753_v42, %v10641_v34  ;;  %v16683_v38 = vpop.f32.mrb[223].mxu1  ;;  %v10218_v34 = vpack.c.bf16 %v10149_v47, %v10149_v47 }
 0xbd0   :  { %v12762_v54 = vmax.f32 %v17742_v11, -1.0  ;;  %v17757_v56 = vadd.f32 %v17754_v50, %v23140_v25  ;;  %16789 = vmatmul.mubr.bf16.gmra.mrb[52].mxu1 %v10217_v2  ;;  %v11413_v2 = vld [vmem:[#allocation2 + $0x474] sm:$0xff] }
 0xbd1   :  { %16792 = vmatprep.mubr.msk.bf16.mxu1 %vm19832_vm0, %v24113_v52 }
 0xbd2   :  { %v12899_v18 = vmin.f32 %v12762_v54, 0.5  ;;  %v12763_v44 = vmax.f32 %v17757_v56, -1.0  ;;  %v11414_v54 = vld [vmem:[#allocation2 + $0x47c] sm:$0xff] }
 0xbd3   :  { %v10646_v41 = vpop.f32.mrb[224].mxu1 }
 0xbd4   :  { %13036 = vst [vmem:[%s24094_s3 + $0x280] sm:$0xff] %v12899_v18  ;;  %v12900_v23 = vmin.f32 %v12763_v44, 0.5  ;;  %v17769_v33 = vadd.f32 %v17768_v40, %v10646_v41  ;;  %v16686_v30 = vpop.f32.mrb[225].mxu1  ;;  %v17792_v18 = vld [vmem:[%s24094_s3 + $0x2a0] sm:$0xff]  ;;  %v17801_v40 = vld [vmem:[%s24094_s3 + $0x2a8] sm:$0xff] }
 0xbd5   :  { %v10649_v25 = vpop.f32.mrb[226].mxu1  ;;  %v11483_v30 = vpack.c.bf16 %v11414_v54, %v11413_v2 }
 0xbd6   :  { %13037 = vst [vmem:[%s24094_s3 + $0x288] sm:$0xff] %v12900_v23  ;;  %v17772_v51 = vadd.f32 %v17769_v33, %v23156_v60  ;;  %v17784_v45 = vadd.f32 %v17783_v53, %v10649_v25  ;;  %v16687_v21 = vpop.f32.mrb[227].mxu1 }
 0xbd8   :  { %v12764_v42 = vmax.f32 %v17772_v51, -1.0  ;;  %v17787_v11 = vadd.f32 %v17784_v45, %v23162_v19  ;;  %16793 = vmatmul.mubr.bf16.gmra.mrb[56].mxu1 %v10218_v34  ;;  %v17810_v34 = vld [vmem:[%s24094_s3 + $0x2b0] sm:$0xff] }
 0xbd9   :  { %17080 = vmatprep.mubr.msk.bf16.mxu1 %vm19832_vm0, %v24113_v52 }
 0xbda   :  { %v12901_v50 = vmin.f32 %v12764_v42, 0.5  ;;  %v12765_v38 = vmax.f32 %v17787_v11, -1.0  ;;  %v11415_v42 = vld [vmem:[#allocation2 + $0x484] sm:$0xff] }
 0xbdb   :  { %v10654_v56 = vpop.f32.mrb[60].mxu1 }
 0xbdc   :  { %13038 = vst [vmem:[%s24094_s3 + $0x290] sm:$0xff] %v12901_v50  ;;  %v12902_v60 = vmin.f32 %v12765_v38, 0.5  ;;  %v17793_v44 = vadd.f32 %v17792_v18, %v10654_v56  ;;  %v16690_v19 = vpop.f32.mrb[61].mxu1  ;;  %v11484_v56 = vpack.c.bf16 %v11415_v42, %v11415_v42 }
 0xbdd   :  { %v10657_v41 = vpop.f32.mrb[62].mxu1 }
 0xbde   :  { %13039 = vst [vmem:[%s24094_s3 + $0x298] sm:$0xff] %v12902_v60  ;;  %v17796_v47 = vadd.f32 %v17793_v44, %v23176_v31  ;;  %v17802_v23 = vadd.f32 %v17801_v40, %v10657_v41  ;;  %v16691_v33 = vpop.f32.mrb[63].mxu1  ;;  %v17828_v40 = vld [vmem:[%s24094_s3 + $0x2c0] sm:$0xff] }
 0xbe0   :  { %v12766_v25 = vmax.f32 %v17796_v47, -1.0  ;;  %v17805_v53 = vadd.f32 %v17802_v23, %v23182_v5  ;;  %17081 = vmatmul.mubr.bf16.vlgmr.msra.gmra.mrb[52].mxu1 %v11483_v30 }
 0xbe1   :  { %17084 = vmatprep.mubr.msk.bf16.mxu1 %vm19832_vm0, %v24113_v52  ;;  %v17819_v52 = vld [vmem:[%s24094_s3 + $0x2b8] sm:$0xff] }
 0xbe2   :  { %v12903_v51 = vmin.f32 %v12766_v25, 0.5  ;;  %v12767_v45 = vmax.f32 %v17805_v53, -1.0 }
 0xbe3   :  { %v10662_v21 = vpop.f32.mrb[64].mxu1 }
 0xbe4   :  { %13040 = vst [vmem:[%s24094_s3 + $0x2a0] sm:$0xff] %v12903_v51  ;;  %v12904_v31 = vmin.f32 %v12767_v45, 0.5  ;;  %v17811_v11 = vadd.f32 %v17810_v34, %v10662_v21  ;;  %v16694_v50 = vpop.f32.mrb[65].mxu1 }
 0xbe5   :  { %v10665_v5 = vpop.f32.mrb[66].mxu1 }
 0xbe6   :  { %13041 = vst [vmem:[%s24094_s3 + $0x2a8] sm:$0xff] %v12904_v31  ;;  %v17814_v38 = vadd.f32 %v17811_v11, %v23196_v7  ;;  %v17820_v2 = vadd.f32 %v17819_v52, %v10665_v5  ;;  %v16695_v54 = vpop.f32.mrb[67].mxu1  ;;  %v17843_v31 = vld [vmem:[%s24094_s3 + $0x2d0] sm:$0xff]  ;;  %v17849_v52 = vld [vmem:[%s24094_s3 + $0x2d8] sm:$0xff] }
 0xbe8   :  { %v12768_v18 = vmax.f32 %v17814_v38, -1.0  ;;  %v17823_v60 = vadd.f32 %v17820_v2, %v23202_v35  ;;  %17085 = vmatmul.mubr.bf16.gmra.mrb[56].mxu1 %v11484_v56  ;;  %v17837_v35 = vld [vmem:[%s24094_s3 + $0x2c8] sm:$0xff] }
 0xbea   :  { %v12905_v44 = vmin.f32 %v12768_v18, 0.5  ;;  %v12769_v19 = vmax.f32 %v17823_v60, -1.0 }
 0xbeb   :  { %v10670_v41 = vpop.f32.mrb[68].mxu1 }
 0xbec   :  { %13042 = vst [vmem:[%s24094_s3 + $0x2b0] sm:$0xff] %v12905_v44  ;;  %v12906_v47 = vmin.f32 %v12769_v19, 0.5  ;;  %v17829_v7 = vadd.f32 %v17828_v40, %v10670_v41  ;;  %v16698_v23 = vpop.f32.mrb[69].mxu1  ;;  %v17855_v19 = vld [vmem:[%s24094_s3 + $0x2e0] sm:$0xff] }
 0xbed   :  { %v10673_v33 = vpop.f32.mrb[70].mxu1 }
 0xbee   :  { %13043 = vst [vmem:[%s24094_s3 + $0x2b8] sm:$0xff] %v12906_v47  ;;  %v17832_v30 = vadd.f32 %v17829_v7, %v23216_v55  ;;  %v17838_v25 = vadd.f32 %v17837_v35, %v10673_v33  ;;  %v16699_v53 = vpop.f32.mrb[71].mxu1  ;;  %v17861_v7 = vld [vmem:[%s24094_s3 + $0x2e8] sm:$0xff] }
 0xbf0   :  { %v12770_v51 = vmax.f32 %v17832_v30, -1.0  ;;  %v17841_v45 = vadd.f32 %v17838_v25, %v23222_v61 }
 0xbf2   :  { %v12907_v21 = vmin.f32 %v12770_v51, 0.5  ;;  %v12771_v34 = vmax.f32 %v17841_v45, -1.0  ;;  %v17867_v45 = vld [vmem:[%s24094_s3 + $0x2f0] sm:$0xff] }
 0xbf3   :  { %v10678_v42 = vpop.f32.mrb[180].mxu1 }
 0xbf4   :  { %13044 = vst [vmem:[%s24094_s3 + $0x2c0] sm:$0xff] %v12907_v21  ;;  %v12908_v11 = vmin.f32 %v12771_v34, 0.5  ;;  %v17844_v50 = vadd.f32 %v17843_v31, %v10678_v42  ;;  %v16702_v5 = vpop.f32.mrb[181].mxu1  ;;  %v17873_v31 = vld [vmem:[%s24094_s3 + $0x2f8] sm:$0xff] }
 0xbf5   :  { %v10681_v55 = vpop.f32.mrb[182].mxu1 }
 0xbf6   :  { %13045 = vst [vmem:[%s24094_s3 + $0x2c8] sm:$0xff] %v12908_v11  ;;  %v17847_v61 = vadd.f32 %v17844_v50, %v23236_v37  ;;  %v17850_v38 = vadd.f32 %v17849_v52, %v10681_v55  ;;  %v16703_v2 = vpop.f32.mrb[183].mxu1 }
 0xbf7   :  { %v17879_v2 = vld [vmem:[%s24094_s3 + $0x300] sm:$0xff] }
 0xbf8   :  { %v12772_v54 = vmax.f32 %v17847_v61, -1.0  ;;  %v17853_v56 = vadd.f32 %v17850_v38, %v23242_v1 }
 0xbfa   :  { %v12909_v18 = vmin.f32 %v12772_v54, 0.5  ;;  %v12773_v60 = vmax.f32 %v17853_v56, -1.0 }
 0xbfb   :  { %v10686_v44 = vpop.f32.mrb[184].mxu1 }
 0xbfc   :  { %13046 = vst [vmem:[%s24094_s3 + $0x2d0] sm:$0xff] %v12909_v18  ;;  %v12910_v41 = vmin.f32 %v12773_v60, 0.5  ;;  %v17856_v40 = vadd.f32 %v17855_v19, %v10686_v44  ;;  %v16706_v47 = vpop.f32.mrb[185].mxu1  ;;  %v17885_v60 = vld [vmem:[%s24094_s3 + $0x308] sm:$0xff] }
 0xbfd   :  { %v10689_v37 = vpop.f32.mrb[186].mxu1 }
 0xbfe   :  { %13047 = vst [vmem:[%s24094_s3 + $0x2d8] sm:$0xff] %v12910_v41  ;;  %v17859_v1 = vadd.f32 %v17856_v40, %v23256_v63  ;;  %v17862_v23 = vadd.f32 %v17861_v7, %v10689_v37  ;;  %v16707_v33 = vpop.f32.mrb[187].mxu1 }
 0xc00   :  { %v12774_v35 = vmax.f32 %v17859_v1, -1.0  ;;  %v17865_v30 = vadd.f32 %v17862_v23, %v23262_v3  ;;  %v17891_v1 = vld [vmem:[%s24094_s3 + $0x310] sm:$0xff] }
 0xc02   :  { %v12911_v25 = vmin.f32 %v12774_v35, 0.5  ;;  %v12775_v53 = vmax.f32 %v17865_v30, -1.0  ;;  %v17897_v30 = vld [vmem:[%s24094_s3 + $0x318] sm:$0xff] }
 0xc03   :  { %v10694_v51 = vpop.f32.mrb[188].mxu1 }
 0xc04   :  { %13048 = vst [vmem:[%s24094_s3 + $0x2e0] sm:$0xff] %v12911_v25  ;;  %v12912_v21 = vmin.f32 %v12775_v53, 0.5  ;;  %v17868_v34 = vadd.f32 %v17867_v45, %v10694_v51  ;;  %v16710_v42 = vpop.f32.mrb[189].mxu1 }
 0xc05   :  { %v10697_v63 = vpop.f32.mrb[190].mxu1 }
 0xc06   :  { %13049 = vst [vmem:[%s24094_s3 + $0x2e8] sm:$0xff] %v12912_v21  ;;  %v17871_v3 = vadd.f32 %v17868_v34, %v23276_v46  ;;  %v17874_v11 = vadd.f32 %v17873_v31, %v10697_v63  ;;  %v16711_v50 = vpop.f32.mrb[191].mxu1  ;;  %v24173_v21 = vld [vmem:[#allocation20_spill] sm:$0xff] }
 0xc08   :  { %v12776_v5 = vmax.f32 %v17871_v3, -1.0  ;;  %v17877_v55 = vadd.f32 %v17874_v11, %v23282_v49  ;;  %v17903_v3 = vld [vmem:[%s24094_s3 + $0x320] sm:$0xff] }
 0xc0a   :  { %v12913_v52 = vmin.f32 %v12776_v5, 0.5  ;;  %v12777_v61 = vmax.f32 %v17877_v55, -1.0 }
 0xc0b   :  { %v10702_v38 = vpop.f32.mrb[192].mxu1 }
 0xc0c   :  { %13050 = vst [vmem:[%s24094_s3 + $0x2f0] sm:$0xff] %v12913_v52  ;;  %v12914_v54 = vmin.f32 %v12777_v61, 0.5  ;;  %v17880_v56 = vadd.f32 %v17879_v2, %v10702_v38  ;;  %v16714_v18 = vpop.f32.mrb[193].mxu1  ;;  %v17909_v52 = vld [vmem:[%s24094_s3 + $0x328] sm:$0xff]  ;;  %v24174_v61 = vld [vmem:[#allocation21_spill] sm:$0xff] }
 0xc0d   :  { %v10705_v46 = vpop.f32.mrb[194].mxu1  ;;  %v24175_v18 = vld [vmem:[#allocation22_spill] sm:$0xff] }
 0xc0e   :  { %13051 = vst [vmem:[%s24094_s3 + $0x2f8] sm:$0xff] %v12914_v54  ;;  %v17883_v49 = vadd.f32 %v17880_v56, %v23296_v8  ;;  %v17886_v44 = vadd.f32 %v17885_v60, %v10705_v46  ;;  %v16715_v19 = vpop.f32.mrb[195].mxu1 }
 0xc0f   :  { %v17915_v19 = vld [vmem:[%s24094_s3 + $0x330] sm:$0xff] }
 0xc10   :  { %v12778_v41 = vmax.f32 %v17883_v49, -1.0  ;;  %v17889_v40 = vadd.f32 %v17886_v44, %v23302_v26  ;;  %v24172_v26 = vld [vmem:[#allocation19_spill] sm:$0xff] }
 0xc12   :  { %v12915_v47 = vmin.f32 %v12778_v41, 0.5  ;;  %v12779_v37 = vmax.f32 %v17889_v40, -1.0 }
 0xc13   :  { %v10710_v7 = vpop.f32.mrb[196].mxu1 }
 0xc14   :  { %13052 = vst [vmem:[%s24094_s3 + $0x300] sm:$0xff] %v12915_v47  ;;  %v12916_v23 = vmin.f32 %v12779_v37, 0.5  ;;  %v17892_v33 = vadd.f32 %v17891_v1, %v10710_v7  ;;  %v16718_v35 = vpop.f32.mrb[197].mxu1  ;;  %v17921_v7 = vld [vmem:[%s24094_s3 + $0x338] sm:$0xff]  ;;  %v24176_v1 = vld [vmem:[#allocation23_spill] sm:$0xff] }
 0xc15   :  { %v10713_v8 = vpop.f32.mrb[198].mxu1 }
 0xc16   :  { %13053 = vst [vmem:[%s24094_s3 + $0x308] sm:$0xff] %v12916_v23  ;;  %v17895_v25 = vadd.f32 %v17892_v33, %v24172_v26  ;;  %v17898_v53 = vadd.f32 %v17897_v30, %v10713_v8  ;;  %v16719_v51 = vpop.f32.mrb[199].mxu1  ;;  %v17930_v8 = vld [vmem:[%s24094_s3 + $0x340] sm:$0xff]  ;;  %v24177_v26 = vld [vmem:[#allocation24_spill] sm:$0xff] }
 0xc18   :  { %v12780_v45 = vmax.f32 %v17895_v25, -1.0  ;;  %v17901_v34 = vadd.f32 %v17898_v53, %v24173_v21  ;;  %v17942_v53 = vld [vmem:[%s24094_s3 + $0x348] sm:$0xff]  ;;  %v24178_v21 = vld [vmem:[#allocation9_spill] sm:$0xff] }
 0xc1a   :  { %v12917_v42 = vmin.f32 %v12780_v45, 0.5  ;;  %v12781_v63 = vmax.f32 %v17901_v34, -1.0  ;;  %v17931_v34 = vadd.f32 %v17930_v8, %v24178_v21 }
 0xc1b   :  { %v10718_v31 = vpop.f32.mrb[200].mxu1 }
 0xc1c   :  { %13054 = vst [vmem:[%s24094_s3 + $0x310] sm:$0xff] %v12917_v42  ;;  %v12918_v11 = vmin.f32 %v12781_v63, 0.5  ;;  %v17904_v50 = vadd.f32 %v17903_v3, %v10718_v31  ;;  %v16722_v5 = vpop.f32.mrb[201].mxu1 }
 0xc1d   :  { %v10721_v55 = vpop.f32.mrb[202].mxu1 }
 0xc1e   :  { %13055 = vst [vmem:[%s24094_s3 + $0x318] sm:$0xff] %v12918_v11  ;;  %v17907_v38 = vadd.f32 %v17904_v50, %v24174_v61  ;;  %v17910_v2 = vadd.f32 %v17909_v52, %v10721_v55  ;;  %v16723_v54 = vpop.f32.mrb[203].mxu1  ;;  %v24179_v11 = vld [vmem:[#allocation10_spill] sm:$0xff]  ;;  %v24180_v55 = vld [vmem:[#allocation25_spill] sm:$0xff] }
 0xc1f   :  { %v17943_v50 = vadd.f32 %v17942_v53, %v24179_v11 }
 0xc20   :  { %v12782_v56 = vmax.f32 %v17907_v38, -1.0  ;;  %v17913_v46 = vadd.f32 %v17910_v2, %v24175_v18  ;;  %v17954_v2 = vld [vmem:[%s24094_s3 + $0x350] sm:$0xff] }
 0xc22   :  { %v12919_v60 = vmin.f32 %v12782_v56, 0.5  ;;  %v12783_v49 = vmax.f32 %v17913_v46, -1.0  ;;  %v24181_v56 = vld [vmem:[#allocation26_spill] sm:$0xff]  ;;  %v17966_v46 = vld [vmem:[%s24094_s3 + $0x358] sm:$0xff] }
 0xc23   :  { %v10726_v44 = vpop.f32.mrb[204].mxu1 }
 0xc24   :  { %13056 = vst [vmem:[%s24094_s3 + $0x320] sm:$0xff] %v12919_v60  ;;  %v12920_v41 = vmin.f32 %v12783_v49, 0.5  ;;  %v17916_v40 = vadd.f32 %v17915_v19, %v10726_v44  ;;  %v16726_v47 = vpop.f32.mrb[205].mxu1  ;;  %v24182_v44 = vld [vmem:[#allocation11_spill] sm:$0xff] }
 0xc25   :  { %v10729_v37 = vpop.f32.mrb[206].mxu1  ;;  %v17955_v19 = vadd.f32 %v17954_v2, %v24182_v44  ;;  %v18002_v2 = vld [vmem:[%s24094_s3 + $0x370] sm:$0xff] }
 0xc26   :  { %13057 = vst [vmem:[%s24094_s3 + $0x328] sm:$0xff] %v12920_v41  ;;  %v17919_v23 = vadd.f32 %v17916_v40, %v24176_v1  ;;  %v17922_v33 = vadd.f32 %v17921_v7, %v10729_v37  ;;  %v16727_v35 = vpop.f32.mrb[207].mxu1  ;;  %v24183_v7 = vld [vmem:[#allocation12_spill] sm:$0xff] }
 0xc27   :  { %v17967_v1 = vadd.f32 %v17966_v46, %v24183_v7 }
 0xc28   :  { %v12784_v30 = vmax.f32 %v17919_v23, -1.0  ;;  %v17925_v25 = vadd.f32 %v17922_v33, %v24177_v26  ;;  %v24184_v33 = vld [vmem:[#allocation27_spill] sm:$0xff]  ;;  %v17978_v26 = vld [vmem:[%s24094_s3 + $0x360] sm:$0xff] }
 0xc2a   :  { %v12921_v51 = vmin.f32 %v12784_v30, 0.5  ;;  %v12785_v45 = vmax.f32 %v17925_v25, -1.0 }
 0xc2b   :  { %v10734_v42 = vpop.f32.mrb[100].mxu1 }
 0xc2c   :  { %13058 = vst [vmem:[%s24094_s3 + $0x330] sm:$0xff] %v12921_v51  ;;  %v12922_v63 = vmin.f32 %v12785_v45, 0.5  ;;  %v17934_v31 = vadd.f32 %v17931_v34, %v10734_v42  ;;  %v16730_v3 = vpop.f32.mrb[101].mxu1  ;;  %v17990_v51 = vld [vmem:[%s24094_s3 + $0x368] sm:$0xff]  ;;  %v24185_v34 = vld [vmem:[#allocation13_spill] sm:$0xff] }
 0xc2d   :  { %v10737_v5 = vpop.f32.mrb[102].mxu1  ;;  %v17979_v42 = vadd.f32 %v17978_v26, %v24185_v34  ;;  %v18038_v26 = vld [vmem:[%s24094_s3 + $0x388] sm:$0xff] }
 0xc2e   :  { %13059 = vst [vmem:[%s24094_s3 + $0x338] sm:$0xff] %v12922_v63  ;;  %v17937_v52 = vadd.f32 %v17934_v31, %v24180_v55  ;;  %v17946_v61 = vadd.f32 %v17943_v50, %v10737_v5  ;;  %v16731_v38 = vpop.f32.mrb[103].mxu1  ;;  %v24186_v50 = vld [vmem:[#allocation14_spill] sm:$0xff] }
 0xc2f   :  { %v17991_v5 = vadd.f32 %v17990_v51, %v24186_v50  ;;  %v24190_v51 = vld [vmem:[#allocation17_spill] sm:$0xff] }
 0xc30   :  { %v12786_v54 = vmax.f32 %v17937_v52, -1.0  ;;  %v17949_v18 = vadd.f32 %v17946_v61, %v24181_v56 }
 0xc32   :  { %v12923_v60 = vmin.f32 %v12786_v54, 0.5  ;;  %v12787_v49 = vmax.f32 %v17949_v18, -1.0  ;;  %v18014_v18 = vld [vmem:[%s24094_s3 + $0x378] sm:$0xff] }
 0xc33   :  { %v10742_v41 = vpop.f32.mrb[104].mxu1 }
 0xc34   :  { %13060 = vst [vmem:[%s24094_s3 + $0x340] sm:$0xff] %v12923_v60  ;;  %v12924_v40 = vmin.f32 %v12787_v49, 0.5  ;;  %v17958_v47 = vadd.f32 %v17955_v19, %v10742_v41  ;;  %v16734_v37 = vpop.f32.mrb[105].mxu1  ;;  %v24188_v49 = vld [vmem:[#allocation15_spill] sm:$0xff] }
 0xc35   :  { %v10745_v23 = vpop.f32.mrb[106].mxu1  ;;  %v18003_v44 = vadd.f32 %v18002_v2, %v24188_v49  ;;  %v24189_v37 = vld [vmem:[#allocation16_spill] sm:$0xff] }
 0xc36   :  { %13061 = vst [vmem:[%s24094_s3 + $0x348] sm:$0xff] %v12924_v40  ;;  %v17961_v35 = vadd.f32 %v17958_v47, %v24184_v33  ;;  %v17970_v8 = vadd.f32 %v17967_v1, %v10745_v23  ;;  %v16735_v30 = vpop.f32.mrb[107].mxu1  ;;  %v18015_v7 = vadd.f32 %v18014_v18, %v24189_v37  ;;  %v18053_v18 = vld [vmem:[%s24094_s3 + $0x398] sm:$0xff] }
 0xc38   :  { %v12788_v25 = vmax.f32 %v17961_v35, -1.0  ;;  %v17973_v53 = vadd.f32 %v17970_v8, %v23402_v12  ;;  %v24187_v12 = vld [vmem:[#allocation28_spill] sm:$0xff]  ;;  %v18026_v35 = vld [vmem:[%s24094_s3 + $0x380] sm:$0xff] }
 0xc3a   :  { %v12925_v45 = vmin.f32 %v12788_v25, 0.5  ;;  %v12789_v21 = vmax.f32 %v17973_v53, -1.0 }
 0xc3b   :  { %v10750_v63 = vpop.f32.mrb[108].mxu1 }
 0xc3c   :  { %13062 = vst [vmem:[%s24094_s3 + $0x350] sm:$0xff] %v12925_v45  ;;  %v12926_v31 = vmin.f32 %v12789_v21, 0.5  ;;  %v17982_v3 = vadd.f32 %v17979_v42, %v10750_v63  ;;  %v16738_v11 = vpop.f32.mrb[109].mxu1  ;;  %v18027_v45 = vadd.f32 %v18026_v35, %v24190_v51  ;;  %v24191_v63 = vld [vmem:[#allocation18_spill] sm:$0xff] }
 0xc3d   :  { %v10753_v55 = vpop.f32.mrb[110].mxu1 }
 0xc3e   :  { %13063 = vst [vmem:[%s24094_s3 + $0x358] sm:$0xff] %v12926_v31  ;;  %v17985_v52 = vadd.f32 %v17982_v3, %v24187_v12  ;;  %v17994_v61 = vadd.f32 %v17991_v5, %v10753_v55  ;;  %v16739_v38 = vpop.f32.mrb[111].mxu1  ;;  %v18039_v31 = vadd.f32 %v18038_v26, %v24191_v63 }
 0xc3f   :  { %v18047_v38 = vld [vmem:[%s24094_s3 + $0x390] sm:$0xff] }
 0xc40   :  { %v12790_v54 = vmax.f32 %v17985_v52, -1.0  ;;  %v17997_v56 = vadd.f32 %v17994_v61, %v23422_v32 }
 0xc42   :  { %v12927_v46 = vmin.f32 %v12790_v54, 0.5  ;;  %v12791_v60 = vmax.f32 %v17997_v56, -1.0 }
 0xc43   :  { %v10758_v19 = vpop.f32.mrb[112].mxu1 }
 0xc44   :  { %13064 = vst [vmem:[%s24094_s3 + $0x360] sm:$0xff] %v12927_v46  ;;  %v12928_v41 = vmin.f32 %v12791_v60, 0.5  ;;  %v18006_v40 = vadd.f32 %v18003_v44, %v10758_v19  ;;  %v16742_v47 = vpop.f32.mrb[113].mxu1 }
 0xc45   :  { %v10761_v1 = vpop.f32.mrb[114].mxu1  ;;  %v18059_v47 = vld [vmem:[%s24094_s3 + $0x3a0] sm:$0xff] }
 0xc46   :  { %13065 = vst [vmem:[%s24094_s3 + $0x368] sm:$0xff] %v12928_v41  ;;  %v18009_v32 = vadd.f32 %v18006_v40, %v23436_v48  ;;  %v18018_v23 = vadd.f32 %v18015_v7, %v10761_v1  ;;  %v16743_v33 = vpop.f32.mrb[115].mxu1 }
 0xc48   :  { %v12792_v8 = vmax.f32 %v18009_v32, -1.0  ;;  %v18021_v30 = vadd.f32 %v18018_v23, %v23442_v22  ;;  %v18065_v32 = vld [vmem:[%s24094_s3 + $0x3a8] sm:$0xff] }
 0xc4a   :  { %v12929_v25 = vmin.f32 %v12792_v8, 0.5  ;;  %v12793_v53 = vmax.f32 %v18021_v30, -1.0 }
 0xc4b   :  { %v10766_v21 = vpop.f32.mrb[116].mxu1 }
 0xc4c   :  { %13066 = vst [vmem:[%s24094_s3 + $0x370] sm:$0xff] %v12929_v25  ;;  %v12930_v48 = vmin.f32 %v12793_v53, 0.5  ;;  %v18030_v34 = vadd.f32 %v18027_v45, %v10766_v21  ;;  %v16746_v42 = vpop.f32.mrb[117].mxu1  ;;  %v18071_v53 = vld [vmem:[%s24094_s3 + $0x3b0] sm:$0xff] }
 0xc4d   :  { %v10769_v3 = vpop.f32.mrb[118].mxu1 }
 0xc4e   :  { %13067 = vst [vmem:[%s24094_s3 + $0x378] sm:$0xff] %v12930_v48  ;;  %v18033_v22 = vadd.f32 %v18030_v34, %v23456_v43  ;;  %v18042_v11 = vadd.f32 %v18039_v31, %v10769_v3  ;;  %v16747_v50 = vpop.f32.mrb[119].mxu1  ;;  %v18077_v48 = vld [vmem:[%s24094_s3 + $0x3b8] sm:$0xff] }
 0xc4f   :  { %v18083_v50 = vld [vmem:[%s24094_s3 + $0x3c0] sm:$0xff] }
 0xc50   :  { %v12794_v5 = vmax.f32 %v18033_v22, -1.0  ;;  %v18045_v55 = vadd.f32 %v18042_v11, %v23462_v29 }
 0xc52   :  { %v12931_v12 = vmin.f32 %v12794_v5, 0.5  ;;  %v12795_v52 = vmax.f32 %v18045_v55, -1.0 }
 0xc53   :  { %v10774_v61 = vpop.f32.mrb[228].mxu1 }
 0xc54   :  { %13068 = vst [vmem:[%s24094_s3 + $0x380] sm:$0xff] %v12931_v12  ;;  %v12932_v2 = vmin.f32 %v12795_v52, 0.5  ;;  %v18048_v54 = vadd.f32 %v18047_v38, %v10774_v61  ;;  %v16750_v56 = vpop.f32.mrb[229].mxu1  ;;  %v18089_v52 = vld [vmem:[%s24094_s3 + $0x3c8] sm:$0xff] }
 0xc55   :  { %v10777_v43 = vpop.f32.mrb[230].mxu1 }
 0xc56   :  { %13069 = vst [vmem:[%s24094_s3 + $0x388] sm:$0xff] %v12932_v2  ;;  %v18051_v29 = vadd.f32 %v18048_v54, %v23476_v17  ;;  %v18054_v46 = vadd.f32 %v18053_v18, %v10777_v43  ;;  %v16751_v60 = vpop.f32.mrb[231].mxu1 }
 0xc58   :  { %v12796_v49 = vmax.f32 %v18051_v29, -1.0  ;;  %v18057_v44 = vadd.f32 %v18054_v46, %v23482_v57  ;;  %v18095_v29 = vld [vmem:[%s24094_s3 + $0x3d0] sm:$0xff] }
 0xc5a   :  { %v12933_v19 = vmin.f32 %v12796_v49, 0.5  ;;  %v12797_v41 = vmax.f32 %v18057_v44, -1.0  ;;  %v18101_v44 = vld [vmem:[%s24094_s3 + $0x3d8] sm:$0xff] }
 0xc5b   :  { %v10782_v40 = vpop.f32.mrb[232].mxu1 }
 0xc5c   :  { %13070 = vst [vmem:[%s24094_s3 + $0x390] sm:$0xff] %v12933_v19  ;;  %v12934_v37 = vmin.f32 %v12797_v41, 0.5  ;;  %v18060_v7 = vadd.f32 %v18059_v47, %v10782_v40  ;;  %v16754_v1 = vpop.f32.mrb[233].mxu1 }
 0xc5d   :  { %v10785_v17 = vpop.f32.mrb[234].mxu1 }
 0xc5e   :  { %13071 = vst [vmem:[%s24094_s3 + $0x398] sm:$0xff] %v12934_v37  ;;  %v18063_v57 = vadd.f32 %v18060_v7, %v23496_v4  ;;  %v18066_v23 = vadd.f32 %v18065_v32, %v10785_v17  ;;  %v16755_v33 = vpop.f32.mrb[235].mxu1  ;;  %v18107_v17 = vld [vmem:[%s24094_s3 + $0x3e0] sm:$0xff] }
 0xc5f   :  { %v18113_v33 = vld [vmem:[%s24094_s3 + $0x3e8] sm:$0xff] }
 0xc60   :  { %v12798_v35 = vmax.f32 %v18063_v57, -1.0  ;;  %v18069_v8 = vadd.f32 %v18066_v23, %v23502_v6 }
 0xc62   :  { %v12935_v30 = vmin.f32 %v12798_v35, 0.5  ;;  %v12799_v26 = vmax.f32 %v18069_v8, -1.0 }
 0xc63   :  { %v10790_v25 = vpop.f32.mrb[236].mxu1 }
 0xc64   :  { %13072 = vst [vmem:[%s24094_s3 + $0x3a0] sm:$0xff] %v12935_v30  ;;  %v12936_v51 = vmin.f32 %v12799_v26, 0.5  ;;  %v18072_v45 = vadd.f32 %v18071_v53, %v10790_v25  ;;  %v16758_v21 = vpop.f32.mrb[237].mxu1 }
 0xc65   :  { %v10793_v4 = vpop.f32.mrb[238].mxu1 }
 0xc66   :  { %13073 = vst [vmem:[%s24094_s3 + $0x3a8] sm:$0xff] %v12936_v51  ;;  %v18075_v6 = vadd.f32 %v18072_v45, %v23516_v16  ;;  %v18078_v34 = vadd.f32 %v18077_v48, %v10793_v4  ;;  %v16759_v42 = vpop.f32.mrb[239].mxu1  ;;  %v18119_v45 = vld [vmem:[%s24094_s3 + $0x3f0] sm:$0xff] }
 0xc68   :  { %v12800_v63 = vmax.f32 %v18075_v6, -1.0  ;;  %v18081_v31 = vadd.f32 %v18078_v34, %v23522_v13  ;;  %v18125_v6 = vld [vmem:[%s24094_s3 + $0x3f8] sm:$0xff] }
 0xc6a   :  { %v12937_v3 = vmin.f32 %v12800_v63, 0.5  ;;  %v12801_v22 = vmax.f32 %v18081_v31, -1.0 }
 0xc6b   :  { %v10798_v11 = vpop.f32.mrb[240].mxu1 }
 0xc6c   :  { %13074 = vst [vmem:[%s24094_s3 + $0x3b0] sm:$0xff] %v12937_v3  ;;  %v12938_v5 = vmin.f32 %v12801_v22, 0.5  ;;  %v18084_v55 = vadd.f32 %v18083_v50, %v10798_v11  ;;  %v16762_v12 = vpop.f32.mrb[241].mxu1  ;;  %v18131_v50 = vld [vmem:[%s24094_s3 + $0x400] sm:$0xff] }
 0xc6d   :  { %v10801_v16 = vpop.f32.mrb[242].mxu1 }
 0xc6e   :  { %13075 = vst [vmem:[%s24094_s3 + $0x3b8] sm:$0xff] %v12938_v5  ;;  %v18087_v13 = vadd.f32 %v18084_v55, %v23536_v62  ;;  %v18090_v61 = vadd.f32 %v18089_v52, %v10801_v16  ;;  %v16763_v38 = vpop.f32.mrb[243].mxu1  ;;  %v18137_v16 = vld [vmem:[%s24094_s3 + $0x408] sm:$0xff] }
 0xc70   :  { %v12802_v2 = vmax.f32 %v18087_v13, -1.0  ;;  %v18093_v54 = vadd.f32 %v18090_v61, %v23542_v9 }
 0xc72   :  { %v12939_v56 = vmin.f32 %v12802_v2, 0.5  ;;  %v12803_v43 = vmax.f32 %v18093_v54, -1.0 }
 0xc73   :  { %v10806_v18 = vpop.f32.mrb[244].mxu1 }
 0xc74   :  { %13076 = vst [vmem:[%s24094_s3 + $0x3c0] sm:$0xff] %v12939_v56  ;;  %v12940_v46 = vmin.f32 %v12803_v43, 0.5  ;;  %v18096_v60 = vadd.f32 %v18095_v29, %v10806_v18  ;;  %v16766_v49 = vpop.f32.mrb[245].mxu1  ;;  %v18143_v43 = vld [vmem:[%s24094_s3 + $0x410] sm:$0xff] }
 0xc75   :  { %v10809_v62 = vpop.f32.mrb[246].mxu1 }
 0xc76   :  { %13077 = vst [vmem:[%s24094_s3 + $0x3c8] sm:$0xff] %v12940_v46  ;;  %v18099_v9 = vadd.f32 %v18096_v60, %v23556_v58  ;;  %v18102_v19 = vadd.f32 %v18101_v44, %v10809_v62  ;;  %v16767_v41 = vpop.f32.mrb[247].mxu1  ;;  %v18149_v60 = vld [vmem:[%s24094_s3 + $0x418] sm:$0xff] }
 0xc78   :  { %v12804_v40 = vmax.f32 %v18099_v9, -1.0  ;;  %v18105_v47 = vadd.f32 %v18102_v19, %v23562_v24 }
 0xc7a   :  { %v12941_v37 = vmin.f32 %v12804_v40, 0.5  ;;  %v12805_v7 = vmax.f32 %v18105_v47, -1.0  ;;  %v18155_v47 = vld [vmem:[%s24094_s3 + $0x420] sm:$0xff] }
 0xc7b   :  { %v10814_v1 = vpop.f32.mrb[248].mxu1 }
 0xc7c   :  { %13078 = vst [vmem:[%s24094_s3 + $0x3d0] sm:$0xff] %v12941_v37  ;;  %v12942_v32 = vmin.f32 %v12805_v7, 0.5  ;;  %v18108_v57 = vadd.f32 %v18107_v17, %v10814_v1  ;;  %v16770_v23 = vpop.f32.mrb[249].mxu1  ;;  %v18161_v17 = vld [vmem:[%s24094_s3 + $0x428] sm:$0xff] }
 0xc7d   :  { %v10817_v58 = vpop.f32.mrb[250].mxu1 }
 0xc7e   :  { %13079 = vst [vmem:[%s24094_s3 + $0x3d8] sm:$0xff] %v12942_v32  ;;  %v18111_v24 = vadd.f32 %v18108_v57, %v23576_v27  ;;  %v18114_v35 = vadd.f32 %v18113_v33, %v10817_v58  ;;  %v16771_v8 = vpop.f32.mrb[251].mxu1 }
 0xc80   :  { %v12806_v30 = vmax.f32 %v18111_v24, -1.0  ;;  %v18117_v26 = vadd.f32 %v18114_v35, %v23582_v28 }
 0xc82   :  { %v12943_v25 = vmin.f32 %v12806_v30, 0.5  ;;  %v12807_v53 = vmax.f32 %v18117_v26, -1.0 }
 0xc83   :  { %v10822_v51 = vpop.f32.mrb[252].mxu1 }
 0xc84   :  { %13080 = vst [vmem:[%s24094_s3 + $0x3e0] sm:$0xff] %v12943_v25  ;;  %v12944_v21 = vmin.f32 %v12807_v53, 0.5  ;;  %v18120_v4 = vadd.f32 %v18119_v45, %v10822_v51  ;;  %v16774_v48 = vpop.f32.mrb[253].mxu1 }
 0xc85   :  { %v10825_v27 = vpop.f32.mrb[254].mxu1 }
 0xc86   :  { %13081 = vst [vmem:[%s24094_s3 + $0x3e8] sm:$0xff] %v12944_v21  ;;  %v18123_v28 = vadd.f32 %v18120_v4, %v23596_v14  ;;  %v18126_v34 = vadd.f32 %v18125_v6, %v10825_v27  ;;  %v16775_v42 = vpop.f32.mrb[255].mxu1  ;;  %v18182_v6 = vld [vmem:[%s24094_s3 + $0x440] sm:$0xff] }
 0xc88   :  { %v12808_v63 = vmax.f32 %v18123_v28, -1.0  ;;  %v18129_v31 = vadd.f32 %v18126_v34, %v23602_v0 }
 0xc8a   :  { %v12945_v3 = vmin.f32 %v12808_v63, 0.5  ;;  %v12809_v22 = vmax.f32 %v18129_v31, -1.0 }
 0xc8b   :  { %v10830_v11 = vpop.f32.mrb[148].mxu1 }
 0xc8c   :  { %13082 = vst [vmem:[%s24094_s3 + $0x3f0] sm:$0xff] %v12945_v3  ;;  %v12946_v5 = vmin.f32 %v12809_v22, 0.5  ;;  %v18132_v55 = vadd.f32 %v18131_v50, %v10830_v11  ;;  %v16778_v12 = vpop.f32.mrb[149].mxu1 }
 0xc8d   :  { %v10833_v14 = vpop.f32.mrb[150].mxu1 }
 0xc8e   :  { %13083 = vst [vmem:[%s24094_s3 + $0x3f8] sm:$0xff] %v12946_v5  ;;  %v18135_v0 = vadd.f32 %v18132_v55, %v23618_v36  ;;  %v18138_v52 = vadd.f32 %v18137_v16, %v10833_v14  ;;  %v16779_v13 = vpop.f32.mrb[151].mxu1 }
 0xc90   :  { %v12810_v61 = vmax.f32 %v18135_v0, -1.0  ;;  %v18141_v38 = vadd.f32 %v18138_v52, %v23624_v20 }
 0xc92   :  { %v12947_v2 = vmin.f32 %v12810_v61, 0.5  ;;  %v12811_v54 = vmax.f32 %v18141_v38, -1.0 }
 0xc93   :  { %v10838_v56 = vpop.f32.mrb[152].mxu1 }
 0xc94   :  { %13084 = vst [vmem:[%s24094_s3 + $0x400] sm:$0xff] %v12947_v2  ;;  %v12948_v18 = vmin.f32 %v12811_v54, 0.5  ;;  %v18144_v29 = vadd.f32 %v18143_v43, %v10838_v56  ;;  %v16782_v46 = vpop.f32.mrb[153].mxu1 }
 0xc95   :  { %v10841_v36 = vpop.f32.mrb[154].mxu1 }
 0xc96   :  { %13085 = vst [vmem:[%s24094_s3 + $0x408] sm:$0xff] %v12948_v18  ;;  %v18147_v20 = vadd.f32 %v18144_v29, %v23640_v15  ;;  %v18150_v49 = vadd.f32 %v18149_v60, %v10841_v36  ;;  %v16783_v62 = vpop.f32.mrb[155].mxu1 }
 0xc98   :  { %v12812_v44 = vmax.f32 %v18147_v20, -1.0  ;;  %v18153_v9 = vadd.f32 %v18150_v49, %v23646_v10 }
 0xc9a   :  { %v12949_v19 = vmin.f32 %v12812_v44, 0.5  ;;  %v12813_v41 = vmax.f32 %v18153_v9, -1.0 }
 0xc9b   :  { %v10846_v40 = vpop.f32.mrb[156].mxu1 }
 0xc9c   :  { %13086 = vst [vmem:[%s24094_s3 + $0x410] sm:$0xff] %v12949_v19  ;;  %v12950_v37 = vmin.f32 %v12813_v41, 0.5  ;;  %v18156_v7 = vadd.f32 %v18155_v47, %v10846_v40  ;;  %v16786_v1 = vpop.f32.mrb[157].mxu1 }
 0xc9d   :  { %v10849_v15 = vpop.f32.mrb[158].mxu1 }
 0xc9e   :  { %13087 = vst [vmem:[%s24094_s3 + $0x418] sm:$0xff] %v12950_v37  ;;  %v18159_v10 = vadd.f32 %v18156_v7, %v23662_v39  ;;  %v18162_v32 = vadd.f32 %v18161_v17, %v10849_v15  ;;  %v16787_v57 = vpop.f32.mrb[159].mxu1  ;;  %v18170_v39 = vld [vmem:[%s24094_s3 + $0x430] sm:$0xff] }
 0xca0   :  { %v12814_v23 = vmax.f32 %v18159_v10, -1.0  ;;  %v18165_v58 = vadd.f32 %v18162_v32, %v23668_v59  ;;  %v18176_v59 = vld [vmem:[%s24094_s3 + $0x438] sm:$0xff] }
 0xca2   :  { %v12951_v33 = vmin.f32 %v12814_v23, 0.5  ;;  %v12815_v24 = vmax.f32 %v18165_v58, -1.0 }
 0xca4   :  { %13088 = vst [vmem:[%s24094_s3 + $0x420] sm:$0xff] %v12951_v33  ;;  %v12952_v35 = vmin.f32 %v12815_v24, 0.5 }
 0xca6   :  { %13089 = vst [vmem:[%s24094_s3 + $0x428] sm:$0xff] %v12952_v35 }
 0xcb3   :  { %v12120_v8 = vpop.f32.mrb[52].mxu1 }
 0xcb4   :  { %v18171_v30 = vadd.f32 %v18170_v39, %v12120_v8  ;;  %v17082_v26 = vpop.f32.mrb[53].mxu1 }
 0xcb5   :  { %v12123_v25 = vpop.f32.mrb[54].mxu1 }
 0xcb6   :  { %v12816_v53 = vmax.f32 %v18171_v30, -1.0  ;;  %v18177_v51 = vadd.f32 %v18176_v59, %v12123_v25  ;;  %v17083_v45 = vpop.f32.mrb[55].mxu1 }
 0xcb8   :  { %v12953_v21 = vmin.f32 %v12816_v53, 0.5  ;;  %v12817_v4 = vmax.f32 %v18177_v51, -1.0 }
 0xcba   :  { %13090 = vst [vmem:[%s24094_s3 + $0x430] sm:$0xff] %v12953_v21  ;;  %v12954_v48 = vmin.f32 %v12817_v4, 0.5 }
 0xcbb   :  { %v12128_v27 = vpop.f32.mrb[56].mxu1 }
 0xcbc   :  { %13091 = vst [vmem:[%s24094_s3 + $0x438] sm:$0xff] %v12954_v48  ;;  %v18183_v28 = vadd.f32 %v18182_v6, %v12128_v27  ;;  %v17086_v34 = vpop.f32.mrb[57].mxu1 }
 0xcbd   :  { %v12131_v42 = vpop.f32.mrb[58].mxu1 }
 0xcbe   :  { %v12818_v63 = vmax.f32 %v18183_v28, -1.0  ;;  %v17087_v31 = vpop.f32.mrb[59].mxu1 }
 0xcc0   :  { %v12955_v3 = vmin.f32 %v12818_v63, 0.5 }
 0xcc2   :  { %13092 = vst [vmem:[%s24094_s3 + $0x440] sm:$0xff] %v12955_v3 }

</bundles_post_ra>
